<compile_context>
chip_gen: v6e
topology: v6e:2x2x1
jax: 0.10.0
libtpu: 0.0.40
codegen_flags: <defaults>
</compile_context>

<pallas_src>
import functools

import jax
import jax.numpy as jnp
from jax import lax
from jax.experimental import pallas as pl
from jax.experimental.pallas import tpu as pltpu

BN_EPS = 1e-5
EXPANSION = 4


def fold_bn(gamma, beta, mean, var, eps=BN_EPS):
    scale = gamma / jnp.sqrt(var + eps)
    return scale, beta - mean * scale


# ----------------------------------------------------------------------------
# Fused bottleneck kernel (Bt batch images per grid step)
# ----------------------------------------------------------------------------
def _make_bottleneck_kernel(*, stride, has_shortcut, H, W, Ho, Wo):
    bf16 = jnp.bfloat16

    def kernel(*refs):
        if has_shortcut:
            (x_ref, w1_ref, b1_ref, w2_ref, b2_ref, w3_ref, ws_ref, bc_ref,
             o_ref, p1_ref, acc_ref) = refs
        else:
            (x_ref, w1_ref, b1_ref, w2_ref, b2_ref, w3_ref, bc_ref,
             o_ref, p1_ref, acc_ref) = refs
            ws_ref = None

        bt = x_ref.shape[0]
        cin = x_ref.shape[-1]
        planes = w1_ref.shape[-1]
        cp = w3_ref.shape[-1]
        m1 = bt * H * W
        m2 = bt * Ho * Wo

        # --- conv1 (1x1) + folded BN1 + ReLU (bf16 MXU operands, f32 accumulate) ---
        x2 = x_ref[...].reshape(m1, cin)                                   # bf16
        h1 = jnp.dot(x2, w1_ref[...], preferred_element_type=jnp.float32)
        h1 = jnp.maximum(h1 + b1_ref[...], 0.0)

        # --- halo scratch: zero ONLY the 1-px border each step, write interior ----
        p1_ref[:, 0:1, :, :] = jnp.zeros((bt, 1, W + 2, planes), jnp.float32)
        p1_ref[:, H + 1:H + 2, :, :] = jnp.zeros((bt, 1, W + 2, planes), jnp.float32)
        p1_ref[:, :, 0:1, :] = jnp.zeros((bt, H + 2, 1, planes), jnp.float32)
        p1_ref[:, :, W + 1:W + 2, :] = jnp.zeros((bt, H + 2, 1, planes), jnp.float32)
        p1_ref[:, 1:H + 1, 1:W + 1, :] = h1.reshape(bt, H, W, planes)

        # --- conv2 (3x3, stride) as 9 accumulating MXU matmuls; taps read from ref --
        for kh in range(3):
            for kw in range(3):
                if stride == 1:
                    tap = p1_ref[:, kh:kh + Ho, kw:kw + Wo, :]
                else:
                    # TODO(synk): strided ref reads for stride>1 are untested below.
                    tap = p1_ref[:, pl.ds(kh, Ho, stride), pl.ds(kw, Wo, stride), :]
                contrib = jnp.dot(tap.astype(bf16).reshape(m2, planes),
                                  w2_ref[kh * 3 + kw],
                                  preferred_element_type=jnp.float32)
                if kh == 0 and kw == 0:
                    acc_ref[...] = contrib
                else:
                    acc_ref[...] += contrib
        h2 = jnp.maximum(acc_ref[...] + b2_ref[...], 0.0).astype(bf16)

        # --- conv3 (1x1 expansion) + shortcut + combined bias + final ReLU ---------
        h3 = jnp.dot(h2, w3_ref[...], preferred_element_type=jnp.float32)
        if has_shortcut:
            if stride == 1:
                xs = x2
            else:
                xs = x_ref[:, pl.ds(0, Ho, stride), pl.ds(0, Wo, stride), :]
                xs = xs.reshape(m2, cin)
            h3 = h3 + jnp.dot(xs, ws_ref[...], preferred_element_type=jnp.float32)
        else:
            # identity shortcut: x was lane-padded to cp in the wrapper — direct add.
            h3 = h3 + x2.astype(jnp.float32)

        out = jnp.maximum(h3 + bc_ref[...], 0.0)
        o_ref[...] = out.reshape(bt, Ho * Wo, cp).astype(o_ref.dtype)

    return kernel


# ----------------------------------------------------------------------------
# Wrapper (NCHW boundary, matches the PyTorch module)
# ----------------------------------------------------------------------------
def bottleneck_forward(x_nchw, params, *, stride=1):
    N, Cin, H, W = x_nchw.shape
    planes = params["w1"].shape[0]
    cexp = params["w3"].shape[0]                       # EXPANSION * planes
    Ho = (H + 2 - 3) // stride + 1
    Wo = (W + 2 - 3) // stride + 1
    CP = ((cexp + 127) // 128) * 128                   # lane-dense output width
    pc = CP - cexp
    f32, bf16 = jnp.float32, jnp.bfloat16

    has_shortcut = (stride != 1) or (Cin != cexp)

    # --- fold BN scales into conv weights (exact: (X W) diag(s) = X (W diag(s))) ---
    s1, t1 = fold_bn(*params["bn1"])
    s2, t2 = fold_bn(*params["bn2"])
    s3, t3 = fold_bn(*params["bn3"])

    w1 = params["w1"].reshape(planes, Cin).T * s1[None, :]                    # (Cin, planes)
    w2 = (jnp.transpose(params["w2"], (2, 3, 1, 0)) * s2[None, None, None, :]
          ).reshape(9, planes, planes)                                        # (9, in, out)
    w3 = jnp.pad(params["w3"].reshape(cexp, planes).T * s3[None, :],
                 ((0, 0), (0, pc)))                                           # (planes, CP)

    x = jnp.transpose(x_nchw, (0, 2, 3, 1))                                   # NHWC
    if has_shortcut:
        ss, ts = fold_bn(*params["bns"])
        ws = jnp.pad(params["ws"].reshape(cexp, Cin).T * ss[None, :],
                     ((0, 0), (0, pc)))                                       # (Cin, CP)
        bc = jnp.pad((t3 + ts).reshape(1, -1), ((0, 0), (0, pc)))
        cin_eff = Cin
    else:
        # identity shortcut: lane-pad x (and w1's rows) so the residual add is on the
        # CP-wide layout with no eye-matmul.  pc == 0 for real ResNet identity blocks.
        x = jnp.pad(x, ((0, 0), (0, 0), (0, 0), (0, pc)))
        w1 = jnp.pad(w1, ((0, pc), (0, 0)))
        bc = jnp.pad(t3.reshape(1, -1), ((0, 0), (0, pc)))
        cin_eff = CP

    x = x.astype(bf16)
    w1, w2, w3 = w1.astype(bf16), w2.astype(bf16), w3.astype(bf16)
    b1 = t1.reshape(1, -1).astype(f32)
    b2 = t2.reshape(1, -1).astype(f32)
    bc = bc.astype(f32)

    # --- batch-block size: amortize per-grid-step overhead at small shapes ---------
    per_img = (H * W * cin_eff * 2 + Ho * Wo * CP * 4
               + (H + 2) * (W + 2) * planes * 4 + Ho * Wo * planes * 4)
    Bt = max(1, min(N, (2 << 20) // max(per_img, 1)))
    while N % Bt:
        Bt -= 1
    NB = N // Bt

    inputs = [x, w1, b1, w2, b2, w3]
    in_specs = [
        pl.BlockSpec((Bt, H, W, cin_eff), lambda n: (n, 0, 0, 0)),
        pl.BlockSpec((cin_eff, planes), lambda n: (0, 0)),
        pl.BlockSpec((1, planes), lambda n: (0, 0)),
        pl.BlockSpec((9, planes, planes), lambda n: (0, 0, 0)),
        pl.BlockSpec((1, planes), lambda n: (0, 0)),
        pl.BlockSpec((planes, CP), lambda n: (0, 0)),
    ]
    if has_shortcut:
        inputs.append(ws.astype(bf16))
        in_specs.append(pl.BlockSpec((Cin, CP), lambda n: (0, 0)))
    inputs.append(bc)
    in_specs.append(pl.BlockSpec((1, CP), lambda n: (0, 0)))

    kernel = _make_bottleneck_kernel(stride=stride, has_shortcut=has_shortcut,
                                     H=H, W=W, Ho=Ho, Wo=Wo)

    weight_bytes = 2 * (w1.size + w2.size + w3.size) + 4 * CP \
        + (2 * Cin * CP if has_shortcut else 0)
    flops = 2 * N * (H * W * cin_eff * planes
                     + Ho * Wo * 9 * planes * planes
                     + Ho * Wo * planes * CP
                     + (Ho * Wo * Cin * CP if has_shortcut else 0))
    bytes_accessed = 2 * N * H * W * cin_eff + 4 * N * Ho * Wo * CP + weight_bytes

    # --- scoped-VMEM sizing: double-buffered blocks + scratch, capped for v7x ------
    block_bytes = 2 * (Bt * H * W * cin_eff * 2 + Bt * Ho * Wo * CP * 4 + weight_bytes)
    scratch_bytes = Bt * (H + 2) * (W + 2) * planes * 4 + Bt * Ho * Wo * planes * 4
    try:
        cap = int(pltpu.get_tpu_info().vmem_capacity_bytes * 3 // 4)
    except Exception:
        cap = 48 << 20
    vmem_limit = int(min(max(2 * (block_bytes + scratch_bytes), 32 << 20), cap))

    out = pl.pallas_call(
        kernel,
        out_shape=jax.ShapeDtypeStruct((N, Ho * Wo, CP), f32),
        grid=(NB,),
        in_specs=in_specs,
        out_specs=pl.BlockSpec((Bt, Ho * Wo, CP), lambda n: (n, 0, 0)),
        scratch_shapes=[
            pltpu.VMEM((Bt, H + 2, W + 2, planes), f32),   # conv1 output + 1-px halo
            pltpu.VMEM((Bt * Ho * Wo, planes), f32),       # conv2 accumulator
        ],
        compiler_params=pltpu.CompilerParams(
            dimension_semantics=("parallel",),
            vmem_limit_bytes=vmem_limit),
        cost_estimate=pl.CostEstimate(flops=flops, transcendentals=0,
                                      bytes_accessed=bytes_accessed),
    )(*inputs)

    out = out[:, :, :cexp].reshape(N, Ho, Wo, cexp)        # drop pad lanes
    return jnp.transpose(out, (0, 3, 1, 2))                # NHWC -> NCHW boundary


# ----------------------------------------------------------------------------
# Pure-JAX reference (f32, HIGHEST precision) for validation
# ----------------------------------------------------------------------------
def _ref_conv(x_nchw, w_oihw, stride, pad):
    return lax.conv_general_dilated(
        x_nchw, w_oihw, (stride, stride), [(pad, pad), (pad, pad)],
        dimension_numbers=("NCHW", "OIHW", "NCHW"),
        precision=lax.Precision.HIGHEST)


def ref_forward(x, params, *, stride=1):
    def bn(y, p):
        s, b = fold_bn(*p)
        return y * s[None, :, None, None] + b[None, :, None, None]

    cexp = params["w3"].shape[0]
    out = jax.nn.relu(bn(_ref_conv(x, params["w1"], 1, 0), params["bn1"]))
    out = jax.nn.relu(bn(_ref_conv(out, params["w2"], stride, 1), params["bn2"]))
    out = bn(_ref_conv(out, params["w3"], 1, 0), params["bn3"])
    if stride != 1 or x.shape[1] != cexp:
        sc = bn(_ref_conv(x, params["ws"], stride, 0), params["bns"])
    else:
        sc = x
    return jax.nn.relu(out + sc)


# ----------------------------------------------------------------------------
if __name__ == "__main__":
    def bn_params(k, c):
        k0, k1, k2, k3 = jax.random.split(k, 4)
        return (jax.random.uniform(k0, (c,), minval=0.5, maxval=1.5),   # gamma
                jax.random.normal(k1, (c,)) * 0.1,                      # beta
                jax.random.normal(k2, (c,)) * 0.1,                      # running_mean
                jax.random.uniform(k3, (c,), minval=0.5, maxval=1.5))   # running_var

    def make_params(key, cin, planes, with_shortcut):
        cexp = EXPANSION * planes
        ks = jax.random.split(key, 8)
        p = {
            "w1": jax.random.normal(ks[0], (planes, cin, 1, 1), jnp.float32) * 0.3,
            "w2": jax.random.normal(ks[1], (planes, planes, 3, 3), jnp.float32) * 0.2,
            "w3": jax.random.normal(ks[2], (cexp, planes, 1, 1), jnp.float32) * 0.3,
            "bn1": bn_params(ks[3], planes),
            "bn2": bn_params(ks[4], planes),
            "bn3": bn_params(ks[5], cexp),
        }
        if with_shortcut:
            p["ws"] = jax.random.normal(ks[6], (cexp, cin, 1, 1), jnp.float32) * 0.3
            p["bns"] = bn_params(ks[7], cexp)
        return p

    def check(key, n, cin, h, w, planes, stride):
        cexp = EXPANSION * planes
        kx, kp = jax.random.split(key)
        with_sc = (stride != 1) or (cin != cexp)
        x = jax.random.normal(kx, (n, cin, h, w), jnp.float32)
        params = make_params(kp, cin, planes, with_sc)

        fwd = jax.jit(functools.partial(bottleneck_forward, stride=stride))
        out = jax.block_until_ready(fwd(x, params))
        ref = jax.block_until_ready(ref_forward(x, params, stride=stride))

        ho = (h + 2 - 3) // stride + 1
        wo = (w + 2 - 3) // stride + 1
        assert out.shape == (n, cexp, ho, wo), out.shape
        assert out.dtype == jnp.float32
        assert bool(jnp.all(out >= 0.0))                  # final ReLU
        # bf16 MXU operands (f32 accumulate) vs f32-HIGHEST reference -> ~1e-2 class error
        assert bool(jnp.allclose(out, ref, atol=5e-2, rtol=5e-2)), \
            f"max abs err {float(jnp.max(jnp.abs(out - ref)))}"

    key = jax.random.PRNGKey(0)
    k1, k2 = jax.random.split(key)
    check(k1, n=2, cin=4, h=16, w=16, planes=8, stride=1)    # projection-conv shortcut
    check(k2, n=2, cin=32, h=8, w=8, planes=8, stride=1)     # identity shortcut path

    print("KERNEL_OK")
</pallas_src>

<mosaic_0001>
module attributes {stable_mosaic.version = 11 : i64} {
  func.func @kernel(%arg0: i32, %arg1: memref<2x16x16x4xbf16, #tpu.memory_space<vmem>>, %arg2: memref<4x8xbf16, #tpu.memory_space<vmem>>, %arg3: memref<1x8xf32, #tpu.memory_space<vmem>>, %arg4: memref<9x8x8xbf16, #tpu.memory_space<vmem>>, %arg5: memref<1x8xf32, #tpu.memory_space<vmem>>, %arg6: memref<8x128xbf16, #tpu.memory_space<vmem>>, %arg7: memref<4x128xbf16, #tpu.memory_space<vmem>>, %arg8: memref<1x128xf32, #tpu.memory_space<vmem>>, %arg9: memref<2x256x128xf32, #tpu.memory_space<vmem>>, %arg10: memref<2x18x18x8xf32, #tpu.memory_space<vmem>>, %arg11: memref<512x8xf32, #tpu.memory_space<vmem>>) attributes {dimension_semantics = [#tpu.dimension_semantics<parallel>], iteration_bounds = array<i64: 1>, scalar_prefetch = 0 : i64, scratch_operands = 2 : i64, tpu.core_type = #tpu.core_type<tc>, window_params = [{transform_indices = @transform_0, window_bounds = array<i64: 2, 16, 16, 4>}, {pipeline_mode = #tpu.pipeline_mode<synchronous>, transform_indices = @transform_1, window_bounds = array<i64: 4, 8>}, {pipeline_mode = #tpu.pipeline_mode<synchronous>, transform_indices = @transform_2, window_bounds = array<i64: 1, 8>}, {pipeline_mode = #tpu.pipeline_mode<synchronous>, transform_indices = @transform_3, window_bounds = array<i64: 9, 8, 8>}, {pipeline_mode = #tpu.pipeline_mode<synchronous>, transform_indices = @transform_4, window_bounds = array<i64: 1, 8>}, {pipeline_mode = #tpu.pipeline_mode<synchronous>, transform_indices = @transform_5, window_bounds = array<i64: 8, 128>}, {pipeline_mode = #tpu.pipeline_mode<synchronous>, transform_indices = @transform_6, window_bounds = array<i64: 4, 128>}, {pipeline_mode = #tpu.pipeline_mode<synchronous>, transform_indices = @transform_7, window_bounds = array<i64: 1, 128>}, {transform_indices = @transform_8, window_bounds = array<i64: 2, 256, 128>}]} {
    %c0 = arith.constant 0 : index
    %c0_0 = arith.constant 0 : index
    %c0_1 = arith.constant 0 : index
    %c0_2 = arith.constant 0 : index
    %0 = vector.load %arg1[%c0, %c0_0, %c0_1, %c0_2] : memref<2x16x16x4xbf16, #tpu.memory_space<vmem>>, vector<2x16x16x4xbf16>
    %1 = vector.shape_cast %0 : vector<2x16x16x4xbf16> to vector<512x4xbf16>
    %c0_3 = arith.constant 0 : index
    %c0_4 = arith.constant 0 : index
    %2 = vector.load %arg2[%c0_3, %c0_4] : memref<4x8xbf16, #tpu.memory_space<vmem>>, vector<4x8xbf16>
    %cst = arith.constant dense<0.000000e+00> : vector<512x8xf32>
    %3 = tpu.matmul %1, %2, %cst {dimension_numbers = #tpu.dot_dimension_numbers<[1], [0], [0], [1], [0, 0, 1, 1], [], []>} : vector<512x4xbf16>, vector<4x8xbf16>, vector<512x8xf32> -> vector<512x8xf32>
    %c0_5 = arith.constant 0 : index
    %c0_6 = arith.constant 0 : index
    %4 = vector.load %arg3[%c0_5, %c0_6] : memref<1x8xf32, #tpu.memory_space<vmem>>, vector<1x8xf32>
    %5 = vector.broadcast %4 : vector<1x8xf32> to vector<512x8xf32>
    %6 = arith.addf %3, %5 : vector<512x8xf32>
    %cst_7 = arith.constant 0.000000e+00 : f32
    %7 = vector.broadcast %cst_7 : f32 to vector<512x8xf32>
    %8 = arith.maximumf %6, %7 : vector<512x8xf32>
    %cst_8 = arith.constant 0.000000e+00 : f32
    %9 = vector.broadcast %cst_8 : f32 to vector<2x1x18x8xf32>
    %c0_9 = arith.constant 0 : index
    %c0_10 = arith.constant 0 : index
    %c0_11 = arith.constant 0 : index
    %c0_12 = arith.constant 0 : index
    %10 = vector.load %arg10[%c0_9, %c0_10, %c0_11, %c0_12] : memref<2x18x18x8xf32, #tpu.memory_space<vmem>>, vector<2x1x18x8xf32>
    tpu.vector_store %arg10[%c0_9, %c0_10, %c0_11, %c0_12], %9 {strides = array<i32>} : memref<2x18x18x8xf32, #tpu.memory_space<vmem>>, vector<2x1x18x8xf32>,
    %cst_13 = arith.constant 0.000000e+00 : f32
    %11 = vector.broadcast %cst_13 : f32 to vector<2x1x18x8xf32>
    %c0_14 = arith.constant 0 : index
    %c17 = arith.constant 17 : index
    %c0_15 = arith.constant 0 : index
    %c0_16 = arith.constant 0 : index
    %12 = vector.load %arg10[%c0_14, %c17, %c0_15, %c0_16] : memref<2x18x18x8xf32, #tpu.memory_space<vmem>>, vector<2x1x18x8xf32>
    tpu.vector_store %arg10[%c0_14, %c17, %c0_15, %c0_16], %11 {strides = array<i32>} : memref<2x18x18x8xf32, #tpu.memory_space<vmem>>, vector<2x1x18x8xf32>,
    %cst_17 = arith.constant 0.000000e+00 : f32
    %13 = vector.broadcast %cst_17 : f32 to vector<2x18x1x8xf32>
    %c0_18 = arith.constant 0 : index
    %c0_19 = arith.constant 0 : index
    %c0_20 = arith.constant 0 : index
    %c0_21 = arith.constant 0 : index
    %14 = vector.load %arg10[%c0_18, %c0_19, %c0_20, %c0_21] : memref<2x18x18x8xf32, #tpu.memory_space<vmem>>, vector<2x18x1x8xf32>
    tpu.vector_store %arg10[%c0_18, %c0_19, %c0_20, %c0_21], %13 {strides = array<i32>} : memref<2x18x18x8xf32, #tpu.memory_space<vmem>>, vector<2x18x1x8xf32>,
    %cst_22 = arith.constant 0.000000e+00 : f32
    %15 = vector.broadcast %cst_22 : f32 to vector<2x18x1x8xf32>
    %c0_23 = arith.constant 0 : index
    %c0_24 = arith.constant 0 : index
    %c17_25 = arith.constant 17 : index
    %c0_26 = arith.constant 0 : index
    %16 = vector.load %arg10[%c0_23, %c0_24, %c17_25, %c0_26] : memref<2x18x18x8xf32, #tpu.memory_space<vmem>>, vector<2x18x1x8xf32>
    tpu.vector_store %arg10[%c0_23, %c0_24, %c17_25, %c0_26], %15 {strides = array<i32>} : memref<2x18x18x8xf32, #tpu.memory_space<vmem>>, vector<2x18x1x8xf32>,
    %17 = vector.shape_cast %8 : vector<512x8xf32> to vector<2x16x16x8xf32>
    %c0_27 = arith.constant 0 : index
    %c1 = arith.constant 1 : index
    %c1_28 = arith.constant 1 : index
    %c0_29 = arith.constant 0 : index
    %18 = vector.load %arg10[%c0_27, %c1, %c1_28, %c0_29] : memref<2x18x18x8xf32, #tpu.memory_space<vmem>>, vector<2x16x16x8xf32>
    tpu.vector_store %arg10[%c0_27, %c1, %c1_28, %c0_29], %17 {strides = array<i32>} : memref<2x18x18x8xf32, #tpu.memory_space<vmem>>, vector<2x16x16x8xf32>,
    %c0_30 = arith.constant 0 : index
    %c0_31 = arith.constant 0 : index
    %c0_32 = arith.constant 0 : index
    %c0_33 = arith.constant 0 : index
    %19 = vector.load %arg10[%c0_30, %c0_31, %c0_32, %c0_33] : memref<2x18x18x8xf32, #tpu.memory_space<vmem>>, vector<2x16x16x8xf32>
    %20 = arith.truncf %19 : vector<2x16x16x8xf32> to vector<2x16x16x8xbf16>
    %21 = vector.shape_cast %20 : vector<2x16x16x8xbf16> to vector<512x8xbf16>
    %c0_34 = arith.constant 0 : index
    %c0_35 = arith.constant 0 : index
    %c0_36 = arith.constant 0 : index
    %22 = vector.load %arg4[%c0_34, %c0_35, %c0_36] : memref<9x8x8xbf16, #tpu.memory_space<vmem>>, vector<1x8x8xbf16>
    %23 = vector.shape_cast %22 : vector<1x8x8xbf16> to vector<8x8xbf16>
    %cst_37 = arith.constant dense<0.000000e+00> : vector<512x8xf32>
    %24 = tpu.matmul %21, %23, %cst_37 {dimension_numbers = #tpu.dot_dimension_numbers<[1], [0], [0], [1], [0, 0, 1, 1], [], []>} : vector<512x8xbf16>, vector<8x8xbf16>, vector<512x8xf32> -> vector<512x8xf32>
    %c0_38 = arith.constant 0 : index
    %c0_39 = arith.constant 0 : index
    %25 = vector.load %arg11[%c0_38, %c0_39] : memref<512x8xf32, #tpu.memory_space<vmem>>, vector<512x8xf32>
    tpu.vector_store %arg11[%c0_38, %c0_39], %24 {strides = array<i32>} : memref<512x8xf32, #tpu.memory_space<vmem>>, vector<512x8xf32>,
    %c0_40 = arith.constant 0 : index
    %c0_41 = arith.constant 0 : index
    %c1_42 = arith.constant 1 : index
    %c0_43 = arith.constant 0 : index
    %26 = vector.load %arg10[%c0_40, %c0_41, %c1_42, %c0_43] : memref<2x18x18x8xf32, #tpu.memory_space<vmem>>, vector<2x16x16x8xf32>
    %27 = arith.truncf %26 : vector<2x16x16x8xf32> to vector<2x16x16x8xbf16>
    %28 = vector.shape_cast %27 : vector<2x16x16x8xbf16> to vector<512x8xbf16>
    %c1_44 = arith.constant 1 : index
    %c0_45 = arith.constant 0 : index
    %c0_46 = arith.constant 0 : index
    %29 = vector.load %arg4[%c1_44, %c0_45, %c0_46] : memref<9x8x8xbf16, #tpu.memory_space<vmem>>, vector<1x8x8xbf16>
    %30 = vector.shape_cast %29 : vector<1x8x8xbf16> to vector<8x8xbf16>
    %cst_47 = arith.constant dense<0.000000e+00> : vector<512x8xf32>
    %31 = tpu.matmul %28, %30, %cst_47 {dimension_numbers = #tpu.dot_dimension_numbers<[1], [0], [0], [1], [0, 0, 1, 1], [], []>} : vector<512x8xbf16>, vector<8x8xbf16>, vector<512x8xf32> -> vector<512x8xf32>
    %c0_48 = arith.constant 0 : index
    %c0_49 = arith.constant 0 : index
    %32 = vector.load %arg11[%c0_48, %c0_49] : memref<512x8xf32, #tpu.memory_space<vmem>>, vector<512x8xf32>
    %33 = arith.addf %32, %31 : vector<512x8xf32>
    %c0_50 = arith.constant 0 : index
    %c0_51 = arith.constant 0 : index
    %34 = vector.load %arg11[%c0_50, %c0_51] : memref<512x8xf32, #tpu.memory_space<vmem>>, vector<512x8xf32>
    tpu.vector_store %arg11[%c0_50, %c0_51], %33 {strides = array<i32>} : memref<512x8xf32, #tpu.memory_space<vmem>>, vector<512x8xf32>,
    %c0_52 = arith.constant 0 : index
    %c0_53 = arith.constant 0 : index
    %c2 = arith.constant 2 : index
    %c0_54 = arith.constant 0 : index
    %35 = vector.load %arg10[%c0_52, %c0_53, %c2, %c0_54] : memref<2x18x18x8xf32, #tpu.memory_space<vmem>>, vector<2x16x16x8xf32>
    %36 = arith.truncf %35 : vector<2x16x16x8xf32> to vector<2x16x16x8xbf16>
    %37 = vector.shape_cast %36 : vector<2x16x16x8xbf16> to vector<512x8xbf16>
    %c2_55 = arith.constant 2 : index
    %c0_56 = arith.constant 0 : index
    %c0_57 = arith.constant 0 : index
    %38 = vector.load %arg4[%c2_55, %c0_56, %c0_57] : memref<9x8x8xbf16, #tpu.memory_space<vmem>>, vector<1x8x8xbf16>
    %39 = vector.shape_cast %38 : vector<1x8x8xbf16> to vector<8x8xbf16>
    %cst_58 = arith.constant dense<0.000000e+00> : vector<512x8xf32>
    %40 = tpu.matmul %37, %39, %cst_58 {dimension_numbers = #tpu.dot_dimension_numbers<[1], [0], [0], [1], [0, 0, 1, 1], [], []>} : vector<512x8xbf16>, vector<8x8xbf16>, vector<512x8xf32> -> vector<512x8xf32>
    %c0_59 = arith.constant 0 : index
    %c0_60 = arith.constant 0 : index
    %41 = vector.load %arg11[%c0_59, %c0_60] : memref<512x8xf32, #tpu.memory_space<vmem>>, vector<512x8xf32>
    %42 = arith.addf %41, %40 : vector<512x8xf32>
    %c0_61 = arith.constant 0 : index
    %c0_62 = arith.constant 0 : index
    %43 = vector.load %arg11[%c0_61, %c0_62] : memref<512x8xf32, #tpu.memory_space<vmem>>, vector<512x8xf32>
    tpu.vector_store %arg11[%c0_61, %c0_62], %42 {strides = array<i32>} : memref<512x8xf32, #tpu.memory_space<vmem>>, vector<512x8xf32>,
    %c0_63 = arith.constant 0 : index
    %c1_64 = arith.constant 1 : index
    %c0_65 = arith.constant 0 : index
    %c0_66 = arith.constant 0 : index
    %44 = vector.load %arg10[%c0_63, %c1_64, %c0_65, %c0_66] : memref<2x18x18x8xf32, #tpu.memory_space<vmem>>, vector<2x16x16x8xf32>
    %45 = arith.truncf %44 : vector<2x16x16x8xf32> to vector<2x16x16x8xbf16>
    %46 = vector.shape_cast %45 : vector<2x16x16x8xbf16> to vector<512x8xbf16>
    %c3 = arith.constant 3 : index
    %c0_67 = arith.constant 0 : index
    %c0_68 = arith.constant 0 : index
    %47 = vector.load %arg4[%c3, %c0_67, %c0_68] : memref<9x8x8xbf16, #tpu.memory_space<vmem>>, vector<1x8x8xbf16>
    %48 = vector.shape_cast %47 : vector<1x8x8xbf16> to vector<8x8xbf16>
    %cst_69 = arith.constant dense<0.000000e+00> : vector<512x8xf32>
    %49 = tpu.matmul %46, %48, %cst_69 {dimension_numbers = #tpu.dot_dimension_numbers<[1], [0], [0], [1], [0, 0, 1, 1], [], []>} : vector<512x8xbf16>, vector<8x8xbf16>, vector<512x8xf32> -> vector<512x8xf32>
    %c0_70 = arith.constant 0 : index
    %c0_71 = arith.constant 0 : index
    %50 = vector.load %arg11[%c0_70, %c0_71] : memref<512x8xf32, #tpu.memory_space<vmem>>, vector<512x8xf32>
    %51 = arith.addf %50, %49 : vector<512x8xf32>
    %c0_72 = arith.constant 0 : index
    %c0_73 = arith.constant 0 : index
    %52 = vector.load %arg11[%c0_72, %c0_73] : memref<512x8xf32, #tpu.memory_space<vmem>>, vector<512x8xf32>
    tpu.vector_store %arg11[%c0_72, %c0_73], %51 {strides = array<i32>} : memref<512x8xf32, #tpu.memory_space<vmem>>, vector<512x8xf32>,
    %c0_74 = arith.constant 0 : index
    %c1_75 = arith.constant 1 : index
    %c1_76 = arith.constant 1 : index
    %c0_77 = arith.constant 0 : index
    %53 = vector.load %arg10[%c0_74, %c1_75, %c1_76, %c0_77] : memref<2x18x18x8xf32, #tpu.memory_space<vmem>>, vector<2x16x16x8xf32>
    %54 = arith.truncf %53 : vector<2x16x16x8xf32> to vector<2x16x16x8xbf16>
    %55 = vector.shape_cast %54 : vector<2x16x16x8xbf16> to vector<512x8xbf16>
    %c4 = arith.constant 4 : index
    %c0_78 = arith.constant 0 : index
    %c0_79 = arith.constant 0 : index
    %56 = vector.load %arg4[%c4, %c0_78, %c0_79] : memref<9x8x8xbf16, #tpu.memory_space<vmem>>, vector<1x8x8xbf16>
    %57 = vector.shape_cast %56 : vector<1x8x8xbf16> to vector<8x8xbf16>
    %cst_80 = arith.constant dense<0.000000e+00> : vector<512x8xf32>
    %58 = tpu.matmul %55, %57, %cst_80 {dimension_numbers = #tpu.dot_dimension_numbers<[1], [0], [0], [1], [0, 0, 1, 1], [], []>} : vector<512x8xbf16>, vector<8x8xbf16>, vector<512x8xf32> -> vector<512x8xf32>
    %c0_81 = arith.constant 0 : index
    %c0_82 = arith.constant 0 : index
    %59 = vector.load %arg11[%c0_81, %c0_82] : memref<512x8xf32, #tpu.memory_space<vmem>>, vector<512x8xf32>
    %60 = arith.addf %59, %58 : vector<512x8xf32>
    %c0_83 = arith.constant 0 : index
    %c0_84 = arith.constant 0 : index
    %61 = vector.load %arg11[%c0_83, %c0_84] : memref<512x8xf32, #tpu.memory_space<vmem>>, vector<512x8xf32>
    tpu.vector_store %arg11[%c0_83, %c0_84], %60 {strides = array<i32>} : memref<512x8xf32, #tpu.memory_space<vmem>>, vector<512x8xf32>,
    %c0_85 = arith.constant 0 : index
    %c1_86 = arith.constant 1 : index
    %c2_87 = arith.constant 2 : index
    %c0_88 = arith.constant 0 : index
    %62 = vector.load %arg10[%c0_85, %c1_86, %c2_87, %c0_88] : memref<2x18x18x8xf32, #tpu.memory_space<vmem>>, vector<2x16x16x8xf32>
    %63 = arith.truncf %62 : vector<2x16x16x8xf32> to vector<2x16x16x8xbf16>
    %64 = vector.shape_cast %63 : vector<2x16x16x8xbf16> to vector<512x8xbf16>
    %c5 = arith.constant 5 : index
    %c0_89 = arith.constant 0 : index
    %c0_90 = arith.constant 0 : index
    %65 = vector.load %arg4[%c5, %c0_89, %c0_90] : memref<9x8x8xbf16, #tpu.memory_space<vmem>>, vector<1x8x8xbf16>
    %66 = vector.shape_cast %65 : vector<1x8x8xbf16> to vector<8x8xbf16>
    %cst_91 = arith.constant dense<0.000000e+00> : vector<512x8xf32>
    %67 = tpu.matmul %64, %66, %cst_91 {dimension_numbers = #tpu.dot_dimension_numbers<[1], [0], [0], [1], [0, 0, 1, 1], [], []>} : vector<512x8xbf16>, vector<8x8xbf16>, vector<512x8xf32> -> vector<512x8xf32>
    %c0_92 = arith.constant 0 : index
    %c0_93 = arith.constant 0 : index
    %68 = vector.load %arg11[%c0_92, %c0_93] : memref<512x8xf32, #tpu.memory_space<vmem>>, vector<512x8xf32>
    %69 = arith.addf %68, %67 : vector<512x8xf32>
    %c0_94 = arith.constant 0 : index
    %c0_95 = arith.constant 0 : index
    %70 = vector.load %arg11[%c0_94, %c0_95] : memref<512x8xf32, #tpu.memory_space<vmem>>, vector<512x8xf32>
    tpu.vector_store %arg11[%c0_94, %c0_95], %69 {strides = array<i32>} : memref<512x8xf32, #tpu.memory_space<vmem>>, vector<512x8xf32>,
    %c0_96 = arith.constant 0 : index
    %c2_97 = arith.constant 2 : index
    %c0_98 = arith.constant 0 : index
    %c0_99 = arith.constant 0 : index
    %71 = vector.load %arg10[%c0_96, %c2_97, %c0_98, %c0_99] : memref<2x18x18x8xf32, #tpu.memory_space<vmem>>, vector<2x16x16x8xf32>
    %72 = arith.truncf %71 : vector<2x16x16x8xf32> to vector<2x16x16x8xbf16>
    %73 = vector.shape_cast %72 : vector<2x16x16x8xbf16> to vector<512x8xbf16>
    %c6 = arith.constant 6 : index
    %c0_100 = arith.constant 0 : index
    %c0_101 = arith.constant 0 : index
    %74 = vector.load %arg4[%c6, %c0_100, %c0_101] : memref<9x8x8xbf16, #tpu.memory_space<vmem>>, vector<1x8x8xbf16>
    %75 = vector.shape_cast %74 : vector<1x8x8xbf16> to vector<8x8xbf16>
    %cst_102 = arith.constant dense<0.000000e+00> : vector<512x8xf32>
    %76 = tpu.matmul %73, %75, %cst_102 {dimension_numbers = #tpu.dot_dimension_numbers<[1], [0], [0], [1], [0, 0, 1, 1], [], []>} : vector<512x8xbf16>, vector<8x8xbf16>, vector<512x8xf32> -> vector<512x8xf32>
    %c0_103 = arith.constant 0 : index
    %c0_104 = arith.constant 0 : index
    %77 = vector.load %arg11[%c0_103, %c0_104] : memref<512x8xf32, #tpu.memory_space<vmem>>, vector<512x8xf32>
    %78 = arith.addf %77, %76 : vector<512x8xf32>
    %c0_105 = arith.constant 0 : index
    %c0_106 = arith.constant 0 : index
    %79 = vector.load %arg11[%c0_105, %c0_106] : memref<512x8xf32, #tpu.memory_space<vmem>>, vector<512x8xf32>
    tpu.vector_store %arg11[%c0_105, %c0_106], %78 {strides = array<i32>} : memref<512x8xf32, #tpu.memory_space<vmem>>, vector<512x8xf32>,
    %c0_107 = arith.constant 0 : index
    %c2_108 = arith.constant 2 : index
    %c1_109 = arith.constant 1 : index
    %c0_110 = arith.constant 0 : index
    %80 = vector.load %arg10[%c0_107, %c2_108, %c1_109, %c0_110] : memref<2x18x18x8xf32, #tpu.memory_space<vmem>>, vector<2x16x16x8xf32>
    %81 = arith.truncf %80 : vector<2x16x16x8xf32> to vector<2x16x16x8xbf16>
    %82 = vector.shape_cast %81 : vector<2x16x16x8xbf16> to vector<512x8xbf16>
    %c7 = arith.constant 7 : index
    %c0_111 = arith.constant 0 : index
    %c0_112 = arith.constant 0 : index
    %83 = vector.load %arg4[%c7, %c0_111, %c0_112] : memref<9x8x8xbf16, #tpu.memory_space<vmem>>, vector<1x8x8xbf16>
    %84 = vector.shape_cast %83 : vector<1x8x8xbf16> to vector<8x8xbf16>
    %cst_113 = arith.constant dense<0.000000e+00> : vector<512x8xf32>
    %85 = tpu.matmul %82, %84, %cst_113 {dimension_numbers = #tpu.dot_dimension_numbers<[1], [0], [0], [1], [0, 0, 1, 1], [], []>} : vector<512x8xbf16>, vector<8x8xbf16>, vector<512x8xf32> -> vector<512x8xf32>
    %c0_114 = arith.constant 0 : index
    %c0_115 = arith.constant 0 : index
    %86 = vector.load %arg11[%c0_114, %c0_115] : memref<512x8xf32, #tpu.memory_space<vmem>>, vector<512x8xf32>
    %87 = arith.addf %86, %85 : vector<512x8xf32>
    %c0_116 = arith.constant 0 : index
    %c0_117 = arith.constant 0 : index
    %88 = vector.load %arg11[%c0_116, %c0_117] : memref<512x8xf32, #tpu.memory_space<vmem>>, vector<512x8xf32>
    tpu.vector_store %arg11[%c0_116, %c0_117], %87 {strides = array<i32>} : memref<512x8xf32, #tpu.memory_space<vmem>>, vector<512x8xf32>,
    %c0_118 = arith.constant 0 : index
    %c2_119 = arith.constant 2 : index
    %c2_120 = arith.constant 2 : index
    %c0_121 = arith.constant 0 : index
    %89 = vector.load %arg10[%c0_118, %c2_119, %c2_120, %c0_121] : memref<2x18x18x8xf32, #tpu.memory_space<vmem>>, vector<2x16x16x8xf32>
    %90 = arith.truncf %89 : vector<2x16x16x8xf32> to vector<2x16x16x8xbf16>
    %91 = vector.shape_cast %90 : vector<2x16x16x8xbf16> to vector<512x8xbf16>
    %c8 = arith.constant 8 : index
    %c0_122 = arith.constant 0 : index
    %c0_123 = arith.constant 0 : index
    %92 = vector.load %arg4[%c8, %c0_122, %c0_123] : memref<9x8x8xbf16, #tpu.memory_space<vmem>>, vector<1x8x8xbf16>
    %93 = vector.shape_cast %92 : vector<1x8x8xbf16> to vector<8x8xbf16>
    %cst_124 = arith.constant dense<0.000000e+00> : vector<512x8xf32>
    %94 = tpu.matmul %91, %93, %cst_124 {dimension_numbers = #tpu.dot_dimension_numbers<[1], [0], [0], [1], [0, 0, 1, 1], [], []>} : vector<512x8xbf16>, vector<8x8xbf16>, vector<512x8xf32> -> vector<512x8xf32>
    %c0_125 = arith.constant 0 : index
    %c0_126 = arith.constant 0 : index
    %95 = vector.load %arg11[%c0_125, %c0_126] : memref<512x8xf32, #tpu.memory_space<vmem>>, vector<512x8xf32>
    %96 = arith.addf %95, %94 : vector<512x8xf32>
    %c0_127 = arith.constant 0 : index
    %c0_128 = arith.constant 0 : index
    %97 = vector.load %arg11[%c0_127, %c0_128] : memref<512x8xf32, #tpu.memory_space<vmem>>, vector<512x8xf32>
    tpu.vector_store %arg11[%c0_127, %c0_128], %96 {strides = array<i32>} : memref<512x8xf32, #tpu.memory_space<vmem>>, vector<512x8xf32>,
    %c0_129 = arith.constant 0 : index
    %c0_130 = arith.constant 0 : index
    %98 = vector.load %arg11[%c0_129, %c0_130] : memref<512x8xf32, #tpu.memory_space<vmem>>, vector<512x8xf32>
    %c0_131 = arith.constant 0 : index
    %c0_132 = arith.constant 0 : index
    %99 = vector.load %arg5[%c0_131, %c0_132] : memref<1x8xf32, #tpu.memory_space<vmem>>, vector<1x8xf32>
    %100 = vector.broadcast %99 : vector<1x8xf32> to vector<512x8xf32>
    %101 = arith.addf %98, %100 : vector<512x8xf32>
    %cst_133 = arith.constant 0.000000e+00 : f32
    %102 = vector.broadcast %cst_133 : f32 to vector<512x8xf32>
    %103 = arith.maximumf %101, %102 : vector<512x8xf32>
    %104 = arith.truncf %103 : vector<512x8xf32> to vector<512x8xbf16>
    %c0_134 = arith.constant 0 : index
    %c0_135 = arith.constant 0 : index
    %105 = vector.load %arg6[%c0_134, %c0_135] : memref<8x128xbf16, #tpu.memory_space<vmem>>, vector<8x128xbf16>
    %cst_136 = arith.constant dense<0.000000e+00> : vector<512x128xf32>
    %106 = tpu.matmul %104, %105, %cst_136 {dimension_numbers = #tpu.dot_dimension_numbers<[1], [0], [0], [1], [0, 0, 1, 1], [], []>} : vector<512x8xbf16>, vector<8x128xbf16>, vector<512x128xf32> -> vector<512x128xf32>
    %c0_137 = arith.constant 0 : index
    %c0_138 = arith.constant 0 : index
    %107 = vector.load %arg7[%c0_137, %c0_138] : memref<4x128xbf16, #tpu.memory_space<vmem>>, vector<4x128xbf16>
    %cst_139 = arith.constant dense<0.000000e+00> : vector<512x128xf32>
    %108 = tpu.matmul %1, %107, %cst_139 {dimension_numbers = #tpu.dot_dimension_numbers<[1], [0], [0], [1], [0, 0, 1, 1], [], []>} : vector<512x4xbf16>, vector<4x128xbf16>, vector<512x128xf32> -> vector<512x128xf32>
    %109 = arith.addf %106, %108 : vector<512x128xf32>
    %c0_140 = arith.constant 0 : index
    %c0_141 = arith.constant 0 : index
    %110 = vector.load %arg8[%c0_140, %c0_141] : memref<1x128xf32, #tpu.memory_space<vmem>>, vector<1x128xf32>
    %111 = vector.broadcast %110 : vector<1x128xf32> to vector<512x128xf32>
    %112 = arith.addf %109, %111 : vector<512x128xf32>
    %cst_142 = arith.constant 0.000000e+00 : f32
    %113 = vector.broadcast %cst_142 : f32 to vector<512x128xf32>
    %114 = arith.maximumf %112, %113 : vector<512x128xf32>
    %115 = vector.shape_cast %114 : vector<512x128xf32> to vector<2x256x128xf32>
    %c0_143 = arith.constant 0 : index
    %c0_144 = arith.constant 0 : index
    %c0_145 = arith.constant 0 : index
    %116 = vector.load %arg9[%c0_143, %c0_144, %c0_145] : memref<2x256x128xf32, #tpu.memory_space<vmem>>, vector<2x256x128xf32>
    tpu.vector_store %arg9[%c0_143, %c0_144, %c0_145], %115 {strides = array<i32>} : memref<2x256x128xf32, #tpu.memory_space<vmem>>, vector<2x256x128xf32>,
    return
  }
  func.func @transform_0(%arg0: i32) -> (i32, i32, i32, i32) {
    %c0_i32 = arith.constant 0 : i32
    %c0_i32_0 = arith.constant 0 : i32
    %c0_i32_1 = arith.constant 0 : i32
    %c0_i32_2 = arith.constant 0 : i32
    return %arg0, %c0_i32, %c0_i32_0, %c0_i32_1 : i32, i32, i32, i32
  }
  func.func @transform_1(%arg0: i32) -> (i32, i32) {
    %c0_i32 = arith.constant 0 : i32
    %c0_i32_0 = arith.constant 0 : i32
    %c0_i32_1 = arith.constant 0 : i32
    return %c0_i32, %c0_i32_0 : i32, i32
  }
  func.func @transform_2(%arg0: i32) -> (i32, i32) {
    %c0_i32 = arith.constant 0 : i32
    %c0_i32_0 = arith.constant 0 : i32
    %c0_i32_1 = arith.constant 0 : i32
    return %c0_i32, %c0_i32_0 : i32, i32
  }
  func.func @transform_3(%arg0: i32) -> (i32, i32, i32) {
    %c0_i32 = arith.constant 0 : i32
    %c0_i32_0 = arith.constant 0 : i32
    %c0_i32_1 = arith.constant 0 : i32
    %c0_i32_2 = arith.constant 0 : i32
    return %c0_i32, %c0_i32_0, %c0_i32_1 : i32, i32, i32
  }
  func.func @transform_4(%arg0: i32) -> (i32, i32) {
    %c0_i32 = arith.constant 0 : i32
    %c0_i32_0 = arith.constant 0 : i32
    %c0_i32_1 = arith.constant 0 : i32
    return %c0_i32, %c0_i32_0 : i32, i32
  }
  func.func @transform_5(%arg0: i32) -> (i32, i32) {
    %c0_i32 = arith.constant 0 : i32
    %c0_i32_0 = arith.constant 0 : i32
    %c0_i32_1 = arith.constant 0 : i32
    return %c0_i32, %c0_i32_0 : i32, i32
  }
  func.func @transform_6(%arg0: i32) -> (i32, i32) {
    %c0_i32 = arith.constant 0 : i32
    %c0_i32_0 = arith.constant 0 : i32
    %c0_i32_1 = arith.constant 0 : i32
    return %c0_i32, %c0_i32_0 : i32, i32
  }
  func.func @transform_7(%arg0: i32) -> (i32, i32) {
    %c0_i32 = arith.constant 0 : i32
    %c0_i32_0 = arith.constant 0 : i32
    %c0_i32_1 = arith.constant 0 : i32
    return %c0_i32, %c0_i32_0 : i32, i32
  }
  func.func @transform_8(%arg0: i32) -> (i32, i32, i32) {
    %c0_i32 = arith.constant 0 : i32
    %c0_i32_0 = arith.constant 0 : i32
    %c0_i32_1 = arith.constant 0 : i32
    return %arg0, %c0_i32, %c0_i32_0 : i32, i32, i32
  }
}

</mosaic_0001>

<bundles_post_ra>
// kernel: bottleneck_forward.1
= control target key start
LH: loop header
LB: loop body
LE: loop exit
PB: predicated region body
PF: predicated region fallthrough
CT: control target
= control target key end

     0   :  { %vm360_vm0 = vcmask 1041408   ;;  %vm263_vm1 = vcmask 31744   ;;  %s11895_s0 = inlined_call_operand.vmem [shape: bf16[2,16,16,4], index: 0, kind: input, shape index: {}]   ;;  %s11896_s1 = inlined_call_operand.vmem [shape: bf16[4,8], index: 1, kind: input, shape index: {}]   ;;  %s11897_s2 = inlined_call_operand.vmem [shape: f32[1,8], index: 2, kind: input, shape index: {}]   ;;  %s11898_s3 = inlined_call_operand.vmem [shape: bf16[9,8,8], index: 3, kind: input, shape index: {}]   ;;  %s11899_s4 = inlined_call_operand.vmem [shape: f32[1,8], index: 4, kind: input, shape index: {}]   ;;  %s11900_s5 = inlined_call_operand.vmem [shape: bf16[8,128], index: 5, kind: input, shape index: {}]   ;;  %s11901_s6 = inlined_call_operand.vmem [shape: bf16[4,128], index: 6, kind: input, shape index: {}]   ;;  %s11902_s7 = inlined_call_operand.vmem [shape: f32[1,128], index: 7, kind: input, shape index: {}]   ;;  %s11903_s8 = inlined_call_operand.hbm [shape: f32[2,256,128], index: 8, kind: output, shape index: {}]  }
   0x1   :  { %v95_v0 = vld [vmem:[%s11896_s1] sm:$0x3]  ;;  %v9605_v3 = vld [vmem:[%s11895_s0 + $0x8] sm:$0xff]   ;;  %v9606_v4 = vld [vmem:[%s11895_s0 + $0x10] sm:$0xff]  }
   0x2   :  { %v9604_v1 = vld [vmem:[%s11895_s0] sm:$0xff]   ;;  %9588 = vmatprep.subr.msk.bf16.mxu0 %vm360_vm0, %v95_v0  ;;  %v362_v2 = vsel %vm360_vm0, %v95_v0, 0  ;;  %v9607_v5 = vld [vmem:[%s11895_s0 + $0x18] sm:$0xff]   ;;  %v9609_v7 = vld [vmem:[%s11895_s0 + $0x28] sm:$0xff]  }
   0x3   :  { %8797 = vmatpush3.bf16.msra.mxu0 %v362_v2  ;;  %8798 = vmatprep.mubr.msk.bf16.mxu0 %vm263_vm1, %v9604_v1  ;;  %v9608_v6 = vld [vmem:[%s11895_s0 + $0x20] sm:$0xff]   ;;  %v9610_v8 = vld [vmem:[%s11895_s0 + $0x30] sm:$0xff]   ;;  %v9611_v9 = vld [vmem:[%s11895_s0 + $0x38] sm:$0xff]  }
   0x4   :  { %v9612_v10 = vld [vmem:[%s11895_s0 + $0x40] sm:$0xff]  }
   0x6   :  { %8799 = vmatmul.mubr.msk.bf16.vlgmr.msra.gmra.mxu0 %vm263_vm1, %v9605_v3 }
   0x7   :  { %8802 = vmatprep.mubr.msk.bf16.mxu0 %vm263_vm1, %v9606_v4 }
   0xe   :  { %8803 = vmatmul.mubr.msk.bf16.gmra.mxu0 %vm263_vm1, %v9607_v5 }
   0xf   :  { %8806 = vmatprep.mubr.msk.bf16.mxu0 %vm263_vm1, %v9608_v6 }
  0x16   :  { %8807 = vmatmul.mubr.msk.bf16.gmra.mxu0 %vm263_vm1, %v9609_v7 }
  0x17   :  { %8810 = vmatprep.mubr.msk.bf16.mxu0 %vm263_vm1, %v9610_v8 }
  0x1e   :  { %8811 = vmatmul.mubr.msk.bf16.gmra.mxu0 %vm263_vm1, %v9611_v9 }
  0x1f   :  { %8814 = vmatprep.mubr.msk.bf16.mxu0 %vm263_vm1, %v9612_v10 }
  0x20   :  { %13 = vsyncpa [#allocation5], 0  ;;  %v9613_v11 = vld [vmem:[%s11895_s0 + $0x48] sm:$0xff]   ;;  %v9614_v12 = vld [vmem:[%s11895_s0 + $0x50] sm:$0xff]   ;;  %vm717_vm2 = vcmask 64512   ;;  %vm732_vm3 = vcmask 57344  }
  0x21   :  { %v9615_v13 = vld [vmem:[%s11895_s0 + $0x58] sm:$0xff]   ;;  %v9616_v14 = vld [vmem:[%s11895_s0 + $0x60] sm:$0xff]   ;;  %v9617_v15 = vld [vmem:[%s11895_s0 + $0x68] sm:$0xff]   ;;  %v9691_v23 = vmov 0.0   ;;  %vm720_vm4 = vcmask 58368   ;;  %vm1063_vm5 = vcmask 1043456  }
  0x22   :  { %v9618_v16 = vld [vmem:[%s11895_s0 + $0x70] sm:$0xff]   ;;  %v9619_v17 = vld [vmem:[%s11895_s0 + $0x78] sm:$0xff]   ;;  %v9620_v18 = vld [vmem:[%s11895_s0 + $0x80] sm:$0xff]   ;;  %718 = vst.msk [vmem:[#allocation2] sm:$0xff] %vm717_vm2, %v9691_v23 }
  0x23   :  { %v9621_v19 = vld [vmem:[%s11895_s0 + $0x88] sm:$0xff]   ;;  %v9622_v20 = vld [vmem:[%s11895_s0 + $0x90] sm:$0xff]   ;;  %v9824_v21 = vld [vmem:[%s11895_s0 + $0x98] sm:$0xff]   ;;  %719 = vst.msk [vmem:[#allocation2 + $0x8] sm:$0xff] %vm717_vm2, %v9691_v23 }
  0x24   :  { %v9829_v22 = vld [vmem:[%s11895_s0 + $0xa0] sm:$0xff]   ;;  %722 = vst.msk [vmem:[#allocation2 + $0x1b0] sm:$0xff] %vm717_vm2, %v9691_v23  ;;  %723 = vst.msk [vmem:[#allocation2 + $0x1b8] sm:$0xff] %vm717_vm2, %v9691_v23  ;;  %v9625_v24 = vld [vmem:[%s11895_s0 + $0xa8] sm:$0xff]  }
  0x25   :  { %726 = vst.msk [vmem:[#allocation2 + $0x198] sm:$0xff] %vm717_vm2, %v9691_v23  ;;  %727 = vst.msk [vmem:[#allocation2 + $0x1a0] sm:$0xff] %vm717_vm2, %v9691_v23  ;;  %v9626_v25 = vld [vmem:[%s11895_s0 + $0xb0] sm:$0xff]   ;;  %v8070_v26 = vld [vmem:[%s11898_s3 + $0x4] sm:$0xf] }
  0x26   :  { %8815 = vmatmul.mubr.msk.bf16.gmra.mxu0 %vm263_vm1, %v9613_v11  ;;  %729 = vst.msk [vmem:[#allocation2 + $0x348] sm:$0xff] %vm717_vm2, %v9691_v23  ;;  %730 = vst.msk [vmem:[#allocation2 + $0x350] sm:$0xff] %vm717_vm2, %v9691_v23  ;;  %9590 = vmatprep.subr.msk.bf16.mxu0 %vm1063_vm5, %v8070_v26  ;;  %v1615_v27 = vsel %vm1063_vm5, %v8070_v26, 0  ;;  %v966_v28 = vld [vmem:[%s11898_s3] sm:$0xf]  ;;  %v9627_v33 = vld [vmem:[%s11895_s0 + $0xb8] sm:$0xff]  }
  0x27   :  { %8818 = vmatprep.mubr.msk.bf16.mxu0 %vm263_vm1, %v9614_v12  ;;  %734 = vst.msk [vmem:[#allocation2 + $0x18] sm:$0x1] %vm732_vm3, %v9691_v23  ;;  %735 = vst.msk [vmem:[#allocation2 + $0x30] sm:$0x1] %vm732_vm3, %v9691_v23  ;;  %8929 = vmatpush3.bf16.msra.mxu0 %v1615_v27  ;;  %v1065_v29 = vsel %vm1063_vm5, %v966_v28, 0  ;;  %v9628_v34 = vld [vmem:[%s11895_s0 + $0xc0] sm:$0xff]  }
  0x28   :  { %736 = vst.msk [vmem:[#allocation2 + $0x48] sm:$0x1] %vm732_vm3, %v9691_v23  ;;  %737 = vst.msk [vmem:[#allocation2 + $0x60] sm:$0x1] %vm732_vm3, %v9691_v23  ;;  %9589 = vmatprep.subr.msk.bf16.mxu1 %vm1063_vm5, %v966_v28  ;;  %v8103_v35 = vld [vmem:[%s11898_s3 + $0x8] sm:$0xf] }
  0x29   :  { %738 = vst.msk [vmem:[#allocation2 + $0x78] sm:$0x1] %vm732_vm3, %v9691_v23  ;;  %739 = vst.msk [vmem:[#allocation2 + $0x90] sm:$0x1] %vm732_vm3, %v9691_v23  ;;  %8863 = vmatpush3.bf16.msra.mxu1 %v1065_v29  ;;  %v9629_v36 = vld [vmem:[%s11895_s0 + $0xc8] sm:$0xff]   ;;  %v9630_v37 = vld [vmem:[%s11895_s0 + $0xd0] sm:$0xff]  }
  0x2a   :  { %740 = vst.msk [vmem:[#allocation2 + $0xa8] sm:$0x1] %vm732_vm3, %v9691_v23  ;;  %741 = vst.msk [vmem:[#allocation2 + $0xc0] sm:$0x1] %vm732_vm3, %v9691_v23  ;;  %v871_v31 = vld [vmem:[#allocation2 + $0x8] sm:$0xff]  ;;  %9591 = vmatprep.subr.msk.bf16.mxu1 %vm1063_vm5, %v8103_v35  ;;  %v9631_v38 = vld [vmem:[%s11895_s0 + $0xd8] sm:$0xff]  }
  0x2b   :  { %742 = vst.msk [vmem:[#allocation2 + $0xd8] sm:$0x1] %vm732_vm3, %v9691_v23  ;;  %743 = vst.msk [vmem:[#allocation2 + $0xf0] sm:$0x1] %vm732_vm3, %v9691_v23  ;;  %v9632_v39 = vld [vmem:[%s11895_s0 + $0xe0] sm:$0xff]   ;;  %v9633_v40 = vld [vmem:[%s11895_s0 + $0xe8] sm:$0xff]  }
  0x2c   :  { %744 = vst.msk [vmem:[#allocation2 + $0x108] sm:$0x1] %vm732_vm3, %v9691_v23  ;;  %745 = vst.msk [vmem:[#allocation2 + $0x120] sm:$0x1] %vm732_vm3, %v9691_v23  ;;  %v9634_v41 = vld [vmem:[%s11895_s0 + $0xf0] sm:$0xff]   ;;  %v1420_v42 = vld [vmem:[#allocation2 + $0x1] sm:$0xff] }
  0x2d   :  { %746 = vst.msk [vmem:[#allocation2 + $0x138] sm:$0x1] %vm732_vm3, %v9691_v23  ;;  %747 = vst.msk [vmem:[#allocation2 + $0x150] sm:$0x1] %vm732_vm3, %v9691_v23  ;;  %v9635_v44 = vld [vmem:[%s11895_s0 + $0xf8] sm:$0xff]  }
  0x2e   :  { %8819 = vmatmul.mubr.msk.bf16.gmra.mxu0 %vm263_vm1, %v9615_v13  ;;  %748 = vst.msk [vmem:[#allocation2 + $0x168] sm:$0x1] %vm732_vm3, %v9691_v23  ;;  %749 = vst.msk [vmem:[#allocation2 + $0x180] sm:$0x1] %vm732_vm3, %v9691_v23  ;;  %v10062_v46 = vld [vmem:[%s11897_s2] ss:$0 sm:$0xff] }
  0x2f   :  { %8822 = vmatprep.mubr.msk.bf16.mxu0 %vm263_vm1, %v9616_v14  ;;  %752 = vst.msk [vmem:[#allocation2 + $0x1c8] sm:$0x1] %vm732_vm3, %v9691_v23  ;;  %753 = vst.msk [vmem:[#allocation2 + $0x1e0] sm:$0x1] %vm732_vm3, %v9691_v23  ;;  %v8136_v56 = vld [vmem:[%s11898_s3 + $0xc] sm:$0xf] }
  0x30   :  { %754 = vst.msk [vmem:[#allocation2 + $0x1f8] sm:$0x1] %vm732_vm3, %v9691_v23  ;;  %755 = vst.msk [vmem:[#allocation2 + $0x210] sm:$0x1] %vm732_vm3, %v9691_v23  ;;  %9592 = vmatprep.subr.msk.bf16.mxu0 %vm1063_vm5, %v8136_v56  ;;  %v2971_v26 = vsel %vm1063_vm5, %v8136_v56, 0 }
  0x31   :  { %756 = vst.msk [vmem:[#allocation2 + $0x228] sm:$0x1] %vm732_vm3, %v9691_v23  ;;  %757 = vst.msk [vmem:[#allocation2 + $0x240] sm:$0x1] %vm732_vm3, %v9691_v23 }
  0x32   :  { %758 = vst.msk [vmem:[#allocation2 + $0x258] sm:$0x1] %vm732_vm3, %v9691_v23  ;;  %759 = vst.msk [vmem:[#allocation2 + $0x270] sm:$0x1] %vm732_vm3, %v9691_v23 }
  0x33   :  { %760 = vst.msk [vmem:[#allocation2 + $0x288] sm:$0x1] %vm732_vm3, %v9691_v23  ;;  %761 = vst.msk [vmem:[#allocation2 + $0x2a0] sm:$0x1] %vm732_vm3, %v9691_v23 }
  0x34   :  { %762 = vst.msk [vmem:[#allocation2 + $0x2b8] sm:$0x1] %vm732_vm3, %v9691_v23  ;;  %763 = vst.msk [vmem:[#allocation2 + $0x2d0] sm:$0x1] %vm732_vm3, %v9691_v23 }
  0x35   :  { %764 = vst.msk [vmem:[#allocation2 + $0x2e8] sm:$0x1] %vm732_vm3, %v9691_v23  ;;  %765 = vst.msk [vmem:[#allocation2 + $0x300] sm:$0x1] %vm732_vm3, %v9691_v23 }
  0x36   :  { %8823 = vmatmul.mubr.msk.bf16.gmra.mxu0 %vm263_vm1, %v9617_v15  ;;  %766 = vst.msk [vmem:[#allocation2 + $0x318] sm:$0x1] %vm732_vm3, %v9691_v23  ;;  %767 = vst.msk [vmem:[#allocation2 + $0x330] sm:$0x1] %vm732_vm3, %v9691_v23 }
  0x37   :  { %8826 = vmatprep.mubr.msk.bf16.mxu0 %vm263_vm1, %v9618_v16  ;;  %770 = vst.msk [vmem:[#allocation2 + $0x29] sm:$0x1] %vm732_vm3, %v9691_v23  ;;  %771 = vst.msk [vmem:[#allocation2 + $0x41] sm:$0x1] %vm732_vm3, %v9691_v23  ;;  %v2293_v16 = vsel %vm1063_vm5, %v8103_v35, 0 }
  0x38   :  { %772 = vst.msk [vmem:[#allocation2 + $0x59] sm:$0x1] %vm732_vm3, %v9691_v23  ;;  %773 = vst.msk [vmem:[#allocation2 + $0x71] sm:$0x1] %vm732_vm3, %v9691_v23 }
  0x39   :  { %774 = vst.msk [vmem:[#allocation2 + $0x89] sm:$0x1] %vm732_vm3, %v9691_v23  ;;  %775 = vst.msk [vmem:[#allocation2 + $0xa1] sm:$0x1] %vm732_vm3, %v9691_v23 }
  0x3a   :  { %776 = vst.msk [vmem:[#allocation2 + $0xb9] sm:$0x1] %vm732_vm3, %v9691_v23  ;;  %777 = vst.msk [vmem:[#allocation2 + $0xd1] sm:$0x1] %vm732_vm3, %v9691_v23 }
  0x3b   :  { %778 = vst.msk [vmem:[#allocation2 + $0xe9] sm:$0x1] %vm732_vm3, %v9691_v23  ;;  %779 = vst.msk [vmem:[#allocation2 + $0x101] sm:$0x1] %vm732_vm3, %v9691_v23 }
  0x3c   :  { %780 = vst.msk [vmem:[#allocation2 + $0x119] sm:$0x1] %vm732_vm3, %v9691_v23  ;;  %781 = vst.msk [vmem:[#allocation2 + $0x131] sm:$0x1] %vm732_vm3, %v9691_v23 }
  0x3d   :  { %782 = vst.msk [vmem:[#allocation2 + $0x149] sm:$0x1] %vm732_vm3, %v9691_v23  ;;  %783 = vst.msk [vmem:[#allocation2 + $0x161] sm:$0x1] %vm732_vm3, %v9691_v23 }
  0x3e   :  { %8827 = vmatmul.mubr.msk.bf16.gmra.mxu0 %vm263_vm1, %v9619_v17  ;;  %784 = vst.msk [vmem:[#allocation2 + $0x179] sm:$0x1] %vm732_vm3, %v9691_v23  ;;  %785 = vst.msk [vmem:[#allocation2 + $0x191] sm:$0x1] %vm732_vm3, %v9691_v23 }
  0x3f   :  { %8830 = vmatprep.mubr.msk.bf16.mxu0 %vm263_vm1, %v9620_v18  ;;  %788 = vst.msk [vmem:[#allocation2 + $0x1d9] sm:$0x1] %vm732_vm3, %v9691_v23  ;;  %789 = vst.msk [vmem:[#allocation2 + $0x1f1] sm:$0x1] %vm732_vm3, %v9691_v23 }
  0x40   :  { %790 = vst.msk [vmem:[#allocation2 + $0x209] sm:$0x1] %vm732_vm3, %v9691_v23  ;;  %791 = vst.msk [vmem:[#allocation2 + $0x221] sm:$0x1] %vm732_vm3, %v9691_v23 }
  0x41   :  { %792 = vst.msk [vmem:[#allocation2 + $0x239] sm:$0x1] %vm732_vm3, %v9691_v23  ;;  %793 = vst.msk [vmem:[#allocation2 + $0x251] sm:$0x1] %vm732_vm3, %v9691_v23 }
  0x42   :  { %794 = vst.msk [vmem:[#allocation2 + $0x269] sm:$0x1] %vm732_vm3, %v9691_v23  ;;  %795 = vst.msk [vmem:[#allocation2 + $0x281] sm:$0x1] %vm732_vm3, %v9691_v23 }
  0x43   :  { %796 = vst.msk [vmem:[#allocation2 + $0x299] sm:$0x1] %vm732_vm3, %v9691_v23  ;;  %797 = vst.msk [vmem:[#allocation2 + $0x2b1] sm:$0x1] %vm732_vm3, %v9691_v23 }
  0x44   :  { %798 = vst.msk [vmem:[#allocation2 + $0x2c9] sm:$0x1] %vm732_vm3, %v9691_v23  ;;  %799 = vst.msk [vmem:[#allocation2 + $0x2e1] sm:$0x1] %vm732_vm3, %v9691_v23 }
  0x45   :  { %800 = vst.msk [vmem:[#allocation2 + $0x2f9] sm:$0x1] %vm732_vm3, %v9691_v23  ;;  %801 = vst.msk [vmem:[#allocation2 + $0x311] sm:$0x1] %vm732_vm3, %v9691_v23 }
  0x46   :  { %8831 = vmatmul.mubr.msk.bf16.gmra.mxu0 %vm263_vm1, %v9621_v19  ;;  %802 = vst.msk [vmem:[#allocation2 + $0x329] sm:$0x1] %vm732_vm3, %v9691_v23  ;;  %803 = vst.msk [vmem:[#allocation2 + $0x341] sm:$0x1] %vm732_vm3, %v9691_v23 }
  0x47   :  { %8834 = vmatprep.mubr.msk.bf16.mxu0 %vm263_vm1, %v9622_v20  ;;  %733 = vst.msk [vmem:[#allocation2] sm:$0x1] %vm732_vm3, %v9691_v23  ;;  %750 = vst.msk [vmem:[#allocation2 + $0x198] sm:$0x1] %vm732_vm3, %v9691_v23 }
  0x48   :  { %751 = vst.msk [vmem:[#allocation2 + $0x1b0] sm:$0x1] %vm732_vm3, %v9691_v23  ;;  %768 = vst.msk [vmem:[#allocation2 + $0x348] sm:$0x1] %vm732_vm3, %v9691_v23 }
  0x49   :  { %721 = vst.msk [vmem:[#allocation2 + $0x10] sm:$0x3] %vm720_vm4, %v9691_v23  ;;  %724 = vst.msk [vmem:[#allocation2 + $0x1c0] sm:$0x3] %vm720_vm4, %v9691_v23 }
  0x4a   :  { %728 = vst.msk [vmem:[#allocation2 + $0x1a8] sm:$0x3] %vm720_vm4, %v9691_v23  ;;  %731 = vst.msk [vmem:[#allocation2 + $0x358] sm:$0x3] %vm720_vm4, %v9691_v23 }
  0x4b   :  { %769 = vst.msk [vmem:[#allocation2 + $0x11] sm:$0x1] %vm732_vm3, %v9691_v23  ;;  %786 = vst.msk [vmem:[#allocation2 + $0x1a9] sm:$0x1] %vm732_vm3, %v9691_v23 }
  0x4c   :  { %787 = vst.msk [vmem:[#allocation2 + $0x1c1] sm:$0x1] %vm732_vm3, %v9691_v23  ;;  %804 = vst.msk [vmem:[#allocation2 + $0x359] sm:$0x1] %vm732_vm3, %v9691_v23 }
  0x4e   :  { %8835 = vmatmul.mubr.msk.bf16.gmra.mxu0 %vm263_vm1, %v9824_v21  ;;  %v870_v30 = vld [vmem:[#allocation2] sm:$0xff] }
  0x4f   :  { %8838 = vmatprep.mubr.msk.bf16.mxu0 %vm263_vm1, %v9829_v22  ;;  %v934_v32 = vpack.c.bf16 %v871_v31, %v870_v30  ;;  %v10100_v30 = vld [vmem:[%s11898_s3 + $0x10] sm:$0xf] }
  0x50   :  { %v1421_v43 = vld [vmem:[#allocation2 + $0x9] sm:$0xff] }
  0x51   :  { %8864 = vmatprep.mubr.msk.bf16.mxu1 %vm717_vm2, %v934_v32  ;;  %v1484_v45 = vpack.c.bf16 %v1421_v43, %v1420_v42 }
  0x56   :  { %8839 = vmatmul.mubr.msk.bf16.gmra.mxu0 %vm263_vm1, %v9625_v24 }
  0x57   :  { %8842 = vmatprep.mubr.msk.bf16.mxu0 %vm263_vm1, %v9626_v25 }
  0x5e   :  { %8843 = vmatmul.mubr.msk.bf16.gmra.mxu0 %vm263_vm1, %v9627_v33 }
  0x5f   :  { %8846 = vmatprep.mubr.msk.bf16.mxu0 %vm263_vm1, %v9628_v34 }
  0x66   :  { %8847 = vmatmul.mubr.msk.bf16.gmra.mxu0 %vm263_vm1, %v9629_v36 }
  0x67   :  { %8850 = vmatprep.mubr.msk.bf16.mxu0 %vm263_vm1, %v9630_v37 }
  0x6e   :  { %8851 = vmatmul.mubr.msk.bf16.gmra.mxu0 %vm263_vm1, %v9631_v38 }
  0x6f   :  { %8854 = vmatprep.mubr.msk.bf16.mxu0 %vm263_vm1, %v9632_v39 }
  0x76   :  { %8855 = vmatmul.mubr.msk.bf16.gmra.mxu0 %vm263_vm1, %v9633_v40 }
  0x77   :  { %8858 = vmatprep.mubr.msk.bf16.mxu0 %vm263_vm1, %v9634_v41 }
  0x7e   :  { %8859 = vmatmul.mubr.msk.bf16.gmra.mxu0 %vm263_vm1, %v9635_v44 }
  0x7f   :  { %8930 = vmatprep.mubr.msk.bf16.mxu0 %vm717_vm2, %v1484_v45 }
  0xc6   :  { %v8800_v47 = vpop.f32.mrf.mxu0 }
  0xc7   :  { %v407_v48 = vadd.f32 %v8800_v47, %v10062_v46 }
  0xc8   :  { %v398_v49 = vpop.f32.mrf.mxu0 }
  0xc9   :  { %v655_v50 = vmax.f32 %v407_v48, 0.0  ;;  %v399_v51 = vadd.f32 %v10062_v46, %v398_v49 }
  0xca   :  { %v8801_v52 = vpop.f32.mrf.mxu0 }
  0xcb   :  { %808 = vst.msk [vmem:[#allocation2 + $0x31] sm:$0xff] %vm717_vm2, %v655_v50  ;;  %v653_v53 = vmax.f32 %v399_v51, 0.0  ;;  %v410_v54 = vadd.f32 %v8801_v52, %v10062_v46 }
  0xcc   :  { %v401_v55 = vpop.f32.mrf.mxu0 }
  0xcd   :  { %806 = vst.msk [vmem:[#allocation2 + $0x19] sm:$0xff] %vm717_vm2, %v653_v53  ;;  %v656_v57 = vmax.f32 %v410_v54, 0.0  ;;  %v402_v58 = vadd.f32 %v10062_v46, %v401_v55 }
  0xce   :  { %v8804_v59 = vpop.f32.mrf.mxu0 }
  0xcf   :  { %809 = vst.msk [vmem:[#allocation2 + $0x39] sm:$0xff] %vm717_vm2, %v656_v57  ;;  %v654_v60 = vmax.f32 %v402_v58, 0.0  ;;  %v423_v61 = vadd.f32 %v8804_v59, %v10062_v46 }
  0xd0   :  { %v414_v62 = vpop.f32.mrf.mxu0 }
  0xd1   :  { %807 = vst.msk [vmem:[#allocation2 + $0x21] sm:$0xff] %vm717_vm2, %v654_v60  ;;  %v659_v63 = vmax.f32 %v423_v61, 0.0  ;;  %v415_v0 = vadd.f32 %v10062_v46, %v414_v62 }
  0xd2   :  { %v8805_v1 = vpop.f32.mrf.mxu0  ;;  %v874_v22 = vld [vmem:[#allocation2 + $0x30] sm:$0xff] }
  0xd3   :  { %812 = vst.msk [vmem:[#allocation2 + $0x61] sm:$0xff] %vm717_vm2, %v659_v63  ;;  %v657_v2 = vmax.f32 %v415_v0, 0.0  ;;  %v426_v3 = vadd.f32 %v8805_v1, %v10062_v46  ;;  %v1424_v25 = vld [vmem:[#allocation2 + $0x31] sm:$0xff] }
  0xd4   :  { %v417_v4 = vpop.f32.mrf.mxu0  ;;  %v872_v10 = vld [vmem:[#allocation2 + $0x18] sm:$0xff] }
  0xd5   :  { %810 = vst.msk [vmem:[#allocation2 + $0x49] sm:$0xff] %vm717_vm2, %v657_v2  ;;  %v660_v5 = vmax.f32 %v426_v3, 0.0  ;;  %v418_v6 = vadd.f32 %v10062_v46, %v417_v4  ;;  %v1422_v11 = vld [vmem:[#allocation2 + $0x19] sm:$0xff] }
  0xd6   :  { %v8808_v7 = vpop.f32.mrf.mxu0  ;;  %v875_v12 = vld [vmem:[#allocation2 + $0x38] sm:$0xff] }
  0xd7   :  { %813 = vst.msk [vmem:[#allocation2 + $0x69] sm:$0xff] %vm717_vm2, %v660_v5  ;;  %v658_v8 = vmax.f32 %v418_v6, 0.0  ;;  %v439_v9 = vadd.f32 %v8808_v7, %v10062_v46  ;;  %v1425_v17 = vld [vmem:[#allocation2 + $0x39] sm:$0xff]  ;;  %v10089_v24 = vpack.c.bf16 %v875_v12, %v874_v22 }
  0xd8   :  { %v430_v13 = vpop.f32.mrf.mxu0  ;;  %v873_v14 = vld [vmem:[#allocation2 + $0x20] sm:$0xff]  ;;  %v1486_v29 = vpack.c.bf16 %v1425_v17, %v1424_v25 }
  0xd9   :  { %v1423_v15 = vld [vmem:[#allocation2 + $0x21] sm:$0xff]  ;;  %811 = vst.msk [vmem:[#allocation2 + $0x51] sm:$0xff] %vm717_vm2, %v658_v8  ;;  %v663_v18 = vmax.f32 %v439_v9, 0.0  ;;  %v431_v19 = vadd.f32 %v10062_v46, %v430_v13  ;;  %v10087_v20 = vpack.c.bf16 %v873_v14, %v872_v10 }
  0xda   :  { %v1485_v21 = vpack.c.bf16 %v1423_v15, %v1422_v11  ;;  %v8809_v23 = vpop.f32.mrf.mxu0  ;;  %v878_v49 = vld [vmem:[#allocation2 + $0x60] sm:$0xff] }
  0xdb   :  { %816 = vst.msk [vmem:[#allocation2 + $0x91] sm:$0xff] %vm717_vm2, %v663_v18  ;;  %v661_v27 = vmax.f32 %v431_v19, 0.0  ;;  %v442_v28 = vadd.f32 %v8809_v23, %v10062_v46  ;;  %8865 = vmatmul.mubr.msk.bf16.vlgmr.msra.gmra.mxu1 %vm717_vm2, %v10087_v20  ;;  %v1428_v50 = vld [vmem:[#allocation2 + $0x61] sm:$0xff] }
  0xdc   :  { %8931 = vmatmul.mubr.msk.bf16.vlgmr.msra.gmra.mxu0 %vm717_vm2, %v1485_v21  ;;  %8995 = vmatpush3.bf16.msra.mxu1 %v2293_v16  ;;  %v433_v31 = vpop.f32.mrf.mxu0  ;;  %v876_v37 = vld [vmem:[#allocation2 + $0x48] sm:$0xff] }
  0xdd   :  { %8868 = vmatprep.mubr.msk.bf16.mxu1 %vm717_vm2, %v10089_v24  ;;  %814 = vst.msk [vmem:[#allocation2 + $0x79] sm:$0xff] %vm717_vm2, %v661_v27  ;;  %v664_v32 = vmax.f32 %v442_v28, 0.0  ;;  %v434_v33 = vadd.f32 %v10062_v46, %v433_v31  ;;  %8934 = vmatprep.mubr.msk.bf16.mxu0 %vm717_vm2, %v1486_v29  ;;  %v1426_v42 = vld [vmem:[#allocation2 + $0x49] sm:$0xff] }
  0xde   :  { %9061 = vmatpush3.bf16.msra.mxu0 %v2971_v26  ;;  %v8812_v34 = vpop.f32.mrf.mxu0  ;;  %9593 = vmatprep.subr.msk.bf16.mxu1 %vm1063_vm5, %v10100_v30  ;;  %v879_v38 = vld [vmem:[#allocation2 + $0x68] sm:$0xff] }
  0xdf   :  { %817 = vst.msk [vmem:[#allocation2 + $0x99] sm:$0xff] %vm717_vm2, %v664_v32  ;;  %v662_v35 = vmax.f32 %v434_v33, 0.0  ;;  %v455_v36 = vadd.f32 %v8812_v34, %v10062_v46  ;;  %v1429_v39 = vld [vmem:[#allocation2 + $0x69] sm:$0xff]  ;;  %v10115_v52 = vpack.c.bf16 %v879_v38, %v878_v49 }
  0xe0   :  { %v446_v40 = vpop.f32.mrf.mxu0  ;;  %v877_v41 = vld [vmem:[#allocation2 + $0x50] sm:$0xff]  ;;  %v1488_v53 = vpack.c.bf16 %v1429_v39, %v1428_v50 }
  0xe1   :  { %v1427_v43 = vld [vmem:[#allocation2 + $0x51] sm:$0xff]  ;;  %815 = vst.msk [vmem:[#allocation2 + $0x81] sm:$0xff] %vm717_vm2, %v662_v35  ;;  %v667_v44 = vmax.f32 %v455_v36, 0.0  ;;  %v447_v45 = vadd.f32 %v10062_v46, %v446_v40  ;;  %v10113_v47 = vpack.c.bf16 %v877_v41, %v876_v37 }
  0xe2   :  { %v1487_v48 = vpack.c.bf16 %v1427_v43, %v1426_v42  ;;  %v8813_v51 = vpop.f32.mrf.mxu0  ;;  %v882_v9 = vld [vmem:[#allocation2 + $0x90] sm:$0xff] }
  0xe3   :  { %820 = vst.msk [vmem:[#allocation2 + $0xc1] sm:$0xff] %vm717_vm2, %v667_v44  ;;  %v665_v54 = vmax.f32 %v447_v45, 0.0  ;;  %v458_v55 = vadd.f32 %v8813_v51, %v10062_v46  ;;  %8869 = vmatmul.mubr.msk.bf16.gmra.mxu1 %vm717_vm2, %v10113_v47  ;;  %v1432_v10 = vld [vmem:[#allocation2 + $0x91] sm:$0xff] }
  0xe4   :  { %8935 = vmatmul.mubr.msk.bf16.gmra.mxu0 %vm717_vm2, %v1487_v48  ;;  %v449_v56 = vpop.f32.mrf.mxu0  ;;  %8872 = vmatprep.mubr.msk.bf16.mxu1 %vm717_vm2, %v10115_v52  ;;  %v880_v62 = vld [vmem:[#allocation2 + $0x78] sm:$0xff] }
  0xe5   :  { %8938 = vmatprep.mubr.msk.bf16.mxu0 %vm717_vm2, %v1488_v53  ;;  %818 = vst.msk [vmem:[#allocation2 + $0xa9] sm:$0xff] %vm717_vm2, %v665_v54  ;;  %v668_v57 = vmax.f32 %v458_v55, 0.0  ;;  %v450_v58 = vadd.f32 %v10062_v46, %v449_v56  ;;  %v1430_v3 = vld [vmem:[#allocation2 + $0x79] sm:$0xff] }
  0xe6   :  { %v8816_v59 = vpop.f32.mrf.mxu0  ;;  %v883_v63 = vld [vmem:[#allocation2 + $0x98] sm:$0xff] }
  0xe7   :  { %821 = vst.msk [vmem:[#allocation2 + $0xc9] sm:$0xff] %vm717_vm2, %v668_v57  ;;  %v666_v60 = vmax.f32 %v450_v58, 0.0  ;;  %v471_v61 = vadd.f32 %v8816_v59, %v10062_v46  ;;  %v1433_v0 = vld [vmem:[#allocation2 + $0x99] sm:$0xff]  ;;  %v10133_v12 = vpack.c.bf16 %v883_v63, %v882_v9 }
  0xe8   :  { %v462_v1 = vpop.f32.mrf.mxu0  ;;  %v881_v2 = vld [vmem:[#allocation2 + $0x80] sm:$0xff]  ;;  %v1490_v13 = vpack.c.bf16 %v1433_v0, %v1432_v10 }
  0xe9   :  { %v1431_v4 = vld [vmem:[#allocation2 + $0x81] sm:$0xff]  ;;  %819 = vst.msk [vmem:[#allocation2 + $0xb1] sm:$0xff] %vm717_vm2, %v666_v60  ;;  %v671_v5 = vmax.f32 %v471_v61, 0.0  ;;  %v463_v6 = vadd.f32 %v10062_v46, %v462_v1  ;;  %v10131_v7 = vpack.c.bf16 %v881_v2, %v880_v62 }
  0xea   :  { %v1489_v8 = vpack.c.bf16 %v1431_v4, %v1430_v3  ;;  %v8817_v11 = vpop.f32.mrf.mxu0  ;;  %v886_v36 = vld [vmem:[#allocation2 + $0xc0] sm:$0xff] }
  0xeb   :  { %824 = vst.msk [vmem:[#allocation2 + $0xf1] sm:$0xff] %vm717_vm2, %v671_v5  ;;  %v669_v14 = vmax.f32 %v463_v6, 0.0  ;;  %v474_v15 = vadd.f32 %v8817_v11, %v10062_v46  ;;  %8873 = vmatmul.mubr.msk.bf16.gmra.mxu1 %vm717_vm2, %v10131_v7  ;;  %v1436_v37 = vld [vmem:[#allocation2 + $0xc1] sm:$0xff] }
  0xec   :  { %8939 = vmatmul.mubr.msk.bf16.gmra.mxu0 %vm717_vm2, %v1489_v8  ;;  %v465_v16 = vpop.f32.mrf.mxu0  ;;  %8876 = vmatprep.mubr.msk.bf16.mxu1 %vm717_vm2, %v10133_v12  ;;  %v884_v23 = vld [vmem:[#allocation2 + $0xa8] sm:$0xff] }
  0xed   :  { %8942 = vmatprep.mubr.msk.bf16.mxu0 %vm717_vm2, %v1490_v13  ;;  %822 = vst.msk [vmem:[#allocation2 + $0xd9] sm:$0xff] %vm717_vm2, %v669_v14  ;;  %v672_v17 = vmax.f32 %v474_v15, 0.0  ;;  %v466_v18 = vadd.f32 %v10062_v46, %v465_v16  ;;  %v1434_v29 = vld [vmem:[#allocation2 + $0xa9] sm:$0xff] }
  0xee   :  { %v8820_v19 = vpop.f32.mrf.mxu0  ;;  %v887_v25 = vld [vmem:[#allocation2 + $0xc8] sm:$0xff] }
  0xef   :  { %825 = vst.msk [vmem:[#allocation2 + $0xf9] sm:$0xff] %vm717_vm2, %v672_v17  ;;  %v670_v21 = vmax.f32 %v466_v18, 0.0  ;;  %v487_v22 = vadd.f32 %v8820_v19, %v10062_v46  ;;  %v1437_v26 = vld [vmem:[#allocation2 + $0xc9] sm:$0xff]  ;;  %v10151_v39 = vpack.c.bf16 %v887_v25, %v886_v36 }
  0xf0   :  { %v478_v27 = vpop.f32.mrf.mxu0  ;;  %v885_v28 = vld [vmem:[#allocation2 + $0xb0] sm:$0xff]  ;;  %v1492_v40 = vpack.c.bf16 %v1437_v26, %v1436_v37 }
  0xf1   :  { %v1435_v31 = vld [vmem:[#allocation2 + $0xb1] sm:$0xff]  ;;  %823 = vst.msk [vmem:[#allocation2 + $0xe1] sm:$0xff] %vm717_vm2, %v670_v21  ;;  %v675_v32 = vmax.f32 %v487_v22, 0.0  ;;  %v479_v33 = vadd.f32 %v10062_v46, %v478_v27  ;;  %v10149_v34 = vpack.c.bf16 %v885_v28, %v884_v23 }
  0xf2   :  { %v1491_v35 = vpack.c.bf16 %v1435_v31, %v1434_v29  ;;  %v8821_v38 = vpop.f32.mrf.mxu0  ;;  %v890_v63 = vld [vmem:[#allocation2 + $0xf0] sm:$0xff] }
  0xf3   :  { %828 = vst.msk [vmem:[#allocation2 + $0x121] sm:$0xff] %vm717_vm2, %v675_v32  ;;  %v673_v41 = vmax.f32 %v479_v33, 0.0  ;;  %v490_v42 = vadd.f32 %v8821_v38, %v10062_v46  ;;  %8877 = vmatmul.mubr.msk.bf16.gmra.mxu1 %vm717_vm2, %v10149_v34  ;;  %v1440_v0 = vld [vmem:[#allocation2 + $0xf1] sm:$0xff] }
  0xf4   :  { %8943 = vmatmul.mubr.msk.bf16.gmra.mxu0 %vm717_vm2, %v1491_v35  ;;  %v481_v43 = vpop.f32.mrf.mxu0  ;;  %8880 = vmatprep.mubr.msk.bf16.mxu1 %vm717_vm2, %v10151_v39  ;;  %v888_v51 = vld [vmem:[#allocation2 + $0xd8] sm:$0xff] }
  0xf5   :  { %8946 = vmatprep.mubr.msk.bf16.mxu0 %vm717_vm2, %v1492_v40  ;;  %826 = vst.msk [vmem:[#allocation2 + $0x109] sm:$0xff] %vm717_vm2, %v673_v41  ;;  %v676_v44 = vmax.f32 %v490_v42, 0.0  ;;  %v482_v45 = vadd.f32 %v10062_v46, %v481_v43  ;;  %v1438_v57 = vld [vmem:[#allocation2 + $0xd9] sm:$0xff] }
  0xf6   :  { %v8824_v48 = vpop.f32.mrf.mxu0  ;;  %v891_v53 = vld [vmem:[#allocation2 + $0xf8] sm:$0xff] }
  0xf7   :  { %829 = vst.msk [vmem:[#allocation2 + $0x129] sm:$0xff] %vm717_vm2, %v676_v44  ;;  %v674_v49 = vmax.f32 %v482_v45, 0.0  ;;  %v503_v50 = vadd.f32 %v8824_v48, %v10062_v46  ;;  %v1441_v54 = vld [vmem:[#allocation2 + $0xf9] sm:$0xff]  ;;  %v10169_v2 = vpack.c.bf16 %v891_v53, %v890_v63 }
  0xf8   :  { %v494_v55 = vpop.f32.mrf.mxu0  ;;  %v889_v56 = vld [vmem:[#allocation2 + $0xe0] sm:$0xff]  ;;  %v1494_v3 = vpack.c.bf16 %v1441_v54, %v1440_v0 }
  0xf9   :  { %v1439_v58 = vld [vmem:[#allocation2 + $0xe1] sm:$0xff]  ;;  %827 = vst.msk [vmem:[#allocation2 + $0x111] sm:$0xff] %vm717_vm2, %v674_v49  ;;  %v679_v59 = vmax.f32 %v503_v50, 0.0  ;;  %v495_v60 = vadd.f32 %v10062_v46, %v494_v55  ;;  %v10167_v61 = vpack.c.bf16 %v889_v56, %v888_v51 }
  0xfa   :  { %v1493_v62 = vpack.c.bf16 %v1439_v58, %v1438_v57  ;;  %v8825_v1 = vpop.f32.mrf.mxu0  ;;  %v894_v27 = vld [vmem:[#allocation2 + $0x120] sm:$0xff] }
  0xfb   :  { %832 = vst.msk [vmem:[#allocation2 + $0x151] sm:$0xff] %vm717_vm2, %v679_v59  ;;  %v677_v4 = vmax.f32 %v495_v60, 0.0  ;;  %v506_v5 = vadd.f32 %v8825_v1, %v10062_v46  ;;  %8881 = vmatmul.mubr.msk.bf16.gmra.mxu1 %vm717_vm2, %v10167_v61  ;;  %v1444_v28 = vld [vmem:[#allocation2 + $0x121] sm:$0xff] }
  0xfc   :  { %8947 = vmatmul.mubr.msk.bf16.gmra.mxu0 %vm717_vm2, %v1493_v62  ;;  %v497_v6 = vpop.f32.mrf.mxu0  ;;  %8884 = vmatprep.mubr.msk.bf16.mxu1 %vm717_vm2, %v10169_v2  ;;  %v892_v14 = vld [vmem:[#allocation2 + $0x108] sm:$0xff] }
  0xfd   :  { %8950 = vmatprep.mubr.msk.bf16.mxu0 %vm717_vm2, %v1494_v3  ;;  %830 = vst.msk [vmem:[#allocation2 + $0x139] sm:$0xff] %vm717_vm2, %v677_v4  ;;  %v680_v8 = vmax.f32 %v506_v5, 0.0  ;;  %v498_v9 = vadd.f32 %v10062_v46, %v497_v6  ;;  %v1442_v19 = vld [vmem:[#allocation2 + $0x109] sm:$0xff]  ;;  %v903_v6 = vld [vmem:[#allocation2 + $0x1b8] sm:$0xff] }
  0xfe   :  { %v8828_v10 = vpop.f32.mrf.mxu0  ;;  %v895_v15 = vld [vmem:[#allocation2 + $0x128] sm:$0xff]  ;;  %v902_v3 = vld [vmem:[#allocation2 + $0x1b0] sm:$0xff] }
  0xff   :  { %833 = vst.msk [vmem:[#allocation2 + $0x159] sm:$0xff] %vm717_vm2, %v680_v8  ;;  %v678_v11 = vmax.f32 %v498_v9, 0.0  ;;  %v519_v13 = vadd.f32 %v8828_v10, %v10062_v46  ;;  %v1445_v16 = vld [vmem:[#allocation2 + $0x129] sm:$0xff]  ;;  %v10187_v31 = vpack.c.bf16 %v895_v15, %v894_v27  ;;  %v1452_v8 = vld [vmem:[#allocation2 + $0x1b1] sm:$0xff]  ;;  %v1453_v9 = vld [vmem:[#allocation2 + $0x1b9] sm:$0xff] }
 0x100   :  { %v510_v17 = vpop.f32.mrf.mxu0  ;;  %v893_v18 = vld [vmem:[#allocation2 + $0x110] sm:$0xff]  ;;  %v1496_v32 = vpack.c.bf16 %v1445_v16, %v1444_v28 }
 0x101   :  { %v1443_v21 = vld [vmem:[#allocation2 + $0x111] sm:$0xff]  ;;  %831 = vst.msk [vmem:[#allocation2 + $0x141] sm:$0xff] %vm717_vm2, %v678_v11  ;;  %v683_v22 = vmax.f32 %v519_v13, 0.0  ;;  %v511_v23 = vadd.f32 %v10062_v46, %v510_v17  ;;  %v10185_v25 = vpack.c.bf16 %v893_v18, %v892_v14 }
 0x102   :  { %v1495_v26 = vpack.c.bf16 %v1443_v21, %v1442_v19  ;;  %v8829_v29 = vpop.f32.mrf.mxu0  ;;  %v898_v57 = vld [vmem:[#allocation2 + $0x150] sm:$0xff]  ;;  %v950_v19 = vpack.c.bf16 %v903_v6, %v902_v3  ;;  %v1500_v21 = vpack.c.bf16 %v1453_v9, %v1452_v8 }
 0x103   :  { %836 = vst.msk [vmem:[#allocation2 + $0x181] sm:$0xff] %vm717_vm2, %v683_v22  ;;  %v681_v33 = vmax.f32 %v511_v23, 0.0  ;;  %v522_v35 = vadd.f32 %v8829_v29, %v10062_v46  ;;  %8885 = vmatmul.mubr.msk.bf16.gmra.mxu1 %vm717_vm2, %v10185_v25  ;;  %v1448_v58 = vld [vmem:[#allocation2 + $0x151] sm:$0xff] }
 0x104   :  { %8951 = vmatmul.mubr.msk.bf16.gmra.mxu0 %vm717_vm2, %v1495_v26  ;;  %v513_v36 = vpop.f32.mrf.mxu0  ;;  %8888 = vmatprep.mubr.msk.bf16.mxu1 %vm717_vm2, %v10187_v31  ;;  %v896_v43 = vld [vmem:[#allocation2 + $0x138] sm:$0xff] }
 0x105   :  { %8954 = vmatprep.mubr.msk.bf16.mxu0 %vm717_vm2, %v1496_v32  ;;  %834 = vst.msk [vmem:[#allocation2 + $0x169] sm:$0xff] %vm717_vm2, %v681_v33  ;;  %v684_v37 = vmax.f32 %v522_v35, 0.0  ;;  %v514_v38 = vadd.f32 %v10062_v46, %v513_v36  ;;  %v1446_v50 = vld [vmem:[#allocation2 + $0x139] sm:$0xff] }
 0x106   :  { %v8832_v40 = vpop.f32.mrf.mxu0  ;;  %v899_v44 = vld [vmem:[#allocation2 + $0x158] sm:$0xff] }
 0x107   :  { %837 = vst.msk [vmem:[#allocation2 + $0x189] sm:$0xff] %vm717_vm2, %v684_v37  ;;  %v682_v41 = vmax.f32 %v514_v38, 0.0  ;;  %v535_v42 = vadd.f32 %v8832_v40, %v10062_v46  ;;  %v1449_v45 = vld [vmem:[#allocation2 + $0x159] sm:$0xff]  ;;  %v10205_v60 = vpack.c.bf16 %v899_v44, %v898_v57 }
 0x108   :  { %v526_v48 = vpop.f32.mrf.mxu0  ;;  %v897_v49 = vld [vmem:[#allocation2 + $0x140] sm:$0xff]  ;;  %v1498_v62 = vpack.c.bf16 %v1449_v45, %v1448_v58 }
 0x109   :  { %v1447_v51 = vld [vmem:[#allocation2 + $0x141] sm:$0xff]  ;;  %835 = vst.msk [vmem:[#allocation2 + $0x171] sm:$0xff] %vm717_vm2, %v682_v41  ;;  %v687_v53 = vmax.f32 %v535_v42, 0.0  ;;  %v527_v54 = vadd.f32 %v10062_v46, %v526_v48  ;;  %v10203_v55 = vpack.c.bf16 %v897_v49, %v896_v43 }
 0x10a   :  { %v1497_v56 = vpack.c.bf16 %v1447_v51, %v1446_v50  ;;  %v8833_v59 = vpop.f32.mrf.mxu0 }
 0x10b   :  { %840 = vst.msk [vmem:[#allocation2 + $0x1e1] sm:$0xff] %vm717_vm2, %v687_v53  ;;  %v685_v63 = vmax.f32 %v527_v54, 0.0  ;;  %v538_v0 = vadd.f32 %v8833_v59, %v10062_v46  ;;  %8889 = vmatmul.mubr.msk.bf16.gmra.mxu1 %vm717_vm2, %v10203_v55 }
 0x10c   :  { %8955 = vmatmul.mubr.msk.bf16.gmra.mxu0 %vm717_vm2, %v1497_v56  ;;  %v529_v1 = vpop.f32.mrf.mxu0  ;;  %8892 = vmatprep.mubr.msk.bf16.mxu1 %vm717_vm2, %v10205_v60  ;;  %v900_v14 = vld [vmem:[#allocation2 + $0x168] sm:$0xff] }
 0x10d   :  { %8958 = vmatprep.mubr.msk.bf16.mxu0 %vm717_vm2, %v1498_v62  ;;  %838 = vst.msk [vmem:[#allocation2 + $0x1c9] sm:$0xff] %vm717_vm2, %v685_v63  ;;  %v688_v4 = vmax.f32 %v538_v0, 0.0  ;;  %v530_v5 = vadd.f32 %v10062_v46, %v529_v1  ;;  %v1450_v17 = vld [vmem:[#allocation2 + $0x169] sm:$0xff] }
 0x10e   :  { %v8836_v10 = vpop.f32.mrf.mxu0 }
 0x10f   :  { %841 = vst.msk [vmem:[#allocation2 + $0x1e9] sm:$0xff] %vm717_vm2, %v688_v4  ;;  %v686_v11 = vmax.f32 %v530_v5, 0.0  ;;  %v551_v13 = vadd.f32 %v8836_v10, %v10062_v46 }
 0x110   :  { %v542_v15 = vpop.f32.mrf.mxu0  ;;  %v901_v16 = vld [vmem:[#allocation2 + $0x170] sm:$0xff] }
 0x111   :  { %v1451_v18 = vld [vmem:[#allocation2 + $0x171] sm:$0xff]  ;;  %839 = vst.msk [vmem:[#allocation2 + $0x1d1] sm:$0xff] %vm717_vm2, %v686_v11  ;;  %v691_v22 = vmax.f32 %v551_v13, 0.0  ;;  %v543_v23 = vadd.f32 %v10062_v46, %v542_v15  ;;  %v10221_v26 = vpack.c.bf16 %v901_v16, %v900_v14 }
 0x112   :  { %v1499_v27 = vpack.c.bf16 %v1451_v18, %v1450_v17  ;;  %v8837_v28 = vpop.f32.mrf.mxu0  ;;  %v906_v56 = vld [vmem:[#allocation2 + $0x1e0] sm:$0xff] }
 0x113   :  { %844 = vst.msk [vmem:[#allocation2 + $0x211] sm:$0xff] %vm717_vm2, %v691_v22  ;;  %v689_v29 = vmax.f32 %v543_v23, 0.0  ;;  %v554_v32 = vadd.f32 %v8837_v28, %v10062_v46  ;;  %8893 = vmatmul.mubr.msk.bf16.gmra.mxu1 %vm717_vm2, %v10221_v26  ;;  %v1456_v57 = vld [vmem:[#allocation2 + $0x1e1] sm:$0xff] }
 0x114   :  { %8959 = vmatmul.mubr.msk.bf16.gmra.mxu0 %vm717_vm2, %v1499_v27  ;;  %v545_v33 = vpop.f32.mrf.mxu0  ;;  %8896 = vmatprep.mubr.msk.bf16.mxu1 %vm717_vm2, %v950_v19  ;;  %v904_v41 = vld [vmem:[#allocation2 + $0x1c8] sm:$0xff] }
 0x115   :  { %8962 = vmatprep.mubr.msk.bf16.mxu0 %vm717_vm2, %v1500_v21  ;;  %842 = vst.msk [vmem:[#allocation2 + $0x1f9] sm:$0xff] %vm717_vm2, %v689_v29  ;;  %v692_v35 = vmax.f32 %v554_v32, 0.0  ;;  %v546_v36 = vadd.f32 %v10062_v46, %v545_v33  ;;  %v1454_v48 = vld [vmem:[#allocation2 + $0x1c9] sm:$0xff] }
 0x116   :  { %v8840_v37 = vpop.f32.mrf.mxu0  ;;  %v907_v42 = vld [vmem:[#allocation2 + $0x1e8] sm:$0xff] }
 0x117   :  { %845 = vst.msk [vmem:[#allocation2 + $0x219] sm:$0xff] %vm717_vm2, %v692_v35  ;;  %v690_v38 = vmax.f32 %v546_v36, 0.0  ;;  %v567_v40 = vadd.f32 %v8840_v37, %v10062_v46  ;;  %v1457_v43 = vld [vmem:[#allocation2 + $0x1e9] sm:$0xff]  ;;  %v10238_v59 = vpack.c.bf16 %v907_v42, %v906_v56 }
 0x118   :  { %v558_v44 = vpop.f32.mrf.mxu0  ;;  %v905_v45 = vld [vmem:[#allocation2 + $0x1d0] sm:$0xff]  ;;  %v1502_v62 = vpack.c.bf16 %v1457_v43, %v1456_v57 }
 0x119   :  { %v1455_v49 = vld [vmem:[#allocation2 + $0x1d1] sm:$0xff]  ;;  %843 = vst.msk [vmem:[#allocation2 + $0x201] sm:$0xff] %vm717_vm2, %v690_v38  ;;  %v695_v50 = vmax.f32 %v567_v40, 0.0  ;;  %v559_v51 = vadd.f32 %v10062_v46, %v558_v44  ;;  %v10236_v53 = vpack.c.bf16 %v905_v45, %v904_v41 }
 0x11a   :  { %v1501_v54 = vpack.c.bf16 %v1455_v49, %v1454_v48  ;;  %v8841_v58 = vpop.f32.mrf.mxu0  ;;  %v910_v22 = vld [vmem:[#allocation2 + $0x210] sm:$0xff] }
 0x11b   :  { %848 = vst.msk [vmem:[#allocation2 + $0x241] sm:$0xff] %vm717_vm2, %v695_v50  ;;  %v693_v63 = vmax.f32 %v559_v51, 0.0  ;;  %v570_v0 = vadd.f32 %v8841_v58, %v10062_v46  ;;  %8897 = vmatmul.mubr.msk.bf16.gmra.mxu1 %vm717_vm2, %v10236_v53  ;;  %v1460_v23 = vld [vmem:[#allocation2 + $0x211] sm:$0xff] }
 0x11c   :  { %8963 = vmatmul.mubr.msk.bf16.gmra.mxu0 %vm717_vm2, %v1501_v54  ;;  %v561_v1 = vpop.f32.mrf.mxu0  ;;  %8900 = vmatprep.mubr.msk.bf16.mxu1 %vm717_vm2, %v10238_v59  ;;  %v908_v9 = vld [vmem:[#allocation2 + $0x1f8] sm:$0xff] }
 0x11d   :  { %8966 = vmatprep.mubr.msk.bf16.mxu0 %vm717_vm2, %v1502_v62  ;;  %846 = vst.msk [vmem:[#allocation2 + $0x229] sm:$0xff] %vm717_vm2, %v693_v63  ;;  %v696_v3 = vmax.f32 %v570_v0, 0.0  ;;  %v562_v4 = vadd.f32 %v10062_v46, %v561_v1  ;;  %v1458_v15 = vld [vmem:[#allocation2 + $0x1f9] sm:$0xff] }
 0x11e   :  { %v8844_v5 = vpop.f32.mrf.mxu0  ;;  %v911_v10 = vld [vmem:[#allocation2 + $0x218] sm:$0xff] }
 0x11f   :  { %849 = vst.msk [vmem:[#allocation2 + $0x249] sm:$0xff] %vm717_vm2, %v696_v3  ;;  %v694_v6 = vmax.f32 %v562_v4, 0.0  ;;  %v583_v8 = vadd.f32 %v8844_v5, %v10062_v46  ;;  %v1461_v11 = vld [vmem:[#allocation2 + $0x219] sm:$0xff]  ;;  %v10256_v28 = vpack.c.bf16 %v911_v10, %v910_v22 }
 0x120   :  { %v574_v13 = vpop.f32.mrf.mxu0  ;;  %v909_v14 = vld [vmem:[#allocation2 + $0x200] sm:$0xff]  ;;  %v1504_v29 = vpack.c.bf16 %v1461_v11, %v1460_v23 }
 0x121   :  { %v1459_v16 = vld [vmem:[#allocation2 + $0x201] sm:$0xff]  ;;  %847 = vst.msk [vmem:[#allocation2 + $0x231] sm:$0xff] %vm717_vm2, %v694_v6  ;;  %v699_v17 = vmax.f32 %v583_v8, 0.0  ;;  %v575_v18 = vadd.f32 %v10062_v46, %v574_v13  ;;  %v10254_v19 = vpack.c.bf16 %v909_v14, %v908_v9 }
 0x122   :  { %v1503_v21 = vpack.c.bf16 %v1459_v16, %v1458_v15  ;;  %v8845_v27 = vpop.f32.mrf.mxu0  ;;  %v914_v58 = vld [vmem:[#allocation2 + $0x240] sm:$0xff] }
 0x123   :  { %852 = vst.msk [vmem:[#allocation2 + $0x271] sm:$0xff] %vm717_vm2, %v699_v17  ;;  %v697_v32 = vmax.f32 %v575_v18, 0.0  ;;  %v586_v33 = vadd.f32 %v8845_v27, %v10062_v46  ;;  %8901 = vmatmul.mubr.msk.bf16.gmra.mxu1 %vm717_vm2, %v10254_v19  ;;  %v1464_v62 = vld [vmem:[#allocation2 + $0x241] sm:$0xff] }
 0x124   :  { %8967 = vmatmul.mubr.msk.bf16.gmra.mxu0 %vm717_vm2, %v1503_v21  ;;  %v577_v35 = vpop.f32.mrf.mxu0  ;;  %8904 = vmatprep.mubr.msk.bf16.mxu1 %vm717_vm2, %v10256_v28  ;;  %v912_v42 = vld [vmem:[#allocation2 + $0x228] sm:$0xff] }
 0x125   :  { %8970 = vmatprep.mubr.msk.bf16.mxu0 %vm717_vm2, %v1504_v29  ;;  %850 = vst.msk [vmem:[#allocation2 + $0x259] sm:$0xff] %vm717_vm2, %v697_v32  ;;  %v700_v36 = vmax.f32 %v586_v33, 0.0  ;;  %v578_v37 = vadd.f32 %v10062_v46, %v577_v35  ;;  %v1462_v49 = vld [vmem:[#allocation2 + $0x229] sm:$0xff] }
 0x126   :  { %v8848_v38 = vpop.f32.mrf.mxu0  ;;  %v915_v43 = vld [vmem:[#allocation2 + $0x248] sm:$0xff] }
 0x127   :  { %853 = vst.msk [vmem:[#allocation2 + $0x279] sm:$0xff] %vm717_vm2, %v700_v36  ;;  %v698_v40 = vmax.f32 %v578_v37, 0.0  ;;  %v599_v41 = vadd.f32 %v8848_v38, %v10062_v46  ;;  %v1465_v44 = vld [vmem:[#allocation2 + $0x249] sm:$0xff]  ;;  %v10274_v0 = vpack.c.bf16 %v915_v43, %v914_v58 }
 0x128   :  { %v590_v45 = vpop.f32.mrf.mxu0  ;;  %v913_v48 = vld [vmem:[#allocation2 + $0x230] sm:$0xff]  ;;  %v1506_v1 = vpack.c.bf16 %v1465_v44, %v1464_v62 }
 0x129   :  { %v1463_v50 = vld [vmem:[#allocation2 + $0x231] sm:$0xff]  ;;  %851 = vst.msk [vmem:[#allocation2 + $0x261] sm:$0xff] %vm717_vm2, %v698_v40  ;;  %v703_v51 = vmax.f32 %v599_v41, 0.0  ;;  %v591_v54 = vadd.f32 %v10062_v46, %v590_v45  ;;  %v10272_v56 = vpack.c.bf16 %v913_v48, %v912_v42 }
 0x12a   :  { %v1505_v57 = vpack.c.bf16 %v1463_v50, %v1462_v49  ;;  %v8849_v63 = vpop.f32.mrf.mxu0  ;;  %v918_v32 = vld [vmem:[#allocation2 + $0x270] sm:$0xff] }
 0x12b   :  { %856 = vst.msk [vmem:[#allocation2 + $0x2a1] sm:$0xff] %vm717_vm2, %v703_v51  ;;  %v701_v3 = vmax.f32 %v591_v54, 0.0  ;;  %v602_v4 = vadd.f32 %v8849_v63, %v10062_v46  ;;  %8905 = vmatmul.mubr.msk.bf16.gmra.mxu1 %vm717_vm2, %v10272_v56  ;;  %v1468_v33 = vld [vmem:[#allocation2 + $0x271] sm:$0xff] }
 0x12c   :  { %8971 = vmatmul.mubr.msk.bf16.gmra.mxu0 %vm717_vm2, %v1505_v57  ;;  %v593_v5 = vpop.f32.mrf.mxu0  ;;  %8908 = vmatprep.mubr.msk.bf16.mxu1 %vm717_vm2, %v10274_v0  ;;  %v916_v13 = vld [vmem:[#allocation2 + $0x258] sm:$0xff] }
 0x12d   :  { %8974 = vmatprep.mubr.msk.bf16.mxu0 %vm717_vm2, %v1506_v1  ;;  %854 = vst.msk [vmem:[#allocation2 + $0x289] sm:$0xff] %vm717_vm2, %v701_v3  ;;  %v704_v6 = vmax.f32 %v602_v4, 0.0  ;;  %v594_v8 = vadd.f32 %v10062_v46, %v593_v5  ;;  %v1466_v18 = vld [vmem:[#allocation2 + $0x259] sm:$0xff] }
 0x12e   :  { %v8852_v9 = vpop.f32.mrf.mxu0  ;;  %v919_v14 = vld [vmem:[#allocation2 + $0x278] sm:$0xff] }
 0x12f   :  { %857 = vst.msk [vmem:[#allocation2 + $0x2a9] sm:$0xff] %vm717_vm2, %v704_v6  ;;  %v702_v10 = vmax.f32 %v594_v8, 0.0  ;;  %v615_v11 = vadd.f32 %v8852_v9, %v10062_v46  ;;  %v1469_v15 = vld [vmem:[#allocation2 + $0x279] sm:$0xff]  ;;  %v10292_v36 = vpack.c.bf16 %v919_v14, %v918_v32 }
 0x130   :  { %v606_v16 = vpop.f32.mrf.mxu0  ;;  %v917_v17 = vld [vmem:[#allocation2 + $0x260] sm:$0xff]  ;;  %v1508_v37 = vpack.c.bf16 %v1469_v15, %v1468_v33 }
 0x131   :  { %v1467_v21 = vld [vmem:[#allocation2 + $0x261] sm:$0xff]  ;;  %855 = vst.msk [vmem:[#allocation2 + $0x291] sm:$0xff] %vm717_vm2, %v702_v10  ;;  %v707_v22 = vmax.f32 %v615_v11, 0.0  ;;  %v607_v23 = vadd.f32 %v10062_v46, %v606_v16  ;;  %v10290_v27 = vpack.c.bf16 %v917_v17, %v916_v13 }
 0x132   :  { %v1507_v29 = vpack.c.bf16 %v1467_v21, %v1466_v18  ;;  %v8853_v35 = vpop.f32.mrf.mxu0  ;;  %v922_v5 = vld [vmem:[#allocation2 + $0x2a0] sm:$0xff] }
 0x133   :  { %860 = vst.msk [vmem:[#allocation2 + $0x2d1] sm:$0xff] %vm717_vm2, %v707_v22  ;;  %v705_v38 = vmax.f32 %v607_v23, 0.0  ;;  %v618_v40 = vadd.f32 %v8853_v35, %v10062_v46  ;;  %8909 = vmatmul.mubr.msk.bf16.gmra.mxu1 %vm717_vm2, %v10290_v27  ;;  %v1472_v6 = vld [vmem:[#allocation2 + $0x2a1] sm:$0xff] }
 0x134   :  { %8975 = vmatmul.mubr.msk.bf16.gmra.mxu0 %vm717_vm2, %v1507_v29  ;;  %v609_v41 = vpop.f32.mrf.mxu0  ;;  %8912 = vmatprep.mubr.msk.bf16.mxu1 %vm717_vm2, %v10292_v36  ;;  %v920_v49 = vld [vmem:[#allocation2 + $0x288] sm:$0xff] }
 0x135   :  { %8978 = vmatprep.mubr.msk.bf16.mxu0 %vm717_vm2, %v1508_v37  ;;  %858 = vst.msk [vmem:[#allocation2 + $0x2b9] sm:$0xff] %vm717_vm2, %v705_v38  ;;  %v708_v42 = vmax.f32 %v618_v40, 0.0  ;;  %v610_v43 = vadd.f32 %v10062_v46, %v609_v41  ;;  %v1470_v58 = vld [vmem:[#allocation2 + $0x289] sm:$0xff] }
 0x136   :  { %v8856_v44 = vpop.f32.mrf.mxu0  ;;  %v923_v50 = vld [vmem:[#allocation2 + $0x2a8] sm:$0xff] }
 0x137   :  { %861 = vst.msk [vmem:[#allocation2 + $0x2d9] sm:$0xff] %vm717_vm2, %v708_v42  ;;  %v706_v45 = vmax.f32 %v610_v43, 0.0  ;;  %v631_v48 = vadd.f32 %v8856_v44, %v10062_v46  ;;  %v1473_v51 = vld [vmem:[#allocation2 + $0x2a9] sm:$0xff]  ;;  %v10310_v9 = vpack.c.bf16 %v923_v50, %v922_v5 }
 0x138   :  { %v622_v54 = vpop.f32.mrf.mxu0  ;;  %v921_v57 = vld [vmem:[#allocation2 + $0x290] sm:$0xff]  ;;  %v1510_v10 = vpack.c.bf16 %v1473_v51, %v1472_v6 }
 0x139   :  { %v1471_v62 = vld [vmem:[#allocation2 + $0x291] sm:$0xff]  ;;  %859 = vst.msk [vmem:[#allocation2 + $0x2c1] sm:$0xff] %vm717_vm2, %v706_v45  ;;  %v711_v63 = vmax.f32 %v631_v48, 0.0  ;;  %v623_v1 = vadd.f32 %v10062_v46, %v622_v54  ;;  %v10308_v3 = vpack.c.bf16 %v921_v57, %v920_v49 }
 0x13a   :  { %v1509_v4 = vpack.c.bf16 %v1471_v62, %v1470_v58  ;;  %v8857_v8 = vpop.f32.mrf.mxu0  ;;  %v926_v43 = vld [vmem:[#allocation2 + $0x2d0] sm:$0xff] }
 0x13b   :  { %864 = vst.msk [vmem:[#allocation2 + $0x301] sm:$0xff] %vm717_vm2, %v711_v63  ;;  %v709_v11 = vmax.f32 %v623_v1, 0.0  ;;  %v634_v13 = vadd.f32 %v8857_v8, %v10062_v46  ;;  %8913 = vmatmul.mubr.msk.bf16.gmra.mxu1 %vm717_vm2, %v10308_v3  ;;  %v1476_v44 = vld [vmem:[#allocation2 + $0x2d1] sm:$0xff] }
 0x13c   :  { %8979 = vmatmul.mubr.msk.bf16.gmra.mxu0 %vm717_vm2, %v1509_v4  ;;  %v625_v14 = vpop.f32.mrf.mxu0  ;;  %8916 = vmatprep.mubr.msk.bf16.mxu1 %vm717_vm2, %v10310_v9  ;;  %v924_v22 = vld [vmem:[#allocation2 + $0x2b8] sm:$0xff] }
 0x13d   :  { %8982 = vmatprep.mubr.msk.bf16.mxu0 %vm717_vm2, %v1510_v10  ;;  %862 = vst.msk [vmem:[#allocation2 + $0x2e9] sm:$0xff] %vm717_vm2, %v709_v11  ;;  %v712_v15 = vmax.f32 %v634_v13, 0.0  ;;  %v626_v16 = vadd.f32 %v10062_v46, %v625_v14  ;;  %v1474_v35 = vld [vmem:[#allocation2 + $0x2b9] sm:$0xff] }
 0x13e   :  { %v8860_v17 = vpop.f32.mrf.mxu0  ;;  %v927_v23 = vld [vmem:[#allocation2 + $0x2d8] sm:$0xff] }
 0x13f   :  { %865 = vst.msk [vmem:[#allocation2 + $0x309] sm:$0xff] %vm717_vm2, %v712_v15  ;;  %v710_v18 = vmax.f32 %v626_v16, 0.0  ;;  %v647_v21 = vadd.f32 %v8860_v17, %v10062_v46  ;;  %v1477_v29 = vld [vmem:[#allocation2 + $0x2d9] sm:$0xff]  ;;  %v10328_v48 = vpack.c.bf16 %v927_v23, %v926_v43  ;;  %v2099_v17 = vld [vmem:[#allocation2 + $0xa] sm:$0xff] }
 0x140   :  { %v638_v32 = vpop.f32.mrf.mxu0  ;;  %v925_v33 = vld [vmem:[#allocation2 + $0x2c0] sm:$0xff]  ;;  %v1512_v49 = vpack.c.bf16 %v1477_v29, %v1476_v44  ;;  %v3649_v44 = vsel %vm1063_vm5, %v10100_v30, 0  ;;  %v2105_v30 = vld [vmem:[#allocation2 + $0x52] sm:$0xff] }
 0x141   :  { %v1475_v37 = vld [vmem:[#allocation2 + $0x2c1] sm:$0xff]  ;;  %863 = vst.msk [vmem:[#allocation2 + $0x2f1] sm:$0xff] %vm717_vm2, %v710_v18  ;;  %v715_v38 = vmax.f32 %v647_v21, 0.0  ;;  %v639_v40 = vadd.f32 %v10062_v46, %v638_v32  ;;  %v10326_v41 = vpack.c.bf16 %v925_v33, %v924_v22 }
 0x142   :  { %v1511_v42 = vpack.c.bf16 %v1475_v37, %v1474_v35  ;;  %v8861_v45 = vpop.f32.mrf.mxu0  ;;  %v930_v13 = vld [vmem:[#allocation2 + $0x300] sm:$0xff] }
 0x143   :  { %868 = vst.msk [vmem:[#allocation2 + $0x331] sm:$0xff] %vm717_vm2, %v715_v38  ;;  %v713_v50 = vmax.f32 %v639_v40, 0.0  ;;  %v650_v51 = vadd.f32 %v8861_v45, %v10062_v46  ;;  %8917 = vmatmul.mubr.msk.bf16.gmra.mxu1 %vm717_vm2, %v10326_v41  ;;  %v1480_v14 = vld [vmem:[#allocation2 + $0x301] sm:$0xff]  ;;  %v2102_v38 = vld [vmem:[#allocation2 + $0x32] sm:$0xff] }
 0x144   :  { %8983 = vmatmul.mubr.msk.bf16.gmra.mxu0 %vm717_vm2, %v1511_v42  ;;  %v641_v54 = vpop.f32.mrf.mxu0  ;;  %8920 = vmatprep.mubr.msk.bf16.mxu1 %vm717_vm2, %v10328_v48  ;;  %v928_v63 = vld [vmem:[#allocation2 + $0x2e8] sm:$0xff]  ;;  %v2100_v35 = vld [vmem:[#allocation2 + $0x1a] sm:$0xff]  ;;  %v8202_v42 = vld [vmem:[%s11898_s3 + $0x14] sm:$0xf] }
 0x145   :  { %8986 = vmatprep.mubr.msk.bf16.mxu0 %vm717_vm2, %v1512_v49  ;;  %866 = vst.msk [vmem:[#allocation2 + $0x319] sm:$0xff] %vm717_vm2, %v713_v50  ;;  %v716_v57 = vmax.f32 %v650_v51, 0.0  ;;  %v642_v58 = vadd.f32 %v10062_v46, %v641_v54  ;;  %v1478_v6 = vld [vmem:[#allocation2 + $0x2e9] sm:$0xff]  ;;  %v2103_v40 = vld [vmem:[#allocation2 + $0x3a] sm:$0xff]  ;;  %9594 = vmatprep.subr.msk.bf16.mxu0 %vm1063_vm5, %v8202_v42 }
 0x146   :  { %v931_v1 = vld [vmem:[#allocation2 + $0x308] sm:$0xff]  ;;  %v10368_v45 = vpack.c.bf16 %v2103_v40, %v2102_v38 }
 0x147   :  { %869 = vst.msk [vmem:[#allocation2 + $0x339] sm:$0xff] %vm717_vm2, %v716_v57  ;;  %v714_v62 = vmax.f32 %v642_v58, 0.0  ;;  %v1481_v4 = vld [vmem:[#allocation2 + $0x309] sm:$0xff]  ;;  %v10344_v15 = vpack.c.bf16 %v931_v1, %v930_v13  ;;  %v2118_v13 = vld [vmem:[#allocation2 + $0xf2] sm:$0xff] }
 0x148   :  { %v929_v5 = vld [vmem:[#allocation2 + $0x2f0] sm:$0xff]  ;;  %v1514_v16 = vpack.c.bf16 %v1481_v4, %v1480_v14  ;;  %v2098_v46 = vld [vmem:[#allocation2 + $0x2] sm:$0xff]  ;;  %v2119_v14 = vld [vmem:[#allocation2 + $0xfa] sm:$0xff] }
 0x149   :  { %v1479_v8 = vld [vmem:[#allocation2 + $0x2f1] sm:$0xff]  ;;  %867 = vst.msk [vmem:[#allocation2 + $0x321] sm:$0xff] %vm717_vm2, %v714_v62  ;;  %v10342_v10 = vpack.c.bf16 %v929_v5, %v928_v63  ;;  %v2162_v29 = vpack.c.bf16 %v2099_v17, %v2098_v46  ;;  %v2101_v37 = vld [vmem:[#allocation2 + $0x22] sm:$0xff]  ;;  %v2111_v63 = vld [vmem:[#allocation2 + $0x9a] sm:$0xff]  ;;  %v2172_v46 = vpack.c.bf16 %v2119_v14, %v2118_v13 }
 0x14a   :  { %v1513_v11 = vpack.c.bf16 %v1479_v8, %v1478_v6  ;;  %v10364_v43 = vpack.c.bf16 %v2101_v37, %v2100_v35  ;;  %v2104_v49 = vld [vmem:[#allocation2 + $0x4a] sm:$0xff]  ;;  %v2106_v50 = vld [vmem:[#allocation2 + $0x62] sm:$0xff]  ;;  %v2110_v62 = vld [vmem:[#allocation2 + $0x92] sm:$0xff] }
 0x14b   :  { %8921 = vmatmul.mubr.msk.bf16.gmra.mxu1 %vm717_vm2, %v10342_v10  ;;  %v2107_v51 = vld [vmem:[#allocation2 + $0x6a] sm:$0xff]  ;;  %v10379_v54 = vpack.c.bf16 %v2105_v30, %v2104_v49  ;;  %v2109_v58 = vld [vmem:[#allocation2 + $0x82] sm:$0xff]  ;;  %v2113_v4 = vld [vmem:[#allocation2 + $0xb2] sm:$0xff] }
 0x14c   :  { %8987 = vmatmul.mubr.msk.bf16.gmra.mxu0 %vm717_vm2, %v1513_v11  ;;  %8924 = vmatprep.mubr.msk.bf16.mxu1 %vm717_vm2, %v10344_v15  ;;  %v932_v18 = vld [vmem:[#allocation2 + $0x318] sm:$0xff]  ;;  %v10381_v57 = vpack.c.bf16 %v2107_v51, %v2106_v50  ;;  %v2114_v5 = vld [vmem:[#allocation2 + $0xc2] sm:$0xff]  ;;  %v2115_v6 = vld [vmem:[#allocation2 + $0xca] sm:$0xff] }
 0x14d   :  { %8990 = vmatprep.mubr.msk.bf16.mxu0 %vm717_vm2, %v1514_v16  ;;  %v1482_v22 = vld [vmem:[#allocation2 + $0x319] sm:$0xff]  ;;  %v2170_v11 = vpack.c.bf16 %v2115_v6, %v2114_v5  ;;  %v2128_v38 = vld [vmem:[#allocation2 + $0x16a] sm:$0xff]  ;;  %v2134_v30 = vld [vmem:[#allocation2 + $0x1e2] sm:$0xff] }
 0x14e   :  { %v2121_v17 = vld [vmem:[#allocation2 + $0x112] sm:$0xff]  ;;  %v2131_v37 = vld [vmem:[#allocation2 + $0x1ba] sm:$0xff]  ;;  %v2807_v40 = vld [vmem:[#allocation2 + $0x188] sm:$0xff] }
 0x14f   :  { %v2135_v50 = vld [vmem:[#allocation2 + $0x1ea] sm:$0xff] }
 0x150   :  { %v933_v21 = vld [vmem:[#allocation2 + $0x320] sm:$0xff] }
 0x151   :  { %v1483_v23 = vld [vmem:[#allocation2 + $0x321] sm:$0xff]  ;;  %v10352_v32 = vpack.c.bf16 %v933_v21, %v932_v18 }
 0x152   :  { %v1515_v33 = vpack.c.bf16 %v1483_v23, %v1482_v22  ;;  %v2122_v18 = vld [vmem:[#allocation2 + $0x122] sm:$0xff] }
 0x153   :  { %8925 = vmatmul.mubr.msk.bf16.gmra.mxu1 %vm717_vm2, %v10352_v32  ;;  %v2125_v23 = vld [vmem:[#allocation2 + $0x142] sm:$0xff] }
 0x154   :  { %8991 = vmatmul.mubr.msk.bf16.gmra.mxu0 %vm717_vm2, %v1515_v33  ;;  %8996 = vmatprep.mubr.msk.bf16.mxu1 %vm717_vm2, %v2162_v29  ;;  %v2126_v29 = vld [vmem:[#allocation2 + $0x152] sm:$0xff] }
 0x155   :  { %9062 = vmatprep.mubr.msk.bf16.mxu0 %vm717_vm2, %v10087_v20  ;;  %v4327_v20 = vsel %vm1063_vm5, %v8202_v42, 0  ;;  %v2806_v42 = vld [vmem:[#allocation2 + $0x180] sm:$0xff] }
 0x156   :  { %v2855_v49 = vpack.c.bf16 %v2807_v40, %v2806_v42 }
 0x15b   :  { %8997 = vmatmul.mubr.msk.bf16.vlgmr.msra.gmra.mxu1 %vm717_vm2, %v10364_v43 }
 0x15c   :  { %9063 = vmatmul.mubr.msk.bf16.vlgmr.msra.gmra.mxu0 %vm717_vm2, %v10089_v24  ;;  %9127 = vmatpush3.bf16.msra.mxu1 %v3649_v44  ;;  %v10394_v24 = vld [vmem:[%s11898_s3 + $0x18] sm:$0xf] }
 0x15d   :  { %9000 = vmatprep.mubr.msk.bf16.mxu1 %vm717_vm2, %v10368_v45  ;;  %9066 = vmatprep.mubr.msk.bf16.mxu0 %vm717_vm2, %v10113_v47  ;;  %v2108_v47 = vld [vmem:[#allocation2 + $0x7a] sm:$0xff] }
 0x15e   :  { %9193 = vmatpush3.bf16.msra.mxu0 %v4327_v20  ;;  %9595 = vmatprep.subr.msk.bf16.mxu1 %vm1063_vm5, %v10394_v24  ;;  %v10398_v1 = vpack.c.bf16 %v2109_v58, %v2108_v47  ;;  %v2180_v47 = vpack.c.bf16 %v2135_v50, %v2134_v30 }
 0x163   :  { %9001 = vmatmul.mubr.msk.bf16.gmra.mxu1 %vm717_vm2, %v10379_v54 }
 0x164   :  { %9067 = vmatmul.mubr.msk.bf16.gmra.mxu0 %vm717_vm2, %v10115_v52  ;;  %9004 = vmatprep.mubr.msk.bf16.mxu1 %vm717_vm2, %v10381_v57  ;;  %v10400_v52 = vpack.c.bf16 %v2111_v63, %v2110_v62 }
 0x165   :  { %9070 = vmatprep.mubr.msk.bf16.mxu0 %vm717_vm2, %v10131_v7  ;;  %v2112_v7 = vld [vmem:[#allocation2 + $0xaa] sm:$0xff] }
 0x166   :  { %v10410_v8 = vpack.c.bf16 %v2113_v4, %v2112_v7  ;;  %v2136_v7 = vld [vmem:[#allocation2 + $0x1fa] sm:$0xff]  ;;  %v2137_v4 = vld [vmem:[#allocation2 + $0x202] sm:$0xff] }
 0x167   :  { %v2181_v13 = vpack.c.bf16 %v2137_v4, %v2136_v7 }
 0x16b   :  { %9005 = vmatmul.mubr.msk.bf16.gmra.mxu1 %vm717_vm2, %v10398_v1 }
 0x16c   :  { %9071 = vmatmul.mubr.msk.bf16.gmra.mxu0 %vm717_vm2, %v10133_v12  ;;  %9008 = vmatprep.mubr.msk.bf16.mxu1 %vm717_vm2, %v10400_v52  ;;  %v2116_v12 = vld [vmem:[#allocation2 + $0xda] sm:$0xff] }
 0x16d   :  { %9074 = vmatprep.mubr.msk.bf16.mxu0 %vm717_vm2, %v10149_v34  ;;  %v2117_v34 = vld [vmem:[#allocation2 + $0xe2] sm:$0xff] }
 0x16e   :  { %v2171_v16 = vpack.c.bf16 %v2117_v34, %v2116_v12  ;;  %v2139_v12 = vld [vmem:[#allocation2 + $0x21a] sm:$0xff] }
 0x173   :  { %9009 = vmatmul.mubr.msk.bf16.gmra.mxu1 %vm717_vm2, %v10410_v8 }
 0x174   :  { %9075 = vmatmul.mubr.msk.bf16.gmra.mxu0 %vm717_vm2, %v10151_v39  ;;  %9012 = vmatprep.mubr.msk.bf16.mxu1 %vm717_vm2, %v2170_v11  ;;  %v2120_v39 = vld [vmem:[#allocation2 + $0x10a] sm:$0xff]  ;;  %v2138_v11 = vld [vmem:[#allocation2 + $0x212] sm:$0xff] }
 0x175   :  { %9078 = vmatprep.mubr.msk.bf16.mxu0 %vm717_vm2, %v10167_v61  ;;  %v2123_v61 = vld [vmem:[#allocation2 + $0x12a] sm:$0xff]  ;;  %v2173_v21 = vpack.c.bf16 %v2121_v17, %v2120_v39  ;;  %v2182_v14 = vpack.c.bf16 %v2139_v12, %v2138_v11 }
 0x176   :  { %v2174_v22 = vpack.c.bf16 %v2123_v61, %v2122_v18 }
 0x17b   :  { %9013 = vmatmul.mubr.msk.bf16.gmra.mxu1 %vm717_vm2, %v2171_v16 }
 0x17c   :  { %9079 = vmatmul.mubr.msk.bf16.gmra.mxu0 %vm717_vm2, %v10169_v2  ;;  %9016 = vmatprep.mubr.msk.bf16.mxu1 %vm717_vm2, %v2172_v46  ;;  %v2124_v2 = vld [vmem:[#allocation2 + $0x13a] sm:$0xff] }
 0x17d   :  { %9082 = vmatprep.mubr.msk.bf16.mxu0 %vm717_vm2, %v10185_v25  ;;  %v2127_v25 = vld [vmem:[#allocation2 + $0x15a] sm:$0xff]  ;;  %v2175_v33 = vpack.c.bf16 %v2125_v23, %v2124_v2  ;;  %v2141_v2 = vld [vmem:[#allocation2 + $0x232] sm:$0xff] }
 0x17e   :  { %v2176_v35 = vpack.c.bf16 %v2127_v25, %v2126_v29  ;;  %v2142_v25 = vld [vmem:[#allocation2 + $0x242] sm:$0xff] }
 0x183   :  { %9017 = vmatmul.mubr.msk.bf16.gmra.mxu1 %vm717_vm2, %v2173_v21 }
 0x184   :  { %9083 = vmatmul.mubr.msk.bf16.gmra.mxu0 %vm717_vm2, %v10187_v31  ;;  %9020 = vmatprep.mubr.msk.bf16.mxu1 %vm717_vm2, %v2174_v22  ;;  %v2130_v31 = vld [vmem:[#allocation2 + $0x1b2] sm:$0xff]  ;;  %v2140_v22 = vld [vmem:[#allocation2 + $0x22a] sm:$0xff] }
 0x185   :  { %9086 = vmatprep.mubr.msk.bf16.mxu0 %vm717_vm2, %v10203_v55  ;;  %v2129_v55 = vld [vmem:[#allocation2 + $0x172] sm:$0xff]  ;;  %v2178_v44 = vpack.c.bf16 %v2131_v37, %v2130_v31 }
 0x186   :  { %v2177_v20 = vpack.c.bf16 %v2129_v55, %v2128_v38  ;;  %v2183_v38 = vpack.c.bf16 %v2141_v2, %v2140_v22  ;;  %v2150_v22 = vld [vmem:[#allocation2 + $0x2a2] sm:$0xff]  ;;  %v2151_v2 = vld [vmem:[#allocation2 + $0x2aa] sm:$0xff] }
 0x18b   :  { %9021 = vmatmul.mubr.msk.bf16.gmra.mxu1 %vm717_vm2, %v2175_v33  ;;  %v2143_v33 = vld [vmem:[#allocation2 + $0x24a] sm:$0xff] }
 0x18c   :  { %9087 = vmatmul.mubr.msk.bf16.gmra.mxu0 %vm717_vm2, %v10205_v60  ;;  %9024 = vmatprep.mubr.msk.bf16.mxu1 %vm717_vm2, %v2176_v35  ;;  %v2132_v60 = vld [vmem:[#allocation2 + $0x1ca] sm:$0xff]  ;;  %v2184_v40 = vpack.c.bf16 %v2143_v33, %v2142_v25 }
 0x18d   :  { %9090 = vmatprep.mubr.msk.bf16.mxu0 %vm717_vm2, %v10221_v26  ;;  %v2133_v26 = vld [vmem:[#allocation2 + $0x1d2] sm:$0xff] }
 0x18e   :  { %v2179_v51 = vpack.c.bf16 %v2133_v26, %v2132_v60 }
 0x193   :  { %9025 = vmatmul.mubr.msk.bf16.gmra.mxu1 %vm717_vm2, %v2177_v20 }
 0x194   :  { %9091 = vmatmul.mubr.msk.bf16.gmra.mxu0 %vm717_vm2, %v2855_v49  ;;  %9028 = vmatprep.mubr.msk.bf16.mxu1 %vm717_vm2, %v2178_v44 }
 0x195   :  { %9094 = vmatprep.mubr.msk.bf16.mxu0 %vm717_vm2, %v10236_v53 }
 0x19b   :  { %v8866_v58 = vpop.f32.mrf.mxu1  ;;  %9029 = vmatmul.mubr.msk.bf16.gmra.mxu1 %vm717_vm2, %v2179_v51  ;;  %v2144_v51 = vld [vmem:[#allocation2 + $0x25a] sm:$0xff] }
 0x19c   :  { %v8932_v62 = vpop.f32.mrf.mxu0  ;;  %9095 = vmatmul.mubr.msk.bf16.gmra.mxu0 %vm717_vm2, %v10238_v59  ;;  %1358 = vst.msk [vmem:[#allocation3 + $0x10] sm:$0xff] %vm717_vm2, %v8866_v58  ;;  %9032 = vmatprep.mubr.msk.bf16.mxu1 %vm717_vm2, %v2180_v47 }
 0x19d   :  { %9098 = vmatprep.mubr.msk.bf16.mxu0 %vm717_vm2, %v10254_v19  ;;  %v1101_v53 = vpop.f32.mrf.mxu1 }
 0x19e   :  { %v1651_v63 = vpop.f32.mrf.mxu0  ;;  %1356 = vst.msk [vmem:[#allocation3] sm:$0xff] %vm717_vm2, %v1101_v53  ;;  %v2146_v53 = vld [vmem:[#allocation2 + $0x272] sm:$0xff] }
 0x19f   :  { %v8867_v5 = vpop.f32.mrf.mxu1 }
 0x1a0   :  { %v8933_v6 = vpop.f32.mrf.mxu0  ;;  %1359 = vst.msk [vmem:[#allocation3 + $0x18] sm:$0xff] %vm717_vm2, %v8867_v5 }
 0x1a1   :  { %v1104_v59 = vpop.f32.mrf.mxu1 }
 0x1a2   :  { %v1654_v34 = vpop.f32.mrf.mxu0  ;;  %1357 = vst.msk [vmem:[#allocation3 + $0x8] sm:$0xff] %vm717_vm2, %v1104_v59 }
 0x1a3   :  { %v1908_v16 = vld [vmem:[#allocation3 + $0x10] sm:$0xff]  ;;  %v8870_v19 = vpop.f32.mrf.mxu1  ;;  %9033 = vmatmul.mubr.msk.bf16.gmra.mxu1 %vm717_vm2, %v2181_v13 }
 0x1a4   :  { %v8936_v46 = vpop.f32.mrf.mxu0  ;;  %9099 = vmatmul.mubr.msk.bf16.gmra.mxu0 %vm717_vm2, %v10256_v28  ;;  %v1972_v39 = vadd.f32 %v8932_v62, %v1908_v16  ;;  %1362 = vst.msk [vmem:[#allocation3 + $0x30] sm:$0xff] %vm717_vm2, %v8870_v19  ;;  %9036 = vmatprep.mubr.msk.bf16.mxu1 %vm717_vm2, %v2182_v14 }
 0x1a5   :  { %9102 = vmatprep.mubr.msk.bf16.mxu0 %vm717_vm2, %v10272_v56  ;;  %v1906_v17 = vld [vmem:[#allocation3] sm:$0xff]  ;;  %v1117_v18 = vpop.f32.mrf.mxu1 }
 0x1a6   :  { %v1667_v61 = vpop.f32.mrf.mxu0  ;;  %2036 = vst.msk [vmem:[#allocation3 + $0x10] sm:$0xff] %vm717_vm2, %v1972_v39  ;;  %v1970_v21 = vadd.f32 %v1906_v17, %v1651_v63  ;;  %1360 = vst.msk [vmem:[#allocation3 + $0x20] sm:$0xff] %vm717_vm2, %v1117_v18  ;;  %v2147_v63 = vld [vmem:[#allocation2 + $0x27a] sm:$0xff]  ;;  %v2148_v17 = vld [vmem:[#allocation2 + $0x28a] sm:$0xff] }
 0x1a7   :  { %v1909_v23 = vld [vmem:[#allocation3 + $0x18] sm:$0xff]  ;;  %v8871_v28 = vpop.f32.mrf.mxu1  ;;  %v2186_v12 = vpack.c.bf16 %v2147_v63, %v2146_v53 }
 0x1a8   :  { %v8937_v29 = vpop.f32.mrf.mxu0  ;;  %2034 = vst.msk [vmem:[#allocation3] sm:$0xff] %vm717_vm2, %v1970_v21  ;;  %v1973_v35 = vadd.f32 %v8933_v6, %v1909_v23  ;;  %1363 = vst.msk [vmem:[#allocation3 + $0x38] sm:$0xff] %vm717_vm2, %v8871_v28 }
 0x1a9   :  { %v1907_v56 = vld [vmem:[#allocation3 + $0x8] sm:$0xff]  ;;  %v1120_v31 = vpop.f32.mrf.mxu1 }
 0x1aa   :  { %v1670_v37 = vpop.f32.mrf.mxu0  ;;  %2037 = vst.msk [vmem:[#allocation3 + $0x18] sm:$0xff] %vm717_vm2, %v1973_v35  ;;  %v1971_v55 = vadd.f32 %v1907_v56, %v1654_v34  ;;  %1361 = vst.msk [vmem:[#allocation3 + $0x28] sm:$0xff] %vm717_vm2, %v1120_v31  ;;  %v2188_v35 = vpack.c.bf16 %v2151_v2, %v2150_v22 }
 0x1ab   :  { %v1912_v42 = vld [vmem:[#allocation3 + $0x30] sm:$0xff]  ;;  %v8874_v44 = vpop.f32.mrf.mxu1  ;;  %9037 = vmatmul.mubr.msk.bf16.gmra.mxu1 %vm717_vm2, %v2183_v38 }
 0x1ac   :  { %v8940_v20 = vpop.f32.mrf.mxu0  ;;  %9103 = vmatmul.mubr.msk.bf16.gmra.mxu0 %vm717_vm2, %v10274_v0  ;;  %2035 = vst.msk [vmem:[#allocation3 + $0x8] sm:$0xff] %vm717_vm2, %v1971_v55  ;;  %v1976_v49 = vadd.f32 %v8936_v46, %v1912_v42  ;;  %1366 = vst.msk [vmem:[#allocation3 + $0x50] sm:$0xff] %vm717_vm2, %v8874_v44  ;;  %9040 = vmatprep.mubr.msk.bf16.mxu1 %vm717_vm2, %v2184_v40  ;;  %v2145_v0 = vld [vmem:[#allocation2 + $0x262] sm:$0xff] }
 0x1ad   :  { %9106 = vmatprep.mubr.msk.bf16.mxu0 %vm717_vm2, %v10290_v27  ;;  %v1910_v60 = vld [vmem:[#allocation3 + $0x20] sm:$0xff]  ;;  %v1133_v26 = vpop.f32.mrf.mxu1  ;;  %v2185_v6 = vpack.c.bf16 %v2145_v0, %v2144_v51 }
 0x1ae   :  { %v1683_v30 = vpop.f32.mrf.mxu0  ;;  %2040 = vst.msk [vmem:[#allocation3 + $0x30] sm:$0xff] %vm717_vm2, %v1976_v49  ;;  %v1974_v50 = vadd.f32 %v1910_v60, %v1667_v61  ;;  %1364 = vst.msk [vmem:[#allocation3 + $0x40] sm:$0xff] %vm717_vm2, %v1133_v26 }
 0x1af   :  { %v1913_v47 = vld [vmem:[#allocation3 + $0x38] sm:$0xff]  ;;  %v8875_v58 = vpop.f32.mrf.mxu1 }
 0x1b0   :  { %v8941_v62 = vpop.f32.mrf.mxu0  ;;  %2038 = vst.msk [vmem:[#allocation3 + $0x20] sm:$0xff] %vm717_vm2, %v1974_v50  ;;  %v1977_v7 = vadd.f32 %v8937_v29, %v1913_v47  ;;  %1367 = vst.msk [vmem:[#allocation3 + $0x58] sm:$0xff] %vm717_vm2, %v8875_v58  ;;  %v2155_v50 = vld [vmem:[#allocation2 + $0x2da] sm:$0xff] }
 0x1b1   :  { %v1911_v27 = vld [vmem:[#allocation3 + $0x28] sm:$0xff]  ;;  %v1136_v4 = vpop.f32.mrf.mxu1 }
 0x1b2   :  { %v1686_v5 = vpop.f32.mrf.mxu0  ;;  %2041 = vst.msk [vmem:[#allocation3 + $0x38] sm:$0xff] %vm717_vm2, %v1977_v7  ;;  %v1975_v11 = vadd.f32 %v1911_v27, %v1670_v37  ;;  %1365 = vst.msk [vmem:[#allocation3 + $0x48] sm:$0xff] %vm717_vm2, %v1136_v4 }
 0x1b3   :  { %v1916_v59 = vld [vmem:[#allocation3 + $0x50] sm:$0xff]  ;;  %v8878_v34 = vpop.f32.mrf.mxu1  ;;  %9041 = vmatmul.mubr.msk.bf16.gmra.mxu1 %vm717_vm2, %v2185_v6 }
 0x1b4   :  { %v8944_v13 = vpop.f32.mrf.mxu0  ;;  %9107 = vmatmul.mubr.msk.bf16.gmra.mxu0 %vm717_vm2, %v10292_v36  ;;  %2039 = vst.msk [vmem:[#allocation3 + $0x28] sm:$0xff] %vm717_vm2, %v1975_v11  ;;  %v1980_v14 = vadd.f32 %v8940_v20, %v1916_v59  ;;  %1370 = vst.msk [vmem:[#allocation3 + $0x70] sm:$0xff] %vm717_vm2, %v8878_v34  ;;  %9044 = vmatprep.mubr.msk.bf16.mxu1 %vm717_vm2, %v2186_v12  ;;  %v2149_v36 = vld [vmem:[#allocation2 + $0x292] sm:$0xff]  ;;  %v2152_v20 = vld [vmem:[#allocation2 + $0x2ba] sm:$0xff] }
 0x1b5   :  { %9110 = vmatprep.mubr.msk.bf16.mxu0 %vm717_vm2, %v10308_v3  ;;  %v1914_v16 = vld [vmem:[#allocation3 + $0x40] sm:$0xff]  ;;  %v1149_v19 = vpop.f32.mrf.mxu1  ;;  %v2187_v25 = vpack.c.bf16 %v2149_v36, %v2148_v17  ;;  %v2156_v59 = vld [vmem:[#allocation2 + $0x2ea] sm:$0xff] }
 0x1b6   :  { %v1699_v46 = vpop.f32.mrf.mxu0  ;;  %2044 = vst.msk [vmem:[#allocation3 + $0x50] sm:$0xff] %vm717_vm2, %v1980_v14  ;;  %v1978_v39 = vadd.f32 %v1914_v16, %v1683_v30  ;;  %1368 = vst.msk [vmem:[#allocation3 + $0x60] sm:$0xff] %vm717_vm2, %v1149_v19  ;;  %v2154_v30 = vld [vmem:[#allocation2 + $0x2d2] sm:$0xff]  ;;  %v2158_v16 = vld [vmem:[#allocation2 + $0x302] sm:$0xff] }
 0x1b7   :  { %v1917_v18 = vld [vmem:[#allocation3 + $0x58] sm:$0xff]  ;;  %v8879_v61 = vpop.f32.mrf.mxu1  ;;  %v2190_v53 = vpack.c.bf16 %v2155_v50, %v2154_v30  ;;  %v2159_v19 = vld [vmem:[#allocation2 + $0x30a] sm:$0xff] }
 0x1b8   :  { %v8945_v21 = vpop.f32.mrf.mxu0  ;;  %2042 = vst.msk [vmem:[#allocation3 + $0x40] sm:$0xff] %vm717_vm2, %v1978_v39  ;;  %v1981_v23 = vadd.f32 %v8941_v62, %v1917_v18  ;;  %1371 = vst.msk [vmem:[#allocation3 + $0x78] sm:$0xff] %vm717_vm2, %v8879_v61  ;;  %v2192_v61 = vpack.c.bf16 %v2159_v19, %v2158_v16 }
 0x1b9   :  { %v1915_v3 = vld [vmem:[#allocation3 + $0x48] sm:$0xff]  ;;  %v1152_v28 = vpop.f32.mrf.mxu1 }
 0x1ba   :  { %v1702_v29 = vpop.f32.mrf.mxu0  ;;  %2045 = vst.msk [vmem:[#allocation3 + $0x58] sm:$0xff] %vm717_vm2, %v1981_v23  ;;  %v1979_v33 = vadd.f32 %v1915_v3, %v1686_v5  ;;  %1369 = vst.msk [vmem:[#allocation3 + $0x68] sm:$0xff] %vm717_vm2, %v1152_v28 }
 0x1bb   :  { %v1920_v56 = vld [vmem:[#allocation3 + $0x70] sm:$0xff]  ;;  %v8882_v31 = vpop.f32.mrf.mxu1  ;;  %9045 = vmatmul.mubr.msk.bf16.gmra.mxu1 %vm717_vm2, %v2187_v25 }
 0x1bc   :  { %v8948_v37 = vpop.f32.mrf.mxu0  ;;  %9111 = vmatmul.mubr.msk.bf16.gmra.mxu0 %vm717_vm2, %v10310_v9  ;;  %2043 = vst.msk [vmem:[#allocation3 + $0x48] sm:$0xff] %vm717_vm2, %v1979_v33  ;;  %v1984_v38 = vadd.f32 %v8944_v13, %v1920_v56  ;;  %1374 = vst.msk [vmem:[#allocation3 + $0x90] sm:$0xff] %vm717_vm2, %v8882_v31  ;;  %9048 = vmatprep.mubr.msk.bf16.mxu1 %vm717_vm2, %v2188_v35  ;;  %v2153_v9 = vld [vmem:[#allocation2 + $0x2c2] sm:$0xff]  ;;  %v2160_v33 = vld [vmem:[#allocation2 + $0x31a] sm:$0xff] }
 0x1bd   :  { %9114 = vmatprep.mubr.msk.bf16.mxu0 %vm717_vm2, %v10326_v41  ;;  %v1918_v55 = vld [vmem:[#allocation3 + $0x60] sm:$0xff]  ;;  %v1165_v40 = vpop.f32.mrf.mxu1  ;;  %v2189_v58 = vpack.c.bf16 %v2153_v9, %v2152_v20  ;;  %v2839_v35 = vld [vmem:[#allocation2 + $0x338] sm:$0xff] }
 0x1be   :  { %v1715_v42 = vpop.f32.mrf.mxu0  ;;  %2048 = vst.msk [vmem:[#allocation3 + $0x70] sm:$0xff] %vm717_vm2, %v1984_v38  ;;  %v1982_v44 = vadd.f32 %v1918_v55, %v1699_v46  ;;  %1372 = vst.msk [vmem:[#allocation3 + $0x80] sm:$0xff] %vm717_vm2, %v1165_v40  ;;  %v3455_v38 = vld [vmem:[#allocation2 + $0x21] sm:$0xff] }
 0x1bf   :  { %v1921_v49 = vld [vmem:[#allocation3 + $0x78] sm:$0xff]  ;;  %v8883_v60 = vpop.f32.mrf.mxu1 }
 0x1c0   :  { %v8949_v26 = vpop.f32.mrf.mxu0  ;;  %2046 = vst.msk [vmem:[#allocation3 + $0x60] sm:$0xff] %vm717_vm2, %v1982_v44  ;;  %v1985_v51 = vadd.f32 %v8945_v21, %v1921_v49  ;;  %1375 = vst.msk [vmem:[#allocation3 + $0x98] sm:$0xff] %vm717_vm2, %v8883_v60  ;;  %v3454_v49 = vld [vmem:[#allocation2 + $0x19] sm:$0xff] }
 0x1c1   :  { %v1919_v41 = vld [vmem:[#allocation3 + $0x68] sm:$0xff]  ;;  %v1168_v0 = vpop.f32.mrf.mxu1 }
 0x1c2   :  { %v1718_v47 = vpop.f32.mrf.mxu0  ;;  %2049 = vst.msk [vmem:[#allocation3 + $0x78] sm:$0xff] %vm717_vm2, %v1985_v51  ;;  %v1983_v62 = vadd.f32 %v1919_v41, %v1702_v29  ;;  %1373 = vst.msk [vmem:[#allocation3 + $0x88] sm:$0xff] %vm717_vm2, %v1168_v0 }
 0x1c3   :  { %v1924_v63 = vld [vmem:[#allocation3 + $0x90] sm:$0xff]  ;;  %v8886_v7 = vpop.f32.mrf.mxu1  ;;  %9049 = vmatmul.mubr.msk.bf16.gmra.mxu1 %vm717_vm2, %v2189_v58 }
 0x1c4   :  { %v8952_v27 = vpop.f32.mrf.mxu0  ;;  %9115 = vmatmul.mubr.msk.bf16.gmra.mxu0 %vm717_vm2, %v10328_v48  ;;  %2047 = vst.msk [vmem:[#allocation3 + $0x68] sm:$0xff] %vm717_vm2, %v1983_v62  ;;  %v1988_v4 = vadd.f32 %v8948_v37, %v1924_v63  ;;  %1378 = vst.msk [vmem:[#allocation3 + $0xb0] sm:$0xff] %vm717_vm2, %v8886_v7  ;;  %9052 = vmatprep.mubr.msk.bf16.mxu1 %vm717_vm2, %v2190_v53  ;;  %v2157_v48 = vld [vmem:[#allocation2 + $0x2f2] sm:$0xff] }
 0x1c5   :  { %9118 = vmatprep.mubr.msk.bf16.mxu0 %vm717_vm2, %v10342_v10  ;;  %v1922_v5 = vld [vmem:[#allocation3 + $0x80] sm:$0xff]  ;;  %v1181_v6 = vpop.f32.mrf.mxu1  ;;  %v2191_v36 = vpack.c.bf16 %v2157_v48, %v2156_v59  ;;  %v5006_v48 = vsel %vm1063_vm5, %v10394_v24, 0 }
 0x1c6   :  { %v1731_v11 = vpop.f32.mrf.mxu0  ;;  %2052 = vst.msk [vmem:[#allocation3 + $0x90] sm:$0xff] %vm717_vm2, %v1988_v4  ;;  %v1986_v12 = vadd.f32 %v1922_v5, %v1715_v42  ;;  %1376 = vst.msk [vmem:[#allocation3 + $0xa0] sm:$0xff] %vm717_vm2, %v1181_v6  ;;  %v3457_v53 = vld [vmem:[#allocation2 + $0x39] sm:$0xff]  ;;  %v3459_v4 = vld [vmem:[#allocation2 + $0x51] sm:$0xff] }
 0x1c7   :  { %v1925_v34 = vld [vmem:[#allocation3 + $0x98] sm:$0xff]  ;;  %v8887_v13 = vpop.f32.mrf.mxu1 }
 0x1c8   :  { %v8953_v14 = vpop.f32.mrf.mxu0  ;;  %2050 = vst.msk [vmem:[#allocation3 + $0x80] sm:$0xff] %vm717_vm2, %v1986_v12  ;;  %v1989_v46 = vadd.f32 %v8949_v26, %v1925_v34  ;;  %1379 = vst.msk [vmem:[#allocation3 + $0xb8] sm:$0xff] %vm717_vm2, %v8887_v13  ;;  %v3518_v26 = vpack.c.bf16 %v3455_v38, %v3454_v49  ;;  %v3456_v6 = vld [vmem:[#allocation2 + $0x31] sm:$0xff]  ;;  %v3458_v34 = vld [vmem:[#allocation2 + $0x49] sm:$0xff] }
 0x1c9   :  { %v1923_v10 = vld [vmem:[#allocation3 + $0x88] sm:$0xff]  ;;  %v1184_v39 = vpop.f32.mrf.mxu1  ;;  %v3519_v59 = vpack.c.bf16 %v3457_v53, %v3456_v6 }
 0x1ca   :  { %v1734_v17 = vpop.f32.mrf.mxu0  ;;  %2053 = vst.msk [vmem:[#allocation3 + $0x98] sm:$0xff] %vm717_vm2, %v1989_v46  ;;  %v1987_v18 = vadd.f32 %v1923_v10, %v1718_v47  ;;  %1377 = vst.msk [vmem:[#allocation3 + $0xa8] sm:$0xff] %vm717_vm2, %v1184_v39  ;;  %v8268_v10 = vld [vmem:[%s11898_s3 + $0x1c] sm:$0xf] }
 0x1cb   :  { %v1928_v21 = vld [vmem:[#allocation3 + $0xb0] sm:$0xff]  ;;  %v8890_v22 = vpop.f32.mrf.mxu1  ;;  %9053 = vmatmul.mubr.msk.bf16.gmra.mxu1 %vm717_vm2, %v2191_v36  ;;  %v5684_v39 = vsel %vm1063_vm5, %v8268_v10, 0  ;;  %9596 = vmatprep.subr.msk.bf16.mxu0 %vm1063_vm5, %v8268_v10 }
 0x1cc   :  { %v8956_v2 = vpop.f32.mrf.mxu0  ;;  %9119 = vmatmul.mubr.msk.bf16.gmra.mxu0 %vm717_vm2, %v10344_v15  ;;  %2051 = vst.msk [vmem:[#allocation3 + $0x88] sm:$0xff] %vm717_vm2, %v1987_v18  ;;  %v1992_v23 = vadd.f32 %v8952_v27, %v1928_v21  ;;  %1382 = vst.msk [vmem:[#allocation3 + $0xd0] sm:$0xff] %vm717_vm2, %v8890_v22  ;;  %9056 = vmatprep.mubr.msk.bf16.mxu1 %vm717_vm2, %v2192_v61  ;;  %v2161_v15 = vld [vmem:[#allocation2 + $0x322] sm:$0xff] }
 0x1cd   :  { %9122 = vmatprep.mubr.msk.bf16.mxu0 %vm717_vm2, %v10352_v32  ;;  %v1926_v3 = vld [vmem:[#allocation3 + $0xa0] sm:$0xff]  ;;  %v1197_v28 = vpop.f32.mrf.mxu1  ;;  %v2838_v32 = vld [vmem:[#allocation2 + $0x330] sm:$0xff]  ;;  %v2193_v20 = vpack.c.bf16 %v2161_v15, %v2160_v33 }
 0x1ce   :  { %v1747_v29 = vpop.f32.mrf.mxu0  ;;  %2056 = vst.msk [vmem:[#allocation3 + $0xb0] sm:$0xff] %vm717_vm2, %v1992_v23  ;;  %v1990_v25 = vadd.f32 %v1926_v3, %v1731_v11  ;;  %1380 = vst.msk [vmem:[#allocation3 + $0xc0] sm:$0xff] %vm717_vm2, %v1197_v28  ;;  %v2871_v9 = vpack.c.bf16 %v2839_v35, %v2838_v32  ;;  %v3461_v61 = vld [vmem:[#allocation2 + $0x69] sm:$0xff]  ;;  %v3463_v23 = vld [vmem:[#allocation2 + $0x81] sm:$0xff] }
 0x1cf   :  { %v1929_v56 = vld [vmem:[#allocation3 + $0xb8] sm:$0xff]  ;;  %v8891_v31 = vpop.f32.mrf.mxu1 }
 0x1d0   :  { %v8957_v37 = vpop.f32.mrf.mxu0  ;;  %2054 = vst.msk [vmem:[#allocation3 + $0xa0] sm:$0xff] %vm717_vm2, %v1990_v25  ;;  %v1993_v55 = vadd.f32 %v8953_v14, %v1929_v56  ;;  %1383 = vst.msk [vmem:[#allocation3 + $0xd8] sm:$0xff] %vm717_vm2, %v8891_v31  ;;  %v3520_v14 = vpack.c.bf16 %v3459_v4, %v3458_v34  ;;  %v3462_v15 = vld [vmem:[#allocation2 + $0x79] sm:$0xff] }
 0x1d1   :  { %v1927_v40 = vld [vmem:[#allocation3 + $0xa8] sm:$0xff]  ;;  %v1200_v42 = vpop.f32.mrf.mxu1  ;;  %v3522_v56 = vpack.c.bf16 %v3463_v23, %v3462_v15  ;;  %v4151_v15 = vld [vmem:[#allocation2 + $0xfa] sm:$0xff] }
 0x1d2   :  { %v1750_v44 = vpop.f32.mrf.mxu0  ;;  %2057 = vst.msk [vmem:[#allocation3 + $0xb8] sm:$0xff] %vm717_vm2, %v1993_v55  ;;  %v1991_v60 = vadd.f32 %v1927_v40, %v1734_v17  ;;  %1381 = vst.msk [vmem:[#allocation3 + $0xc8] sm:$0xff] %vm717_vm2, %v1200_v42 }
 0x1d3   :  { %v1932_v30 = vld [vmem:[#allocation3 + $0xd0] sm:$0xff]  ;;  %v8894_v50 = vpop.f32.mrf.mxu1  ;;  %9057 = vmatmul.mubr.msk.bf16.gmra.mxu1 %vm717_vm2, %v2193_v20  ;;  %v3465_v20 = vld [vmem:[#allocation2 + $0x99] sm:$0xff] }
 0x1d4   :  { %v8960_v51 = vpop.f32.mrf.mxu0  ;;  %9123 = vmatmul.mubr.msk.bf16.gmra.mxu0 %vm717_vm2, %v2871_v9  ;;  %2055 = vst.msk [vmem:[#allocation3 + $0xa8] sm:$0xff] %vm717_vm2, %v1991_v60  ;;  %v1996_v41 = vadd.f32 %v8956_v2, %v1932_v30  ;;  %1386 = vst.msk [vmem:[#allocation3 + $0xf0] sm:$0xff] %vm717_vm2, %v8894_v50  ;;  %9128 = vmatprep.mubr.msk.bf16.mxu1 %vm717_vm2, %v3518_v26  ;;  %v3467_v26 = vld [vmem:[#allocation2 + $0xb1] sm:$0xff] }
 0x1d5   :  { %9194 = vmatprep.mubr.msk.bf16.mxu0 %vm717_vm2, %v10364_v43  ;;  %v1930_v0 = vld [vmem:[#allocation3 + $0xc0] sm:$0xff]  ;;  %v1213_v47 = vpop.f32.mrf.mxu1  ;;  %v3464_v30 = vld [vmem:[#allocation2 + $0x91] sm:$0xff] }
 0x1d6   :  { %v1763_v58 = vpop.f32.mrf.mxu0  ;;  %2060 = vst.msk [vmem:[#allocation3 + $0xd0] sm:$0xff] %vm717_vm2, %v1996_v41  ;;  %v1994_v62 = vadd.f32 %v1930_v0, %v1747_v29  ;;  %1384 = vst.msk [vmem:[#allocation3 + $0xe0] sm:$0xff] %vm717_vm2, %v1213_v47  ;;  %v3523_v0 = vpack.c.bf16 %v3465_v20, %v3464_v30  ;;  %v3466_v47 = vld [vmem:[#allocation2 + $0xa9] sm:$0xff] }
 0x1d7   :  { %v1933_v63 = vld [vmem:[#allocation3 + $0xd8] sm:$0xff]  ;;  %v8895_v7 = vpop.f32.mrf.mxu1 }
 0x1d8   :  { %v8961_v27 = vpop.f32.mrf.mxu0  ;;  %2058 = vst.msk [vmem:[#allocation3 + $0xc0] sm:$0xff] %vm717_vm2, %v1994_v62  ;;  %v1997_v5 = vadd.f32 %v8957_v37, %v1933_v63  ;;  %1387 = vst.msk [vmem:[#allocation3 + $0xf8] sm:$0xff] %vm717_vm2, %v8895_v7  ;;  %v3524_v62 = vpack.c.bf16 %v3467_v26, %v3466_v47 }
 0x1d9   :  { %v1931_v43 = vld [vmem:[#allocation3 + $0xc8] sm:$0xff]  ;;  %v1216_v11 = vpop.f32.mrf.mxu1 }
 0x1da   :  { %v1766_v12 = vpop.f32.mrf.mxu0  ;;  %2061 = vst.msk [vmem:[#allocation3 + $0xd8] sm:$0xff] %vm717_vm2, %v1997_v5  ;;  %v1995_v13 = vadd.f32 %v1931_v43, %v1750_v44  ;;  %1385 = vst.msk [vmem:[#allocation3 + $0xe8] sm:$0xff] %vm717_vm2, %v1216_v11  ;;  %v3469_v43 = vld [vmem:[#allocation2 + $0xc9] sm:$0xff] }
 0x1db   :  { %v1936_v16 = vld [vmem:[#allocation3 + $0xf0] sm:$0xff]  ;;  %v8898_v19 = vpop.f32.mrf.mxu1  ;;  %9129 = vmatmul.mubr.msk.bf16.vlgmr.msra.gmra.mxu1 %vm717_vm2, %v3519_v59  ;;  %v3471_v59 = vld [vmem:[#allocation2 + $0xe1] sm:$0xff] }
 0x1dc   :  { %v8964_v46 = vpop.f32.mrf.mxu0  ;;  %9195 = vmatmul.mubr.msk.bf16.vlgmr.msra.gmra.mxu0 %vm717_vm2, %v10368_v45  ;;  %2059 = vst.msk [vmem:[#allocation3 + $0xc8] sm:$0xff] %vm717_vm2, %v1995_v13  ;;  %v2000_v24 = vadd.f32 %v8960_v51, %v1936_v16  ;;  %1390 = vst.msk [vmem:[#allocation3 + $0x110] sm:$0xff] %vm717_vm2, %v8898_v19  ;;  %9259 = vmatpush3.bf16.msra.mxu1 %v5006_v48  ;;  %v4149_v16 = vld [vmem:[#allocation2 + $0xe2] sm:$0xff] }
 0x1dd   :  { %9132 = vmatprep.mubr.msk.bf16.mxu1 %vm717_vm2, %v3520_v14  ;;  %v1934_v17 = vld [vmem:[#allocation3 + $0xe0] sm:$0xff]  ;;  %9198 = vmatprep.mubr.msk.bf16.mxu0 %vm717_vm2, %v10379_v54  ;;  %v1229_v36 = vpop.f32.mrf.mxu1 }
 0x1de   :  { %v1779_v45 = vpop.f32.mrf.mxu0  ;;  %2064 = vst.msk [vmem:[#allocation3 + $0xf0] sm:$0xff] %vm717_vm2, %v2000_v24  ;;  %v1998_v18 = vadd.f32 %v1934_v17, %v1763_v58  ;;  %1388 = vst.msk [vmem:[#allocation3 + $0x100] sm:$0xff] %vm717_vm2, %v1229_v36  ;;  %9325 = vmatpush3.bf16.msra.mxu0 %v5684_v39  ;;  %v3460_v54 = vld [vmem:[#allocation2 + $0x61] sm:$0xff]  ;;  %v3470_v36 = vld [vmem:[#allocation2 + $0xd9] sm:$0xff] }
 0x1df   :  { %v1937_v21 = vld [vmem:[#allocation3 + $0xf8] sm:$0xff]  ;;  %v8899_v22 = vpop.f32.mrf.mxu1  ;;  %v3521_v33 = vpack.c.bf16 %v3461_v61, %v3460_v54  ;;  %v3468_v19 = vld [vmem:[#allocation2 + $0xc1] sm:$0xff] }
 0x1e0   :  { %v8965_v2 = vpop.f32.mrf.mxu0  ;;  %2062 = vst.msk [vmem:[#allocation3 + $0xe0] sm:$0xff] %vm717_vm2, %v1998_v18  ;;  %v2001_v3 = vadd.f32 %v8961_v27, %v1937_v21  ;;  %1391 = vst.msk [vmem:[#allocation3 + $0x118] sm:$0xff] %vm717_vm2, %v8899_v22  ;;  %v4148_v14 = vld [vmem:[#allocation2 + $0xda] sm:$0xff]  ;;  %v3525_v39 = vpack.c.bf16 %v3469_v43, %v3468_v19  ;;  %v3526_v18 = vpack.c.bf16 %v3471_v59, %v3470_v36 }
 0x1e1   :  { %v1935_v28 = vld [vmem:[#allocation3 + $0xe8] sm:$0xff]  ;;  %v1232_v29 = vpop.f32.mrf.mxu1  ;;  %v4204_v61 = vpack.c.bf16 %v4149_v16, %v4148_v14  ;;  %v4156_v43 = vld [vmem:[#allocation2 + $0x13a] sm:$0xff] }
 0x1e2   :  { %v1782_v25 = vpop.f32.mrf.mxu0  ;;  %2065 = vst.msk [vmem:[#allocation3 + $0xf8] sm:$0xff] %vm717_vm2, %v2001_v3  ;;  %v1999_v35 = vadd.f32 %v1935_v28, %v1766_v12  ;;  %1389 = vst.msk [vmem:[#allocation3 + $0x108] sm:$0xff] %vm717_vm2, %v1232_v29  ;;  %v4147_v12 = vld [vmem:[#allocation2 + $0xca] sm:$0xff]  ;;  %v3473_v29 = vld [vmem:[#allocation2 + $0xf9] sm:$0xff] }
 0x1e3   :  { %v1940_v31 = vld [vmem:[#allocation3 + $0x110] sm:$0xff]  ;;  %v8902_v37 = vpop.f32.mrf.mxu1  ;;  %9133 = vmatmul.mubr.msk.bf16.gmra.mxu1 %vm717_vm2, %v3521_v33  ;;  %v3478_v16 = vld [vmem:[#allocation2 + $0x139] sm:$0xff] }
 0x1e4   :  { %v8968_v38 = vpop.f32.mrf.mxu0  ;;  %9199 = vmatmul.mubr.msk.bf16.gmra.mxu0 %vm717_vm2, %v10381_v57  ;;  %2063 = vst.msk [vmem:[#allocation3 + $0xe8] sm:$0xff] %vm717_vm2, %v1999_v35  ;;  %v2004_v55 = vadd.f32 %v8964_v46, %v1940_v31  ;;  %1394 = vst.msk [vmem:[#allocation3 + $0x130] sm:$0xff] %vm717_vm2, %v8902_v37  ;;  %9136 = vmatprep.mubr.msk.bf16.mxu1 %vm717_vm2, %v3522_v56  ;;  %v8301_v57 = vld [vmem:[%s11898_s3 + $0x20] sm:$0xf]  ;;  %v4150_v33 = vld [vmem:[#allocation2 + $0xf2] sm:$0xff] }
 0x1e5   :  { %9202 = vmatprep.mubr.msk.bf16.mxu0 %vm717_vm2, %v10398_v1  ;;  %v1938_v32 = vld [vmem:[#allocation3 + $0x100] sm:$0xff]  ;;  %v1245_v40 = vpop.f32.mrf.mxu1  ;;  %9597 = vmatprep.subr.msk.bf16.mxu1 %vm1063_vm5, %v8301_v57  ;;  %v3475_v35 = vld [vmem:[#allocation2 + $0x111] sm:$0xff] }
 0x1e6   :  { %v1795_v42 = vpop.f32.mrf.mxu0  ;;  %2068 = vst.msk [vmem:[#allocation3 + $0x110] sm:$0xff] %vm717_vm2, %v2004_v55  ;;  %v2002_v44 = vadd.f32 %v1938_v32, %v1779_v45  ;;  %1392 = vst.msk [vmem:[#allocation3 + $0x120] sm:$0xff] %vm717_vm2, %v1245_v40  ;;  %v4153_v55 = vld [vmem:[#allocation2 + $0x112] sm:$0xff] }
 0x1e7   :  { %v1941_v9 = vld [vmem:[#allocation3 + $0x118] sm:$0xff]  ;;  %v8903_v49 = vpop.f32.mrf.mxu1 }
 0x1e8   :  { %v8969_v60 = vpop.f32.mrf.mxu0  ;;  %2066 = vst.msk [vmem:[#allocation3 + $0x100] sm:$0xff] %vm717_vm2, %v2002_v44  ;;  %v2005_v1 = vadd.f32 %v8965_v2, %v1941_v9  ;;  %1395 = vst.msk [vmem:[#allocation3 + $0x138] sm:$0xff] %vm717_vm2, %v8903_v49  ;;  %v3472_v40 = vld [vmem:[#allocation2 + $0xf1] sm:$0xff]  ;;  %v4205_v9 = vpack.c.bf16 %v4151_v15, %v4150_v33  ;;  %v3474_v49 = vld [vmem:[#allocation2 + $0x109] sm:$0xff] }
 0x1e9   :  { %v1939_v50 = vld [vmem:[#allocation3 + $0x108] sm:$0xff]  ;;  %v1248_v51 = vpop.f32.mrf.mxu1  ;;  %v3527_v57 = vpack.c.bf16 %v3473_v29, %v3472_v40  ;;  %v3528_v26 = vpack.c.bf16 %v3475_v35, %v3474_v49  ;;  %v3480_v15 = vld [vmem:[#allocation2 + $0x151] sm:$0xff] }
 0x1ea   :  { %v1798_v41 = vpop.f32.mrf.mxu0  ;;  %2069 = vst.msk [vmem:[#allocation3 + $0x118] sm:$0xff] %vm717_vm2, %v2005_v1  ;;  %v2003_v58 = vadd.f32 %v1939_v50, %v1782_v25  ;;  %1393 = vst.msk [vmem:[#allocation3 + $0x128] sm:$0xff] %vm717_vm2, %v1248_v51  ;;  %v4160_v29 = vld [vmem:[#allocation2 + $0x16a] sm:$0xff] }
 0x1eb   :  { %v1944_v53 = vld [vmem:[#allocation3 + $0x130] sm:$0xff]  ;;  %v8906_v63 = vpop.f32.mrf.mxu1  ;;  %9137 = vmatmul.mubr.msk.bf16.gmra.mxu1 %vm717_vm2, %v3523_v0 }
 0x1ec   :  { %v8972_v7 = vpop.f32.mrf.mxu0  ;;  %9203 = vmatmul.mubr.msk.bf16.gmra.mxu0 %vm717_vm2, %v10400_v52  ;;  %2067 = vst.msk [vmem:[#allocation3 + $0x108] sm:$0xff] %vm717_vm2, %v2003_v58  ;;  %v2008_v27 = vadd.f32 %v8968_v38, %v1944_v53  ;;  %1398 = vst.msk [vmem:[#allocation3 + $0x150] sm:$0xff] %vm717_vm2, %v8906_v63  ;;  %9140 = vmatprep.mubr.msk.bf16.mxu1 %vm717_vm2, %v3524_v62  ;;  %v4146_v52 = vld [vmem:[#allocation2 + $0xc2] sm:$0xff]  ;;  %v4152_v38 = vld [vmem:[#allocation2 + $0x10a] sm:$0xff] }
 0x1ed   :  { %9206 = vmatprep.mubr.msk.bf16.mxu0 %vm717_vm2, %v10410_v8  ;;  %v1942_v4 = vld [vmem:[#allocation3 + $0x120] sm:$0xff]  ;;  %v1261_v5 = vpop.f32.mrf.mxu1  ;;  %v4203_v17 = vpack.c.bf16 %v4147_v12, %v4146_v52  ;;  %v4206_v1 = vpack.c.bf16 %v4153_v55, %v4152_v38  ;;  %v3477_v62 = vld [vmem:[#allocation2 + $0x129] sm:$0xff] }
 0x1ee   :  { %v1811_v6 = vpop.f32.mrf.mxu0  ;;  %2072 = vst.msk [vmem:[#allocation3 + $0x130] sm:$0xff] %vm717_vm2, %v2008_v27  ;;  %v2006_v11 = vadd.f32 %v1942_v4, %v1795_v42  ;;  %1396 = vst.msk [vmem:[#allocation3 + $0x140] sm:$0xff] %vm717_vm2, %v1261_v5  ;;  %v4154_v63 = vld [vmem:[#allocation2 + $0x122] sm:$0xff] }
 0x1ef   :  { %v1945_v48 = vld [vmem:[#allocation3 + $0x138] sm:$0xff]  ;;  %v8907_v34 = vpop.f32.mrf.mxu1  ;;  %v3479_v27 = vld [vmem:[#allocation2 + $0x141] sm:$0xff]  ;;  %v3482_v55 = vld [vmem:[#allocation2 + $0x169] sm:$0xff] }
 0x1f0   :  { %v8973_v13 = vpop.f32.mrf.mxu0  ;;  %2070 = vst.msk [vmem:[#allocation3 + $0x120] sm:$0xff] %vm717_vm2, %v2006_v11  ;;  %v2009_v8 = vadd.f32 %v8969_v60, %v1945_v48  ;;  %1399 = vst.msk [vmem:[#allocation3 + $0x158] sm:$0xff] %vm717_vm2, %v8907_v34  ;;  %v4157_v11 = vld [vmem:[#allocation2 + $0x142] sm:$0xff]  ;;  %v3530_v19 = vpack.c.bf16 %v3479_v27, %v3478_v16 }
 0x1f1   :  { %v1943_v46 = vld [vmem:[#allocation3 + $0x128] sm:$0xff]  ;;  %v1264_v10 = vpop.f32.mrf.mxu1 }
 0x1f2   :  { %v1814_v24 = vpop.f32.mrf.mxu0  ;;  %2073 = vst.msk [vmem:[#allocation3 + $0x138] sm:$0xff] %vm717_vm2, %v2009_v8  ;;  %v2007_v45 = vadd.f32 %v1943_v46, %v1798_v41  ;;  %1397 = vst.msk [vmem:[#allocation3 + $0x148] sm:$0xff] %vm717_vm2, %v1264_v10  ;;  %v3476_v12 = vld [vmem:[#allocation2 + $0x121] sm:$0xff]  ;;  %v4208_v46 = vpack.c.bf16 %v4157_v11, %v4156_v43  ;;  %v3486_v11 = vld [vmem:[#allocation2 + $0x1c9] sm:$0xff] }
 0x1f3   :  { %v1948_v21 = vld [vmem:[#allocation3 + $0x150] sm:$0xff]  ;;  %v8910_v22 = vpop.f32.mrf.mxu1  ;;  %9141 = vmatmul.mubr.msk.bf16.gmra.mxu1 %vm717_vm2, %v3525_v39 }
 0x1f4   :  { %v8976_v2 = vpop.f32.mrf.mxu0  ;;  %9207 = vmatmul.mubr.msk.bf16.gmra.mxu0 %vm717_vm2, %v4203_v17  ;;  %2071 = vst.msk [vmem:[#allocation3 + $0x128] sm:$0xff] %vm717_vm2, %v2007_v45  ;;  %v2012_v23 = vadd.f32 %v8972_v7, %v1948_v21  ;;  %1402 = vst.msk [vmem:[#allocation3 + $0x170] sm:$0xff] %vm717_vm2, %v8910_v22  ;;  %9144 = vmatprep.mubr.msk.bf16.mxu1 %vm717_vm2, %v3526_v18  ;;  %v4155_v7 = vld [vmem:[#allocation2 + $0x12a] sm:$0xff]  ;;  %v4158_v22 = vld [vmem:[#allocation2 + $0x152] sm:$0xff] }
 0x1f5   :  { %9210 = vmatprep.mubr.msk.bf16.mxu0 %vm717_vm2, %v4204_v61  ;;  %v1946_v3 = vld [vmem:[#allocation3 + $0x140] sm:$0xff]  ;;  %v1277_v54 = vpop.f32.mrf.mxu1  ;;  %v4207_v14 = vpack.c.bf16 %v4155_v7, %v4154_v63 }
 0x1f6   :  { %v1827_v28 = vpop.f32.mrf.mxu0  ;;  %2076 = vst.msk [vmem:[#allocation3 + $0x150] sm:$0xff] %vm717_vm2, %v2012_v23  ;;  %v2010_v25 = vadd.f32 %v1946_v3, %v1811_v6  ;;  %1400 = vst.msk [vmem:[#allocation3 + $0x160] sm:$0xff] %vm717_vm2, %v1277_v54  ;;  %v3481_v61 = vld [vmem:[#allocation2 + $0x159] sm:$0xff]  ;;  %v3483_v23 = vld [vmem:[#allocation2 + $0x171] sm:$0xff] }
 0x1f7   :  { %v1949_v56 = vld [vmem:[#allocation3 + $0x158] sm:$0xff]  ;;  %v8911_v31 = vpop.f32.mrf.mxu1  ;;  %v3532_v40 = vpack.c.bf16 %v3483_v23, %v3482_v55  ;;  %v3484_v7 = vld [vmem:[#allocation2 + $0x181] sm:$0xff] }
 0x1f8   :  { %v8977_v37 = vpop.f32.mrf.mxu0  ;;  %2074 = vst.msk [vmem:[#allocation3 + $0x140] sm:$0xff] %vm717_vm2, %v2010_v25  ;;  %v2013_v32 = vadd.f32 %v8973_v13, %v1949_v56  ;;  %1403 = vst.msk [vmem:[#allocation3 + $0x178] sm:$0xff] %vm717_vm2, %v8911_v31  ;;  %v3529_v13 = vpack.c.bf16 %v3477_v62, %v3476_v12  ;;  %v4161_v25 = vld [vmem:[#allocation2 + $0x172] sm:$0xff]  ;;  %v4164_v62 = vld [vmem:[#allocation2 + $0x1ca] sm:$0xff] }
 0x1f9   :  { %v1947_v42 = vld [vmem:[#allocation3 + $0x148] sm:$0xff]  ;;  %v1280_v44 = vpop.f32.mrf.mxu1 }
 0x1fa   :  { %v1830_v20 = vpop.f32.mrf.mxu0  ;;  %2077 = vst.msk [vmem:[#allocation3 + $0x158] sm:$0xff] %vm717_vm2, %v2013_v32  ;;  %v2011_v60 = vadd.f32 %v1947_v42, %v1814_v24  ;;  %1401 = vst.msk [vmem:[#allocation3 + $0x168] sm:$0xff] %vm717_vm2, %v1280_v44  ;;  %v4210_v42 = vpack.c.bf16 %v4161_v25, %v4160_v29  ;;  %v3490_v25 = vld [vmem:[#allocation2 + $0x1f9] sm:$0xff] }
 0x1fb   :  { %v1952_v30 = vld [vmem:[#allocation3 + $0x170] sm:$0xff]  ;;  %v8914_v50 = vpop.f32.mrf.mxu1  ;;  %9145 = vmatmul.mubr.msk.bf16.gmra.mxu1 %vm717_vm2, %v3527_v57 }
 0x1fc   :  { %v8980_v51 = vpop.f32.mrf.mxu0  ;;  %9211 = vmatmul.mubr.msk.bf16.gmra.mxu0 %vm717_vm2, %v4205_v9  ;;  %2075 = vst.msk [vmem:[#allocation3 + $0x148] sm:$0xff] %vm717_vm2, %v2011_v60  ;;  %v2016_v41 = vadd.f32 %v8976_v2, %v1952_v30  ;;  %1406 = vst.msk [vmem:[#allocation3 + $0x190] sm:$0xff] %vm717_vm2, %v8914_v50  ;;  %9148 = vmatprep.mubr.msk.bf16.mxu1 %vm717_vm2, %v3528_v26  ;;  %v4159_v2 = vld [vmem:[#allocation2 + $0x15a] sm:$0xff]  ;;  %v4162_v50 = vld [vmem:[#allocation2 + $0x182] sm:$0xff] }
 0x1fd   :  { %9214 = vmatprep.mubr.msk.bf16.mxu0 %vm717_vm2, %v4206_v1  ;;  %v1950_v0 = vld [vmem:[#allocation3 + $0x160] sm:$0xff]  ;;  %v1293_v47 = vpop.f32.mrf.mxu1  ;;  %v4209_v38 = vpack.c.bf16 %v4159_v2, %v4158_v22  ;;  %v3485_v1 = vld [vmem:[#allocation2 + $0x189] sm:$0xff] }
 0x1fe   :  { %v1843_v58 = vpop.f32.mrf.mxu0  ;;  %2080 = vst.msk [vmem:[#allocation3 + $0x170] sm:$0xff] %vm717_vm2, %v2016_v41  ;;  %v2014_v53 = vadd.f32 %v1950_v0, %v1827_v28  ;;  %1404 = vst.msk [vmem:[#allocation3 + $0x180] sm:$0xff] %vm717_vm2, %v1293_v47  ;;  %v3487_v41 = vld [vmem:[#allocation2 + $0x1d1] sm:$0xff]  ;;  %v3488_v2 = vld [vmem:[#allocation2 + $0x1e1] sm:$0xff] }
 0x1ff   :  { %v1953_v4 = vld [vmem:[#allocation3 + $0x178] sm:$0xff]  ;;  %v8915_v5 = vpop.f32.mrf.mxu1  ;;  %v3534_v12 = vpack.c.bf16 %v3487_v41, %v3486_v11 }
 0x200   :  { %v8981_v6 = vpop.f32.mrf.mxu0  ;;  %2078 = vst.msk [vmem:[#allocation3 + $0x160] sm:$0xff] %vm717_vm2, %v2014_v53  ;;  %v2017_v52 = vadd.f32 %v8977_v37, %v1953_v4  ;;  %1407 = vst.msk [vmem:[#allocation3 + $0x198] sm:$0xff] %vm717_vm2, %v8915_v5  ;;  %v3531_v37 = vpack.c.bf16 %v3481_v61, %v3480_v15  ;;  %v4165_v53 = vld [vmem:[#allocation2 + $0x1d2] sm:$0xff]  ;;  %v4168_v61 = vld [vmem:[#allocation2 + $0x1fa] sm:$0xff] }
 0x201   :  { %v1951_v59 = vld [vmem:[#allocation3 + $0x168] sm:$0xff]  ;;  %v1296_v48 = vpop.f32.mrf.mxu1  ;;  %v2587_v41 = vld [vmem:[#allocation3 + $0x18] sm:$0xff] }
 0x202   :  { %v1846_v34 = vpop.f32.mrf.mxu0  ;;  %2081 = vst.msk [vmem:[#allocation3 + $0x178] sm:$0xff] %vm717_vm2, %v2017_v52  ;;  %v2015_v8 = vadd.f32 %v1951_v59, %v1830_v20  ;;  %1405 = vst.msk [vmem:[#allocation3 + $0x188] sm:$0xff] %vm717_vm2, %v1296_v48  ;;  %v4212_v59 = vpack.c.bf16 %v4165_v53, %v4164_v62  ;;  %v3492_v53 = vld [vmem:[#allocation2 + $0x211] sm:$0xff] }
 0x203   :  { %v1956_v10 = vld [vmem:[#allocation3 + $0x190] sm:$0xff]  ;;  %v8918_v24 = vpop.f32.mrf.mxu1  ;;  %9149 = vmatmul.mubr.msk.bf16.gmra.mxu1 %vm717_vm2, %v3529_v13 }
 0x204   :  { %v8984_v39 = vpop.f32.mrf.mxu0  ;;  %9215 = vmatmul.mubr.msk.bf16.gmra.mxu0 %vm717_vm2, %v4207_v14  ;;  %2079 = vst.msk [vmem:[#allocation3 + $0x168] sm:$0xff] %vm717_vm2, %v2015_v8  ;;  %v2020_v17 = vadd.f32 %v8980_v51, %v1956_v10  ;;  %1410 = vst.msk [vmem:[#allocation3 + $0x1b0] sm:$0xff] %vm717_vm2, %v8918_v24  ;;  %9152 = vmatprep.mubr.msk.bf16.mxu1 %vm717_vm2, %v3530_v19  ;;  %v4163_v51 = vld [vmem:[#allocation2 + $0x18a] sm:$0xff]  ;;  %v4166_v24 = vld [vmem:[#allocation2 + $0x1e2] sm:$0xff] }
 0x205   :  { %9218 = vmatprep.mubr.msk.bf16.mxu0 %vm717_vm2, %v4208_v46  ;;  %v1954_v36 = vld [vmem:[#allocation3 + $0x180] sm:$0xff]  ;;  %v1309_v45 = vpop.f32.mrf.mxu1  ;;  %v4211_v43 = vpack.c.bf16 %v4163_v51, %v4162_v50  ;;  %v3489_v46 = vld [vmem:[#allocation2 + $0x1e9] sm:$0xff] }
 0x206   :  { %v1859_v18 = vpop.f32.mrf.mxu0  ;;  %2084 = vst.msk [vmem:[#allocation3 + $0x190] sm:$0xff] %vm717_vm2, %v2020_v17  ;;  %v2018_v21 = vadd.f32 %v1954_v36, %v1843_v58  ;;  %1408 = vst.msk [vmem:[#allocation3 + $0x1a0] sm:$0xff] %vm717_vm2, %v1309_v45  ;;  %v3491_v17 = vld [vmem:[#allocation2 + $0x201] sm:$0xff] }
 0x207   :  { %v1957_v3 = vld [vmem:[#allocation3 + $0x198] sm:$0xff]  ;;  %v8919_v54 = vpop.f32.mrf.mxu1  ;;  %v3536_v15 = vpack.c.bf16 %v3491_v17, %v3490_v25 }
 0x208   :  { %v8985_v28 = vpop.f32.mrf.mxu0  ;;  %2082 = vst.msk [vmem:[#allocation3 + $0x180] sm:$0xff] %vm717_vm2, %v2018_v21  ;;  %v2021_v33 = vadd.f32 %v8981_v6, %v1957_v3  ;;  %1411 = vst.msk [vmem:[#allocation3 + $0x1b8] sm:$0xff] %vm717_vm2, %v8919_v54  ;;  %v3533_v6 = vpack.c.bf16 %v3485_v1, %v3484_v7  ;;  %v4169_v21 = vld [vmem:[#allocation2 + $0x202] sm:$0xff]  ;;  %v3495_v1 = vld [vmem:[#allocation2 + $0x231] sm:$0xff] }
 0x209   :  { %v1955_v35 = vld [vmem:[#allocation3 + $0x188] sm:$0xff]  ;;  %v1312_v56 = vpop.f32.mrf.mxu1 }
 0x20a   :  { %v1862_v31 = vpop.f32.mrf.mxu0  ;;  %2085 = vst.msk [vmem:[#allocation3 + $0x198] sm:$0xff] %vm717_vm2, %v2021_v33  ;;  %v2019_v32 = vadd.f32 %v1955_v35, %v1846_v34  ;;  %1409 = vst.msk [vmem:[#allocation3 + $0x1a8] sm:$0xff] %vm717_vm2, %v1312_v56  ;;  %v4214_v35 = vpack.c.bf16 %v4169_v21, %v4168_v61 }
 0x20b   :  { %v1960_v44 = vld [vmem:[#allocation3 + $0x1b0] sm:$0xff]  ;;  %v8922_v20 = vpop.f32.mrf.mxu1  ;;  %9153 = vmatmul.mubr.msk.bf16.gmra.mxu1 %vm717_vm2, %v3531_v37 }
 0x20c   :  { %v8988_v57 = vpop.f32.mrf.mxu0  ;;  %9219 = vmatmul.mubr.msk.bf16.gmra.mxu0 %vm717_vm2, %v4209_v38  ;;  %2083 = vst.msk [vmem:[#allocation3 + $0x188] sm:$0xff] %vm717_vm2, %v2019_v32  ;;  %v2024_v9 = vadd.f32 %v8984_v39, %v1960_v44  ;;  %1414 = vst.msk [vmem:[#allocation3 + $0x1d0] sm:$0xff] %vm717_vm2, %v8922_v20  ;;  %9156 = vmatprep.mubr.msk.bf16.mxu1 %vm717_vm2, %v3532_v40  ;;  %v4167_v39 = vld [vmem:[#allocation2 + $0x1ea] sm:$0xff]  ;;  %v3493_v40 = vld [vmem:[#allocation2 + $0x219] sm:$0xff] }
 0x20d   :  { %9222 = vmatprep.mubr.msk.bf16.mxu0 %vm717_vm2, %v4210_v42  ;;  %v1958_v49 = vld [vmem:[#allocation3 + $0x1a0] sm:$0xff]  ;;  %v1325_v60 = vpop.f32.mrf.mxu1  ;;  %v4213_v29 = vpack.c.bf16 %v4167_v39, %v4166_v24  ;;  %v2586_v37 = vld [vmem:[#allocation3 + $0x10] sm:$0xff] }
 0x20e   :  { %v1875_v26 = vpop.f32.mrf.mxu0  ;;  %2088 = vst.msk [vmem:[#allocation3 + $0x1b0] sm:$0xff] %vm717_vm2, %v2024_v9  ;;  %v2022_v30 = vadd.f32 %v1958_v49, %v1859_v18  ;;  %1412 = vst.msk [vmem:[#allocation3 + $0x1c0] sm:$0xff] %vm717_vm2, %v1325_v60  ;;  %v2584_v20 = vld [vmem:[#allocation3] sm:$0xff]  ;;  %v4170_v9 = vld [vmem:[#allocation2 + $0x212] sm:$0xff] }
 0x20f   :  { %v1961_v0 = vld [vmem:[#allocation3 + $0x1b8] sm:$0xff]  ;;  %v8923_v47 = vpop.f32.mrf.mxu1  ;;  %v4174_v24 = vld [vmem:[#allocation2 + $0x242] sm:$0xff] }
 0x210   :  { %v8989_v58 = vpop.f32.mrf.mxu0  ;;  %2086 = vst.msk [vmem:[#allocation3 + $0x1a0] sm:$0xff] %vm717_vm2, %v2022_v30  ;;  %v2025_v63 = vadd.f32 %v8985_v28, %v1961_v0  ;;  %1415 = vst.msk [vmem:[#allocation3 + $0x1d8] sm:$0xff] %vm717_vm2, %v8923_v47  ;;  %v3535_v28 = vpack.c.bf16 %v3489_v46, %v3488_v2  ;;  %v4172_v30 = vld [vmem:[#allocation2 + $0x22a] sm:$0xff]  ;;  %v4173_v47 = vld [vmem:[#allocation2 + $0x232] sm:$0xff] }
 0x211   :  { %v1959_v27 = vld [vmem:[#allocation3 + $0x1a8] sm:$0xff]  ;;  %v1328_v4 = vpop.f32.mrf.mxu1  ;;  %v2588_v46 = vld [vmem:[#allocation3 + $0x20] sm:$0xff] }
 0x212   :  { %v1878_v5 = vpop.f32.mrf.mxu0  ;;  %2089 = vst.msk [vmem:[#allocation3 + $0x1b8] sm:$0xff] %vm717_vm2, %v2025_v63  ;;  %v2023_v52 = vadd.f32 %v1959_v27, %v1862_v31  ;;  %1413 = vst.msk [vmem:[#allocation3 + $0x1c8] sm:$0xff] %vm717_vm2, %v1328_v4  ;;  %v2585_v27 = vld [vmem:[#allocation3 + $0x8] sm:$0xff] }
 0x213   :  { %v1964_v48 = vld [vmem:[#allocation3 + $0x1d0] sm:$0xff]  ;;  %v8926_v34 = vpop.f32.mrf.mxu1  ;;  %9157 = vmatmul.mubr.msk.bf16.gmra.mxu1 %vm717_vm2, %v3533_v6 }
 0x214   :  { %v8992_v13 = vpop.f32.mrf.mxu0  ;;  %9223 = vmatmul.mubr.msk.bf16.gmra.mxu0 %vm717_vm2, %v4211_v43  ;;  %2087 = vst.msk [vmem:[#allocation3 + $0x1a8] sm:$0xff] %vm717_vm2, %v2023_v52  ;;  %v2028_v14 = vadd.f32 %v8988_v57, %v1964_v48  ;;  %1418 = vst.msk [vmem:[#allocation3 + $0x1f0] sm:$0xff] %vm717_vm2, %v8926_v34  ;;  %9160 = vmatprep.mubr.msk.bf16.mxu1 %vm717_vm2, %v3534_v12  ;;  %v3494_v43 = vld [vmem:[#allocation2 + $0x229] sm:$0xff] }
 0x215   :  { %9226 = vmatprep.mubr.msk.bf16.mxu0 %vm717_vm2, %v4212_v59  ;;  %v1962_v16 = vld [vmem:[#allocation3 + $0x1c0] sm:$0xff]  ;;  %v1341_v8 = vpop.f32.mrf.mxu1  ;;  %v3538_v12 = vpack.c.bf16 %v3495_v1, %v3494_v43  ;;  %v4216_v59 = vpack.c.bf16 %v4173_v47, %v4172_v30  ;;  %v2590_v34 = vld [vmem:[#allocation3 + $0x30] sm:$0xff] }
 0x216   :  { %v1891_v19 = vpop.f32.mrf.mxu0  ;;  %2092 = vst.msk [vmem:[#allocation3 + $0x1d0] sm:$0xff] %vm717_vm2, %v2028_v14  ;;  %v2026_v10 = vadd.f32 %v1962_v16, %v1875_v26  ;;  %1416 = vst.msk [vmem:[#allocation3 + $0x1e0] sm:$0xff] %vm717_vm2, %v1341_v8  ;;  %v4171_v26 = vld [vmem:[#allocation2 + $0x21a] sm:$0xff]  ;;  %v3497_v16 = vld [vmem:[#allocation2 + $0x249] sm:$0xff] }
 0x217   :  { %v1965_v36 = vld [vmem:[#allocation3 + $0x1d8] sm:$0xff]  ;;  %v8927_v45 = vpop.f32.mrf.mxu1  ;;  %v4215_v6 = vpack.c.bf16 %v4171_v26, %v4170_v9  ;;  %v2592_v1 = vld [vmem:[#allocation3 + $0x40] sm:$0xff] }
 0x218   :  { %v8993_v18 = vpop.f32.mrf.mxu0  ;;  %2090 = vst.msk [vmem:[#allocation3 + $0x1c0] sm:$0xff] %vm717_vm2, %v2026_v10  ;;  %v2029_v22 = vadd.f32 %v8989_v58, %v1965_v36  ;;  %1419 = vst.msk [vmem:[#allocation3 + $0x1f8] sm:$0xff] %vm717_vm2, %v8927_v45  ;;  %v4175_v36 = vld [vmem:[#allocation2 + $0x24a] sm:$0xff]  ;;  %v3499_v45 = vld [vmem:[#allocation2 + $0x261] sm:$0xff] }
 0x219   :  { %v1963_v23 = vld [vmem:[#allocation3 + $0x1c8] sm:$0xff]  ;;  %v1344_v3 = vpop.f32.mrf.mxu1  ;;  %v3503_v47 = vld [vmem:[#allocation2 + $0x291] sm:$0xff] }
 0x21a   :  { %v1894_v54 = vpop.f32.mrf.mxu0  ;;  %2093 = vst.msk [vmem:[#allocation3 + $0x1d8] sm:$0xff] %vm717_vm2, %v2029_v22  ;;  %v2027_v33 = vadd.f32 %v1963_v23, %v1878_v5  ;;  %1417 = vst.msk [vmem:[#allocation3 + $0x1e8] sm:$0xff] %vm717_vm2, %v1344_v3  ;;  %v3537_v5 = vpack.c.bf16 %v3493_v40, %v3492_v53  ;;  %v2591_v22 = vld [vmem:[#allocation3 + $0x38] sm:$0xff]  ;;  %v4177_v23 = vld [vmem:[#allocation2 + $0x262] sm:$0xff] }
 0x21b   :  { %v1968_v56 = vld [vmem:[#allocation3 + $0x1f0] sm:$0xff]  ;;  %v8998_v31 = vpop.f32.mrf.mxu1  ;;  %9161 = vmatmul.mubr.msk.bf16.gmra.mxu1 %vm717_vm2, %v3535_v28  ;;  %v3496_v28 = vld [vmem:[#allocation2 + $0x241] sm:$0xff] }
 0x21c   :  { %v9064_v38 = vpop.f32.mrf.mxu0  ;;  %9227 = vmatmul.mubr.msk.bf16.gmra.mxu0 %vm717_vm2, %v4213_v29  ;;  %2091 = vst.msk [vmem:[#allocation3 + $0x1c8] sm:$0xff] %vm717_vm2, %v2027_v33  ;;  %v2032_v55 = vadd.f32 %v8992_v13, %v1968_v56  ;;  %v2650_v32 = vadd.f32 %v8998_v31, %v2586_v37  ;;  %9164 = vmatprep.mubr.msk.bf16.mxu1 %vm717_vm2, %v3536_v15  ;;  %v2589_v33 = vld [vmem:[#allocation3 + $0x28] sm:$0xff]  ;;  %v3498_v31 = vld [vmem:[#allocation2 + $0x259] sm:$0xff] }
 0x21d   :  { %9230 = vmatprep.mubr.msk.bf16.mxu0 %vm717_vm2, %v4214_v35  ;;  %v1966_v42 = vld [vmem:[#allocation3 + $0x1e0] sm:$0xff]  ;;  %v2329_v44 = vpop.f32.mrf.mxu1  ;;  %v3539_v35 = vpack.c.bf16 %v3497_v16, %v3496_v28  ;;  %v4217_v56 = vpack.c.bf16 %v4175_v36, %v4174_v24  ;;  %v3505_v36 = vld [vmem:[#allocation2 + $0x2a9] sm:$0xff] }
 0x21e   :  { %v3007_v57 = vpop.f32.mrf.mxu0  ;;  %2096 = vst.msk [vmem:[#allocation3 + $0x1f0] sm:$0xff] %vm717_vm2, %v2032_v55  ;;  %v2030_v49 = vadd.f32 %v1966_v42, %v1891_v19  ;;  %2714 = vst.msk [vmem:[#allocation3 + $0x10] sm:$0xff] %vm717_vm2, %v2650_v32  ;;  %v2648_v60 = vadd.f32 %v2584_v20, %v2329_v44  ;;  %v3540_v55 = vpack.c.bf16 %v3499_v45, %v3498_v31  ;;  %v2594_v44 = vld [vmem:[#allocation3 + $0x50] sm:$0xff]  ;;  %v4184_v28 = vld [vmem:[#allocation2 + $0x2ba] sm:$0xff] }
 0x21f   :  { %v1969_v50 = vld [vmem:[#allocation3 + $0x1f8] sm:$0xff]  ;;  %v8999_v51 = vpop.f32.mrf.mxu1 }
 0x220   :  { %v9065_v0 = vpop.f32.mrf.mxu0  ;;  %2094 = vst.msk [vmem:[#allocation3 + $0x1e0] sm:$0xff] %vm717_vm2, %v2030_v49  ;;  %v2033_v58 = vadd.f32 %v8993_v18, %v1969_v50  ;;  %2712 = vst.msk [vmem:[#allocation3] sm:$0xff] %vm717_vm2, %v2648_v60  ;;  %v2651_v62 = vadd.f32 %v8999_v51, %v2587_v41  ;;  %v4176_v18 = vld [vmem:[#allocation2 + $0x25a] sm:$0xff]  ;;  %v4178_v50 = vld [vmem:[#allocation2 + $0x272] sm:$0xff] }
 0x221   :  { %v1967_v63 = vld [vmem:[#allocation3 + $0x1e8] sm:$0xff]  ;;  %v2332_v7 = vpop.f32.mrf.mxu1  ;;  %v4218_v32 = vpack.c.bf16 %v4177_v23, %v4176_v18  ;;  %v3501_v49 = vld [vmem:[#allocation2 + $0x279] sm:$0xff] }
 0x222   :  { %v3010_v4 = vpop.f32.mrf.mxu0  ;;  %2097 = vst.msk [vmem:[#allocation3 + $0x1f8] sm:$0xff] %vm717_vm2, %v2033_v58  ;;  %v2031_v11 = vadd.f32 %v1967_v63, %v1894_v54  ;;  %2715 = vst.msk [vmem:[#allocation3 + $0x18] sm:$0xff] %vm717_vm2, %v2651_v62  ;;  %v2649_v52 = vadd.f32 %v2585_v27, %v2332_v7  ;;  %v4180_v58 = vld [vmem:[#allocation2 + $0x28a] sm:$0xff]  ;;  %v2595_v63 = vld [vmem:[#allocation3 + $0x58] sm:$0xff] }
 0x223   :  { %v9002_v48 = vpop.f32.mrf.mxu1  ;;  %9165 = vmatmul.mubr.msk.bf16.gmra.mxu1 %vm717_vm2, %v3537_v5  ;;  %v4181_v27 = vld [vmem:[#allocation2 + $0x292] sm:$0xff] }
 0x224   :  { %v9068_v13 = vpop.f32.mrf.mxu0  ;;  %9231 = vmatmul.mubr.msk.bf16.gmra.mxu0 %vm717_vm2, %v4215_v6  ;;  %2095 = vst.msk [vmem:[#allocation3 + $0x1e8] sm:$0xff] %vm717_vm2, %v2031_v11  ;;  %2713 = vst.msk [vmem:[#allocation3 + $0x8] sm:$0xff] %vm717_vm2, %v2649_v52  ;;  %v2654_v14 = vadd.f32 %v9002_v48, %v2590_v34  ;;  %9168 = vmatprep.mubr.msk.bf16.mxu1 %vm717_vm2, %v3538_v12  ;;  %v3500_v6 = vld [vmem:[#allocation2 + $0x271] sm:$0xff]  ;;  %v2593_v52 = vld [vmem:[#allocation3 + $0x48] sm:$0xff] }
 0x225   :  { %9234 = vmatprep.mubr.msk.bf16.mxu0 %vm717_vm2, %v4216_v59  ;;  %v3264_v8 = vld [vmem:[#allocation3 + $0x10] sm:$0xff]  ;;  %v2345_v19 = vpop.f32.mrf.mxu1  ;;  %v3541_v59 = vpack.c.bf16 %v3501_v49, %v3500_v6 }
 0x226   :  { %v3023_v10 = vpop.f32.mrf.mxu0  ;;  %v3328_v39 = vadd.f32 %v9064_v38, %v3264_v8  ;;  %2718 = vst.msk [vmem:[#allocation3 + $0x30] sm:$0xff] %vm717_vm2, %v2654_v14  ;;  %v2652_v17 = vadd.f32 %v2588_v46, %v2345_v19  ;;  %v3502_v34 = vld [vmem:[#allocation2 + $0x289] sm:$0xff]  ;;  %v4220_v8 = vpack.c.bf16 %v4181_v27, %v4180_v58 }
 0x227   :  { %v3262_v61 = vld [vmem:[#allocation3] sm:$0xff]  ;;  %v9003_v21 = vpop.f32.mrf.mxu1  ;;  %v3542_v16 = vpack.c.bf16 %v3503_v47, %v3502_v34  ;;  %v4188_v6 = vld [vmem:[#allocation2 + $0x2ea] sm:$0xff] }
 0x228   :  { %v10679_v2 = vpop.f32.mrf.mxu0  ;;  %3392 = vst.msk [vmem:[#allocation3 + $0x10] sm:$0xff] %vm717_vm2, %v3328_v39  ;;  %v3326_v3 = vadd.f32 %v3262_v61, %v3007_v57  ;;  %2716 = vst.msk [vmem:[#allocation3 + $0x20] sm:$0xff] %vm717_vm2, %v2652_v17  ;;  %v2655_v54 = vadd.f32 %v9003_v21, %v2591_v22  ;;  %v2596_v61 = vld [vmem:[#allocation3 + $0x60] sm:$0xff] }
 0x229   :  { %v3265_v29 = vld [vmem:[#allocation3 + $0x18] sm:$0xff]  ;;  %v2348_v25 = vpop.f32.mrf.mxu1  ;;  %v4182_v22 = vld [vmem:[#allocation2 + $0x2a2] sm:$0xff] }
 0x22a   :  { %v10683_v15 = vpop.f32.mrf.mxu0  ;;  %3390 = vst.msk [vmem:[#allocation3] sm:$0xff] %vm717_vm2, %v3326_v3  ;;  %v3329_v37 = vadd.f32 %v9065_v0, %v3265_v29  ;;  %2719 = vst.msk [vmem:[#allocation3 + $0x38] sm:$0xff] %vm717_vm2, %v2655_v54  ;;  %v2653_v38 = vadd.f32 %v2589_v33, %v2348_v25  ;;  %v4179_v0 = vld [vmem:[#allocation2 + $0x27a] sm:$0xff]  ;;  %v4183_v3 = vld [vmem:[#allocation2 + $0x2aa] sm:$0xff] }
 0x22b   :  { %v3263_v40 = vld [vmem:[#allocation3 + $0x8] sm:$0xff]  ;;  %v9006_v42 = vpop.f32.mrf.mxu1  ;;  %9169 = vmatmul.mubr.msk.bf16.gmra.mxu1 %vm717_vm2, %v3539_v35  ;;  %v4219_v48 = vpack.c.bf16 %v4179_v0, %v4178_v50  ;;  %v2599_v33 = vld [vmem:[#allocation3 + $0x78] sm:$0xff] }
 0x22c   :  { %v10687_v20 = vpop.f32.mrf.mxu0  ;;  %9235 = vmatmul.mubr.msk.bf16.gmra.mxu0 %vm717_vm2, %v4217_v56  ;;  %3393 = vst.msk [vmem:[#allocation3 + $0x18] sm:$0xff] %vm717_vm2, %v3329_v37  ;;  %v3327_v57 = vadd.f32 %v3263_v40, %v3010_v4  ;;  %2717 = vst.msk [vmem:[#allocation3 + $0x28] sm:$0xff] %vm717_vm2, %v2653_v38  ;;  %v2658_v9 = vadd.f32 %v9006_v42, %v2594_v44  ;;  %9172 = vmatprep.mubr.msk.bf16.mxu1 %vm717_vm2, %v3540_v55  ;;  %v3507_v54 = vld [vmem:[#allocation2 + $0x2c1] sm:$0xff]  ;;  %v3509_v0 = vld [vmem:[#allocation2 + $0x2d9] sm:$0xff] }
 0x22d   :  { %9238 = vmatprep.mubr.msk.bf16.mxu0 %vm717_vm2, %v4218_v32  ;;  %v3268_v60 = vld [vmem:[#allocation3 + $0x30] sm:$0xff]  ;;  %v2361_v26 = vpop.f32.mrf.mxu1  ;;  %v4185_v35 = vld [vmem:[#allocation2 + $0x2c2] sm:$0xff]  ;;  %v4221_v44 = vpack.c.bf16 %v4183_v3, %v4182_v22 }
 0x22e   :  { %v10695_v30 = vpop.f32.mrf.mxu0  ;;  %3391 = vst.msk [vmem:[#allocation3 + $0x8] sm:$0xff] %vm717_vm2, %v3327_v57  ;;  %v3332_v51 = vadd.f32 %v9068_v13, %v3268_v60  ;;  %2722 = vst.msk [vmem:[#allocation3 + $0x50] sm:$0xff] %vm717_vm2, %v2658_v9  ;;  %v2656_v41 = vadd.f32 %v2592_v1, %v2361_v26  ;;  %v3504_v37 = vld [vmem:[#allocation2 + $0x2a1] sm:$0xff]  ;;  %v4222_v60 = vpack.c.bf16 %v4185_v35, %v4184_v28  ;;  %v3513_v3 = vld [vmem:[#allocation2 + $0x309] sm:$0xff] }
 0x22f   :  { %v3266_v62 = vld [vmem:[#allocation3 + $0x20] sm:$0xff]  ;;  %v9007_v53 = vpop.f32.mrf.mxu1  ;;  %v2597_v32 = vld [vmem:[#allocation3 + $0x68] sm:$0xff]  ;;  %v3543_v42 = vpack.c.bf16 %v3505_v36, %v3504_v37 }
 0x230   :  { %v10699_v7 = vpop.f32.mrf.mxu0  ;;  %3396 = vst.msk [vmem:[#allocation3 + $0x30] sm:$0xff] %vm717_vm2, %v3332_v51  ;;  %v3330_v4 = vadd.f32 %v3266_v62, %v3023_v10  ;;  %2720 = vst.msk [vmem:[#allocation3 + $0x40] sm:$0xff] %vm717_vm2, %v2656_v41  ;;  %v2659_v5 = vadd.f32 %v9007_v53, %v2595_v63  ;;  %v2598_v10 = vld [vmem:[#allocation3 + $0x70] sm:$0xff]  ;;  %v2600_v62 = vld [vmem:[#allocation3 + $0x80] sm:$0xff] }
 0x231   :  { %v3269_v43 = vld [vmem:[#allocation3 + $0x38] sm:$0xff]  ;;  %v2364_v11 = vpop.f32.mrf.mxu1 }
 0x232   :  { %v10703_v12 = vpop.f32.mrf.mxu0  ;;  %3394 = vst.msk [vmem:[#allocation3 + $0x20] sm:$0xff] %vm717_vm2, %v3330_v4  ;;  %v3333_v13 = vadd.f32 %v10679_v2, %v3269_v43  ;;  %2723 = vst.msk [vmem:[#allocation3 + $0x58] sm:$0xff] %vm717_vm2, %v2659_v5  ;;  %v2657_v14 = vadd.f32 %v2593_v52, %v2364_v11  ;;  %v4186_v63 = vld [vmem:[#allocation2 + $0x2d2] sm:$0xff]  ;;  %v4187_v4 = vld [vmem:[#allocation2 + $0x2da] sm:$0xff] }
 0x233   :  { %v3267_v19 = vld [vmem:[#allocation3 + $0x28] sm:$0xff]  ;;  %v9010_v46 = vpop.f32.mrf.mxu1  ;;  %9173 = vmatmul.mubr.msk.bf16.gmra.mxu1 %vm717_vm2, %v3541_v59  ;;  %v3511_v5 = vld [vmem:[#allocation2 + $0x2f1] sm:$0xff]  ;;  %v4192_v37 = vld [vmem:[#allocation2 + $0x31a] sm:$0xff] }
 0x234   :  { %v10708_v24 = vpop.f32.mrf.mxu0  ;;  %9239 = vmatmul.mubr.msk.bf16.gmra.mxu0 %vm717_vm2, %v4219_v48  ;;  %3397 = vst.msk [vmem:[#allocation3 + $0x38] sm:$0xff] %vm717_vm2, %v3333_v13  ;;  %v3331_v39 = vadd.f32 %v3267_v19, %v10683_v15  ;;  %2721 = vst.msk [vmem:[#allocation3 + $0x48] sm:$0xff] %vm717_vm2, %v2657_v14  ;;  %v2662_v17 = vadd.f32 %v9010_v46, %v2598_v10  ;;  %9176 = vmatprep.mubr.msk.bf16.mxu1 %vm717_vm2, %v3542_v16  ;;  %v2603_v52 = vld [vmem:[#allocation3 + $0x98] sm:$0xff] }
 0x235   :  { %9242 = vmatprep.mubr.msk.bf16.mxu0 %vm717_vm2, %v4220_v8  ;;  %v3272_v45 = vld [vmem:[#allocation3 + $0x50] sm:$0xff]  ;;  %v2377_v18 = vpop.f32.mrf.mxu1  ;;  %v2601_v8 = vld [vmem:[#allocation3 + $0x88] sm:$0xff]  ;;  %v4223_v10 = vpack.c.bf16 %v4187_v4, %v4186_v63 }
 0x236   :  { %v10717_v21 = vpop.f32.mrf.mxu0  ;;  %3395 = vst.msk [vmem:[#allocation3 + $0x28] sm:$0xff] %vm717_vm2, %v3331_v39  ;;  %v3336_v2 = vadd.f32 %v10687_v20, %v3272_v45  ;;  %2726 = vst.msk [vmem:[#allocation3 + $0x70] sm:$0xff] %vm717_vm2, %v2662_v17  ;;  %v2660_v23 = vadd.f32 %v2596_v61, %v2377_v18  ;;  %v3506_v20 = vld [vmem:[#allocation2 + $0x2b9] sm:$0xff]  ;;  %v3508_v13 = vld [vmem:[#allocation2 + $0x2d1] sm:$0xff] }
 0x237   :  { %v3270_v29 = vld [vmem:[#allocation3 + $0x40] sm:$0xff]  ;;  %v9011_v25 = vpop.f32.mrf.mxu1  ;;  %v3544_v49 = vpack.c.bf16 %v3507_v54, %v3506_v20  ;;  %v4189_v59 = vld [vmem:[#allocation2 + $0x2f2] sm:$0xff]  ;;  %v3545_v46 = vpack.c.bf16 %v3509_v0, %v3508_v13 }
 0x238   :  { %v10722_v15 = vpop.f32.mrf.mxu0  ;;  %3400 = vst.msk [vmem:[#allocation3 + $0x50] sm:$0xff] %vm717_vm2, %v3336_v2  ;;  %v3334_v56 = vadd.f32 %v3270_v29, %v10695_v30  ;;  %2724 = vst.msk [vmem:[#allocation3 + $0x60] sm:$0xff] %vm717_vm2, %v2660_v23  ;;  %v2663_v31 = vadd.f32 %v9011_v25, %v2599_v33  ;;  %v2602_v30 = vld [vmem:[#allocation3 + $0x90] sm:$0xff]  ;;  %v4224_v45 = vpack.c.bf16 %v4189_v59, %v4188_v6  ;;  %v2604_v29 = vld [vmem:[#allocation3 + $0xa0] sm:$0xff] }
 0x239   :  { %v3273_v38 = vld [vmem:[#allocation3 + $0x58] sm:$0xff]  ;;  %v2380_v55 = vpop.f32.mrf.mxu1  ;;  %v4190_v33 = vld [vmem:[#allocation2 + $0x302] sm:$0xff] }
 0x23a   :  { %v10727_v40 = vpop.f32.mrf.mxu0  ;;  %3398 = vst.msk [vmem:[#allocation3 + $0x40] sm:$0xff] %vm717_vm2, %v3334_v56  ;;  %v3337_v57 = vadd.f32 %v10699_v7, %v3273_v38  ;;  %2727 = vst.msk [vmem:[#allocation3 + $0x78] sm:$0xff] %vm717_vm2, %v2663_v31  ;;  %v2661_v9 = vadd.f32 %v2597_v32, %v2380_v55  ;;  %v4191_v56 = vld [vmem:[#allocation2 + $0x30a] sm:$0xff]  ;;  %v3515_v31 = vld [vmem:[#allocation2 + $0x321] sm:$0xff] }
 0x23b   :  { %v3271_v26 = vld [vmem:[#allocation3 + $0x48] sm:$0xff]  ;;  %v9014_v1 = vpop.f32.mrf.mxu1  ;;  %9177 = vmatmul.mubr.msk.bf16.gmra.mxu1 %vm717_vm2, %v3543_v42  ;;  %v2607_v32 = vld [vmem:[#allocation3 + $0xb8] sm:$0xff]  ;;  %v2608_v6 = vld [vmem:[#allocation3 + $0xc0] sm:$0xff] }
 0x23c   :  { %v10732_v50 = vpop.f32.mrf.mxu0  ;;  %9243 = vmatmul.mubr.msk.bf16.gmra.mxu0 %vm717_vm2, %v4221_v44  ;;  %3401 = vst.msk [vmem:[#allocation3 + $0x58] sm:$0xff] %vm717_vm2, %v3337_v57  ;;  %v3335_v51 = vadd.f32 %v3271_v26, %v10703_v12  ;;  %2725 = vst.msk [vmem:[#allocation3 + $0x68] sm:$0xff] %vm717_vm2, %v2661_v9  ;;  %v2666_v41 = vadd.f32 %v9014_v1, %v2602_v30  ;;  %9180 = vmatprep.mubr.msk.bf16.mxu1 %vm717_vm2, %v3544_v49  ;;  %v4193_v42 = vld [vmem:[#allocation2 + $0x322] sm:$0xff]  ;;  %v3517_v59 = vld [vmem:[#allocation2 + $0x339] sm:$0xff] }
 0x23d   :  { %9246 = vmatprep.mubr.msk.bf16.mxu0 %vm717_vm2, %v4222_v60  ;;  %v3276_v47 = vld [vmem:[#allocation3 + $0x70] sm:$0xff]  ;;  %v2393_v58 = vpop.f32.mrf.mxu1  ;;  %v3512_v57 = vld [vmem:[#allocation2 + $0x301] sm:$0xff]  ;;  %v4225_v30 = vpack.c.bf16 %v4191_v56, %v4190_v33 }
 0x23e   :  { %v10741_v53 = vpop.f32.mrf.mxu0  ;;  %3399 = vst.msk [vmem:[#allocation3 + $0x48] sm:$0xff] %vm717_vm2, %v3335_v51  ;;  %v3340_v7 = vadd.f32 %v10708_v24, %v3276_v47  ;;  %2730 = vst.msk [vmem:[#allocation3 + $0x90] sm:$0xff] %vm717_vm2, %v2666_v41  ;;  %v2664_v27 = vadd.f32 %v2600_v62, %v2393_v58  ;;  %v3510_v24 = vld [vmem:[#allocation2 + $0x2e9] sm:$0xff]  ;;  %v3547_v1 = vpack.c.bf16 %v3513_v3, %v3512_v57  ;;  %v2615_v57 = vld [vmem:[#allocation3 + $0xf8] sm:$0xff] }
 0x23f   :  { %v3274_v43 = vld [vmem:[#allocation3 + $0x60] sm:$0xff]  ;;  %v9015_v11 = vpop.f32.mrf.mxu1  ;;  %v3546_v36 = vpack.c.bf16 %v3511_v5, %v3510_v24  ;;  %v2605_v60 = vld [vmem:[#allocation3 + $0xa8] sm:$0xff]  ;;  %v4226_v47 = vpack.c.bf16 %v4193_v42, %v4192_v37  ;;  %v3516_v24 = vld [vmem:[#allocation2 + $0x331] sm:$0xff] }
 0x240   :  { %v10746_v12 = vpop.f32.mrf.mxu0  ;;  %3404 = vst.msk [vmem:[#allocation3 + $0x70] sm:$0xff] %vm717_vm2, %v3340_v7  ;;  %v3338_v48 = vadd.f32 %v3274_v43, %v10717_v21  ;;  %2728 = vst.msk [vmem:[#allocation3 + $0x80] sm:$0xff] %vm717_vm2, %v2664_v27  ;;  %v2667_v34 = vadd.f32 %v9015_v11, %v2603_v52  ;;  %v2606_v21 = vld [vmem:[#allocation3 + $0xb0] sm:$0xff]  ;;  %v4812_v11 = vld [vmem:[#allocation2 + $0x38] sm:$0xff] }
 0x241   :  { %v3277_v14 = vld [vmem:[#allocation3 + $0x78] sm:$0xff]  ;;  %v2396_v16 = vpop.f32.mrf.mxu1  ;;  %v2612_v37 = vld [vmem:[#allocation3 + $0xe0] sm:$0xff] }
 0x242   :  { %v10751_v19 = vpop.f32.mrf.mxu0  ;;  %3402 = vst.msk [vmem:[#allocation3 + $0x60] sm:$0xff] %vm717_vm2, %v3338_v48  ;;  %v3341_v39 = vadd.f32 %v10722_v15, %v3277_v14  ;;  %2731 = vst.msk [vmem:[#allocation3 + $0x98] sm:$0xff] %vm717_vm2, %v2667_v34  ;;  %v2665_v17 = vadd.f32 %v2601_v8, %v2396_v16  ;;  %v4194_v48 = vld [vmem:[#allocation2 + $0x332] sm:$0xff]  ;;  %v4195_v34 = vld [vmem:[#allocation2 + $0x33a] sm:$0xff] }
 0x243   :  { %v3275_v18 = vld [vmem:[#allocation3 + $0x68] sm:$0xff]  ;;  %v9018_v61 = vpop.f32.mrf.mxu1  ;;  %9181 = vmatmul.mubr.msk.bf16.gmra.mxu1 %vm717_vm2, %v3545_v46  ;;  %v2611_v16 = vld [vmem:[#allocation3 + $0xd8] sm:$0xff] }
 0x244   :  { %v10756_v22 = vpop.f32.mrf.mxu0  ;;  %9247 = vmatmul.mubr.msk.bf16.gmra.mxu0 %vm717_vm2, %v4223_v10  ;;  %3405 = vst.msk [vmem:[#allocation3 + $0x78] sm:$0xff] %vm717_vm2, %v3341_v39  ;;  %v3339_v2 = vadd.f32 %v3275_v18, %v10727_v40  ;;  %2729 = vst.msk [vmem:[#allocation3 + $0x88] sm:$0xff] %vm717_vm2, %v2665_v17  ;;  %v2670_v23 = vadd.f32 %v9018_v61, %v2606_v21  ;;  %9184 = vmatprep.mubr.msk.bf16.mxu1 %vm717_vm2, %v3546_v36  ;;  %v4811_v39 = vld [vmem:[#allocation2 + $0x30] sm:$0xff] }
 0x245   :  { %9250 = vmatprep.mubr.msk.bf16.mxu0 %vm717_vm2, %v4224_v45  ;;  %v3280_v54 = vld [vmem:[#allocation3 + $0x90] sm:$0xff]  ;;  %v2409_v28 = vpop.f32.mrf.mxu1  ;;  %v2609_v45 = vld [vmem:[#allocation3 + $0xc8] sm:$0xff]  ;;  %v3549_v61 = vpack.c.bf16 %v3517_v59, %v3516_v24  ;;  %v4227_v21 = vpack.c.bf16 %v4195_v34, %v4194_v48  ;;  %v4875_v3 = vpack.c.bf16 %v4812_v11, %v4811_v39  ;;  %v4820_v39 = vld [vmem:[#allocation2 + $0x98] sm:$0xff] }
 0x246   :  { %v3087_v25 = vpop.f32.mrf.mxu0  ;;  %3403 = vst.msk [vmem:[#allocation3 + $0x68] sm:$0xff] %vm717_vm2, %v3339_v2  ;;  %v3344_v15 = vadd.f32 %v10732_v50, %v3280_v54  ;;  %2734 = vst.msk [vmem:[#allocation3 + $0xb0] sm:$0xff] %vm717_vm2, %v2670_v23  ;;  %v2668_v35 = vadd.f32 %v2604_v29, %v2409_v28  ;;  %v3514_v50 = vld [vmem:[#allocation2 + $0x319] sm:$0xff]  ;;  %v5492_v42 = vld [vmem:[#allocation2 + $0x51] sm:$0xff] }
 0x247   :  { %v3278_v38 = vld [vmem:[#allocation3 + $0x80] sm:$0xff]  ;;  %v9019_v55 = vpop.f32.mrf.mxu1  ;;  %v3548_v0 = vpack.c.bf16 %v3515_v31, %v3514_v50  ;;  %v5494_v50 = vld [vmem:[#allocation2 + $0x69] sm:$0xff] }
 0x248   :  { %v10768_v40 = vpop.f32.mrf.mxu0  ;;  %3408 = vst.msk [vmem:[#allocation3 + $0x90] sm:$0xff] %vm717_vm2, %v3344_v15  ;;  %v3342_v44 = vadd.f32 %v3278_v38, %v10741_v53  ;;  %2732 = vst.msk [vmem:[#allocation3 + $0xa0] sm:$0xff] %vm717_vm2, %v2668_v35  ;;  %v2671_v20 = vadd.f32 %v9019_v55, %v2607_v32  ;;  %v2610_v53 = vld [vmem:[#allocation3 + $0xd0] sm:$0xff]  ;;  %v5496_v24 = vld [vmem:[#allocation2 + $0x81] sm:$0xff] }
 0x249   :  { %v3281_v9 = vld [vmem:[#allocation3 + $0x98] sm:$0xff]  ;;  %v2412_v49 = vpop.f32.mrf.mxu1 }
 0x24a   :  { %v10773_v26 = vpop.f32.mrf.mxu0  ;;  %3406 = vst.msk [vmem:[#allocation3 + $0x80] sm:$0xff] %vm717_vm2, %v3342_v44  ;;  %v3345_v51 = vadd.f32 %v10746_v12, %v3281_v9  ;;  %2735 = vst.msk [vmem:[#allocation3 + $0xb8] sm:$0xff] %vm717_vm2, %v2671_v20  ;;  %v2669_v41 = vadd.f32 %v2605_v60, %v2412_v49  ;;  %v4816_v49 = vld [vmem:[#allocation2 + $0x68] sm:$0xff] }
 0x24b   :  { %v3279_v58 = vld [vmem:[#allocation3 + $0x88] sm:$0xff]  ;;  %v9022_v62 = vpop.f32.mrf.mxu1  ;;  %9185 = vmatmul.mubr.msk.bf16.gmra.mxu1 %vm717_vm2, %v3547_v1 }
 0x24c   :  { %v9088_v63 = vpop.f32.mrf.mxu0  ;;  %9251 = vmatmul.mubr.msk.bf16.gmra.mxu0 %vm717_vm2, %v4225_v30  ;;  %3409 = vst.msk [vmem:[#allocation3 + $0x98] sm:$0xff] %vm717_vm2, %v3345_v51  ;;  %v3343_v7 = vadd.f32 %v3279_v58, %v10751_v19  ;;  %2733 = vst.msk [vmem:[#allocation3 + $0xa8] sm:$0xff] %vm717_vm2, %v2669_v41  ;;  %v2674_v27 = vadd.f32 %v9022_v62, %v2610_v53  ;;  %9188 = vmatprep.mubr.msk.bf16.mxu1 %vm717_vm2, %v3548_v0  ;;  %v5490_v19 = vld [vmem:[#allocation2 + $0x39] sm:$0xff]  ;;  %v4813_v1 = vld [vmem:[#allocation2 + $0x48] sm:$0xff] }
 0x24d   :  { %9254 = vmatprep.mubr.msk.bf16.mxu0 %vm717_vm2, %v4226_v47  ;;  %v3284_v4 = vld [vmem:[#allocation3 + $0xb0] sm:$0xff]  ;;  %v2425_v5 = vpop.f32.mrf.mxu1  ;;  %v2613_v0 = vld [vmem:[#allocation3 + $0xe8] sm:$0xff]  ;;  %v9636_v53 = vld [vmem:[%s11898_s3 + $0x20] sm:$0xf] }
 0x24e   :  { %v3103_v43 = vpop.f32.mrf.mxu0  ;;  %3407 = vst.msk [vmem:[#allocation3 + $0x88] sm:$0xff] %vm717_vm2, %v3343_v7  ;;  %v3348_v52 = vadd.f32 %v10756_v22, %v3284_v4  ;;  %2738 = vst.msk [vmem:[#allocation3 + $0xd0] sm:$0xff] %vm717_vm2, %v2674_v27  ;;  %v2672_v12 = vadd.f32 %v2608_v6, %v2425_v5  ;;  %v5489_v22 = vld [vmem:[#allocation2 + $0x31] sm:$0xff]  ;;  %v5491_v30 = vld [vmem:[#allocation2 + $0x49] sm:$0xff] }
 0x24f   :  { %v3282_v13 = vld [vmem:[#allocation3 + $0xa0] sm:$0xff]  ;;  %v9023_v14 = vpop.f32.mrf.mxu1  ;;  %v5553_v54 = vpack.c.bf16 %v5490_v19, %v5489_v22  ;;  %v5554_v62 = vpack.c.bf16 %v5492_v42, %v5491_v30  ;;  %v4822_v30 = vld [vmem:[#allocation2 + $0xb0] sm:$0xff] }
 0x250   :  { %v10788_v8 = vpop.f32.mrf.mxu0  ;;  %3412 = vst.msk [vmem:[#allocation3 + $0xb0] sm:$0xff] %vm717_vm2, %v3348_v52  ;;  %v3346_v46 = vadd.f32 %v3282_v13, %v3087_v25  ;;  %2736 = vst.msk [vmem:[#allocation3 + $0xc0] sm:$0xff] %vm717_vm2, %v2672_v12  ;;  %v2675_v10 = vadd.f32 %v9023_v14, %v2611_v16  ;;  %v2614_v25 = vld [vmem:[#allocation3 + $0xf0] sm:$0xff]  ;;  %v4815_v7 = vld [vmem:[#allocation2 + $0x60] sm:$0xff] }
 0x251   :  { %v3285_v17 = vld [vmem:[#allocation3 + $0xb8] sm:$0xff]  ;;  %v2428_v36 = vpop.f32.mrf.mxu1  ;;  %v4877_v5 = vpack.c.bf16 %v4816_v49, %v4815_v7  ;;  %v5493_v6 = vld [vmem:[#allocation2 + $0x61] sm:$0xff]  ;;  %v2618_v52 = vld [vmem:[#allocation3 + $0x110] sm:$0xff] }
 0x252   :  { %v10792_v18 = vpop.f32.mrf.mxu0  ;;  %3410 = vst.msk [vmem:[#allocation3 + $0xa0] sm:$0xff] %vm717_vm2, %v3346_v46  ;;  %v3349_v2 = vadd.f32 %v10768_v40, %v3285_v17  ;;  %2739 = vst.msk [vmem:[#allocation3 + $0xd8] sm:$0xff] %vm717_vm2, %v2675_v10  ;;  %v2673_v23 = vadd.f32 %v2609_v45, %v2428_v36  ;;  %v4814_v40 = vld [vmem:[#allocation2 + $0x50] sm:$0xff]  ;;  %v5555_v59 = vpack.c.bf16 %v5494_v50, %v5493_v6  ;;  %v2616_v16 = vld [vmem:[#allocation3 + $0x100] sm:$0xff] }
 0x253   :  { %v3283_v28 = vld [vmem:[#allocation3 + $0xa8] sm:$0xff]  ;;  %v9026_v29 = vpop.f32.mrf.mxu1  ;;  %9189 = vmatmul.mubr.msk.bf16.gmra.mxu1 %vm717_vm2, %v3549_v61  ;;  %v4876_v58 = vpack.c.bf16 %v4814_v40, %v4813_v1  ;;  %v4818_v10 = vld [vmem:[#allocation2 + $0x80] sm:$0xff]  ;;  %v2619_v45 = vld [vmem:[#allocation3 + $0x118] sm:$0xff] }
 0x254   :  { %v10797_v33 = vpop.f32.mrf.mxu0  ;;  %9255 = vmatmul.mubr.msk.bf16.gmra.mxu0 %vm717_vm2, %v4227_v21  ;;  %3413 = vst.msk [vmem:[#allocation3 + $0xb8] sm:$0xff] %vm717_vm2, %v3349_v2  ;;  %v3347_v15 = vadd.f32 %v3283_v28, %v10773_v26  ;;  %2737 = vst.msk [vmem:[#allocation3 + $0xc8] sm:$0xff] %vm717_vm2, %v2673_v23  ;;  %v2678_v35 = vadd.f32 %v9026_v29, %v2614_v25  ;;  %9260 = vmatprep.mubr.msk.bf16.mxu1 %vm717_vm2, %v4875_v3  ;;  %v5498_v61 = vld [vmem:[#allocation2 + $0x99] sm:$0xff]  ;;  %v4819_v3 = vld [vmem:[#allocation2 + $0x90] sm:$0xff] }
 0x255   :  { %9326 = vmatprep.mubr.msk.bf16.mxu0 %vm717_vm2, %v5553_v54  ;;  %v3288_v56 = vld [vmem:[#allocation3 + $0xd0] sm:$0xff]  ;;  %v2441_v31 = vpop.f32.mrf.mxu1  ;;  %v4817_v2 = vld [vmem:[#allocation2 + $0x78] sm:$0xff]  ;;  %v2617_v29 = vld [vmem:[#allocation3 + $0x108] sm:$0xff] }
 0x256   :  { %v10806_v38 = vpop.f32.mrf.mxu0  ;;  %3411 = vst.msk [vmem:[#allocation3 + $0xa8] sm:$0xff] %vm717_vm2, %v3347_v15  ;;  %v3352_v55 = vadd.f32 %v9088_v63, %v3288_v56  ;;  %2742 = vst.msk [vmem:[#allocation3 + $0xf0] sm:$0xff] %vm717_vm2, %v2678_v35  ;;  %v2676_v32 = vadd.f32 %v2612_v37, %v2441_v31  ;;  %v6362_v63 = vsel %vm1063_vm5, %v9636_v53, 0  ;;  %v5495_v23 = vld [vmem:[#allocation2 + $0x79] sm:$0xff]  ;;  %v5497_v35 = vld [vmem:[#allocation2 + $0x91] sm:$0xff]  ;;  %v4879_v37 = vpack.c.bf16 %v4820_v39, %v4819_v3 }
 0x257   :  { %v3286_v44 = vld [vmem:[#allocation3 + $0xc0] sm:$0xff]  ;;  %v9027_v20 = vpop.f32.mrf.mxu1  ;;  %v5556_v15 = vpack.c.bf16 %v5496_v24, %v5495_v23  ;;  %v2622_v40 = vld [vmem:[#allocation3 + $0x130] sm:$0xff]  ;;  %v4821_v7 = vld [vmem:[#allocation2 + $0xa8] sm:$0xff] }
 0x258   :  { %v10810_v9 = vpop.f32.mrf.mxu0  ;;  %3416 = vst.msk [vmem:[#allocation3 + $0xd0] sm:$0xff] %vm717_vm2, %v3352_v55  ;;  %v3350_v60 = vadd.f32 %v3286_v44, %v3103_v43  ;;  %2740 = vst.msk [vmem:[#allocation3 + $0xe0] sm:$0xff] %vm717_vm2, %v2676_v32  ;;  %v2679_v26 = vadd.f32 %v9027_v20, %v2615_v57  ;;  %v2620_v49 = vld [vmem:[#allocation3 + $0x120] sm:$0xff]  ;;  %v5500_v50 = vld [vmem:[#allocation2 + $0xb1] sm:$0xff] }
 0x259   :  { %v3289_v51 = vld [vmem:[#allocation3 + $0xd8] sm:$0xff]  ;;  %v2444_v41 = vpop.f32.mrf.mxu1 }
 0x25a   :  { %v10814_v47 = vpop.f32.mrf.mxu0  ;;  %3414 = vst.msk [vmem:[#allocation3 + $0xc0] sm:$0xff] %vm717_vm2, %v3350_v60  ;;  %v3353_v27 = vadd.f32 %v10788_v8, %v3289_v51  ;;  %2743 = vst.msk [vmem:[#allocation3 + $0xf8] sm:$0xff] %vm717_vm2, %v2679_v26  ;;  %v2677_v4 = vadd.f32 %v2613_v0, %v2444_v41  ;;  %v4824_v51 = vld [vmem:[#allocation2 + $0xc8] sm:$0xff] }
 0x25b   :  { %v3287_v43 = vld [vmem:[#allocation3 + $0xc8] sm:$0xff]  ;;  %v9030_v11 = vpop.f32.mrf.mxu1  ;;  %9261 = vmatmul.mubr.msk.bf16.vlgmr.msra.gmra.mxu1 %vm717_vm2, %v4876_v58 }
 0x25c   :  { %v10823_v12 = vpop.f32.mrf.mxu0  ;;  %9327 = vmatmul.mubr.msk.bf16.vlgmr.msra.gmra.mxu0 %vm717_vm2, %v5554_v62  ;;  %3417 = vst.msk [vmem:[#allocation3 + $0xd8] sm:$0xff] %vm717_vm2, %v3353_v27  ;;  %v3351_v48 = vadd.f32 %v3287_v43, %v10792_v18  ;;  %2741 = vst.msk [vmem:[#allocation3 + $0xe8] sm:$0xff] %vm717_vm2, %v2677_v4  ;;  %v2682_v34 = vadd.f32 %v9030_v11, %v2618_v52  ;;  %9391 = vmatpush3.bf16.msra.mxu1 %v6362_v63  ;;  %v5502_v62 = vld [vmem:[#allocation2 + $0xc9] sm:$0xff]  ;;  %v4823_v4 = vld [vmem:[#allocation2 + $0xc0] sm:$0xff] }
 0x25d   :  { %9264 = vmatprep.mubr.msk.bf16.mxu1 %vm717_vm2, %v4877_v5  ;;  %v3292_v13 = vld [vmem:[#allocation3 + $0xf0] sm:$0xff]  ;;  %9330 = vmatprep.mubr.msk.bf16.mxu0 %vm717_vm2, %v5555_v59  ;;  %v2457_v14 = vpop.f32.mrf.mxu1  ;;  %v2621_v43 = vld [vmem:[#allocation3 + $0x128] sm:$0xff]  ;;  %v4880_v52 = vpack.c.bf16 %v4822_v30, %v4821_v7 }
 0x25e   :  { %v3135_v8 = vpop.f32.mrf.mxu0  ;;  %3415 = vst.msk [vmem:[#allocation3 + $0xc8] sm:$0xff] %vm717_vm2, %v3351_v48  ;;  %v3356_v19 = vadd.f32 %v10797_v33, %v3292_v13  ;;  %2746 = vst.msk [vmem:[#allocation3 + $0x110] sm:$0xff] %vm717_vm2, %v2682_v34  ;;  %v2680_v46 = vadd.f32 %v2616_v16, %v2457_v14  ;;  %v4878_v33 = vpack.c.bf16 %v4818_v10, %v4817_v2  ;;  %v5499_v27 = vld [vmem:[#allocation2 + $0xa9] sm:$0xff]  ;;  %v5501_v59 = vld [vmem:[#allocation2 + $0xc1] sm:$0xff] }
 0x25f   :  { %v3290_v17 = vld [vmem:[#allocation3 + $0xe0] sm:$0xff]  ;;  %v9031_v36 = vpop.f32.mrf.mxu1  ;;  %v4881_v13 = vpack.c.bf16 %v4824_v51, %v4823_v4  ;;  %v5559_v14 = vpack.c.bf16 %v5502_v62, %v5501_v59  ;;  %v4828_v2 = vld [vmem:[#allocation2 + $0xf8] sm:$0xff]  ;;  %v4832_v7 = vld [vmem:[#allocation2 + $0x128] sm:$0xff] }
 0x260   :  { %v10835_v18 = vpop.f32.mrf.mxu0  ;;  %3420 = vst.msk [vmem:[#allocation3 + $0xf0] sm:$0xff] %vm717_vm2, %v3356_v19  ;;  %v3354_v21 = vadd.f32 %v3290_v17, %v10806_v38  ;;  %2744 = vst.msk [vmem:[#allocation3 + $0x100] sm:$0xff] %vm717_vm2, %v2680_v46  ;;  %v2683_v22 = vadd.f32 %v9031_v36, %v2619_v45  ;;  %v5557_v38 = vpack.c.bf16 %v5498_v61, %v5497_v35  ;;  %v2626_v19 = vld [vmem:[#allocation3 + $0x150] sm:$0xff]  ;;  %v2624_v36 = vld [vmem:[#allocation3 + $0x140] sm:$0xff] }
 0x261   :  { %v3293_v54 = vld [vmem:[#allocation3 + $0xf8] sm:$0xff]  ;;  %v2460_v28 = vpop.f32.mrf.mxu1  ;;  %v5507_v59 = vld [vmem:[#allocation2 + $0x109] sm:$0xff] }
 0x262   :  { %v10840_v25 = vpop.f32.mrf.mxu0  ;;  %3418 = vst.msk [vmem:[#allocation3 + $0xe0] sm:$0xff] %vm717_vm2, %v3354_v21  ;;  %v3357_v56 = vadd.f32 %v10810_v9, %v3293_v54  ;;  %2747 = vst.msk [vmem:[#allocation3 + $0x118] sm:$0xff] %vm717_vm2, %v2683_v22  ;;  %v2681_v31 = vadd.f32 %v2617_v29, %v2460_v28  ;;  %v4826_v21 = vld [vmem:[#allocation2 + $0xe0] sm:$0xff]  ;;  %v2627_v54 = vld [vmem:[#allocation3 + $0x158] sm:$0xff] }
 0x263   :  { %v3291_v55 = vld [vmem:[#allocation3 + $0xe8] sm:$0xff]  ;;  %v9034_v32 = vpop.f32.mrf.mxu1  ;;  %9265 = vmatmul.mubr.msk.bf16.gmra.mxu1 %vm717_vm2, %v4878_v33  ;;  %v5506_v29 = vld [vmem:[#allocation2 + $0xf9] sm:$0xff] }
 0x264   :  { %v9100_v42 = vpop.f32.mrf.mxu0  ;;  %9331 = vmatmul.mubr.msk.bf16.gmra.mxu0 %vm717_vm2, %v5556_v15  ;;  %3421 = vst.msk [vmem:[#allocation3 + $0xf8] sm:$0xff] %vm717_vm2, %v3357_v56  ;;  %v3355_v44 = vadd.f32 %v3291_v55, %v10814_v47  ;;  %2745 = vst.msk [vmem:[#allocation3 + $0x108] sm:$0xff] %vm717_vm2, %v2681_v31  ;;  %v2686_v20 = vadd.f32 %v9034_v32, %v2622_v40  ;;  %9268 = vmatprep.mubr.msk.bf16.mxu1 %vm717_vm2, %v4879_v37  ;;  %v2623_v47 = vld [vmem:[#allocation3 + $0x138] sm:$0xff]  ;;  %v5504_v22 = vld [vmem:[#allocation2 + $0xe1] sm:$0xff] }
 0x265   :  { %9334 = vmatprep.mubr.msk.bf16.mxu0 %vm717_vm2, %v5557_v38  ;;  %v3296_v57 = vld [vmem:[#allocation3 + $0x110] sm:$0xff]  ;;  %v2473_v9 = vpop.f32.mrf.mxu1  ;;  %v4825_v15 = vld [vmem:[#allocation2 + $0xd8] sm:$0xff]  ;;  %v2625_v38 = vld [vmem:[#allocation3 + $0x148] sm:$0xff] }
 0x266   :  { %v3151_v60 = vpop.f32.mrf.mxu0  ;;  %3419 = vst.msk [vmem:[#allocation3 + $0xe8] sm:$0xff] %vm717_vm2, %v3355_v44  ;;  %v3360_v26 = vadd.f32 %v10823_v12, %v3296_v57  ;;  %2750 = vst.msk [vmem:[#allocation3 + $0x130] sm:$0xff] %vm717_vm2, %v2686_v20  ;;  %v2684_v1 = vadd.f32 %v2620_v49, %v2473_v9  ;;  %v5558_v12 = vpack.c.bf16 %v5500_v50, %v5499_v27  ;;  %v5503_v35 = vld [vmem:[#allocation2 + $0xd9] sm:$0xff]  ;;  %v4827_v56 = vld [vmem:[#allocation2 + $0xf0] sm:$0xff] }
 0x267   :  { %v3294_v41 = vld [vmem:[#allocation3 + $0x100] sm:$0xff]  ;;  %v9035_v0 = vpop.f32.mrf.mxu1  ;;  %v4882_v32 = vpack.c.bf16 %v4826_v21, %v4825_v15  ;;  %v5560_v40 = vpack.c.bf16 %v5504_v22, %v5503_v35  ;;  %v4883_v57 = vpack.c.bf16 %v4828_v2, %v4827_v56  ;;  %v4836_v15 = vld [vmem:[#allocation2 + $0x158] sm:$0xff] }
 0x268   :  { %v10855_v58 = vpop.f32.mrf.mxu0  ;;  %3424 = vst.msk [vmem:[#allocation3 + $0x110] sm:$0xff] %vm717_vm2, %v3360_v26  ;;  %v3358_v53 = vadd.f32 %v3294_v41, %v3135_v8  ;;  %2748 = vst.msk [vmem:[#allocation3 + $0x120] sm:$0xff] %vm717_vm2, %v2684_v1  ;;  %v2687_v63 = vadd.f32 %v9035_v0, %v2623_v47  ;;  %v2630_v26 = vld [vmem:[#allocation3 + $0x170] sm:$0xff]  ;;  %v2628_v0 = vld [vmem:[#allocation3 + $0x160] sm:$0xff] }
 0x269   :  { %v3297_v5 = vld [vmem:[#allocation3 + $0x118] sm:$0xff]  ;;  %v2476_v6 = vpop.f32.mrf.mxu1 }
 0x26a   :  { %v10859_v11 = vpop.f32.mrf.mxu0  ;;  %3422 = vst.msk [vmem:[#allocation3 + $0x100] sm:$0xff] %vm717_vm2, %v3358_v53  ;;  %v3361_v48 = vadd.f32 %v10835_v18, %v3297_v5  ;;  %2751 = vst.msk [vmem:[#allocation3 + $0x138] sm:$0xff] %vm717_vm2, %v2687_v63  ;;  %v2685_v34 = vadd.f32 %v2621_v43, %v2476_v6  ;;  %v4830_v53 = vld [vmem:[#allocation2 + $0x110] sm:$0xff]  ;;  %v2631_v5 = vld [vmem:[#allocation3 + $0x178] sm:$0xff] }
 0x26b   :  { %v3295_v16 = vld [vmem:[#allocation3 + $0x108] sm:$0xff]  ;;  %v9038_v8 = vpop.f32.mrf.mxu1  ;;  %9269 = vmatmul.mubr.msk.bf16.gmra.mxu1 %vm717_vm2, %v4880_v52  ;;  %v5508_v63 = vld [vmem:[#allocation2 + $0x111] sm:$0xff] }
 0x26c   :  { %v9104_v46 = vpop.f32.mrf.mxu0  ;;  %9335 = vmatmul.mubr.msk.bf16.gmra.mxu0 %vm717_vm2, %v5558_v12  ;;  %3425 = vst.msk [vmem:[#allocation3 + $0x118] sm:$0xff] %vm717_vm2, %v3361_v48  ;;  %v3359_v10 = vadd.f32 %v3295_v16, %v10840_v25  ;;  %2749 = vst.msk [vmem:[#allocation3 + $0x128] sm:$0xff] %vm717_vm2, %v2685_v34  ;;  %v2690_v24 = vadd.f32 %v9038_v8, %v2626_v19  ;;  %9272 = vmatprep.mubr.msk.bf16.mxu1 %vm717_vm2, %v4881_v13  ;;  %v5510_v43 = vld [vmem:[#allocation2 + $0x129] sm:$0xff]  ;;  %v4831_v48 = vld [vmem:[#allocation2 + $0x120] sm:$0xff] }
 0x26d   :  { %9338 = vmatprep.mubr.msk.bf16.mxu0 %vm717_vm2, %v5559_v14  ;;  %v3300_v39 = vld [vmem:[#allocation3 + $0x130] sm:$0xff]  ;;  %v2489_v17 = vpop.f32.mrf.mxu1  ;;  %v4829_v12 = vld [vmem:[#allocation2 + $0x108] sm:$0xff]  ;;  %v5562_v19 = vpack.c.bf16 %v5508_v63, %v5507_v59 }
 0x26e   :  { %v3167_v45 = vpop.f32.mrf.mxu0  ;;  %3423 = vst.msk [vmem:[#allocation3 + $0x108] sm:$0xff] %vm717_vm2, %v3359_v10  ;;  %v3364_v18 = vadd.f32 %v9100_v42, %v3300_v39  ;;  %2754 = vst.msk [vmem:[#allocation3 + $0x150] sm:$0xff] %vm717_vm2, %v2690_v24  ;;  %v2688_v61 = vadd.f32 %v2624_v36, %v2489_v17  ;;  %v5505_v42 = vld [vmem:[#allocation2 + $0xf1] sm:$0xff]  ;;  %v2629_v14 = vld [vmem:[#allocation3 + $0x168] sm:$0xff]  ;;  %v4884_v8 = vpack.c.bf16 %v4830_v53, %v4829_v12 }
 0x26f   :  { %v3298_v23 = vld [vmem:[#allocation3 + $0x120] sm:$0xff]  ;;  %v9039_v3 = vpop.f32.mrf.mxu1  ;;  %v5561_v9 = vpack.c.bf16 %v5506_v29, %v5505_v42  ;;  %v4885_v39 = vpack.c.bf16 %v4832_v7, %v4831_v48  ;;  %v4840_v12 = vld [vmem:[#allocation2 + $0x188] sm:$0xff] }
 0x270   :  { %v10873_v28 = vpop.f32.mrf.mxu0  ;;  %3428 = vst.msk [vmem:[#allocation3 + $0x130] sm:$0xff] %vm717_vm2, %v3364_v18  ;;  %v3362_v25 = vadd.f32 %v3298_v23, %v3151_v60  ;;  %2752 = vst.msk [vmem:[#allocation3 + $0x140] sm:$0xff] %vm717_vm2, %v2688_v61  ;;  %v2691_v33 = vadd.f32 %v9039_v3, %v2627_v54  ;;  %v2634_v18 = vld [vmem:[#allocation3 + $0x190] sm:$0xff]  ;;  %v2632_v3 = vld [vmem:[#allocation3 + $0x180] sm:$0xff] }
 0x271   :  { %v3301_v31 = vld [vmem:[#allocation3 + $0x138] sm:$0xff]  ;;  %v2492_v37 = vpop.f32.mrf.mxu1 }
 0x272   :  { %v10877_v55 = vpop.f32.mrf.mxu0  ;;  %3426 = vst.msk [vmem:[#allocation3 + $0x120] sm:$0xff] %vm717_vm2, %v3362_v25  ;;  %v3365_v44 = vadd.f32 %v10855_v58, %v3301_v31  ;;  %2755 = vst.msk [vmem:[#allocation3 + $0x158] sm:$0xff] %vm717_vm2, %v2691_v33  ;;  %v2689_v20 = vadd.f32 %v2625_v38, %v2492_v37  ;;  %v4834_v25 = vld [vmem:[#allocation2 + $0x140] sm:$0xff]  ;;  %v2635_v31 = vld [vmem:[#allocation3 + $0x198] sm:$0xff] }
 0x273   :  { %v3299_v49 = vld [vmem:[#allocation3 + $0x128] sm:$0xff]  ;;  %v9042_v60 = vpop.f32.mrf.mxu1  ;;  %9273 = vmatmul.mubr.msk.bf16.gmra.mxu1 %vm717_vm2, %v4882_v32  ;;  %v5514_v38 = vld [vmem:[#allocation2 + $0x159] sm:$0xff] }
 0x274   :  { %v9108_v1 = vpop.f32.mrf.mxu0  ;;  %9339 = vmatmul.mubr.msk.bf16.gmra.mxu0 %vm717_vm2, %v5560_v40  ;;  %3429 = vst.msk [vmem:[#allocation3 + $0x138] sm:$0xff] %vm717_vm2, %v3365_v44  ;;  %v3363_v30 = vadd.f32 %v3299_v49, %v10859_v11  ;;  %2753 = vst.msk [vmem:[#allocation3 + $0x148] sm:$0xff] %vm717_vm2, %v2689_v20  ;;  %v2694_v50 = vadd.f32 %v9042_v60, %v2630_v26  ;;  %9276 = vmatprep.mubr.msk.bf16.mxu1 %vm717_vm2, %v4883_v57  ;;  %v5512_v33 = vld [vmem:[#allocation2 + $0x141] sm:$0xff]  ;;  %v4833_v40 = vld [vmem:[#allocation2 + $0x138] sm:$0xff] }
 0x275   :  { %9342 = vmatprep.mubr.msk.bf16.mxu0 %vm717_vm2, %v5561_v9  ;;  %v3304_v51 = vld [vmem:[#allocation3 + $0x150] sm:$0xff]  ;;  %v2505_v41 = vpop.f32.mrf.mxu1  ;;  %v5511_v42 = vld [vmem:[#allocation2 + $0x139] sm:$0xff]  ;;  %v2633_v9 = vld [vmem:[#allocation3 + $0x188] sm:$0xff]  ;;  %v4886_v60 = vpack.c.bf16 %v4834_v25, %v4833_v40 }
 0x276   :  { %v3183_v47 = vpop.f32.mrf.mxu0  ;;  %3427 = vst.msk [vmem:[#allocation3 + $0x128] sm:$0xff] %vm717_vm2, %v3363_v30  ;;  %v3368_v58 = vadd.f32 %v9104_v46, %v3304_v51  ;;  %2758 = vst.msk [vmem:[#allocation3 + $0x170] sm:$0xff] %vm717_vm2, %v2694_v50  ;;  %v2692_v62 = vadd.f32 %v2628_v0, %v2505_v41  ;;  %v5509_v46 = vld [vmem:[#allocation2 + $0x121] sm:$0xff]  ;;  %v4835_v44 = vld [vmem:[#allocation2 + $0x150] sm:$0xff]  ;;  %v5564_v26 = vpack.c.bf16 %v5512_v33, %v5511_v42 }
 0x277   :  { %v3302_v27 = vld [vmem:[#allocation3 + $0x140] sm:$0xff]  ;;  %v9043_v4 = vpop.f32.mrf.mxu1  ;;  %v5563_v17 = vpack.c.bf16 %v5510_v43, %v5509_v46  ;;  %v4887_v51 = vpack.c.bf16 %v4836_v15, %v4835_v44  ;;  %v5515_v46 = vld [vmem:[#allocation2 + $0x169] sm:$0xff]  ;;  %v4841_v25 = vld [vmem:[#allocation2 + $0x198] sm:$0xff] }
 0x278   :  { %v10891_v6 = vpop.f32.mrf.mxu0  ;;  %3432 = vst.msk [vmem:[#allocation3 + $0x150] sm:$0xff] %vm717_vm2, %v3368_v58  ;;  %v3366_v11 = vadd.f32 %v3302_v27, %v3167_v45  ;;  %2756 = vst.msk [vmem:[#allocation3 + $0x160] sm:$0xff] %vm717_vm2, %v2692_v62  ;;  %v2695_v52 = vadd.f32 %v9043_v4, %v2631_v5  ;;  %v2638_v58 = vld [vmem:[#allocation3 + $0x1b0] sm:$0xff]  ;;  %v2636_v4 = vld [vmem:[#allocation3 + $0x1a0] sm:$0xff] }
 0x279   :  { %v3305_v34 = vld [vmem:[#allocation3 + $0x158] sm:$0xff]  ;;  %v2508_v13 = vpop.f32.mrf.mxu1  ;;  %v4844_v44 = vld [vmem:[#allocation2 + $0x1e8] sm:$0xff] }
 0x27a   :  { %v10895_v16 = vpop.f32.mrf.mxu0  ;;  %3430 = vst.msk [vmem:[#allocation3 + $0x140] sm:$0xff] %vm717_vm2, %v3366_v11  ;;  %v3369_v10 = vadd.f32 %v10873_v28, %v3305_v34  ;;  %2759 = vst.msk [vmem:[#allocation3 + $0x178] sm:$0xff] %vm717_vm2, %v2695_v52  ;;  %v2693_v24 = vadd.f32 %v2629_v14, %v2508_v13  ;;  %v4838_v11 = vld [vmem:[#allocation2 + $0x170] sm:$0xff]  ;;  %v2639_v34 = vld [vmem:[#allocation3 + $0x1b8] sm:$0xff] }
 0x27b   :  { %v3303_v36 = vld [vmem:[#allocation3 + $0x148] sm:$0xff]  ;;  %v9046_v45 = vpop.f32.mrf.mxu1  ;;  %9277 = vmatmul.mubr.msk.bf16.gmra.mxu1 %vm717_vm2, %v4884_v8  ;;  %v5516_v52 = vld [vmem:[#allocation2 + $0x171] sm:$0xff] }
 0x27c   :  { %v9112_v61 = vpop.f32.mrf.mxu0  ;;  %9343 = vmatmul.mubr.msk.bf16.gmra.mxu0 %vm717_vm2, %v5562_v19  ;;  %3433 = vst.msk [vmem:[#allocation3 + $0x158] sm:$0xff] %vm717_vm2, %v3369_v10  ;;  %v3367_v21 = vadd.f32 %v3303_v36, %v10877_v55  ;;  %2757 = vst.msk [vmem:[#allocation3 + $0x168] sm:$0xff] %vm717_vm2, %v2693_v24  ;;  %v2698_v22 = vadd.f32 %v9046_v45, %v2634_v18  ;;  %9280 = vmatprep.mubr.msk.bf16.mxu1 %vm717_vm2, %v4885_v39  ;;  %v5518_v14 = vld [vmem:[#allocation2 + $0x189] sm:$0xff]  ;;  %v4839_v10 = vld [vmem:[#allocation2 + $0x180] sm:$0xff] }
 0x27d   :  { %9346 = vmatprep.mubr.msk.bf16.mxu0 %vm717_vm2, %v5563_v17  ;;  %v3308_v2 = vld [vmem:[#allocation3 + $0x170] sm:$0xff]  ;;  %v2521_v23 = vpop.f32.mrf.mxu1  ;;  %v4837_v19 = vld [vmem:[#allocation2 + $0x168] sm:$0xff]  ;;  %v5566_v18 = vpack.c.bf16 %v5516_v52, %v5515_v46 }
 0x27e   :  { %v3199_v54 = vpop.f32.mrf.mxu0  ;;  %3431 = vst.msk [vmem:[#allocation3 + $0x148] sm:$0xff] %vm717_vm2, %v3367_v21  ;;  %v3372_v28 = vadd.f32 %v9108_v1, %v3308_v2  ;;  %2762 = vst.msk [vmem:[#allocation3 + $0x190] sm:$0xff] %vm717_vm2, %v2698_v22  ;;  %v2696_v29 = vadd.f32 %v2632_v3, %v2521_v23  ;;  %v5513_v1 = vld [vmem:[#allocation2 + $0x151] sm:$0xff]  ;;  %v2637_v17 = vld [vmem:[#allocation3 + $0x1a8] sm:$0xff]  ;;  %v4888_v45 = vpack.c.bf16 %v4838_v11, %v4837_v19 }
 0x27f   :  { %v3306_v35 = vld [vmem:[#allocation3 + $0x160] sm:$0xff]  ;;  %v9047_v56 = vpop.f32.mrf.mxu1  ;;  %v5565_v41 = vpack.c.bf16 %v5514_v38, %v5513_v1  ;;  %v4889_v2 = vpack.c.bf16 %v4840_v12, %v4839_v10  ;;  %v5522_v1 = vld [vmem:[#allocation2 + $0x1e9] sm:$0xff]  ;;  %v4848_v19 = vld [vmem:[#allocation2 + $0x218] sm:$0xff] }
 0x280   :  { %v10909_v37 = vpop.f32.mrf.mxu0  ;;  %3436 = vst.msk [vmem:[#allocation3 + $0x170] sm:$0xff] %vm717_vm2, %v3372_v28  ;;  %v3370_v55 = vadd.f32 %v3306_v35, %v3183_v47  ;;  %2760 = vst.msk [vmem:[#allocation3 + $0x180] sm:$0xff] %vm717_vm2, %v2696_v29  ;;  %v2699_v32 = vadd.f32 %v9047_v56, %v2635_v31  ;;  %v2642_v28 = vld [vmem:[#allocation3 + $0x1d0] sm:$0xff]  ;;  %v4842_v35 = vld [vmem:[#allocation2 + $0x1a0] sm:$0xff] }
 0x281   :  { %v3309_v20 = vld [vmem:[#allocation3 + $0x178] sm:$0xff]  ;;  %v2524_v57 = vpop.f32.mrf.mxu1  ;;  %v5520_v31 = vld [vmem:[#allocation2 + $0x1a1] sm:$0xff] }
 0x282   :  { %v10913_v49 = vpop.f32.mrf.mxu0  ;;  %3434 = vst.msk [vmem:[#allocation3 + $0x160] sm:$0xff] %vm717_vm2, %v3370_v55  ;;  %v3373_v30 = vadd.f32 %v10891_v6, %v3309_v20  ;;  %2763 = vst.msk [vmem:[#allocation3 + $0x198] sm:$0xff] %vm717_vm2, %v2699_v32  ;;  %v2697_v50 = vadd.f32 %v2633_v9, %v2524_v57  ;;  %v5519_v56 = vld [vmem:[#allocation2 + $0x199] sm:$0xff] }
 0x283   :  { %v3307_v0 = vld [vmem:[#allocation3 + $0x168] sm:$0xff]  ;;  %v9050_v47 = vpop.f32.mrf.mxu1  ;;  %9281 = vmatmul.mubr.msk.bf16.gmra.mxu1 %vm717_vm2, %v4886_v60  ;;  %v2640_v55 = vld [vmem:[#allocation3 + $0x1c0] sm:$0xff]  ;;  %v2643_v9 = vld [vmem:[#allocation3 + $0x1d8] sm:$0xff]  ;;  %v4890_v60 = vpack.c.bf16 %v4842_v35, %v4841_v25 }
 0x284   :  { %v10918_v62 = vpop.f32.mrf.mxu0  ;;  %9347 = vmatmul.mubr.msk.bf16.gmra.mxu0 %vm717_vm2, %v5564_v26  ;;  %3437 = vst.msk [vmem:[#allocation3 + $0x178] sm:$0xff] %vm717_vm2, %v3373_v30  ;;  %v3371_v53 = vadd.f32 %v3307_v0, %v10895_v16  ;;  %2761 = vst.msk [vmem:[#allocation3 + $0x188] sm:$0xff] %vm717_vm2, %v2697_v50  ;;  %v2702_v63 = vadd.f32 %v9050_v47, %v2638_v58  ;;  %9284 = vmatprep.mubr.msk.bf16.mxu1 %vm717_vm2, %v4887_v51  ;;  %v4843_v51 = vld [vmem:[#allocation2 + $0x1e0] sm:$0xff]  ;;  %v2641_v47 = vld [vmem:[#allocation3 + $0x1c8] sm:$0xff] }
 0x285   :  { %9350 = vmatprep.mubr.msk.bf16.mxu0 %vm717_vm2, %v5565_v41  ;;  %v3312_v7 = vld [vmem:[#allocation3 + $0x190] sm:$0xff]  ;;  %v2537_v27 = vpop.f32.mrf.mxu1  ;;  %v5568_v26 = vpack.c.bf16 %v5520_v31, %v5519_v56 }
 0x286   :  { %v10927_v5 = vpop.f32.mrf.mxu0  ;;  %3435 = vst.msk [vmem:[#allocation3 + $0x168] sm:$0xff] %vm717_vm2, %v3371_v53  ;;  %v3376_v6 = vadd.f32 %v9112_v61, %v3312_v7  ;;  %2766 = vst.msk [vmem:[#allocation3 + $0x1b0] sm:$0xff] %vm717_vm2, %v2702_v63  ;;  %v2700_v43 = vadd.f32 %v2636_v4, %v2537_v27  ;;  %v5517_v61 = vld [vmem:[#allocation2 + $0x181] sm:$0xff]  ;;  %v4891_v7 = vpack.c.bf16 %v4844_v44, %v4843_v51 }
 0x287   :  { %v3310_v59 = vld [vmem:[#allocation3 + $0x180] sm:$0xff]  ;;  %v9051_v48 = vpop.f32.mrf.mxu1  ;;  %v5567_v23 = vpack.c.bf16 %v5518_v14, %v5517_v61 }
 0x288   :  { %v10931_v13 = vpop.f32.mrf.mxu0  ;;  %3440 = vst.msk [vmem:[#allocation3 + $0x190] sm:$0xff] %vm717_vm2, %v3376_v6  ;;  %v3374_v16 = vadd.f32 %v3310_v59, %v3199_v54  ;;  %2764 = vst.msk [vmem:[#allocation3 + $0x1a0] sm:$0xff] %vm717_vm2, %v2700_v43  ;;  %v2703_v8 = vadd.f32 %v9051_v48, %v2639_v34  ;;  %v2646_v6 = vld [vmem:[#allocation3 + $0x1f0] sm:$0xff]  ;;  %v2644_v48 = vld [vmem:[#allocation3 + $0x1e0] sm:$0xff] }
 0x289   :  { %v3313_v24 = vld [vmem:[#allocation3 + $0x198] sm:$0xff]  ;;  %v2540_v39 = vpop.f32.mrf.mxu1  ;;  %v3940_v44 = vld [vmem:[#allocation3] sm:$0xff] }
 0x28a   :  { %v10935_v36 = vpop.f32.mrf.mxu0  ;;  %3438 = vst.msk [vmem:[#allocation3 + $0x180] sm:$0xff] %vm717_vm2, %v3374_v16  ;;  %v3377_v21 = vadd.f32 %v10909_v37, %v3313_v24  ;;  %2767 = vst.msk [vmem:[#allocation3 + $0x1b8] sm:$0xff] %vm717_vm2, %v2703_v8  ;;  %v2701_v22 = vadd.f32 %v2637_v17, %v2540_v39  ;;  %v4846_v16 = vld [vmem:[#allocation2 + $0x200] sm:$0xff]  ;;  %v2647_v24 = vld [vmem:[#allocation3 + $0x1f8] sm:$0xff] }
 0x28b   :  { %v3311_v3 = vld [vmem:[#allocation3 + $0x188] sm:$0xff]  ;;  %v9054_v54 = vpop.f32.mrf.mxu1  ;;  %9285 = vmatmul.mubr.msk.bf16.gmra.mxu1 %vm717_vm2, %v4888_v45  ;;  %v5526_v17 = vld [vmem:[#allocation2 + $0x219] sm:$0xff] }
 0x28c   :  { %v9120_v29 = vpop.f32.mrf.mxu0  ;;  %9351 = vmatmul.mubr.msk.bf16.gmra.mxu0 %vm717_vm2, %v5566_v18  ;;  %3441 = vst.msk [vmem:[#allocation3 + $0x198] sm:$0xff] %vm717_vm2, %v3377_v21  ;;  %v3375_v33 = vadd.f32 %v3311_v3, %v10913_v49  ;;  %2765 = vst.msk [vmem:[#allocation3 + $0x1a8] sm:$0xff] %vm717_vm2, %v2701_v22  ;;  %v2706_v15 = vadd.f32 %v9054_v54, %v2642_v28  ;;  %9288 = vmatprep.mubr.msk.bf16.mxu1 %vm717_vm2, %v4889_v2  ;;  %v5524_v8 = vld [vmem:[#allocation2 + $0x201] sm:$0xff]  ;;  %v4845_v18 = vld [vmem:[#allocation2 + $0x1f8] sm:$0xff] }
 0x28d   :  { %9354 = vmatprep.mubr.msk.bf16.mxu0 %vm717_vm2, %v5567_v23  ;;  %v3316_v37 = vld [vmem:[#allocation3 + $0x1b0] sm:$0xff]  ;;  %v2553_v38 = vpop.f32.mrf.mxu1  ;;  %v5523_v61 = vld [vmem:[#allocation2 + $0x1f9] sm:$0xff]  ;;  %v2645_v23 = vld [vmem:[#allocation3 + $0x1e8] sm:$0xff]  ;;  %v4892_v54 = vpack.c.bf16 %v4846_v16, %v4845_v18 }
 0x28e   :  { %v3231_v32 = vpop.f32.mrf.mxu0  ;;  %3439 = vst.msk [vmem:[#allocation3 + $0x188] sm:$0xff] %vm717_vm2, %v3375_v33  ;;  %v3380_v40 = vadd.f32 %v10918_v62, %v3316_v37  ;;  %2770 = vst.msk [vmem:[#allocation3 + $0x1d0] sm:$0xff] %vm717_vm2, %v2706_v15  ;;  %v2704_v42 = vadd.f32 %v2640_v55, %v2553_v38  ;;  %v5521_v62 = vld [vmem:[#allocation2 + $0x1e1] sm:$0xff]  ;;  %v4847_v21 = vld [vmem:[#allocation2 + $0x210] sm:$0xff]  ;;  %v5570_v28 = vpack.c.bf16 %v5524_v8, %v5523_v61 }
 0x28f   :  { %v3314_v20 = vld [vmem:[#allocation3 + $0x1a0] sm:$0xff]  ;;  %v9055_v57 = vpop.f32.mrf.mxu1  ;;  %v5569_v27 = vpack.c.bf16 %v5522_v1, %v5521_v62  ;;  %v4893_v15 = vpack.c.bf16 %v4848_v19, %v4847_v21  ;;  %v3942_v37 = vld [vmem:[#allocation3 + $0x10] sm:$0xff]  ;;  %v4856_v18 = vld [vmem:[#allocation2 + $0x278] sm:$0xff] }
 0x290   :  { %v10950_v49 = vpop.f32.mrf.mxu0  ;;  %3444 = vst.msk [vmem:[#allocation3 + $0x1b0] sm:$0xff] %vm717_vm2, %v3380_v40  ;;  %v3378_v30 = vadd.f32 %v3314_v20, %v10927_v5  ;;  %2768 = vst.msk [vmem:[#allocation3 + $0x1c0] sm:$0xff] %vm717_vm2, %v2704_v42  ;;  %v2707_v50 = vadd.f32 %v9055_v57, %v2643_v9  ;;  %v5527_v62 = vld [vmem:[#allocation2 + $0x229] sm:$0xff] }
 0x291   :  { %v3317_v41 = vld [vmem:[#allocation3 + $0x1b8] sm:$0xff]  ;;  %v2556_v0 = vpop.f32.mrf.mxu1 }
 0x292   :  { %v10955_v58 = vpop.f32.mrf.mxu0  ;;  %3442 = vst.msk [vmem:[#allocation3 + $0x1a0] sm:$0xff] %vm717_vm2, %v3378_v30  ;;  %v3381_v53 = vadd.f32 %v10931_v13, %v3317_v41  ;;  %2771 = vst.msk [vmem:[#allocation3 + $0x1d8] sm:$0xff] %vm717_vm2, %v2707_v50  ;;  %v2705_v63 = vadd.f32 %v2641_v47, %v2556_v0  ;;  %v3943_v50 = vld [vmem:[#allocation3 + $0x18] sm:$0xff]  ;;  %v5530_v41 = vld [vmem:[#allocation2 + $0x249] sm:$0xff] }
 0x293   :  { %v3315_v4 = vld [vmem:[#allocation3 + $0x1a8] sm:$0xff]  ;;  %v9058_v5 = vpop.f32.mrf.mxu1  ;;  %9289 = vmatmul.mubr.msk.bf16.gmra.mxu1 %vm717_vm2, %v4890_v60  ;;  %v5528_v60 = vld [vmem:[#allocation2 + $0x231] sm:$0xff] }
 0x294   :  { %v9124_v43 = vpop.f32.mrf.mxu0  ;;  %9355 = vmatmul.mubr.msk.bf16.gmra.mxu0 %vm717_vm2, %v5568_v26  ;;  %3445 = vst.msk [vmem:[#allocation3 + $0x1b8] sm:$0xff] %vm717_vm2, %v3381_v53  ;;  %v3379_v11 = vadd.f32 %v3315_v4, %v10935_v36  ;;  %2769 = vst.msk [vmem:[#allocation3 + $0x1c8] sm:$0xff] %vm717_vm2, %v2705_v63  ;;  %v2710_v52 = vadd.f32 %v9058_v5, %v2646_v6  ;;  %9292 = vmatprep.mubr.msk.bf16.mxu1 %vm717_vm2, %v4891_v7  ;;  %v4852_v26 = vld [vmem:[#allocation2 + $0x248] sm:$0xff]  ;;  %v4851_v53 = vld [vmem:[#allocation2 + $0x240] sm:$0xff] }
 0x295   :  { %9358 = vmatprep.mubr.msk.bf16.mxu0 %vm717_vm2, %v5569_v27  ;;  %v3320_v12 = vld [vmem:[#allocation3 + $0x1d0] sm:$0xff]  ;;  %v2569_v59 = vpop.f32.mrf.mxu1  ;;  %v3941_v27 = vld [vmem:[#allocation3 + $0x8] sm:$0xff]  ;;  %v5572_v6 = vpack.c.bf16 %v5528_v60, %v5527_v62 }
 0x296   :  { %v3247_v34 = vpop.f32.mrf.mxu0  ;;  %3443 = vst.msk [vmem:[#allocation3 + $0x1a8] sm:$0xff] %vm717_vm2, %v3379_v11  ;;  %v3384_v13 = vadd.f32 %v9120_v29, %v3320_v12  ;;  %2774 = vst.msk [vmem:[#allocation3 + $0x1f0] sm:$0xff] %vm717_vm2, %v2710_v52  ;;  %v2708_v14 = vadd.f32 %v2644_v48, %v2569_v59  ;;  %v5525_v29 = vld [vmem:[#allocation2 + $0x211] sm:$0xff]  ;;  %v4895_v12 = vpack.c.bf16 %v4852_v26, %v4851_v53 }
 0x297   :  { %v3318_v46 = vld [vmem:[#allocation3 + $0x1c0] sm:$0xff]  ;;  %v9059_v10 = vpop.f32.mrf.mxu1  ;;  %v5571_v35 = vpack.c.bf16 %v5526_v17, %v5525_v29 }
 0x298   :  { %v10969_v39 = vpop.f32.mrf.mxu0  ;;  %3448 = vst.msk [vmem:[#allocation3 + $0x1d0] sm:$0xff] %vm717_vm2, %v3384_v13  ;;  %v3382_v36 = vadd.f32 %v3318_v46, %v3231_v32  ;;  %2772 = vst.msk [vmem:[#allocation3 + $0x1e0] sm:$0xff] %vm717_vm2, %v2708_v14  ;;  %v2711_v45 = vadd.f32 %v9059_v10, %v2647_v24  ;;  %v3946_v13 = vld [vmem:[#allocation3 + $0x30] sm:$0xff]  ;;  %v3944_v10 = vld [vmem:[#allocation3 + $0x20] sm:$0xff] }
 0x299   :  { %v3321_v22 = vld [vmem:[#allocation3 + $0x1d8] sm:$0xff]  ;;  %v2572_v2 = vpop.f32.mrf.mxu1 }
 0x29a   :  { %v10973_v3 = vpop.f32.mrf.mxu0  ;;  %3446 = vst.msk [vmem:[#allocation3 + $0x1c0] sm:$0xff] %vm717_vm2, %v3382_v36  ;;  %v3385_v25 = vadd.f32 %v10950_v49, %v3321_v22  ;;  %2775 = vst.msk [vmem:[#allocation3 + $0x1f8] sm:$0xff] %vm717_vm2, %v2711_v45  ;;  %v2709_v33 = vadd.f32 %v2645_v23, %v2572_v2  ;;  %v4850_v49 = vld [vmem:[#allocation2 + $0x230] sm:$0xff]  ;;  %v4854_v36 = vld [vmem:[#allocation2 + $0x260] sm:$0xff] }
 0x29b   :  { %v3319_v56 = vld [vmem:[#allocation3 + $0x1c8] sm:$0xff]  ;;  %v9130_v31 = vpop.f32.mrf.mxu1  ;;  %9293 = vmatmul.mubr.msk.bf16.gmra.mxu1 %vm717_vm2, %v4892_v54  ;;  %v3947_v22 = vld [vmem:[#allocation3 + $0x38] sm:$0xff] }
 0x29c   :  { %v9196_v38 = vpop.f32.mrf.mxu0  ;;  %9359 = vmatmul.mubr.msk.bf16.gmra.mxu0 %vm717_vm2, %v5570_v28  ;;  %3449 = vst.msk [vmem:[#allocation3 + $0x1d8] sm:$0xff] %vm717_vm2, %v3385_v25  ;;  %v3383_v55 = vadd.f32 %v3319_v56, %v10955_v58  ;;  %2773 = vst.msk [vmem:[#allocation3 + $0x1e8] sm:$0xff] %vm717_vm2, %v2709_v33  ;;  %v4006_v32 = vadd.f32 %v9130_v31, %v3942_v37  ;;  %9296 = vmatprep.mubr.msk.bf16.mxu1 %vm717_vm2, %v4893_v15  ;;  %v4849_v58 = vld [vmem:[#allocation2 + $0x228] sm:$0xff]  ;;  %v5534_v23 = vld [vmem:[#allocation2 + $0x279] sm:$0xff] }
 0x29d   :  { %9362 = vmatprep.mubr.msk.bf16.mxu0 %vm717_vm2, %v5571_v35  ;;  %v3324_v40 = vld [vmem:[#allocation3 + $0x1f0] sm:$0xff]  ;;  %v3685_v42 = vpop.f32.mrf.mxu1  ;;  %v4894_v5 = vpack.c.bf16 %v4850_v49, %v4849_v58  ;;  %v5532_v45 = vld [vmem:[#allocation2 + $0x261] sm:$0xff]  ;;  %v4853_v28 = vld [vmem:[#allocation2 + $0x258] sm:$0xff] }
 0x29e   :  { %v4363_v20 = vpop.f32.mrf.mxu0  ;;  %3447 = vst.msk [vmem:[#allocation3 + $0x1c8] sm:$0xff] %vm717_vm2, %v3383_v55  ;;  %v3388_v57 = vadd.f32 %v9124_v43, %v3324_v40  ;;  %4070 = vst.msk [vmem:[#allocation3 + $0x10] sm:$0xff] %vm717_vm2, %v4006_v32  ;;  %v4004_v9 = vadd.f32 %v3940_v44, %v3685_v42  ;;  %v5529_v43 = vld [vmem:[#allocation2 + $0x241] sm:$0xff]  ;;  %v5531_v29 = vld [vmem:[#allocation2 + $0x259] sm:$0xff]  ;;  %v4896_v31 = vpack.c.bf16 %v4854_v36, %v4853_v28 }
 0x29f   :  { %v3322_v1 = vld [vmem:[#allocation3 + $0x1e0] sm:$0xff]  ;;  %v9131_v30 = vpop.f32.mrf.mxu1  ;;  %v5573_v59 = vpack.c.bf16 %v5530_v41, %v5529_v43  ;;  %v4855_v25 = vld [vmem:[#allocation2 + $0x270] sm:$0xff]  ;;  %v3945_v35 = vld [vmem:[#allocation3 + $0x28] sm:$0xff]  ;;  %v5574_v37 = vpack.c.bf16 %v5532_v45, %v5531_v29 }
 0x2a0   :  { %v10987_v51 = vpop.f32.mrf.mxu0  ;;  %3452 = vst.msk [vmem:[#allocation3 + $0x1f0] sm:$0xff] %vm717_vm2, %v3388_v57  ;;  %v3386_v0 = vadd.f32 %v3322_v1, %v3247_v34  ;;  %4068 = vst.msk [vmem:[#allocation3] sm:$0xff] %vm717_vm2, %v4004_v9  ;;  %v4007_v47 = vadd.f32 %v9131_v30, %v3943_v50  ;;  %v4897_v40 = vpack.c.bf16 %v4856_v18, %v4855_v25  ;;  %v3950_v57 = vld [vmem:[#allocation3 + $0x50] sm:$0xff]  ;;  %v3948_v30 = vld [vmem:[#allocation3 + $0x40] sm:$0xff] }
 0x2a1   :  { %v3325_v63 = vld [vmem:[#allocation3 + $0x1f8] sm:$0xff]  ;;  %v3688_v7 = vpop.f32.mrf.mxu1  ;;  %v4860_v58 = vld [vmem:[#allocation2 + $0x2a8] sm:$0xff] }
 0x2a2   :  { %v10991_v4 = vpop.f32.mrf.mxu0  ;;  %3450 = vst.msk [vmem:[#allocation3 + $0x1e0] sm:$0xff] %vm717_vm2, %v3386_v0  ;;  %v3389_v11 = vadd.f32 %v10969_v39, %v3325_v63  ;;  %4071 = vst.msk [vmem:[#allocation3 + $0x18] sm:$0xff] %vm717_vm2, %v4007_v47  ;;  %v4005_v52 = vadd.f32 %v3941_v27, %v3688_v7  ;;  %v4858_v0 = vld [vmem:[#allocation2 + $0x290] sm:$0xff]  ;;  %v3951_v63 = vld [vmem:[#allocation3 + $0x58] sm:$0xff] }
 0x2a3   :  { %v3323_v48 = vld [vmem:[#allocation3 + $0x1e8] sm:$0xff]  ;;  %v9134_v34 = vpop.f32.mrf.mxu1  ;;  %9297 = vmatmul.mubr.msk.bf16.gmra.mxu1 %vm717_vm2, %v4894_v5  ;;  %v5536_v47 = vld [vmem:[#allocation2 + $0x291] sm:$0xff] }
 0x2a4   :  { %v9200_v14 = vpop.f32.mrf.mxu0  ;;  %9363 = vmatmul.mubr.msk.bf16.gmra.mxu0 %vm717_vm2, %v5572_v6  ;;  %3453 = vst.msk [vmem:[#allocation3 + $0x1f8] sm:$0xff] %vm717_vm2, %v3389_v11  ;;  %v3387_v16 = vadd.f32 %v3323_v48, %v10973_v3  ;;  %4069 = vst.msk [vmem:[#allocation3 + $0x8] sm:$0xff] %vm717_vm2, %v4005_v52  ;;  %v4010_v8 = vadd.f32 %v9134_v34, %v3946_v13  ;;  %9300 = vmatprep.mubr.msk.bf16.mxu1 %vm717_vm2, %v4895_v12  ;;  %v5538_v27 = vld [vmem:[#allocation2 + $0x2a9] sm:$0xff]  ;;  %v4859_v11 = vld [vmem:[#allocation2 + $0x2a0] sm:$0xff] }
 0x2a5   :  { %9366 = vmatprep.mubr.msk.bf16.mxu0 %vm717_vm2, %v5573_v59  ;;  %v4620_v19 = vld [vmem:[#allocation3 + $0x10] sm:$0xff]  ;;  %v3701_v46 = vpop.f32.mrf.mxu1  ;;  %v4857_v6 = vld [vmem:[#allocation2 + $0x288] sm:$0xff]  ;;  %v4864_v28 = vld [vmem:[#allocation2 + $0x2d8] sm:$0xff] }
 0x2a6   :  { %v4379_v24 = vpop.f32.mrf.mxu0  ;;  %3451 = vst.msk [vmem:[#allocation3 + $0x1e8] sm:$0xff] %vm717_vm2, %v3387_v16  ;;  %v4684_v39 = vadd.f32 %v9196_v38, %v4620_v19  ;;  %4074 = vst.msk [vmem:[#allocation3 + $0x30] sm:$0xff] %vm717_vm2, %v4010_v8  ;;  %v4008_v17 = vadd.f32 %v3944_v10, %v3701_v46  ;;  %v5533_v38 = vld [vmem:[#allocation2 + $0x271] sm:$0xff]  ;;  %v5535_v43 = vld [vmem:[#allocation2 + $0x289] sm:$0xff]  ;;  %v4898_v34 = vpack.c.bf16 %v4858_v0, %v4857_v6 }
 0x2a7   :  { %v4618_v61 = vld [vmem:[#allocation3] sm:$0xff]  ;;  %v9135_v21 = vpop.f32.mrf.mxu1  ;;  %v5575_v42 = vpack.c.bf16 %v5534_v23, %v5533_v38  ;;  %v3949_v59 = vld [vmem:[#allocation3 + $0x48] sm:$0xff]  ;;  %v5576_v13 = vpack.c.bf16 %v5536_v47, %v5535_v43  ;;  %v4899_v19 = vpack.c.bf16 %v4860_v58, %v4859_v11  ;;  %v4866_v58 = vld [vmem:[#allocation2 + $0x2f0] sm:$0xff] }
 0x2a8   :  { %v11005_v2 = vpop.f32.mrf.mxu0  ;;  %4748 = vst.msk [vmem:[#allocation3 + $0x10] sm:$0xff] %vm717_vm2, %v4684_v39  ;;  %v4682_v3 = vadd.f32 %v4618_v61, %v4363_v20  ;;  %4072 = vst.msk [vmem:[#allocation3 + $0x20] sm:$0xff] %vm717_vm2, %v4008_v17  ;;  %v4011_v54 = vadd.f32 %v9135_v21, %v3947_v22  ;;  %v3954_v39 = vld [vmem:[#allocation3 + $0x70] sm:$0xff]  ;;  %v3952_v21 = vld [vmem:[#allocation3 + $0x60] sm:$0xff] }
 0x2a9   :  { %v4621_v33 = vld [vmem:[#allocation3 + $0x18] sm:$0xff]  ;;  %v3704_v15 = vpop.f32.mrf.mxu1  ;;  %v4868_v6 = vld [vmem:[#allocation2 + $0x308] sm:$0xff]  ;;  %v7077_v43 = vld [vmem:[%s11901_s6] sm:$0x3] }
 0x2aa   :  { %v11009_v56 = vpop.f32.mrf.mxu0  ;;  %4746 = vst.msk [vmem:[#allocation3] sm:$0xff] %vm717_vm2, %v4682_v3  ;;  %v4685_v55 = vadd.f32 %v10987_v51, %v4621_v33  ;;  %4075 = vst.msk [vmem:[#allocation3 + $0x38] sm:$0xff] %vm717_vm2, %v4011_v54  ;;  %v4009_v32 = vadd.f32 %v3945_v35, %v3704_v15  ;;  %v4862_v3 = vld [vmem:[#allocation2 + $0x2c0] sm:$0xff]  ;;  %v3955_v33 = vld [vmem:[#allocation3 + $0x78] sm:$0xff]  ;;  %9598 = vmatprep.subr.msk.bf16.mxu0 %vm360_vm0, %v7077_v43 }
 0x2ab   :  { %v4619_v44 = vld [vmem:[#allocation3 + $0x8] sm:$0xff]  ;;  %v9138_v20 = vpop.f32.mrf.mxu1  ;;  %9301 = vmatmul.mubr.msk.bf16.gmra.mxu1 %vm717_vm2, %v4896_v31  ;;  %v5542_v35 = vld [vmem:[#allocation2 + $0x2d9] sm:$0xff] }
 0x2ac   :  { %v9204_v9 = vpop.f32.mrf.mxu0  ;;  %9367 = vmatmul.mubr.msk.bf16.gmra.mxu0 %vm717_vm2, %v5574_v37  ;;  %4749 = vst.msk [vmem:[#allocation3 + $0x18] sm:$0xff] %vm717_vm2, %v4685_v55  ;;  %v4683_v49 = vadd.f32 %v4619_v44, %v10991_v4  ;;  %4073 = vst.msk [vmem:[#allocation3 + $0x28] sm:$0xff] %vm717_vm2, %v4009_v32  ;;  %v4014_v60 = vadd.f32 %v9138_v20, %v3950_v57  ;;  %9304 = vmatprep.mubr.msk.bf16.mxu1 %vm717_vm2, %v4897_v40  ;;  %v5540_v54 = vld [vmem:[#allocation2 + $0x2c1] sm:$0xff]  ;;  %v4861_v37 = vld [vmem:[#allocation2 + $0x2b8] sm:$0xff] }
 0x2ad   :  { %9370 = vmatprep.mubr.msk.bf16.mxu0 %vm717_vm2, %v5575_v42  ;;  %v4624_v26 = vld [vmem:[#allocation3 + $0x30] sm:$0xff]  ;;  %v3717_v1 = vpop.f32.mrf.mxu1  ;;  %v5539_v38 = vld [vmem:[#allocation2 + $0x2b9] sm:$0xff]  ;;  %v3953_v42 = vld [vmem:[#allocation3 + $0x68] sm:$0xff]  ;;  %v4900_v20 = vpack.c.bf16 %v4862_v3, %v4861_v37 }
 0x2ae   :  { %v4395_v50 = vpop.f32.mrf.mxu0  ;;  %4747 = vst.msk [vmem:[#allocation3 + $0x8] sm:$0xff] %vm717_vm2, %v4683_v49  ;;  %v4688_v51 = vadd.f32 %v9200_v14, %v4624_v26  ;;  %4078 = vst.msk [vmem:[#allocation3 + $0x50] sm:$0xff] %vm717_vm2, %v4014_v60  ;;  %v4012_v41 = vadd.f32 %v3948_v30, %v3717_v1  ;;  %v5537_v14 = vld [vmem:[#allocation2 + $0x2a1] sm:$0xff]  ;;  %v4863_v55 = vld [vmem:[#allocation2 + $0x2d0] sm:$0xff]  ;;  %v5578_v57 = vpack.c.bf16 %v5540_v54, %v5539_v38 }
 0x2af   :  { %v4622_v62 = vld [vmem:[#allocation3 + $0x20] sm:$0xff]  ;;  %v9139_v53 = vpop.f32.mrf.mxu1  ;;  %v5577_v46 = vpack.c.bf16 %v5538_v27, %v5537_v14  ;;  %v4901_v26 = vpack.c.bf16 %v4864_v28, %v4863_v55  ;;  %v5544_v27 = vld [vmem:[#allocation2 + $0x2f1] sm:$0xff] }
 0x2b0   :  { %v11023_v7 = vpop.f32.mrf.mxu0  ;;  %4752 = vst.msk [vmem:[#allocation3 + $0x30] sm:$0xff] %vm717_vm2, %v4688_v51  ;;  %v4686_v4 = vadd.f32 %v4622_v62, %v4379_v24  ;;  %4076 = vst.msk [vmem:[#allocation3 + $0x40] sm:$0xff] %vm717_vm2, %v4012_v41  ;;  %v4015_v5 = vadd.f32 %v9139_v53, %v3951_v63  ;;  %v3958_v51 = vld [vmem:[#allocation3 + $0x90] sm:$0xff]  ;;  %v3956_v63 = vld [vmem:[#allocation3 + $0x80] sm:$0xff] }
 0x2b1   :  { %v4625_v52 = vld [vmem:[#allocation3 + $0x38] sm:$0xff]  ;;  %v3720_v12 = vpop.f32.mrf.mxu1  ;;  %v11074_v11 = vld [vmem:[%s11900_s5] sm:$0xf]  ;;  %v3962_v54 = vld [vmem:[#allocation3 + $0xb0] sm:$0xff] }
 0x2b2   :  { %v11027_v48 = vpop.f32.mrf.mxu0  ;;  %4750 = vst.msk [vmem:[#allocation3 + $0x20] sm:$0xff] %vm717_vm2, %v4686_v4  ;;  %v4689_v16 = vadd.f32 %v11005_v2, %v4625_v52  ;;  %4079 = vst.msk [vmem:[#allocation3 + $0x58] sm:$0xff] %vm717_vm2, %v4015_v5  ;;  %v4013_v8 = vadd.f32 %v3949_v59, %v3720_v12  ;;  %v3959_v59 = vld [vmem:[#allocation3 + $0x98] sm:$0xff]  ;;  %9599 = vmatprep.subr.msk.bf16.mxu1 %vm1063_vm5, %v11074_v11  ;;  %v4870_v38 = vld [vmem:[#allocation2 + $0x320] sm:$0xff] }
 0x2b3   :  { %v4623_v10 = vld [vmem:[#allocation3 + $0x28] sm:$0xff]  ;;  %v9142_v24 = vpop.f32.mrf.mxu1  ;;  %9305 = vmatmul.mubr.msk.bf16.gmra.mxu1 %vm717_vm2, %v4898_v34 }
 0x2b4   :  { %v11032_v17 = vpop.f32.mrf.mxu0  ;;  %9371 = vmatmul.mubr.msk.bf16.gmra.mxu0 %vm717_vm2, %v5576_v13  ;;  %4753 = vst.msk [vmem:[#allocation3 + $0x38] sm:$0xff] %vm717_vm2, %v4689_v16  ;;  %v4687_v36 = vadd.f32 %v4623_v10, %v11009_v56  ;;  %4077 = vst.msk [vmem:[#allocation3 + $0x48] sm:$0xff] %vm717_vm2, %v4013_v8  ;;  %v4018_v45 = vadd.f32 %v9142_v24, %v3954_v39  ;;  %9308 = vmatprep.mubr.msk.bf16.mxu1 %vm717_vm2, %v4899_v19  ;;  %v5546_v34 = vld [vmem:[#allocation2 + $0x309] sm:$0xff]  ;;  %v4867_v19 = vld [vmem:[#allocation2 + $0x300] sm:$0xff] }
 0x2b5   :  { %9374 = vmatprep.mubr.msk.bf16.mxu0 %vm717_vm2, %v5577_v46  ;;  %v4628_v18 = vld [vmem:[#allocation3 + $0x50] sm:$0xff]  ;;  %v3733_v61 = vpop.f32.mrf.mxu1  ;;  %v4865_v16 = vld [vmem:[#allocation2 + $0x2e8] sm:$0xff]  ;;  %v7079_v46 = vsel %vm360_vm0, %v7077_v43, 0 }
 0x2b6   :  { %v11041_v22 = vpop.f32.mrf.mxu0  ;;  %4751 = vst.msk [vmem:[#allocation3 + $0x28] sm:$0xff] %vm717_vm2, %v4687_v36  ;;  %v4692_v2 = vadd.f32 %v9204_v9, %v4628_v18  ;;  %4082 = vst.msk [vmem:[#allocation3 + $0x70] sm:$0xff] %vm717_vm2, %v4018_v45  ;;  %v4016_v23 = vadd.f32 %v3952_v21, %v3733_v61  ;;  %v5541_v9 = vld [vmem:[#allocation2 + $0x2d1] sm:$0xff]  ;;  %v5543_v8 = vld [vmem:[#allocation2 + $0x2e9] sm:$0xff]  ;;  %v4902_v36 = vpack.c.bf16 %v4866_v58, %v4865_v16  ;;  %9457 = vmatpush3.bf16.msra.mxu0 %v7079_v46 }
 0x2b7   :  { %v4626_v29 = vld [vmem:[#allocation3 + $0x40] sm:$0xff]  ;;  %v9143_v25 = vpop.f32.mrf.mxu1  ;;  %v5579_v1 = vpack.c.bf16 %v5542_v35, %v5541_v9  ;;  %v3957_v39 = vld [vmem:[#allocation3 + $0x88] sm:$0xff]  ;;  %v5580_v45 = vpack.c.bf16 %v5544_v27, %v5543_v8  ;;  %v5549_v58 = vld [vmem:[#allocation2 + $0x331] sm:$0xff] }
 0x2b8   :  { %v11045_v15 = vpop.f32.mrf.mxu0  ;;  %4756 = vst.msk [vmem:[#allocation3 + $0x50] sm:$0xff] %vm717_vm2, %v4692_v2  ;;  %v4690_v56 = vadd.f32 %v4626_v29, %v4395_v50  ;;  %4080 = vst.msk [vmem:[#allocation3 + $0x60] sm:$0xff] %vm717_vm2, %v4016_v23  ;;  %v4019_v31 = vadd.f32 %v9143_v25, %v3955_v33  ;;  %v5545_v18 = vld [vmem:[#allocation2 + $0x301] sm:$0xff] }
 0x2b9   :  { %v4629_v32 = vld [vmem:[#allocation3 + $0x58] sm:$0xff]  ;;  %v3736_v40 = vpop.f32.mrf.mxu1  ;;  %v5581_v2 = vpack.c.bf16 %v5546_v34, %v5545_v18  ;;  %v3960_v35 = vld [vmem:[#allocation3 + $0xa0] sm:$0xff]  ;;  %v4873_v43 = vld [vmem:[#allocation2 + $0x348] sm:$0xff] }
 0x2ba   :  { %v11049_v44 = vpop.f32.mrf.mxu0  ;;  %4754 = vst.msk [vmem:[#allocation3 + $0x40] sm:$0xff] %vm717_vm2, %v4690_v56  ;;  %v4693_v49 = vadd.f32 %v11023_v7, %v4629_v32  ;;  %4083 = vst.msk [vmem:[#allocation3 + $0x78] sm:$0xff] %vm717_vm2, %v4019_v31  ;;  %v4017_v60 = vadd.f32 %v3953_v42, %v3736_v40  ;;  %v5548_v55 = vld [vmem:[#allocation2 + $0x321] sm:$0xff]  ;;  %v4872_v32 = vld [vmem:[#allocation2 + $0x338] sm:$0xff] }
 0x2bb   :  { %v4627_v30 = vld [vmem:[#allocation3 + $0x48] sm:$0xff]  ;;  %v9146_v50 = vpop.f32.mrf.mxu1  ;;  %9309 = vmatmul.mubr.msk.bf16.gmra.mxu1 %vm717_vm2, %v4900_v20  ;;  %v5552_v34 = vld [vmem:[#allocation2 + $0x351] sm:$0xff]  ;;  %v3964_v16 = vld [vmem:[#allocation3 + $0xc0] sm:$0xff] }
 0x2bc   :  { %v11054_v41 = vpop.f32.mrf.mxu0  ;;  %9375 = vmatmul.mubr.msk.bf16.gmra.mxu0 %vm717_vm2, %v5578_v57  ;;  %4757 = vst.msk [vmem:[#allocation3 + $0x58] sm:$0xff] %vm717_vm2, %v4693_v49  ;;  %v4691_v0 = vadd.f32 %v4627_v30, %v11027_v48  ;;  %4081 = vst.msk [vmem:[#allocation3 + $0x68] sm:$0xff] %vm717_vm2, %v4017_v60  ;;  %v4022_v47 = vadd.f32 %v9146_v50, %v3958_v51  ;;  %9312 = vmatprep.mubr.msk.bf16.mxu1 %vm717_vm2, %v4901_v26  ;;  %v5550_v57 = vld [vmem:[#allocation2 + $0x339] sm:$0xff]  ;;  %v3961_v51 = vld [vmem:[#allocation3 + $0xa8] sm:$0xff] }
 0x2bd   :  { %9378 = vmatprep.mubr.msk.bf16.mxu0 %vm717_vm2, %v5579_v1  ;;  %v4632_v62 = vld [vmem:[#allocation3 + $0x70] sm:$0xff]  ;;  %v3749_v53 = vpop.f32.mrf.mxu1  ;;  %v4869_v60 = vld [vmem:[#allocation2 + $0x318] sm:$0xff] }
 0x2be   :  { %v11063_v7 = vpop.f32.mrf.mxu0  ;;  %4755 = vst.msk [vmem:[#allocation3 + $0x48] sm:$0xff] %vm717_vm2, %v4691_v0  ;;  %v4696_v4 = vadd.f32 %v11032_v17, %v4632_v62  ;;  %4086 = vst.msk [vmem:[#allocation3 + $0x90] sm:$0xff] %vm717_vm2, %v4022_v47  ;;  %v4020_v5 = vadd.f32 %v3956_v63, %v3749_v53  ;;  %v5547_v26 = vld [vmem:[#allocation2 + $0x319] sm:$0xff]  ;;  %v4871_v1 = vld [vmem:[#allocation2 + $0x330] sm:$0xff]  ;;  %v4904_v0 = vpack.c.bf16 %v4870_v38, %v4869_v60 }
 0x2bf   :  { %v4630_v52 = vld [vmem:[#allocation3 + $0x60] sm:$0xff]  ;;  %v9147_v12 = vpop.f32.mrf.mxu1  ;;  %v5582_v47 = vpack.c.bf16 %v5548_v55, %v5547_v26  ;;  %v4905_v63 = vpack.c.bf16 %v4872_v32, %v4871_v1  ;;  %v3971_v1 = vld [vmem:[#allocation3 + $0xf8] sm:$0xff] }
 0x2c0   :  { %v11076_v48 = vpop.f32.mrf.mxu0  ;;  %4760 = vst.msk [vmem:[#allocation3 + $0x70] sm:$0xff] %vm717_vm2, %v4696_v4  ;;  %v4694_v13 = vadd.f32 %v4630_v52, %v11041_v22  ;;  %4084 = vst.msk [vmem:[#allocation3 + $0x80] sm:$0xff] %vm717_vm2, %v4020_v5  ;;  %v4023_v14 = vadd.f32 %v9147_v12, %v3959_v59  ;;  %v4903_v22 = vpack.c.bf16 %v4868_v6, %v4867_v19  ;;  %v3966_v5 = vld [vmem:[#allocation3 + $0xd0] sm:$0xff]  ;;  %v6168_v18 = vld [vmem:[#allocation2 + $0x3a] sm:$0xff] }
 0x2c1   :  { %v4633_v10 = vld [vmem:[#allocation3 + $0x78] sm:$0xff]  ;;  %v3752_v24 = vpop.f32.mrf.mxu1  ;;  %v4874_v59 = vld [vmem:[#allocation2 + $0x350] sm:$0xff]  ;;  %v9637_v38 = vld [vmem:[%s11895_s0] sm:$0xff]  }
 0x2c2   :  { %v11085_v17 = vpop.f32.mrf.mxu0  ;;  %4758 = vst.msk [vmem:[#allocation3 + $0x60] sm:$0xff] %vm717_vm2, %v4694_v13  ;;  %v4697_v61 = vadd.f32 %v11045_v15, %v4633_v10  ;;  %4087 = vst.msk [vmem:[#allocation3 + $0x98] sm:$0xff] %vm717_vm2, %v4023_v14  ;;  %v4021_v21 = vadd.f32 %v3957_v39, %v3752_v24  ;;  %v6167_v10 = vld [vmem:[#allocation2 + $0x32] sm:$0xff] }
 0x2c3   :  { %v4631_v23 = vld [vmem:[#allocation3 + $0x68] sm:$0xff]  ;;  %v9150_v3 = vpop.f32.mrf.mxu1  ;;  %9313 = vmatmul.mubr.msk.bf16.gmra.mxu1 %vm717_vm2, %v4902_v36 }
 0x2c4   :  { %v11090_v28 = vpop.f32.mrf.mxu0  ;;  %9379 = vmatmul.mubr.msk.bf16.gmra.mxu0 %vm717_vm2, %v5580_v45  ;;  %4761 = vst.msk [vmem:[#allocation3 + $0x78] sm:$0xff] %vm717_vm2, %v4697_v61  ;;  %v4695_v29 = vadd.f32 %v4631_v23, %v11049_v44  ;;  %4085 = vst.msk [vmem:[#allocation3 + $0x88] sm:$0xff] %vm717_vm2, %v4021_v21  ;;  %v4026_v25 = vadd.f32 %v9150_v3, %v3962_v54  ;;  %9316 = vmatprep.mubr.msk.bf16.mxu1 %vm717_vm2, %v4903_v22  ;;  %v3963_v44 = vld [vmem:[#allocation3 + $0xb8] sm:$0xff]  ;;  %v3965_v3 = vld [vmem:[#allocation3 + $0xc8] sm:$0xff] }
 0x2c5   :  { %9382 = vmatprep.mubr.msk.bf16.mxu0 %vm717_vm2, %v5581_v2  ;;  %v4636_v33 = vld [vmem:[#allocation3 + $0x90] sm:$0xff]  ;;  %v3765_v15 = vpop.f32.mrf.mxu1  ;;  %v4906_v45 = vpack.c.bf16 %v4874_v59, %v4873_v43 }
 0x2c6   :  { %v11099_v56 = vpop.f32.mrf.mxu0  ;;  %4759 = vst.msk [vmem:[#allocation3 + $0x68] sm:$0xff] %vm717_vm2, %v4695_v29  ;;  %v4700_v31 = vadd.f32 %v11054_v41, %v4636_v33  ;;  %4090 = vst.msk [vmem:[#allocation3 + $0xb0] sm:$0xff] %vm717_vm2, %v4026_v25  ;;  %v4024_v37 = vadd.f32 %v3960_v35, %v3765_v15  ;;  %v6231_v25 = vpack.c.bf16 %v6168_v18, %v6167_v10  ;;  %v3970_v35 = vld [vmem:[#allocation3 + $0xf0] sm:$0xff]  ;;  %v6174_v10 = vld [vmem:[#allocation2 + $0x82] sm:$0xff] }
 0x2c7   :  { %v4634_v40 = vld [vmem:[#allocation3 + $0x80] sm:$0xff]  ;;  %v9151_v42 = vpop.f32.mrf.mxu1  ;;  %v3974_v43 = vld [vmem:[#allocation3 + $0x110] sm:$0xff] }
 0x2c8   :  { %v11104_v20 = vpop.f32.mrf.mxu0  ;;  %4764 = vst.msk [vmem:[#allocation3 + $0x90] sm:$0xff] %vm717_vm2, %v4700_v31  ;;  %v4698_v9 = vadd.f32 %v4634_v40, %v11063_v7  ;;  %4088 = vst.msk [vmem:[#allocation3 + $0xa0] sm:$0xff] %vm717_vm2, %v4024_v37  ;;  %v4027_v49 = vadd.f32 %v9151_v42, %v3963_v44  ;;  %v5583_v7 = vpack.c.bf16 %v5550_v57, %v5549_v58  ;;  %v3968_v40 = vld [vmem:[#allocation3 + $0xe0] sm:$0xff]  ;;  %v6169_v57 = vld [vmem:[#allocation2 + $0x4a] sm:$0xff] }
 0x2c9   :  { %v4637_v30 = vld [vmem:[#allocation3 + $0x98] sm:$0xff]  ;;  %v3768_v50 = vpop.f32.mrf.mxu1  ;;  %v3969_v58 = vld [vmem:[#allocation3 + $0xe8] sm:$0xff] }
 0x2ca   :  { %v4446_v41 = vpop.f32.mrf.mxu0  ;;  %4762 = vst.msk [vmem:[#allocation3 + $0x80] sm:$0xff] %vm717_vm2, %v4698_v9  ;;  %v4701_v62 = vadd.f32 %v11076_v48, %v4637_v30  ;;  %4091 = vst.msk [vmem:[#allocation3 + $0xb8] sm:$0xff] %vm717_vm2, %v4027_v49  ;;  %v4025_v53 = vadd.f32 %v3961_v51, %v3768_v50  ;;  %v5551_v48 = vld [vmem:[#allocation2 + $0x349] sm:$0xff]  ;;  %v6170_v9 = vld [vmem:[#allocation2 + $0x52] sm:$0xff] }
 0x2cb   :  { %v4635_v27 = vld [vmem:[#allocation3 + $0x88] sm:$0xff]  ;;  %v9154_v4 = vpop.f32.mrf.mxu1  ;;  %9317 = vmatmul.mubr.msk.bf16.gmra.mxu1 %vm717_vm2, %v4904_v0  ;;  %v5584_v61 = vpack.c.bf16 %v5552_v34, %v5551_v48  ;;  %v6176_v18 = vld [vmem:[#allocation2 + $0x9a] sm:$0xff] }
 0x2cc   :  { %v9220_v6 = vpop.f32.mrf.mxu0  ;;  %9383 = vmatmul.mubr.msk.bf16.gmra.mxu0 %vm717_vm2, %v5582_v47  ;;  %4765 = vst.msk [vmem:[#allocation3 + $0x98] sm:$0xff] %vm717_vm2, %v4701_v62  ;;  %v4699_v52 = vadd.f32 %v4635_v27, %v11085_v17  ;;  %4089 = vst.msk [vmem:[#allocation3 + $0xa8] sm:$0xff] %vm717_vm2, %v4025_v53  ;;  %v4030_v12 = vadd.f32 %v9154_v4, %v3966_v5  ;;  %9320 = vmatprep.mubr.msk.bf16.mxu1 %vm717_vm2, %v4905_v63  ;;  %v3967_v17 = vld [vmem:[#allocation3 + $0xd8] sm:$0xff]  ;;  %v6171_v49 = vld [vmem:[#allocation2 + $0x62] sm:$0xff]  ;;  %v7467_v63 = vsel %vm1063_vm5, %v11074_v11, 0 }
 0x2cd   :  { %9386 = vmatprep.mubr.msk.bf16.mxu0 %vm717_vm2, %v5583_v7  ;;  %v4640_v13 = vld [vmem:[#allocation3 + $0xb0] sm:$0xff]  ;;  %v3781_v14 = vpop.f32.mrf.mxu1  ;;  %v6232_v53 = vpack.c.bf16 %v6170_v9, %v6169_v57 }
 0x2ce   :  { %v4459_v8 = vpop.f32.mrf.mxu0  ;;  %4763 = vst.msk [vmem:[#allocation3 + $0x88] sm:$0xff] %vm717_vm2, %v4699_v52  ;;  %v4704_v19 = vadd.f32 %v11090_v28, %v4640_v13  ;;  %4094 = vst.msk [vmem:[#allocation3 + $0xd0] sm:$0xff] %vm717_vm2, %v4030_v12  ;;  %v4028_v46 = vadd.f32 %v3964_v16, %v3781_v14  ;;  %v6172_v50 = vld [vmem:[#allocation2 + $0x6a] sm:$0xff]  ;;  %v3972_v13 = vld [vmem:[#allocation3 + $0x100] sm:$0xff] }
 0x2cf   :  { %v4638_v24 = vld [vmem:[#allocation3 + $0xa0] sm:$0xff]  ;;  %v9155_v39 = vpop.f32.mrf.mxu1  ;;  %v6233_v4 = vpack.c.bf16 %v6172_v50, %v6171_v49  ;;  %v9638_v12 = vld [vmem:[%s11895_s0 + $0x8] sm:$0xff]   ;;  %v9639_v16 = vld [vmem:[%s11895_s0 + $0x10] sm:$0xff]  }
 0x2d0   :  { %v9221_v36 = vpop.f32.mrf.mxu0  ;;  %4768 = vst.msk [vmem:[#allocation3 + $0xb0] sm:$0xff] %vm717_vm2, %v4704_v19  ;;  %v4702_v21 = vadd.f32 %v4638_v24, %v11099_v56  ;;  %4092 = vst.msk [vmem:[#allocation3 + $0xc0] sm:$0xff] %vm717_vm2, %v4028_v46  ;;  %v4031_v22 = vadd.f32 %v9155_v39, %v3967_v17  ;;  %v6173_v46 = vld [vmem:[#allocation2 + $0x7a] sm:$0xff]  ;;  %v6175_v24 = vld [vmem:[#allocation2 + $0x92] sm:$0xff] }
 0x2d1   :  { %v4641_v2 = vld [vmem:[#allocation3 + $0xb8] sm:$0xff]  ;;  %v3784_v23 = vpop.f32.mrf.mxu1  ;;  %v6177_v9 = vld [vmem:[#allocation2 + $0xaa] sm:$0xff] }
 0x2d2   :  { %v4462_v54 = vpop.f32.mrf.mxu0  ;;  %4766 = vst.msk [vmem:[#allocation3 + $0xa0] sm:$0xff] %vm717_vm2, %v4702_v21  ;;  %v4705_v28 = vadd.f32 %v11104_v20, %v4641_v2  ;;  %4095 = vst.msk [vmem:[#allocation3 + $0xd8] sm:$0xff] %vm717_vm2, %v4031_v22  ;;  %v4029_v29 = vadd.f32 %v3965_v3, %v3784_v23  ;;  %v3973_v23 = vld [vmem:[#allocation3 + $0x108] sm:$0xff]  ;;  %v6178_v49 = vld [vmem:[#allocation2 + $0xb2] sm:$0xff] }
 0x2d3   :  { %v4639_v33 = vld [vmem:[#allocation3 + $0xa8] sm:$0xff]  ;;  %v9158_v15 = vpop.f32.mrf.mxu1  ;;  %9321 = vmatmul.mubr.msk.bf16.gmra.mxu1 %vm717_vm2, %v4906_v45 }
 0x2d4   :  { %v9224_v31 = vpop.f32.mrf.mxu0  ;;  %9387 = vmatmul.mubr.msk.bf16.gmra.mxu0 %vm717_vm2, %v5584_v61  ;;  %4769 = vst.msk [vmem:[#allocation3 + $0xb8] sm:$0xff] %vm717_vm2, %v4705_v28  ;;  %v4703_v56 = vadd.f32 %v4639_v33, %v4446_v41  ;;  %4093 = vst.msk [vmem:[#allocation3 + $0xc8] sm:$0xff] %vm717_vm2, %v4029_v29  ;;  %v4034_v37 = vadd.f32 %v9158_v15, %v3970_v35  ;;  %9392 = vmatprep.mubr.msk.bf16.mxu1 %vm717_vm2, %v6231_v25  ;;  %v3978_v35 = vld [vmem:[#allocation3 + $0x130] sm:$0xff] }
 0x2d5   :  { %9458 = vmatprep.mubr.msk.bf16.mxu0 %vm263_vm1, %v9637_v38  ;;  %v4644_v55 = vld [vmem:[#allocation3 + $0xd0] sm:$0xff]  ;;  %v3797_v32 = vpop.f32.mrf.mxu1  ;;  %v6235_v25 = vpack.c.bf16 %v6176_v18, %v6175_v24  ;;  %v6184_v18 = vld [vmem:[#allocation2 + $0xfa] sm:$0xff] }
 0x2d6   :  { %v4475_v42 = vpop.f32.mrf.mxu0  ;;  %4767 = vst.msk [vmem:[#allocation3 + $0xa8] sm:$0xff] %vm717_vm2, %v4703_v56  ;;  %v4708_v44 = vadd.f32 %v9220_v6, %v4644_v55  ;;  %4098 = vst.msk [vmem:[#allocation3 + $0xf0] sm:$0xff] %vm717_vm2, %v4034_v37  ;;  %v4032_v20 = vadd.f32 %v3968_v40, %v3797_v32  ;;  %v9640_v56 = vld [vmem:[%s11895_s0 + $0x18] sm:$0xff]   ;;  %v9641_v55 = vld [vmem:[%s11895_s0 + $0x20] sm:$0xff]  }
 0x2d7   :  { %v4642_v60 = vld [vmem:[#allocation3 + $0xc0] sm:$0xff]  ;;  %v9159_v26 = vpop.f32.mrf.mxu1  ;;  %v6183_v24 = vld [vmem:[#allocation2 + $0xf2] sm:$0xff] }
 0x2d8   :  { %v9225_v30 = vpop.f32.mrf.mxu0  ;;  %4772 = vst.msk [vmem:[#allocation3 + $0xd0] sm:$0xff] %vm717_vm2, %v4708_v44  ;;  %v4706_v51 = vadd.f32 %v4642_v60, %v4459_v8  ;;  %4096 = vst.msk [vmem:[#allocation3 + $0xe0] sm:$0xff] %vm717_vm2, %v4032_v20  ;;  %v4035_v41 = vadd.f32 %v9159_v26, %v3971_v1  ;;  %v6179_v60 = vld [vmem:[#allocation2 + $0xc2] sm:$0xff] }
 0x2d9   :  { %v4645_v0 = vld [vmem:[#allocation3 + $0xd8] sm:$0xff]  ;;  %v3800_v47 = vpop.f32.mrf.mxu1 }
 0x2da   :  { %v4478_v62 = vpop.f32.mrf.mxu0  ;;  %4770 = vst.msk [vmem:[#allocation3 + $0xc0] sm:$0xff] %vm717_vm2, %v4706_v51  ;;  %v4709_v7 = vadd.f32 %v9221_v36, %v4645_v0  ;;  %4099 = vst.msk [vmem:[#allocation3 + $0xf8] sm:$0xff] %vm717_vm2, %v4035_v41  ;;  %v4033_v27 = vadd.f32 %v3969_v58, %v3800_v47  ;;  %v3975_v36 = vld [vmem:[#allocation3 + $0x118] sm:$0xff]  ;;  %v6180_v51 = vld [vmem:[#allocation2 + $0xca] sm:$0xff] }
 0x2db   :  { %v4643_v5 = vld [vmem:[#allocation3 + $0xc8] sm:$0xff]  ;;  %v9162_v6 = vpop.f32.mrf.mxu1  ;;  %9393 = vmatmul.mubr.msk.bf16.vlgmr.msra.gmra.mxu1 %vm717_vm2, %v6232_v53 }
 0x2dc   :  { %v9228_v52 = vpop.f32.mrf.mxu0  ;;  %9459 = vmatmul.mubr.msk.bf16.vlgmr.msra.gmra.mxu0 %vm263_vm1, %v9638_v12  ;;  %4773 = vst.msk [vmem:[#allocation3 + $0xd8] sm:$0xff] %vm717_vm2, %v4709_v7  ;;  %v4707_v11 = vadd.f32 %v4643_v5, %v4462_v54  ;;  %4097 = vst.msk [vmem:[#allocation3 + $0xe8] sm:$0xff] %vm717_vm2, %v4033_v27  ;;  %v4038_v59 = vadd.f32 %v9162_v6, %v3974_v43  ;;  %9396 = vmatprep.mubr.msk.bf16.mxu1 %vm717_vm2, %v6233_v4  ;;  %v3982_v43 = vld [vmem:[#allocation3 + $0x150] sm:$0xff]  ;;  %v9642_v12 = vld [vmem:[%s11895_s0 + $0x28] sm:$0xff]  }
 0x2dd   :  { %9523 = vmatpush3.bf16.msra.mxu1 %v7467_v63  ;;  %v4648_v48 = vld [vmem:[#allocation3 + $0xf0] sm:$0xff]  ;;  %v3813_v34 = vpop.f32.mrf.mxu1  ;;  %9462 = vmatprep.mubr.msk.bf16.mxu0 %vm263_vm1, %v9639_v16  ;;  %v6234_v54 = vpack.c.bf16 %v6174_v10, %v6173_v46  ;;  %v6236_v63 = vpack.c.bf16 %v6178_v49, %v6177_v9  ;;  %v6237_v4 = vpack.c.bf16 %v6180_v51, %v6179_v60  ;;  %v6181_v46 = vld [vmem:[#allocation2 + $0xda] sm:$0xff]  ;;  %v6182_v10 = vld [vmem:[#allocation2 + $0xe2] sm:$0xff] }
 0x2de   :  { %v4491_v14 = vpop.f32.mrf.mxu0  ;;  %4771 = vst.msk [vmem:[#allocation3 + $0xc8] sm:$0xff] %vm717_vm2, %v4707_v11  ;;  %v4712_v8 = vadd.f32 %v9224_v31, %v4648_v48  ;;  %4102 = vst.msk [vmem:[#allocation3 + $0x110] sm:$0xff] %vm717_vm2, %v4038_v59  ;;  %v4036_v19 = vadd.f32 %v3972_v13, %v3813_v34  ;;  %v9643_v48 = vld [vmem:[%s11895_s0 + $0x30] sm:$0xff]   ;;  %v6187_v60 = vld [vmem:[#allocation2 + $0x122] sm:$0xff] }
 0x2df   :  { %v4646_v39 = vld [vmem:[#allocation3 + $0xe0] sm:$0xff]  ;;  %v9163_v17 = vpop.f32.mrf.mxu1  ;;  %v6185_v9 = vld [vmem:[#allocation2 + $0x10a] sm:$0xff]  ;;  %v6186_v49 = vld [vmem:[#allocation2 + $0x112] sm:$0xff] }
 0x2e0   :  { %v9229_v45 = vpop.f32.mrf.mxu0  ;;  %4776 = vst.msk [vmem:[#allocation3 + $0xf0] sm:$0xff] %vm717_vm2, %v4712_v8  ;;  %v4710_v61 = vadd.f32 %v4646_v39, %v4475_v42  ;;  %4100 = vst.msk [vmem:[#allocation3 + $0x100] sm:$0xff] %vm717_vm2, %v4036_v19  ;;  %v4039_v21 = vadd.f32 %v9163_v17, %v3975_v36  ;;  %v3976_v42 = vld [vmem:[#allocation3 + $0x120] sm:$0xff]  ;;  %v3983_v36 = vld [vmem:[#allocation3 + $0x158] sm:$0xff] }
 0x2e1   :  { %v4649_v22 = vld [vmem:[#allocation3 + $0xf8] sm:$0xff]  ;;  %v3816_v2 = vpop.f32.mrf.mxu1  ;;  %v6188_v51 = vld [vmem:[#allocation2 + $0x12a] sm:$0xff] }
 0x2e2   :  { %v4494_v3 = vpop.f32.mrf.mxu0  ;;  %4774 = vst.msk [vmem:[#allocation3 + $0xe0] sm:$0xff] %vm717_vm2, %v4710_v61  ;;  %v4713_v28 = vadd.f32 %v9225_v30, %v4649_v22  ;;  %4103 = vst.msk [vmem:[#allocation3 + $0x118] sm:$0xff] %vm717_vm2, %v4039_v21  ;;  %v4037_v29 = vadd.f32 %v3973_v23, %v3816_v2  ;;  %v3979_v30 = vld [vmem:[#allocation3 + $0x138] sm:$0xff]  ;;  %v3981_v23 = vld [vmem:[#allocation3 + $0x148] sm:$0xff] }
 0x2e3   :  { %v4647_v33 = vld [vmem:[#allocation3 + $0xe8] sm:$0xff]  ;;  %v9166_v15 = vpop.f32.mrf.mxu1  ;;  %9397 = vmatmul.mubr.msk.bf16.gmra.mxu1 %vm717_vm2, %v6234_v54  ;;  %v6238_v54 = vpack.c.bf16 %v6182_v10, %v6181_v46  ;;  %v6189_v46 = vld [vmem:[#allocation2 + $0x13a] sm:$0xff] }
 0x2e4   :  { %v9232_v31 = vpop.f32.mrf.mxu0  ;;  %9463 = vmatmul.mubr.msk.bf16.gmra.mxu0 %vm263_vm1, %v9640_v56  ;;  %4777 = vst.msk [vmem:[#allocation3 + $0xf8] sm:$0xff] %vm717_vm2, %v4713_v28  ;;  %v4711_v37 = vadd.f32 %v4647_v33, %v4478_v62  ;;  %4101 = vst.msk [vmem:[#allocation3 + $0x108] sm:$0xff] %vm717_vm2, %v4037_v29  ;;  %v4042_v38 = vadd.f32 %v9166_v15, %v3978_v35  ;;  %9400 = vmatprep.mubr.msk.bf16.mxu1 %vm717_vm2, %v6235_v25  ;;  %v3977_v62 = vld [vmem:[#allocation3 + $0x128] sm:$0xff]  ;;  %v3986_v35 = vld [vmem:[#allocation3 + $0x170] sm:$0xff] }
 0x2e5   :  { %9466 = vmatprep.mubr.msk.bf16.mxu0 %vm263_vm1, %v9641_v55  ;;  %v4652_v32 = vld [vmem:[#allocation3 + $0x110] sm:$0xff]  ;;  %v3829_v40 = vpop.f32.mrf.mxu1  ;;  %v6239_v25 = vpack.c.bf16 %v6184_v18, %v6183_v24  ;;  %v9644_v56 = vld [vmem:[%s11895_s0 + $0x38] sm:$0xff]   ;;  %v9645_v55 = vld [vmem:[%s11895_s0 + $0x40] sm:$0xff]  }
 0x2e6   :  { %v4507_v44 = vpop.f32.mrf.mxu0  ;;  %4775 = vst.msk [vmem:[#allocation3 + $0xe8] sm:$0xff] %vm717_vm2, %v4711_v37  ;;  %v4716_v20 = vadd.f32 %v9228_v52, %v4652_v32  ;;  %4106 = vst.msk [vmem:[#allocation3 + $0x130] sm:$0xff] %vm717_vm2, %v4042_v38  ;;  %v4040_v57 = vadd.f32 %v3976_v42, %v3829_v40  ;;  %v3984_v42 = vld [vmem:[#allocation3 + $0x160] sm:$0xff]  ;;  %v6191_v24 = vld [vmem:[#allocation2 + $0x152] sm:$0xff] }
 0x2e7   :  { %v4650_v26 = vld [vmem:[#allocation3 + $0x100] sm:$0xff]  ;;  %v9167_v1 = vpop.f32.mrf.mxu1 }
 0x2e8   :  { %v9233_v50 = vpop.f32.mrf.mxu0  ;;  %4780 = vst.msk [vmem:[#allocation3 + $0x110] sm:$0xff] %vm717_vm2, %v4716_v20  ;;  %v4714_v41 = vadd.f32 %v4650_v26, %v4491_v14  ;;  %4104 = vst.msk [vmem:[#allocation3 + $0x120] sm:$0xff] %vm717_vm2, %v4040_v57  ;;  %v4043_v0 = vadd.f32 %v9167_v1, %v3979_v30  ;;  %v3980_v14 = vld [vmem:[#allocation3 + $0x140] sm:$0xff]  ;;  %v3987_v30 = vld [vmem:[#allocation3 + $0x178] sm:$0xff] }
 0x2e9   :  { %v4653_v47 = vld [vmem:[#allocation3 + $0x118] sm:$0xff]  ;;  %v3832_v58 = vpop.f32.mrf.mxu1  ;;  %v6190_v10 = vld [vmem:[#allocation2 + $0x142] sm:$0xff] }
 0x2ea   :  { %v4510_v53 = vpop.f32.mrf.mxu0  ;;  %4778 = vst.msk [vmem:[#allocation3 + $0x100] sm:$0xff] %vm717_vm2, %v4714_v41  ;;  %v4717_v7 = vadd.f32 %v9229_v45, %v4653_v47  ;;  %4107 = vst.msk [vmem:[#allocation3 + $0x138] sm:$0xff] %vm717_vm2, %v4043_v0  ;;  %v4041_v27 = vadd.f32 %v3977_v62, %v3832_v58  ;;  %v3985_v62 = vld [vmem:[#allocation3 + $0x168] sm:$0xff]  ;;  %v6192_v18 = vld [vmem:[#allocation2 + $0x15a] sm:$0xff] }
 0x2eb   :  { %v4651_v5 = vld [vmem:[#allocation3 + $0x108] sm:$0xff]  ;;  %v9170_v6 = vpop.f32.mrf.mxu1  ;;  %9401 = vmatmul.mubr.msk.bf16.gmra.mxu1 %vm717_vm2, %v6236_v63  ;;  %v6240_v63 = vpack.c.bf16 %v6186_v49, %v6185_v9  ;;  %v6194_v49 = vld [vmem:[#allocation2 + $0x172] sm:$0xff] }
 0x2ec   :  { %v9236_v52 = vpop.f32.mrf.mxu0  ;;  %9467 = vmatmul.mubr.msk.bf16.gmra.mxu0 %vm263_vm1, %v9642_v12  ;;  %4781 = vst.msk [vmem:[#allocation3 + $0x118] sm:$0xff] %vm717_vm2, %v4717_v7  ;;  %v4715_v11 = vadd.f32 %v4651_v5, %v4494_v3  ;;  %4105 = vst.msk [vmem:[#allocation3 + $0x128] sm:$0xff] %vm717_vm2, %v4041_v27  ;;  %v4046_v59 = vadd.f32 %v9170_v6, %v3982_v43  ;;  %9404 = vmatprep.mubr.msk.bf16.mxu1 %vm717_vm2, %v6237_v4  ;;  %v3990_v43 = vld [vmem:[#allocation3 + $0x190] sm:$0xff]  ;;  %v9646_v12 = vld [vmem:[%s11895_s0 + $0x48] sm:$0xff]  }
 0x2ed   :  { %9470 = vmatprep.mubr.msk.bf16.mxu0 %vm263_vm1, %v9643_v48  ;;  %v4656_v34 = vld [vmem:[#allocation3 + $0x130] sm:$0xff]  ;;  %v3845_v13 = vpop.f32.mrf.mxu1  ;;  %v6241_v4 = vpack.c.bf16 %v6188_v51, %v6187_v60  ;;  %v6195_v60 = vld [vmem:[#allocation2 + $0x182] sm:$0xff] }
 0x2ee   :  { %v4523_v16 = vpop.f32.mrf.mxu0  ;;  %4779 = vst.msk [vmem:[#allocation3 + $0x108] sm:$0xff] %vm717_vm2, %v4715_v11  ;;  %v4720_v8 = vadd.f32 %v9232_v31, %v4656_v34  ;;  %4110 = vst.msk [vmem:[#allocation3 + $0x150] sm:$0xff] %vm717_vm2, %v4046_v59  ;;  %v4044_v19 = vadd.f32 %v3980_v14, %v3845_v13  ;;  %v9647_v48 = vld [vmem:[%s11895_s0 + $0x50] sm:$0xff]   ;;  %v3988_v14 = vld [vmem:[#allocation3 + $0x180] sm:$0xff] }
 0x2ef   :  { %v4654_v39 = vld [vmem:[#allocation3 + $0x120] sm:$0xff]  ;;  %v9171_v17 = vpop.f32.mrf.mxu1  ;;  %v6193_v9 = vld [vmem:[#allocation2 + $0x16a] sm:$0xff] }
 0x2f0   :  { %v9237_v45 = vpop.f32.mrf.mxu0  ;;  %4784 = vst.msk [vmem:[#allocation3 + $0x130] sm:$0xff] %vm717_vm2, %v4720_v8  ;;  %v4718_v61 = vadd.f32 %v4654_v39, %v4507_v44  ;;  %4108 = vst.msk [vmem:[#allocation3 + $0x140] sm:$0xff] %vm717_vm2, %v4044_v19  ;;  %v4047_v21 = vadd.f32 %v9171_v17, %v3983_v36  ;;  %v3991_v36 = vld [vmem:[#allocation3 + $0x198] sm:$0xff]  ;;  %v6196_v51 = vld [vmem:[#allocation2 + $0x18a] sm:$0xff] }
 0x2f1   :  { %v4657_v22 = vld [vmem:[#allocation3 + $0x138] sm:$0xff]  ;;  %v3848_v2 = vpop.f32.mrf.mxu1 }
 0x2f2   :  { %v4526_v3 = vpop.f32.mrf.mxu0  ;;  %4782 = vst.msk [vmem:[#allocation3 + $0x120] sm:$0xff] %vm717_vm2, %v4718_v61  ;;  %v4721_v28 = vadd.f32 %v9233_v50, %v4657_v22  ;;  %4111 = vst.msk [vmem:[#allocation3 + $0x158] sm:$0xff] %vm717_vm2, %v4047_v21  ;;  %v4045_v29 = vadd.f32 %v3981_v23, %v3848_v2  ;;  %v3989_v23 = vld [vmem:[#allocation3 + $0x188] sm:$0xff] }
 0x2f3   :  { %v4655_v33 = vld [vmem:[#allocation3 + $0x128] sm:$0xff]  ;;  %v9174_v15 = vpop.f32.mrf.mxu1  ;;  %9405 = vmatmul.mubr.msk.bf16.gmra.mxu1 %vm717_vm2, %v6238_v54  ;;  %v6242_v54 = vpack.c.bf16 %v6190_v10, %v6189_v46 }
 0x2f4   :  { %v9240_v31 = vpop.f32.mrf.mxu0  ;;  %9471 = vmatmul.mubr.msk.bf16.gmra.mxu0 %vm263_vm1, %v9644_v56  ;;  %4785 = vst.msk [vmem:[#allocation3 + $0x138] sm:$0xff] %vm717_vm2, %v4721_v28  ;;  %v4719_v37 = vadd.f32 %v4655_v33, %v4510_v53  ;;  %4109 = vst.msk [vmem:[#allocation3 + $0x148] sm:$0xff] %vm717_vm2, %v4045_v29  ;;  %v4050_v38 = vadd.f32 %v9174_v15, %v3986_v35  ;;  %9408 = vmatprep.mubr.msk.bf16.mxu1 %vm717_vm2, %v6239_v25  ;;  %v3994_v35 = vld [vmem:[#allocation3 + $0x1b0] sm:$0xff]  ;;  %v9648_v56 = vld [vmem:[%s11895_s0 + $0x58] sm:$0xff]  }
 0x2f5   :  { %9474 = vmatprep.mubr.msk.bf16.mxu0 %vm263_vm1, %v9645_v55  ;;  %v4660_v32 = vld [vmem:[#allocation3 + $0x150] sm:$0xff]  ;;  %v3861_v40 = vpop.f32.mrf.mxu1  ;;  %v6243_v25 = vpack.c.bf16 %v6192_v18, %v6191_v24  ;;  %v9649_v55 = vld [vmem:[%s11895_s0 + $0x60] sm:$0xff]  }
 0x2f6   :  { %v4539_v44 = vpop.f32.mrf.mxu0  ;;  %4783 = vst.msk [vmem:[#allocation3 + $0x128] sm:$0xff] %vm717_vm2, %v4719_v37  ;;  %v4724_v20 = vadd.f32 %v9236_v52, %v4660_v32  ;;  %4114 = vst.msk [vmem:[#allocation3 + $0x170] sm:$0xff] %vm717_vm2, %v4050_v38  ;;  %v4048_v57 = vadd.f32 %v3984_v42, %v3861_v40  ;;  %v3992_v42 = vld [vmem:[#allocation3 + $0x1a0] sm:$0xff] }
 0x2f7   :  { %v4658_v26 = vld [vmem:[#allocation3 + $0x140] sm:$0xff]  ;;  %v9175_v1 = vpop.f32.mrf.mxu1 }
 0x2f8   :  { %v9241_v50 = vpop.f32.mrf.mxu0  ;;  %4788 = vst.msk [vmem:[#allocation3 + $0x150] sm:$0xff] %vm717_vm2, %v4724_v20  ;;  %v4722_v41 = vadd.f32 %v4658_v26, %v4523_v16  ;;  %4112 = vst.msk [vmem:[#allocation3 + $0x160] sm:$0xff] %vm717_vm2, %v4048_v57  ;;  %v4051_v0 = vadd.f32 %v9175_v1, %v3987_v30  ;;  %v3995_v30 = vld [vmem:[#allocation3 + $0x1b8] sm:$0xff]  ;;  %v6199_v24 = vld [vmem:[#allocation2 + $0x1e2] sm:$0xff] }
 0x2f9   :  { %v4661_v47 = vld [vmem:[#allocation3 + $0x158] sm:$0xff]  ;;  %v3864_v58 = vpop.f32.mrf.mxu1 }
 0x2fa   :  { %v4542_v53 = vpop.f32.mrf.mxu0  ;;  %4786 = vst.msk [vmem:[#allocation3 + $0x140] sm:$0xff] %vm717_vm2, %v4722_v41  ;;  %v4725_v7 = vadd.f32 %v9237_v45, %v4661_v47  ;;  %4115 = vst.msk [vmem:[#allocation3 + $0x178] sm:$0xff] %vm717_vm2, %v4051_v0  ;;  %v4049_v27 = vadd.f32 %v3985_v62, %v3864_v58  ;;  %v3993_v62 = vld [vmem:[#allocation3 + $0x1a8] sm:$0xff] }
 0x2fb   :  { %v4659_v5 = vld [vmem:[#allocation3 + $0x148] sm:$0xff]  ;;  %v9178_v6 = vpop.f32.mrf.mxu1  ;;  %9409 = vmatmul.mubr.msk.bf16.gmra.mxu1 %vm717_vm2, %v6240_v63  ;;  %v6244_v63 = vpack.c.bf16 %v6194_v49, %v6193_v9  ;;  %v6201_v9 = vld [vmem:[#allocation2 + $0x1fa] sm:$0xff] }
 0x2fc   :  { %v9244_v52 = vpop.f32.mrf.mxu0  ;;  %9475 = vmatmul.mubr.msk.bf16.gmra.mxu0 %vm263_vm1, %v9646_v12  ;;  %4789 = vst.msk [vmem:[#allocation3 + $0x158] sm:$0xff] %vm717_vm2, %v4725_v7  ;;  %v4723_v11 = vadd.f32 %v4659_v5, %v4526_v3  ;;  %4113 = vst.msk [vmem:[#allocation3 + $0x168] sm:$0xff] %vm717_vm2, %v4049_v27  ;;  %v4054_v59 = vadd.f32 %v9178_v6, %v3990_v43  ;;  %9412 = vmatprep.mubr.msk.bf16.mxu1 %vm717_vm2, %v6241_v4  ;;  %v3998_v43 = vld [vmem:[#allocation3 + $0x1d0] sm:$0xff]  ;;  %v9650_v12 = vld [vmem:[%s11895_s0 + $0x68] sm:$0xff]  }
 0x2fd   :  { %9478 = vmatprep.mubr.msk.bf16.mxu0 %vm263_vm1, %v9647_v48  ;;  %v4664_v34 = vld [vmem:[#allocation3 + $0x170] sm:$0xff]  ;;  %v3877_v13 = vpop.f32.mrf.mxu1  ;;  %v6245_v4 = vpack.c.bf16 %v6196_v51, %v6195_v60  ;;  %v6197_v48 = vld [vmem:[#allocation2 + $0x19a] sm:$0xff]  ;;  %v6202_v49 = vld [vmem:[#allocation2 + $0x202] sm:$0xff] }
 0x2fe   :  { %v4555_v16 = vpop.f32.mrf.mxu0  ;;  %4787 = vst.msk [vmem:[#allocation3 + $0x148] sm:$0xff] %vm717_vm2, %v4723_v11  ;;  %v4728_v8 = vadd.f32 %v9240_v31, %v4664_v34  ;;  %4118 = vst.msk [vmem:[#allocation3 + $0x190] sm:$0xff] %vm717_vm2, %v4054_v59  ;;  %v4052_v19 = vadd.f32 %v3988_v14, %v3877_v13  ;;  %v6198_v34 = vld [vmem:[#allocation2 + $0x1a2] sm:$0xff]  ;;  %v9651_v13 = vld [vmem:[%s11895_s0 + $0x70] sm:$0xff]  }
 0x2ff   :  { %v4662_v39 = vld [vmem:[#allocation3 + $0x160] sm:$0xff]  ;;  %v9179_v17 = vpop.f32.mrf.mxu1  ;;  %v6246_v18 = vpack.c.bf16 %v6198_v34, %v6197_v48  ;;  %v6203_v60 = vld [vmem:[#allocation2 + $0x212] sm:$0xff] }
 0x300   :  { %v9245_v45 = vpop.f32.mrf.mxu0  ;;  %4792 = vst.msk [vmem:[#allocation3 + $0x170] sm:$0xff] %vm717_vm2, %v4728_v8  ;;  %v4726_v61 = vadd.f32 %v4662_v39, %v4539_v44  ;;  %4116 = vst.msk [vmem:[#allocation3 + $0x180] sm:$0xff] %vm717_vm2, %v4052_v19  ;;  %v4055_v21 = vadd.f32 %v9179_v17, %v3991_v36  ;;  %v3996_v8 = vld [vmem:[#allocation3 + $0x1c0] sm:$0xff]  ;;  %v3999_v36 = vld [vmem:[#allocation3 + $0x1d8] sm:$0xff] }
 0x301   :  { %v4665_v22 = vld [vmem:[#allocation3 + $0x178] sm:$0xff]  ;;  %v3880_v2 = vpop.f32.mrf.mxu1  ;;  %v9655_v48 = vld [vmem:[%s11895_s0 + $0x90] sm:$0xff]  }
 0x302   :  { %v4558_v3 = vpop.f32.mrf.mxu0  ;;  %4790 = vst.msk [vmem:[#allocation3 + $0x160] sm:$0xff] %vm717_vm2, %v4726_v61  ;;  %v4729_v28 = vadd.f32 %v9241_v50, %v4665_v22  ;;  %4119 = vst.msk [vmem:[#allocation3 + $0x198] sm:$0xff] %vm717_vm2, %v4055_v21  ;;  %v4053_v29 = vadd.f32 %v3989_v23, %v3880_v2  ;;  %v6200_v61 = vld [vmem:[#allocation2 + $0x1ea] sm:$0xff]  ;;  %v6204_v51 = vld [vmem:[#allocation2 + $0x21a] sm:$0xff] }
 0x303   :  { %v4663_v33 = vld [vmem:[#allocation3 + $0x168] sm:$0xff]  ;;  %v9182_v15 = vpop.f32.mrf.mxu1  ;;  %9413 = vmatmul.mubr.msk.bf16.gmra.mxu1 %vm717_vm2, %v6242_v54 }
 0x304   :  { %v9248_v31 = vpop.f32.mrf.mxu0  ;;  %9479 = vmatmul.mubr.msk.bf16.gmra.mxu0 %vm263_vm1, %v9648_v56  ;;  %4793 = vst.msk [vmem:[#allocation3 + $0x178] sm:$0xff] %vm717_vm2, %v4729_v28  ;;  %v4727_v37 = vadd.f32 %v4663_v33, %v4542_v53  ;;  %4117 = vst.msk [vmem:[#allocation3 + $0x188] sm:$0xff] %vm717_vm2, %v4053_v29  ;;  %v4058_v38 = vadd.f32 %v9182_v15, %v3994_v35  ;;  %9416 = vmatprep.mubr.msk.bf16.mxu1 %vm717_vm2, %v6243_v25  ;;  %v4002_v35 = vld [vmem:[#allocation3 + $0x1f0] sm:$0xff]  ;;  %v9652_v56 = vld [vmem:[%s11895_s0 + $0x78] sm:$0xff]  }
 0x305   :  { %9482 = vmatprep.mubr.msk.bf16.mxu0 %vm263_vm1, %v9649_v55  ;;  %v4668_v32 = vld [vmem:[#allocation3 + $0x190] sm:$0xff]  ;;  %v3893_v40 = vpop.f32.mrf.mxu1  ;;  %v6247_v25 = vpack.c.bf16 %v6200_v61, %v6199_v24  ;;  %v9653_v55 = vld [vmem:[%s11895_s0 + $0x80] sm:$0xff]  }
 0x306   :  { %v4571_v44 = vpop.f32.mrf.mxu0  ;;  %4791 = vst.msk [vmem:[#allocation3 + $0x168] sm:$0xff] %vm717_vm2, %v4727_v37  ;;  %v4732_v20 = vadd.f32 %v9244_v52, %v4668_v32  ;;  %4122 = vst.msk [vmem:[#allocation3 + $0x1b0] sm:$0xff] %vm717_vm2, %v4058_v38  ;;  %v4056_v57 = vadd.f32 %v3992_v42, %v3893_v40  ;;  %v4000_v42 = vld [vmem:[#allocation3 + $0x1e0] sm:$0xff] }
 0x307   :  { %v4666_v26 = vld [vmem:[#allocation3 + $0x180] sm:$0xff]  ;;  %v9183_v1 = vpop.f32.mrf.mxu1 }
 0x308   :  { %v9249_v50 = vpop.f32.mrf.mxu0  ;;  %4796 = vst.msk [vmem:[#allocation3 + $0x190] sm:$0xff] %vm717_vm2, %v4732_v20  ;;  %v4730_v41 = vadd.f32 %v4666_v26, %v4555_v16  ;;  %4120 = vst.msk [vmem:[#allocation3 + $0x1a0] sm:$0xff] %vm717_vm2, %v4056_v57  ;;  %v4059_v0 = vadd.f32 %v9183_v1, %v3995_v30  ;;  %v4003_v30 = vld [vmem:[#allocation3 + $0x1f8] sm:$0xff]  ;;  %v6207_v24 = vld [vmem:[#allocation2 + $0x242] sm:$0xff] }
 0x309   :  { %v4669_v47 = vld [vmem:[#allocation3 + $0x198] sm:$0xff]  ;;  %v3896_v58 = vpop.f32.mrf.mxu1 }
 0x30a   :  { %v4574_v53 = vpop.f32.mrf.mxu0  ;;  %4794 = vst.msk [vmem:[#allocation3 + $0x180] sm:$0xff] %vm717_vm2, %v4730_v41  ;;  %v4733_v7 = vadd.f32 %v9245_v45, %v4669_v47  ;;  %4123 = vst.msk [vmem:[#allocation3 + $0x1b8] sm:$0xff] %vm717_vm2, %v4059_v0  ;;  %v4057_v27 = vadd.f32 %v3993_v62, %v3896_v58  ;;  %v4001_v62 = vld [vmem:[#allocation3 + $0x1e8] sm:$0xff] }
 0x30b   :  { %v4667_v5 = vld [vmem:[#allocation3 + $0x188] sm:$0xff]  ;;  %v9186_v6 = vpop.f32.mrf.mxu1  ;;  %9417 = vmatmul.mubr.msk.bf16.gmra.mxu1 %vm717_vm2, %v6244_v63  ;;  %v6248_v63 = vpack.c.bf16 %v6202_v49, %v6201_v9  ;;  %v6209_v9 = vld [vmem:[#allocation2 + $0x25a] sm:$0xff] }
 0x30c   :  { %v9252_v52 = vpop.f32.mrf.mxu0  ;;  %9483 = vmatmul.mubr.msk.bf16.gmra.mxu0 %vm263_vm1, %v9650_v12  ;;  %4797 = vst.msk [vmem:[#allocation3 + $0x198] sm:$0xff] %vm717_vm2, %v4733_v7  ;;  %v4731_v11 = vadd.f32 %v4667_v5, %v4558_v3  ;;  %4121 = vst.msk [vmem:[#allocation3 + $0x1a8] sm:$0xff] %vm717_vm2, %v4057_v27  ;;  %v4062_v59 = vadd.f32 %v9186_v6, %v3998_v43  ;;  %9420 = vmatprep.mubr.msk.bf16.mxu1 %vm717_vm2, %v6245_v4  ;;  %v3997_v3 = vld [vmem:[#allocation3 + $0x1c8] sm:$0xff]  ;;  %v5299_v43 = vld [vmem:[#allocation3 + $0x10] sm:$0xff] }
 0x30d   :  { %9486 = vmatprep.mubr.msk.bf16.mxu0 %vm263_vm1, %v9651_v13  ;;  %v4672_v14 = vld [vmem:[#allocation3 + $0x1b0] sm:$0xff]  ;;  %v3909_v16 = vpop.f32.mrf.mxu1  ;;  %v6249_v4 = vpack.c.bf16 %v6204_v51, %v6203_v60  ;;  %v9654_v12 = vld [vmem:[%s11895_s0 + $0x88] sm:$0xff]   ;;  %v6212_v51 = vld [vmem:[#allocation2 + $0x27a] sm:$0xff] }
 0x30e   :  { %v4587_v19 = vpop.f32.mrf.mxu0  ;;  %4795 = vst.msk [vmem:[#allocation3 + $0x188] sm:$0xff] %vm717_vm2, %v4731_v11  ;;  %v4736_v46 = vadd.f32 %v9248_v31, %v4672_v14  ;;  %4126 = vst.msk [vmem:[#allocation3 + $0x1d0] sm:$0xff] %vm717_vm2, %v4062_v59  ;;  %v4060_v10 = vadd.f32 %v3996_v8, %v3909_v16  ;;  %v5297_v14 = vld [vmem:[#allocation3] sm:$0xff]  ;;  %v6211_v60 = vld [vmem:[#allocation2 + $0x272] sm:$0xff] }
 0x30f   :  { %v4670_v39 = vld [vmem:[#allocation3 + $0x1a0] sm:$0xff]  ;;  %v9187_v17 = vpop.f32.mrf.mxu1 }
 0x310   :  { %v9253_v45 = vpop.f32.mrf.mxu0  ;;  %4800 = vst.msk [vmem:[#allocation3 + $0x1b0] sm:$0xff] %vm717_vm2, %v4736_v46  ;;  %v4734_v21 = vadd.f32 %v4670_v39, %v4571_v44  ;;  %4124 = vst.msk [vmem:[#allocation3 + $0x1c0] sm:$0xff] %vm717_vm2, %v4060_v10  ;;  %v4063_v22 = vadd.f32 %v9187_v17, %v3999_v36  ;;  %v6205_v46 = vld [vmem:[#allocation2 + $0x22a] sm:$0xff]  ;;  %v6206_v10 = vld [vmem:[#allocation2 + $0x232] sm:$0xff] }
 0x311   :  { %v4673_v2 = vld [vmem:[#allocation3 + $0x1b8] sm:$0xff]  ;;  %v3912_v23 = vpop.f32.mrf.mxu1  ;;  %v6210_v49 = vld [vmem:[#allocation2 + $0x262] sm:$0xff] }
 0x312   :  { %v4590_v54 = vpop.f32.mrf.mxu0  ;;  %4798 = vst.msk [vmem:[#allocation3 + $0x1a0] sm:$0xff] %vm717_vm2, %v4734_v21  ;;  %v4737_v28 = vadd.f32 %v9249_v50, %v4673_v2  ;;  %4127 = vst.msk [vmem:[#allocation3 + $0x1d8] sm:$0xff] %vm717_vm2, %v4063_v22  ;;  %v4061_v29 = vadd.f32 %v3997_v3, %v3912_v23  ;;  %v5300_v36 = vld [vmem:[#allocation3 + $0x18] sm:$0xff]  ;;  %v5298_v23 = vld [vmem:[#allocation3 + $0x8] sm:$0xff] }
 0x313   :  { %v4671_v33 = vld [vmem:[#allocation3 + $0x1a8] sm:$0xff]  ;;  %v9190_v15 = vpop.f32.mrf.mxu1  ;;  %9421 = vmatmul.mubr.msk.bf16.gmra.mxu1 %vm717_vm2, %v6246_v18 }
 0x314   :  { %v9256_v31 = vpop.f32.mrf.mxu0  ;;  %9487 = vmatmul.mubr.msk.bf16.gmra.mxu0 %vm263_vm1, %v9652_v56  ;;  %4801 = vst.msk [vmem:[#allocation3 + $0x1b8] sm:$0xff] %vm717_vm2, %v4737_v28  ;;  %v4735_v37 = vadd.f32 %v4671_v33, %v4574_v53  ;;  %4125 = vst.msk [vmem:[#allocation3 + $0x1c8] sm:$0xff] %vm717_vm2, %v4061_v29  ;;  %v4066_v38 = vadd.f32 %v9190_v15, %v4002_v35  ;;  %9424 = vmatprep.mubr.msk.bf16.mxu1 %vm717_vm2, %v6247_v25  ;;  %v6208_v18 = vld [vmem:[#allocation2 + $0x24a] sm:$0xff]  ;;  %v9656_v56 = vld [vmem:[%s11895_s0 + $0x98] sm:$0xff]  }
 0x315   :  { %9490 = vmatprep.mubr.msk.bf16.mxu0 %vm263_vm1, %v9653_v55  ;;  %v4676_v32 = vld [vmem:[#allocation3 + $0x1d0] sm:$0xff]  ;;  %v3925_v40 = vpop.f32.mrf.mxu1  ;;  %v6251_v25 = vpack.c.bf16 %v6208_v18, %v6207_v24  ;;  %v9657_v55 = vld [vmem:[%s11895_s0 + $0xa0] sm:$0xff]  }
 0x316   :  { %v4603_v44 = vpop.f32.mrf.mxu0  ;;  %4799 = vst.msk [vmem:[#allocation3 + $0x1a8] sm:$0xff] %vm717_vm2, %v4735_v37  ;;  %v4740_v20 = vadd.f32 %v9252_v52, %v4676_v32  ;;  %4130 = vst.msk [vmem:[#allocation3 + $0x1f0] sm:$0xff] %vm717_vm2, %v4066_v38  ;;  %v4064_v57 = vadd.f32 %v4000_v42, %v3925_v40  ;;  %v5303_v35 = vld [vmem:[#allocation3 + $0x30] sm:$0xff]  ;;  %v5301_v42 = vld [vmem:[#allocation3 + $0x20] sm:$0xff] }
 0x317   :  { %v4674_v26 = vld [vmem:[#allocation3 + $0x1c0] sm:$0xff]  ;;  %v9191_v1 = vpop.f32.mrf.mxu1  ;;  %v6216_v18 = vld [vmem:[#allocation2 + $0x2aa] sm:$0xff] }
 0x318   :  { %v9257_v50 = vpop.f32.mrf.mxu0  ;;  %4804 = vst.msk [vmem:[#allocation3 + $0x1d0] sm:$0xff] %vm717_vm2, %v4740_v20  ;;  %v4738_v41 = vadd.f32 %v4674_v26, %v4587_v19  ;;  %4128 = vst.msk [vmem:[#allocation3 + $0x1e0] sm:$0xff] %vm717_vm2, %v4064_v57  ;;  %v4067_v0 = vadd.f32 %v9191_v1, %v4003_v30  ;;  %v5304_v30 = vld [vmem:[#allocation3 + $0x38] sm:$0xff]  ;;  %v6215_v24 = vld [vmem:[#allocation2 + $0x2a2] sm:$0xff] }
 0x319   :  { %v4677_v47 = vld [vmem:[#allocation3 + $0x1d8] sm:$0xff]  ;;  %v3928_v58 = vpop.f32.mrf.mxu1 }
 0x31a   :  { %v4606_v53 = vpop.f32.mrf.mxu0  ;;  %4802 = vst.msk [vmem:[#allocation3 + $0x1c0] sm:$0xff] %vm717_vm2, %v4738_v41  ;;  %v4741_v7 = vadd.f32 %v9253_v45, %v4677_v47  ;;  %4131 = vst.msk [vmem:[#allocation3 + $0x1f8] sm:$0xff] %vm717_vm2, %v4067_v0  ;;  %v4065_v27 = vadd.f32 %v4001_v62, %v3928_v58  ;;  %v5302_v62 = vld [vmem:[#allocation3 + $0x28] sm:$0xff] }
 0x31b   :  { %v4675_v5 = vld [vmem:[#allocation3 + $0x1c8] sm:$0xff]  ;;  %v9262_v6 = vpop.f32.mrf.mxu1  ;;  %9425 = vmatmul.mubr.msk.bf16.gmra.mxu1 %vm717_vm2, %v6248_v63  ;;  %v6252_v63 = vpack.c.bf16 %v6210_v49, %v6209_v9  ;;  %v6217_v9 = vld [vmem:[#allocation2 + $0x2ba] sm:$0xff] }
 0x31c   :  { %v9328_v52 = vpop.f32.mrf.mxu0  ;;  %9491 = vmatmul.mubr.msk.bf16.gmra.mxu0 %vm263_vm1, %v9654_v12  ;;  %4805 = vst.msk [vmem:[#allocation3 + $0x1d8] sm:$0xff] %vm717_vm2, %v4741_v7  ;;  %v4739_v11 = vadd.f32 %v4675_v5, %v4590_v54  ;;  %4129 = vst.msk [vmem:[#allocation3 + $0x1e8] sm:$0xff] %vm717_vm2, %v4065_v27  ;;  %v5363_v59 = vadd.f32 %v9262_v6, %v5299_v43  ;;  %9428 = vmatprep.mubr.msk.bf16.mxu1 %vm717_vm2, %v6249_v4  ;;  %v5307_v43 = vld [vmem:[#allocation3 + $0x50] sm:$0xff]  ;;  %v9658_v12 = vld [vmem:[%s11895_s0 + $0xa8] sm:$0xff]  }
 0x31d   :  { %9494 = vmatprep.mubr.msk.bf16.mxu0 %vm263_vm1, %v9655_v48  ;;  %v4680_v34 = vld [vmem:[#allocation3 + $0x1f0] sm:$0xff]  ;;  %v5042_v13 = vpop.f32.mrf.mxu1  ;;  %v6250_v54 = vpack.c.bf16 %v6206_v10, %v6205_v46  ;;  %v6253_v4 = vpack.c.bf16 %v6212_v51, %v6211_v60  ;;  %v6218_v49 = vld [vmem:[#allocation2 + $0x2c2] sm:$0xff]  ;;  %v6220_v51 = vld [vmem:[#allocation2 + $0x2da] sm:$0xff] }
 0x31e   :  { %v5720_v16 = vpop.f32.mrf.mxu0  ;;  %4803 = vst.msk [vmem:[#allocation3 + $0x1c8] sm:$0xff] %vm717_vm2, %v4739_v11  ;;  %v4744_v8 = vadd.f32 %v9256_v31, %v4680_v34  ;;  %5427 = vst.msk [vmem:[#allocation3 + $0x10] sm:$0xff] %vm717_vm2, %v5363_v59  ;;  %v5361_v19 = vadd.f32 %v5297_v14, %v5042_v13  ;;  %v9659_v48 = vld [vmem:[%s11895_s0 + $0xb0] sm:$0xff]   ;;  %v5305_v14 = vld [vmem:[#allocation3 + $0x40] sm:$0xff] }
 0x31f   :  { %v4678_v39 = vld [vmem:[#allocation3 + $0x1e0] sm:$0xff]  ;;  %v9263_v17 = vpop.f32.mrf.mxu1  ;;  %v6213_v46 = vld [vmem:[#allocation2 + $0x28a] sm:$0xff]  ;;  %v6214_v10 = vld [vmem:[#allocation2 + $0x292] sm:$0xff] }
 0x320   :  { %v9329_v45 = vpop.f32.mrf.mxu0  ;;  %4808 = vst.msk [vmem:[#allocation3 + $0x1f0] sm:$0xff] %vm717_vm2, %v4744_v8  ;;  %v4742_v61 = vadd.f32 %v4678_v39, %v4603_v44  ;;  %5425 = vst.msk [vmem:[#allocation3] sm:$0xff] %vm717_vm2, %v5361_v19  ;;  %v5364_v21 = vadd.f32 %v9263_v17, %v5300_v36  ;;  %v5308_v36 = vld [vmem:[#allocation3 + $0x58] sm:$0xff] }
 0x321   :  { %v4681_v22 = vld [vmem:[#allocation3 + $0x1f8] sm:$0xff]  ;;  %v5045_v2 = vpop.f32.mrf.mxu1 }
 0x322   :  { %v5723_v3 = vpop.f32.mrf.mxu0  ;;  %4806 = vst.msk [vmem:[#allocation3 + $0x1e0] sm:$0xff] %vm717_vm2, %v4742_v61  ;;  %v4745_v28 = vadd.f32 %v9257_v50, %v4681_v22  ;;  %5428 = vst.msk [vmem:[#allocation3 + $0x18] sm:$0xff] %vm717_vm2, %v5364_v21  ;;  %v5362_v29 = vadd.f32 %v5298_v23, %v5045_v2  ;;  %v5306_v23 = vld [vmem:[#allocation3 + $0x48] sm:$0xff]  ;;  %v6219_v60 = vld [vmem:[#allocation2 + $0x2d2] sm:$0xff] }
 0x323   :  { %v4679_v33 = vld [vmem:[#allocation3 + $0x1e8] sm:$0xff]  ;;  %v9266_v15 = vpop.f32.mrf.mxu1  ;;  %9429 = vmatmul.mubr.msk.bf16.gmra.mxu1 %vm717_vm2, %v6250_v54  ;;  %v6254_v54 = vpack.c.bf16 %v6214_v10, %v6213_v46  ;;  %v6222_v10 = vld [vmem:[#allocation2 + $0x2f2] sm:$0xff] }
 0x324   :  { %v9332_v31 = vpop.f32.mrf.mxu0  ;;  %9495 = vmatmul.mubr.msk.bf16.gmra.mxu0 %vm263_vm1, %v9656_v56  ;;  %4809 = vst.msk [vmem:[#allocation3 + $0x1f8] sm:$0xff] %vm717_vm2, %v4745_v28  ;;  %v4743_v37 = vadd.f32 %v4679_v33, %v4606_v53  ;;  %5426 = vst.msk [vmem:[#allocation3 + $0x8] sm:$0xff] %vm717_vm2, %v5362_v29  ;;  %v5367_v38 = vadd.f32 %v9266_v15, %v5303_v35  ;;  %9432 = vmatprep.mubr.msk.bf16.mxu1 %vm717_vm2, %v6251_v25  ;;  %v5311_v35 = vld [vmem:[#allocation3 + $0x70] sm:$0xff]  ;;  %v9660_v56 = vld [vmem:[%s11895_s0 + $0xb8] sm:$0xff]  }
 0x325   :  { %9498 = vmatprep.mubr.msk.bf16.mxu0 %vm263_vm1, %v9657_v55  ;;  %v5977_v32 = vld [vmem:[#allocation3 + $0x10] sm:$0xff]  ;;  %v5058_v40 = vpop.f32.mrf.mxu1  ;;  %v6255_v25 = vpack.c.bf16 %v6216_v18, %v6215_v24  ;;  %v9661_v55 = vld [vmem:[%s11895_s0 + $0xc0] sm:$0xff]  }
 0x326   :  { %v5736_v44 = vpop.f32.mrf.mxu0  ;;  %4807 = vst.msk [vmem:[#allocation3 + $0x1e8] sm:$0xff] %vm717_vm2, %v4743_v37  ;;  %v6041_v20 = vadd.f32 %v9328_v52, %v5977_v32  ;;  %5431 = vst.msk [vmem:[#allocation3 + $0x30] sm:$0xff] %vm717_vm2, %v5367_v38  ;;  %v5365_v57 = vadd.f32 %v5301_v42, %v5058_v40  ;;  %v5309_v42 = vld [vmem:[#allocation3 + $0x60] sm:$0xff]  ;;  %v6221_v46 = vld [vmem:[#allocation2 + $0x2ea] sm:$0xff] }
 0x327   :  { %v5975_v26 = vld [vmem:[#allocation3] sm:$0xff]  ;;  %v9267_v1 = vpop.f32.mrf.mxu1  ;;  %v6224_v18 = vld [vmem:[#allocation2 + $0x30a] sm:$0xff] }
 0x328   :  { %v9333_v50 = vpop.f32.mrf.mxu0  ;;  %6105 = vst.msk [vmem:[#allocation3 + $0x10] sm:$0xff] %vm717_vm2, %v6041_v20  ;;  %v6039_v41 = vadd.f32 %v5975_v26, %v5720_v16  ;;  %5429 = vst.msk [vmem:[#allocation3 + $0x20] sm:$0xff] %vm717_vm2, %v5365_v57  ;;  %v5368_v0 = vadd.f32 %v9267_v1, %v5304_v30  ;;  %v5312_v30 = vld [vmem:[#allocation3 + $0x78] sm:$0xff]  ;;  %v6223_v24 = vld [vmem:[#allocation2 + $0x302] sm:$0xff] }
 0x329   :  { %v5978_v47 = vld [vmem:[#allocation3 + $0x18] sm:$0xff]  ;;  %v5061_v58 = vpop.f32.mrf.mxu1 }
 0x32a   :  { %v5739_v53 = vpop.f32.mrf.mxu0  ;;  %6103 = vst.msk [vmem:[#allocation3] sm:$0xff] %vm717_vm2, %v6039_v41  ;;  %v6042_v7 = vadd.f32 %v9329_v45, %v5978_v47  ;;  %5432 = vst.msk [vmem:[#allocation3 + $0x38] sm:$0xff] %vm717_vm2, %v5368_v0  ;;  %v5366_v27 = vadd.f32 %v5302_v62, %v5061_v58  ;;  %v5310_v62 = vld [vmem:[#allocation3 + $0x68] sm:$0xff] }
 0x32b   :  { %v5976_v5 = vld [vmem:[#allocation3 + $0x8] sm:$0xff]  ;;  %v9270_v6 = vpop.f32.mrf.mxu1  ;;  %9433 = vmatmul.mubr.msk.bf16.gmra.mxu1 %vm717_vm2, %v6252_v63  ;;  %v6256_v63 = vpack.c.bf16 %v6218_v49, %v6217_v9  ;;  %v6225_v9 = vld [vmem:[#allocation2 + $0x31a] sm:$0xff] }
 0x32c   :  { %v9336_v52 = vpop.f32.mrf.mxu0  ;;  %9499 = vmatmul.mubr.msk.bf16.gmra.mxu0 %vm263_vm1, %v9658_v12  ;;  %6106 = vst.msk [vmem:[#allocation3 + $0x18] sm:$0xff] %vm717_vm2, %v6042_v7  ;;  %v6040_v11 = vadd.f32 %v5976_v5, %v5723_v3  ;;  %5430 = vst.msk [vmem:[#allocation3 + $0x28] sm:$0xff] %vm717_vm2, %v5366_v27  ;;  %v5371_v59 = vadd.f32 %v9270_v6, %v5307_v43  ;;  %9436 = vmatprep.mubr.msk.bf16.mxu1 %vm717_vm2, %v6253_v4  ;;  %v5315_v43 = vld [vmem:[#allocation3 + $0x90] sm:$0xff]  ;;  %v9662_v12 = vld [vmem:[%s11895_s0 + $0xc8] sm:$0xff]  }
 0x32d   :  { %9502 = vmatprep.mubr.msk.bf16.mxu0 %vm263_vm1, %v9659_v48  ;;  %v5981_v34 = vld [vmem:[#allocation3 + $0x30] sm:$0xff]  ;;  %v5074_v13 = vpop.f32.mrf.mxu1  ;;  %v6257_v4 = vpack.c.bf16 %v6220_v51, %v6219_v60  ;;  %v6226_v49 = vld [vmem:[#allocation2 + $0x322] sm:$0xff]  ;;  %v6228_v51 = vld [vmem:[#allocation2 + $0x33a] sm:$0xff] }
 0x32e   :  { %v5752_v16 = vpop.f32.mrf.mxu0  ;;  %6104 = vst.msk [vmem:[#allocation3 + $0x8] sm:$0xff] %vm717_vm2, %v6040_v11  ;;  %v6045_v8 = vadd.f32 %v9332_v31, %v5981_v34  ;;  %5435 = vst.msk [vmem:[#allocation3 + $0x50] sm:$0xff] %vm717_vm2, %v5371_v59  ;;  %v5369_v19 = vadd.f32 %v5305_v14, %v5074_v13  ;;  %v9663_v48 = vld [vmem:[%s11895_s0 + $0xd0] sm:$0xff]   ;;  %v5313_v14 = vld [vmem:[#allocation3 + $0x80] sm:$0xff] }
 0x32f   :  { %v5979_v39 = vld [vmem:[#allocation3 + $0x20] sm:$0xff]  ;;  %v9271_v17 = vpop.f32.mrf.mxu1  ;;  %v6227_v60 = vld [vmem:[#allocation2 + $0x332] sm:$0xff] }
 0x330   :  { %v9337_v45 = vpop.f32.mrf.mxu0  ;;  %6109 = vst.msk [vmem:[#allocation3 + $0x30] sm:$0xff] %vm717_vm2, %v6045_v8  ;;  %v6043_v61 = vadd.f32 %v5979_v39, %v5736_v44  ;;  %5433 = vst.msk [vmem:[#allocation3 + $0x40] sm:$0xff] %vm717_vm2, %v5369_v19  ;;  %v5372_v21 = vadd.f32 %v9271_v17, %v5308_v36  ;;  %v5316_v36 = vld [vmem:[#allocation3 + $0x98] sm:$0xff] }
 0x331   :  { %v5982_v22 = vld [vmem:[#allocation3 + $0x38] sm:$0xff]  ;;  %v5077_v2 = vpop.f32.mrf.mxu1 }
 0x332   :  { %v5755_v3 = vpop.f32.mrf.mxu0  ;;  %6107 = vst.msk [vmem:[#allocation3 + $0x20] sm:$0xff] %vm717_vm2, %v6043_v61  ;;  %v6046_v28 = vadd.f32 %v9333_v50, %v5982_v22  ;;  %5436 = vst.msk [vmem:[#allocation3 + $0x58] sm:$0xff] %vm717_vm2, %v5372_v21  ;;  %v5370_v29 = vadd.f32 %v5306_v23, %v5077_v2  ;;  %v5314_v23 = vld [vmem:[#allocation3 + $0x88] sm:$0xff] }
 0x333   :  { %v5980_v33 = vld [vmem:[#allocation3 + $0x28] sm:$0xff]  ;;  %v9274_v15 = vpop.f32.mrf.mxu1  ;;  %9437 = vmatmul.mubr.msk.bf16.gmra.mxu1 %vm717_vm2, %v6254_v54  ;;  %v6258_v54 = vpack.c.bf16 %v6222_v10, %v6221_v46 }
 0x334   :  { %v9340_v31 = vpop.f32.mrf.mxu0  ;;  %9503 = vmatmul.mubr.msk.bf16.gmra.mxu0 %vm263_vm1, %v9660_v56  ;;  %6110 = vst.msk [vmem:[#allocation3 + $0x38] sm:$0xff] %vm717_vm2, %v6046_v28  ;;  %v6044_v37 = vadd.f32 %v5980_v33, %v5739_v53  ;;  %5434 = vst.msk [vmem:[#allocation3 + $0x48] sm:$0xff] %vm717_vm2, %v5370_v29  ;;  %v5375_v38 = vadd.f32 %v9274_v15, %v5311_v35  ;;  %9440 = vmatprep.mubr.msk.bf16.mxu1 %vm717_vm2, %v6255_v25  ;;  %v5319_v35 = vld [vmem:[#allocation3 + $0xb0] sm:$0xff]  ;;  %v9664_v56 = vld [vmem:[%s11895_s0 + $0xd8] sm:$0xff]  }
 0x335   :  { %9506 = vmatprep.mubr.msk.bf16.mxu0 %vm263_vm1, %v9661_v55  ;;  %v5985_v32 = vld [vmem:[#allocation3 + $0x50] sm:$0xff]  ;;  %v5090_v40 = vpop.f32.mrf.mxu1  ;;  %v6259_v25 = vpack.c.bf16 %v6224_v18, %v6223_v24  ;;  %v9665_v55 = vld [vmem:[%s11895_s0 + $0xe0] sm:$0xff]  }
 0x336   :  { %v5768_v44 = vpop.f32.mrf.mxu0  ;;  %6108 = vst.msk [vmem:[#allocation3 + $0x28] sm:$0xff] %vm717_vm2, %v6044_v37  ;;  %v6049_v20 = vadd.f32 %v9336_v52, %v5985_v32  ;;  %5439 = vst.msk [vmem:[#allocation3 + $0x70] sm:$0xff] %vm717_vm2, %v5375_v38  ;;  %v5373_v57 = vadd.f32 %v5309_v42, %v5090_v40  ;;  %v5317_v42 = vld [vmem:[#allocation3 + $0xa0] sm:$0xff] }
 0x337   :  { %v5983_v26 = vld [vmem:[#allocation3 + $0x40] sm:$0xff]  ;;  %v9275_v1 = vpop.f32.mrf.mxu1 }
 0x338   :  { %v9341_v50 = vpop.f32.mrf.mxu0  ;;  %6113 = vst.msk [vmem:[#allocation3 + $0x50] sm:$0xff] %vm717_vm2, %v6049_v20  ;;  %v6047_v41 = vadd.f32 %v5983_v26, %v5752_v16  ;;  %5437 = vst.msk [vmem:[#allocation3 + $0x60] sm:$0xff] %vm717_vm2, %v5373_v57  ;;  %v5376_v0 = vadd.f32 %v9275_v1, %v5312_v30  ;;  %v5320_v30 = vld [vmem:[#allocation3 + $0xb8] sm:$0xff] }
 0x339   :  { %v5986_v47 = vld [vmem:[#allocation3 + $0x58] sm:$0xff]  ;;  %v5093_v58 = vpop.f32.mrf.mxu1 }
 0x33a   :  { %v5771_v53 = vpop.f32.mrf.mxu0  ;;  %6111 = vst.msk [vmem:[#allocation3 + $0x40] sm:$0xff] %vm717_vm2, %v6047_v41  ;;  %v6050_v7 = vadd.f32 %v9337_v45, %v5986_v47  ;;  %5440 = vst.msk [vmem:[#allocation3 + $0x78] sm:$0xff] %vm717_vm2, %v5376_v0  ;;  %v5374_v27 = vadd.f32 %v5310_v62, %v5093_v58  ;;  %v5318_v62 = vld [vmem:[#allocation3 + $0xa8] sm:$0xff] }
 0x33b   :  { %v5984_v5 = vld [vmem:[#allocation3 + $0x48] sm:$0xff]  ;;  %v9278_v6 = vpop.f32.mrf.mxu1  ;;  %9441 = vmatmul.mubr.msk.bf16.gmra.mxu1 %vm717_vm2, %v6256_v63  ;;  %v6260_v63 = vpack.c.bf16 %v6226_v49, %v6225_v9 }
 0x33c   :  { %v9344_v52 = vpop.f32.mrf.mxu0  ;;  %9507 = vmatmul.mubr.msk.bf16.gmra.mxu0 %vm263_vm1, %v9662_v12  ;;  %6114 = vst.msk [vmem:[#allocation3 + $0x58] sm:$0xff] %vm717_vm2, %v6050_v7  ;;  %v6048_v11 = vadd.f32 %v5984_v5, %v5755_v3  ;;  %5438 = vst.msk [vmem:[#allocation3 + $0x68] sm:$0xff] %vm717_vm2, %v5374_v27  ;;  %v5379_v59 = vadd.f32 %v9278_v6, %v5315_v43  ;;  %9444 = vmatprep.mubr.msk.bf16.mxu1 %vm717_vm2, %v6257_v4  ;;  %v5323_v43 = vld [vmem:[#allocation3 + $0xd0] sm:$0xff]  ;;  %v9666_v12 = vld [vmem:[%s11895_s0 + $0xe8] sm:$0xff]  }
 0x33d   :  { %9510 = vmatprep.mubr.msk.bf16.mxu0 %vm263_vm1, %v9663_v48  ;;  %v5989_v34 = vld [vmem:[#allocation3 + $0x70] sm:$0xff]  ;;  %v5106_v13 = vpop.f32.mrf.mxu1  ;;  %v6261_v4 = vpack.c.bf16 %v6228_v51, %v6227_v60 }
 0x33e   :  { %v5784_v16 = vpop.f32.mrf.mxu0  ;;  %6112 = vst.msk [vmem:[#allocation3 + $0x48] sm:$0xff] %vm717_vm2, %v6048_v11  ;;  %v6053_v8 = vadd.f32 %v9340_v31, %v5989_v34  ;;  %5443 = vst.msk [vmem:[#allocation3 + $0x90] sm:$0xff] %vm717_vm2, %v5379_v59  ;;  %v5377_v19 = vadd.f32 %v5313_v14, %v5106_v13  ;;  %v6229_v48 = vld [vmem:[#allocation2 + $0x34a] sm:$0xff]  ;;  %v6230_v34 = vld [vmem:[#allocation2 + $0x352] sm:$0xff] }
 0x33f   :  { %v5987_v39 = vld [vmem:[#allocation3 + $0x60] sm:$0xff]  ;;  %v9279_v17 = vpop.f32.mrf.mxu1  ;;  %v9667_v13 = vld [vmem:[%s11895_s0 + $0xf0] sm:$0xff]  }
 0x340   :  { %v9345_v45 = vpop.f32.mrf.mxu0  ;;  %6117 = vst.msk [vmem:[#allocation3 + $0x70] sm:$0xff] %vm717_vm2, %v6053_v8  ;;  %v6051_v61 = vadd.f32 %v5987_v39, %v5768_v44  ;;  %5441 = vst.msk [vmem:[#allocation3 + $0x80] sm:$0xff] %vm717_vm2, %v5377_v19  ;;  %v5380_v21 = vadd.f32 %v9279_v17, %v5316_v36  ;;  %v5321_v8 = vld [vmem:[#allocation3 + $0xc0] sm:$0xff]  ;;  %v5324_v17 = vld [vmem:[#allocation3 + $0xd8] sm:$0xff] }
 0x341   :  { %v5990_v22 = vld [vmem:[#allocation3 + $0x78] sm:$0xff]  ;;  %v5109_v2 = vpop.f32.mrf.mxu1 }
 0x342   :  { %v5787_v3 = vpop.f32.mrf.mxu0  ;;  %6115 = vst.msk [vmem:[#allocation3 + $0x60] sm:$0xff] %vm717_vm2, %v6051_v61  ;;  %v6054_v28 = vadd.f32 %v9341_v50, %v5990_v22  ;;  %5444 = vst.msk [vmem:[#allocation3 + $0x98] sm:$0xff] %vm717_vm2, %v5380_v21  ;;  %v5378_v29 = vadd.f32 %v5314_v23, %v5109_v2  ;;  %v5322_v2 = vld [vmem:[#allocation3 + $0xc8] sm:$0xff] }
 0x343   :  { %v5988_v33 = vld [vmem:[#allocation3 + $0x68] sm:$0xff]  ;;  %v9282_v15 = vpop.f32.mrf.mxu1  ;;  %9445 = vmatmul.mubr.msk.bf16.gmra.mxu1 %vm717_vm2, %v6258_v54 }
 0x344   :  { %v9348_v31 = vpop.f32.mrf.mxu0  ;;  %9511 = vmatmul.mubr.msk.bf16.gmra.mxu0 %vm263_vm1, %v9664_v56  ;;  %6118 = vst.msk [vmem:[#allocation3 + $0x78] sm:$0xff] %vm717_vm2, %v6054_v28  ;;  %v6052_v37 = vadd.f32 %v5988_v33, %v5771_v53  ;;  %5442 = vst.msk [vmem:[#allocation3 + $0x88] sm:$0xff] %vm717_vm2, %v5378_v29  ;;  %v5383_v38 = vadd.f32 %v9282_v15, %v5319_v35  ;;  %9448 = vmatprep.mubr.msk.bf16.mxu1 %vm717_vm2, %v6259_v25  ;;  %v5327_v25 = vld [vmem:[#allocation3 + $0xf0] sm:$0xff]  ;;  %v9668_v15 = vld [vmem:[%s11895_s0 + $0xf8] sm:$0xff]  }
 0x345   :  { %9514 = vmatprep.mubr.msk.bf16.mxu0 %vm263_vm1, %v9665_v55  ;;  %v5993_v32 = vld [vmem:[#allocation3 + $0x90] sm:$0xff]  ;;  %v5122_v40 = vpop.f32.mrf.mxu1 }
 0x346   :  { %v5800_v44 = vpop.f32.mrf.mxu0  ;;  %6116 = vst.msk [vmem:[#allocation3 + $0x68] sm:$0xff] %vm717_vm2, %v6052_v37  ;;  %v6057_v20 = vadd.f32 %v9344_v52, %v5993_v32  ;;  %5447 = vst.msk [vmem:[#allocation3 + $0xb0] sm:$0xff] %vm717_vm2, %v5383_v38  ;;  %v5381_v57 = vadd.f32 %v5317_v42, %v5122_v40  ;;  %v5325_v38 = vld [vmem:[#allocation3 + $0xe0] sm:$0xff] }
 0x347   :  { %v5991_v26 = vld [vmem:[#allocation3 + $0x80] sm:$0xff]  ;;  %v9283_v1 = vpop.f32.mrf.mxu1 }
 0x348   :  { %v9349_v50 = vpop.f32.mrf.mxu0  ;;  %6121 = vst.msk [vmem:[#allocation3 + $0x90] sm:$0xff] %vm717_vm2, %v6057_v20  ;;  %v6055_v41 = vadd.f32 %v5991_v26, %v5784_v16  ;;  %5445 = vst.msk [vmem:[#allocation3 + $0xa0] sm:$0xff] %vm717_vm2, %v5381_v57  ;;  %v5384_v0 = vadd.f32 %v9283_v1, %v5320_v30  ;;  %v5328_v20 = vld [vmem:[#allocation3 + $0xf8] sm:$0xff]  ;;  %v5326_v1 = vld [vmem:[#allocation3 + $0xe8] sm:$0xff] }
 0x349   :  { %v5994_v47 = vld [vmem:[#allocation3 + $0x98] sm:$0xff]  ;;  %v5125_v58 = vpop.f32.mrf.mxu1 }
 0x34a   :  { %v5803_v53 = vpop.f32.mrf.mxu0  ;;  %6119 = vst.msk [vmem:[#allocation3 + $0x80] sm:$0xff] %vm717_vm2, %v6055_v41  ;;  %v6058_v7 = vadd.f32 %v9345_v45, %v5994_v47  ;;  %5448 = vst.msk [vmem:[#allocation3 + $0xb8] sm:$0xff] %vm717_vm2, %v5384_v0  ;;  %v5382_v27 = vadd.f32 %v5318_v62, %v5125_v58  ;;  %v6262_v45 = vpack.c.bf16 %v6230_v34, %v6229_v48  ;;  %v5331_v47 = vld [vmem:[#allocation3 + $0x110] sm:$0xff] }
 0x34b   :  { %v5992_v5 = vld [vmem:[#allocation3 + $0x88] sm:$0xff]  ;;  %v9286_v6 = vpop.f32.mrf.mxu1  ;;  %9449 = vmatmul.mubr.msk.bf16.gmra.mxu1 %vm717_vm2, %v6260_v63 }
 0x34c   :  { %v9352_v52 = vpop.f32.mrf.mxu0  ;;  %9515 = vmatmul.mubr.msk.bf16.gmra.mxu0 %vm263_vm1, %v9666_v12  ;;  %6122 = vst.msk [vmem:[#allocation3 + $0x98] sm:$0xff] %vm717_vm2, %v6058_v7  ;;  %v6056_v11 = vadd.f32 %v5992_v5, %v5787_v3  ;;  %5446 = vst.msk [vmem:[#allocation3 + $0xa8] sm:$0xff] %vm717_vm2, %v5382_v27  ;;  %v5387_v59 = vadd.f32 %v9286_v6, %v5323_v43  ;;  %9452 = vmatprep.mubr.msk.bf16.mxu1 %vm717_vm2, %v6261_v4  ;;  %v5329_v27 = vld [vmem:[#allocation3 + $0x100] sm:$0xff]  ;;  %v5332_v12 = vld [vmem:[#allocation3 + $0x118] sm:$0xff] }
 0x34d   :  { %9518 = vmatprep.mubr.msk.bf16.mxu0 %vm263_vm1, %v9667_v13  ;;  %v5997_v14 = vld [vmem:[#allocation3 + $0xb0] sm:$0xff]  ;;  %v5138_v16 = vpop.f32.mrf.mxu1 }
 0x34e   :  { %v5816_v19 = vpop.f32.mrf.mxu0  ;;  %6120 = vst.msk [vmem:[#allocation3 + $0x88] sm:$0xff] %vm717_vm2, %v6056_v11  ;;  %v6061_v46 = vadd.f32 %v9348_v31, %v5997_v14  ;;  %5451 = vst.msk [vmem:[#allocation3 + $0xd0] sm:$0xff] %vm717_vm2, %v5387_v59  ;;  %v5385_v10 = vadd.f32 %v5321_v8, %v5138_v16  ;;  %v5330_v14 = vld [vmem:[#allocation3 + $0x108] sm:$0xff] }
 0x34f   :  { %v5995_v24 = vld [vmem:[#allocation3 + $0xa0] sm:$0xff]  ;;  %v9287_v39 = vpop.f32.mrf.mxu1 }
 0x350   :  { %v9353_v36 = vpop.f32.mrf.mxu0  ;;  %6125 = vst.msk [vmem:[#allocation3 + $0xb0] sm:$0xff] %vm717_vm2, %v6061_v46  ;;  %v6059_v18 = vadd.f32 %v5995_v24, %v5800_v44  ;;  %5449 = vst.msk [vmem:[#allocation3 + $0xc0] sm:$0xff] %vm717_vm2, %v5385_v10  ;;  %v5388_v61 = vadd.f32 %v9287_v39, %v5324_v17  ;;  %v5335_v24 = vld [vmem:[#allocation3 + $0x130] sm:$0xff] }
 0x351   :  { %v5998_v21 = vld [vmem:[#allocation3 + $0xb8] sm:$0xff]  ;;  %v5141_v22 = vpop.f32.mrf.mxu1 }
 0x352   :  { %v5819_v23 = vpop.f32.mrf.mxu0  ;;  %6123 = vst.msk [vmem:[#allocation3 + $0xa0] sm:$0xff] %vm717_vm2, %v6059_v18  ;;  %v6062_v3 = vadd.f32 %v9349_v50, %v5998_v21  ;;  %5452 = vst.msk [vmem:[#allocation3 + $0xd8] sm:$0xff] %vm717_vm2, %v5388_v61  ;;  %v5386_v54 = vadd.f32 %v5322_v2, %v5141_v22  ;;  %v5333_v61 = vld [vmem:[#allocation3 + $0x120] sm:$0xff] }
 0x353   :  { %v5996_v28 = vld [vmem:[#allocation3 + $0xa8] sm:$0xff]  ;;  %v9290_v29 = vpop.f32.mrf.mxu1  ;;  %9453 = vmatmul.mubr.msk.bf16.gmra.mxu1 %vm717_vm2, %v6262_v45 }
 0x354   :  { %v9356_v33 = vpop.f32.mrf.mxu0  ;;  %9519 = vmatmul.mubr.msk.bf16.gmra.mxu0 %vm263_vm1, %v9668_v15  ;;  %6126 = vst.msk [vmem:[#allocation3 + $0xb8] sm:$0xff] %vm717_vm2, %v6062_v3  ;;  %v6060_v35 = vadd.f32 %v5996_v28, %v5803_v53  ;;  %5450 = vst.msk [vmem:[#allocation3 + $0xc8] sm:$0xff] %vm717_vm2, %v5386_v54  ;;  %v5391_v31 = vadd.f32 %v9290_v29, %v5327_v25  ;;  %v5336_v54 = vld [vmem:[#allocation3 + $0x138] sm:$0xff] }
 0x355   :  { %v6001_v56 = vld [vmem:[#allocation3 + $0xd0] sm:$0xff]  ;;  %v5154_v37 = vpop.f32.mrf.mxu1 }
 0x356   :  { %v5832_v55 = vpop.f32.mrf.mxu0  ;;  %6124 = vst.msk [vmem:[#allocation3 + $0xa8] sm:$0xff] %vm717_vm2, %v6060_v35  ;;  %v6065_v32 = vadd.f32 %v9352_v52, %v6001_v56  ;;  %5455 = vst.msk [vmem:[#allocation3 + $0xf0] sm:$0xff] %vm717_vm2, %v5391_v31  ;;  %v5389_v40 = vadd.f32 %v5325_v38, %v5154_v37  ;;  %v5334_v35 = vld [vmem:[#allocation3 + $0x128] sm:$0xff] }
 0x357   :  { %v5999_v42 = vld [vmem:[#allocation3 + $0xc0] sm:$0xff]  ;;  %v9291_v44 = vpop.f32.mrf.mxu1 }
 0x358   :  { %v9357_v57 = vpop.f32.mrf.mxu0  ;;  %6129 = vst.msk [vmem:[#allocation3 + $0xd0] sm:$0xff] %vm717_vm2, %v6065_v32  ;;  %v6063_v9 = vadd.f32 %v5999_v42, %v5816_v19  ;;  %5453 = vst.msk [vmem:[#allocation3 + $0xe0] sm:$0xff] %vm717_vm2, %v5389_v40  ;;  %v5392_v49 = vadd.f32 %v9291_v44, %v5328_v20  ;;  %v5339_v32 = vld [vmem:[#allocation3 + $0x150] sm:$0xff] }
 0x359   :  { %v6002_v60 = vld [vmem:[#allocation3 + $0xd8] sm:$0xff]  ;;  %v5157_v26 = vpop.f32.mrf.mxu1 }
 0x35a   :  { %v5835_v30 = vpop.f32.mrf.mxu0  ;;  %6127 = vst.msk [vmem:[#allocation3 + $0xc0] sm:$0xff] %vm717_vm2, %v6063_v9  ;;  %v6066_v50 = vadd.f32 %v9353_v36, %v6002_v60  ;;  %5456 = vst.msk [vmem:[#allocation3 + $0xf8] sm:$0xff] %vm717_vm2, %v5392_v49  ;;  %v5390_v51 = vadd.f32 %v5326_v1, %v5157_v26  ;;  %v5337_v9 = vld [vmem:[#allocation3 + $0x140] sm:$0xff] }
 0x35b   :  { %v6000_v41 = vld [vmem:[#allocation3 + $0xc8] sm:$0xff]  ;;  %v9294_v0 = vpop.f32.mrf.mxu1 }
 0x35c   :  { %v9360_v58 = vpop.f32.mrf.mxu0  ;;  %6130 = vst.msk [vmem:[#allocation3 + $0xd8] sm:$0xff] %vm717_vm2, %v6066_v50  ;;  %v6064_v62 = vadd.f32 %v6000_v41, %v5819_v23  ;;  %5454 = vst.msk [vmem:[#allocation3 + $0xe8] sm:$0xff] %vm717_vm2, %v5390_v51  ;;  %v5395_v53 = vadd.f32 %v9294_v0, %v5331_v47  ;;  %v5340_v50 = vld [vmem:[#allocation3 + $0x158] sm:$0xff] }
 0x35d   :  { %v6005_v63 = vld [vmem:[#allocation3 + $0xf0] sm:$0xff]  ;;  %v5170_v7 = vpop.f32.mrf.mxu1 }
 0x35e   :  { %v5848_v4 = vpop.f32.mrf.mxu0  ;;  %6128 = vst.msk [vmem:[#allocation3 + $0xc8] sm:$0xff] %vm717_vm2, %v6064_v62  ;;  %v6069_v5 = vadd.f32 %v9356_v33, %v6005_v63  ;;  %5459 = vst.msk [vmem:[#allocation3 + $0x110] sm:$0xff] %vm717_vm2, %v5395_v53  ;;  %v5393_v6 = vadd.f32 %v5329_v27, %v5170_v7  ;;  %v5338_v62 = vld [vmem:[#allocation3 + $0x148] sm:$0xff] }
 0x35f   :  { %v6003_v43 = vld [vmem:[#allocation3 + $0xe0] sm:$0xff]  ;;  %v9295_v52 = vpop.f32.mrf.mxu1 }
 0x360   :  { %v9361_v11 = vpop.f32.mrf.mxu0  ;;  %6133 = vst.msk [vmem:[#allocation3 + $0xf0] sm:$0xff] %vm717_vm2, %v6069_v5  ;;  %v6067_v59 = vadd.f32 %v6003_v43, %v5832_v55  ;;  %5457 = vst.msk [vmem:[#allocation3 + $0x100] sm:$0xff] %vm717_vm2, %v5393_v6  ;;  %v5396_v48 = vadd.f32 %v9295_v52, %v5332_v12  ;;  %v5343_v5 = vld [vmem:[#allocation3 + $0x170] sm:$0xff] }
 0x361   :  { %v6006_v34 = vld [vmem:[#allocation3 + $0xf8] sm:$0xff]  ;;  %v5173_v13 = vpop.f32.mrf.mxu1 }
 0x362   :  { %v5851_v16 = vpop.f32.mrf.mxu0  ;;  %6131 = vst.msk [vmem:[#allocation3 + $0xe0] sm:$0xff] %vm717_vm2, %v6067_v59  ;;  %v6070_v8 = vadd.f32 %v9357_v57, %v6006_v34  ;;  %5460 = vst.msk [vmem:[#allocation3 + $0x118] sm:$0xff] %vm717_vm2, %v5396_v48  ;;  %v5394_v19 = vadd.f32 %v5330_v14, %v5173_v13  ;;  %v5341_v59 = vld [vmem:[#allocation3 + $0x160] sm:$0xff] }
 0x363   :  { %v6004_v46 = vld [vmem:[#allocation3 + $0xe8] sm:$0xff]  ;;  %v9298_v10 = vpop.f32.mrf.mxu1 }
 0x364   :  { %v9364_v39 = vpop.f32.mrf.mxu0  ;;  %6134 = vst.msk [vmem:[#allocation3 + $0xf8] sm:$0xff] %vm717_vm2, %v6070_v8  ;;  %v6068_v17 = vadd.f32 %v6004_v46, %v5835_v30  ;;  %5458 = vst.msk [vmem:[#allocation3 + $0x108] sm:$0xff] %vm717_vm2, %v5394_v19  ;;  %v5399_v36 = vadd.f32 %v9298_v10, %v5335_v24  ;;  %v5344_v8 = vld [vmem:[#allocation3 + $0x178] sm:$0xff] }
 0x365   :  { %v6009_v45 = vld [vmem:[#allocation3 + $0x110] sm:$0xff]  ;;  %v5186_v18 = vpop.f32.mrf.mxu1 }
 0x366   :  { %v5864_v21 = vpop.f32.mrf.mxu0  ;;  %6132 = vst.msk [vmem:[#allocation3 + $0xe8] sm:$0xff] %vm717_vm2, %v6068_v17  ;;  %v6073_v22 = vadd.f32 %v9360_v58, %v6009_v45  ;;  %5463 = vst.msk [vmem:[#allocation3 + $0x130] sm:$0xff] %vm717_vm2, %v5399_v36  ;;  %v5397_v2 = vadd.f32 %v5333_v61, %v5186_v18  ;;  %v5342_v17 = vld [vmem:[#allocation3 + $0x168] sm:$0xff] }
 0x367   :  { %v6007_v23 = vld [vmem:[#allocation3 + $0x100] sm:$0xff]  ;;  %v9299_v3 = vpop.f32.mrf.mxu1 }
 0x368   :  { %v9365_v28 = vpop.f32.mrf.mxu0  ;;  %6137 = vst.msk [vmem:[#allocation3 + $0x110] sm:$0xff] %vm717_vm2, %v6073_v22  ;;  %v6071_v29 = vadd.f32 %v6007_v23, %v5848_v4  ;;  %5461 = vst.msk [vmem:[#allocation3 + $0x120] sm:$0xff] %vm717_vm2, %v5397_v2  ;;  %v5400_v25 = vadd.f32 %v9299_v3, %v5336_v54  ;;  %v5347_v22 = vld [vmem:[#allocation3 + $0x190] sm:$0xff] }
 0x369   :  { %v6010_v33 = vld [vmem:[#allocation3 + $0x118] sm:$0xff]  ;;  %v5189_v15 = vpop.f32.mrf.mxu1 }
 0x36a   :  { %v5867_v31 = vpop.f32.mrf.mxu0  ;;  %6135 = vst.msk [vmem:[#allocation3 + $0x100] sm:$0xff] %vm717_vm2, %v6071_v29  ;;  %v6074_v56 = vadd.f32 %v9361_v11, %v6010_v33  ;;  %5464 = vst.msk [vmem:[#allocation3 + $0x138] sm:$0xff] %vm717_vm2, %v5400_v25  ;;  %v5398_v37 = vadd.f32 %v5334_v35, %v5189_v15  ;;  %v5345_v29 = vld [vmem:[#allocation3 + $0x180] sm:$0xff] }
 0x36b   :  { %v6008_v38 = vld [vmem:[#allocation3 + $0x108] sm:$0xff]  ;;  %v9302_v55 = vpop.f32.mrf.mxu1 }
 0x36c   :  { %v9368_v40 = vpop.f32.mrf.mxu0  ;;  %6138 = vst.msk [vmem:[#allocation3 + $0x118] sm:$0xff] %vm717_vm2, %v6074_v56  ;;  %v6072_v42 = vadd.f32 %v6008_v38, %v5851_v16  ;;  %5462 = vst.msk [vmem:[#allocation3 + $0x128] sm:$0xff] %vm717_vm2, %v5398_v37  ;;  %v5403_v44 = vadd.f32 %v9302_v55, %v5339_v32  ;;  %v5348_v56 = vld [vmem:[#allocation3 + $0x198] sm:$0xff] }
 0x36d   :  { %v6013_v20 = vld [vmem:[#allocation3 + $0x130] sm:$0xff]  ;;  %v5202_v57 = vpop.f32.mrf.mxu1 }
 0x36e   :  { %v5880_v49 = vpop.f32.mrf.mxu0  ;;  %6136 = vst.msk [vmem:[#allocation3 + $0x108] sm:$0xff] %vm717_vm2, %v6072_v42  ;;  %v6077_v60 = vadd.f32 %v9364_v39, %v6013_v20  ;;  %5467 = vst.msk [vmem:[#allocation3 + $0x150] sm:$0xff] %vm717_vm2, %v5403_v44  ;;  %v5401_v26 = vadd.f32 %v5337_v9, %v5202_v57  ;;  %v5346_v42 = vld [vmem:[#allocation3 + $0x188] sm:$0xff] }
 0x36f   :  { %v6011_v1 = vld [vmem:[#allocation3 + $0x120] sm:$0xff]  ;;  %v9303_v30 = vpop.f32.mrf.mxu1 }
 0x370   :  { %v9369_v51 = vpop.f32.mrf.mxu0  ;;  %6141 = vst.msk [vmem:[#allocation3 + $0x130] sm:$0xff] %vm717_vm2, %v6077_v60  ;;  %v6075_v41 = vadd.f32 %v6011_v1, %v5864_v21  ;;  %5465 = vst.msk [vmem:[#allocation3 + $0x140] sm:$0xff] %vm717_vm2, %v5401_v26  ;;  %v5404_v0 = vadd.f32 %v9303_v30, %v5340_v50  ;;  %v5351_v60 = vld [vmem:[#allocation3 + $0x1b0] sm:$0xff] }
 0x371   :  { %v6014_v47 = vld [vmem:[#allocation3 + $0x138] sm:$0xff]  ;;  %v5205_v58 = vpop.f32.mrf.mxu1 }
 0x372   :  { %v5883_v53 = vpop.f32.mrf.mxu0  ;;  %6139 = vst.msk [vmem:[#allocation3 + $0x120] sm:$0xff] %vm717_vm2, %v6075_v41  ;;  %v6078_v63 = vadd.f32 %v9365_v28, %v6014_v47  ;;  %5468 = vst.msk [vmem:[#allocation3 + $0x158] sm:$0xff] %vm717_vm2, %v5404_v0  ;;  %v5402_v7 = vadd.f32 %v5338_v62, %v5205_v58  ;;  %v5349_v41 = vld [vmem:[#allocation3 + $0x1a0] sm:$0xff] }
 0x373   :  { %v6012_v27 = vld [vmem:[#allocation3 + $0x128] sm:$0xff]  ;;  %v9306_v4 = vpop.f32.mrf.mxu1 }
 0x374   :  { %v9372_v6 = vpop.f32.mrf.mxu0  ;;  %6142 = vst.msk [vmem:[#allocation3 + $0x138] sm:$0xff] %vm717_vm2, %v6078_v63  ;;  %v6076_v43 = vadd.f32 %v6012_v27, %v5867_v31  ;;  %5466 = vst.msk [vmem:[#allocation3 + $0x148] sm:$0xff] %vm717_vm2, %v5402_v7  ;;  %v5407_v52 = vadd.f32 %v9306_v4, %v5343_v5  ;;  %v5352_v63 = vld [vmem:[#allocation3 + $0x1b8] sm:$0xff] }
 0x375   :  { %v6017_v12 = vld [vmem:[#allocation3 + $0x150] sm:$0xff]  ;;  %v5218_v11 = vpop.f32.mrf.mxu1 }
 0x376   :  { %v5896_v48 = vpop.f32.mrf.mxu0  ;;  %6140 = vst.msk [vmem:[#allocation3 + $0x128] sm:$0xff] %vm717_vm2, %v6076_v43  ;;  %v6081_v34 = vadd.f32 %v9368_v40, %v6017_v12  ;;  %5471 = vst.msk [vmem:[#allocation3 + $0x170] sm:$0xff] %vm717_vm2, %v5407_v52  ;;  %v5405_v13 = vadd.f32 %v5341_v59, %v5218_v11  ;;  %v5350_v43 = vld [vmem:[#allocation3 + $0x1a8] sm:$0xff] }
 0x377   :  { %v6015_v14 = vld [vmem:[#allocation3 + $0x140] sm:$0xff]  ;;  %v9307_v16 = vpop.f32.mrf.mxu1 }
 0x378   :  { %v9373_v19 = vpop.f32.mrf.mxu0  ;;  %6145 = vst.msk [vmem:[#allocation3 + $0x150] sm:$0xff] %vm717_vm2, %v6081_v34  ;;  %v6079_v46 = vadd.f32 %v6015_v14, %v5880_v49  ;;  %5469 = vst.msk [vmem:[#allocation3 + $0x160] sm:$0xff] %vm717_vm2, %v5405_v13  ;;  %v5408_v10 = vadd.f32 %v9307_v16, %v5344_v8  ;;  %v5355_v34 = vld [vmem:[#allocation3 + $0x1d0] sm:$0xff] }
 0x379   :  { %v6018_v24 = vld [vmem:[#allocation3 + $0x158] sm:$0xff]  ;;  %v5221_v39 = vpop.f32.mrf.mxu1 }
 0x37a   :  { %v5899_v36 = vpop.f32.mrf.mxu0  ;;  %6143 = vst.msk [vmem:[#allocation3 + $0x140] sm:$0xff] %vm717_vm2, %v6079_v46  ;;  %v6082_v45 = vadd.f32 %v9369_v51, %v6018_v24  ;;  %5472 = vst.msk [vmem:[#allocation3 + $0x178] sm:$0xff] %vm717_vm2, %v5408_v10  ;;  %v5406_v18 = vadd.f32 %v5342_v17, %v5221_v39  ;;  %v5353_v46 = vld [vmem:[#allocation3 + $0x1c0] sm:$0xff] }
 0x37b   :  { %v6016_v61 = vld [vmem:[#allocation3 + $0x148] sm:$0xff]  ;;  %v9310_v21 = vpop.f32.mrf.mxu1 }
 0x37c   :  { %v9376_v2 = vpop.f32.mrf.mxu0  ;;  %6146 = vst.msk [vmem:[#allocation3 + $0x158] sm:$0xff] %vm717_vm2, %v6082_v45  ;;  %v6080_v23 = vadd.f32 %v6016_v61, %v5883_v53  ;;  %5470 = vst.msk [vmem:[#allocation3 + $0x168] sm:$0xff] %vm717_vm2, %v5406_v18  ;;  %v5411_v3 = vadd.f32 %v9310_v21, %v5347_v22  ;;  %v5356_v45 = vld [vmem:[#allocation3 + $0x1d8] sm:$0xff] }
 0x37d   :  { %v6021_v54 = vld [vmem:[#allocation3 + $0x170] sm:$0xff]  ;;  %v5234_v28 = vpop.f32.mrf.mxu1 }
 0x37e   :  { %v5912_v25 = vpop.f32.mrf.mxu0  ;;  %6144 = vst.msk [vmem:[#allocation3 + $0x148] sm:$0xff] %vm717_vm2, %v6080_v23  ;;  %v6085_v33 = vadd.f32 %v9372_v6, %v6021_v54  ;;  %5475 = vst.msk [vmem:[#allocation3 + $0x190] sm:$0xff] %vm717_vm2, %v5411_v3  ;;  %v5409_v15 = vadd.f32 %v5345_v29, %v5234_v28  ;;  %v5354_v23 = vld [vmem:[#allocation3 + $0x1c8] sm:$0xff] }
 0x37f   :  { %v6019_v35 = vld [vmem:[#allocation3 + $0x160] sm:$0xff]  ;;  %v9311_v31 = vpop.f32.mrf.mxu1 }
 0x380   :  { %v9377_v37 = vpop.f32.mrf.mxu0  ;;  %6149 = vst.msk [vmem:[#allocation3 + $0x170] sm:$0xff] %vm717_vm2, %v6085_v33  ;;  %v6083_v38 = vadd.f32 %v6019_v35, %v5896_v48  ;;  %5473 = vst.msk [vmem:[#allocation3 + $0x180] sm:$0xff] %vm717_vm2, %v5409_v15  ;;  %v5412_v55 = vadd.f32 %v9311_v31, %v5348_v56  ;;  %v5359_v33 = vld [vmem:[#allocation3 + $0x1f0] sm:$0xff] }
 0x381   :  { %v6022_v32 = vld [vmem:[#allocation3 + $0x178] sm:$0xff]  ;;  %v5237_v40 = vpop.f32.mrf.mxu1 }
 0x382   :  { %v5915_v44 = vpop.f32.mrf.mxu0  ;;  %6147 = vst.msk [vmem:[#allocation3 + $0x160] sm:$0xff] %vm717_vm2, %v6083_v38  ;;  %v6086_v20 = vadd.f32 %v9373_v19, %v6022_v32  ;;  %5476 = vst.msk [vmem:[#allocation3 + $0x198] sm:$0xff] %vm717_vm2, %v5412_v55  ;;  %v5410_v57 = vadd.f32 %v5346_v42, %v5237_v40 }
 0x383   :  { %v6020_v9 = vld [vmem:[#allocation3 + $0x168] sm:$0xff]  ;;  %v9314_v49 = vpop.f32.mrf.mxu1 }
 0x384   :  { %v9380_v26 = vpop.f32.mrf.mxu0  ;;  %6150 = vst.msk [vmem:[#allocation3 + $0x178] sm:$0xff] %vm717_vm2, %v6086_v20  ;;  %v6084_v1 = vadd.f32 %v6020_v9, %v5899_v36  ;;  %5474 = vst.msk [vmem:[#allocation3 + $0x188] sm:$0xff] %vm717_vm2, %v5410_v57  ;;  %v5415_v30 = vadd.f32 %v9314_v49, %v5351_v60  ;;  %v5358_v60 = vld [vmem:[#allocation3 + $0x1e8] sm:$0xff] }
 0x385   :  { %v6025_v50 = vld [vmem:[#allocation3 + $0x190] sm:$0xff]  ;;  %v5250_v51 = vpop.f32.mrf.mxu1 }
 0x386   :  { %v5928_v0 = vpop.f32.mrf.mxu0  ;;  %6148 = vst.msk [vmem:[#allocation3 + $0x168] sm:$0xff] %vm717_vm2, %v6084_v1  ;;  %v6089_v47 = vadd.f32 %v9376_v2, %v6025_v50  ;;  %5479 = vst.msk [vmem:[#allocation3 + $0x1b0] sm:$0xff] %vm717_vm2, %v5415_v30  ;;  %v5413_v58 = vadd.f32 %v5349_v41, %v5250_v51  ;;  %v6655_v41 = vld [vmem:[#allocation3 + $0x10] sm:$0xff] }
 0x387   :  { %v6023_v62 = vld [vmem:[#allocation3 + $0x180] sm:$0xff]  ;;  %v9315_v53 = vpop.f32.mrf.mxu1 }
 0x388   :  { %v9381_v7 = vpop.f32.mrf.mxu0  ;;  %6153 = vst.msk [vmem:[#allocation3 + $0x190] sm:$0xff] %vm717_vm2, %v6089_v47  ;;  %v6087_v27 = vadd.f32 %v6023_v62, %v5912_v25  ;;  %5477 = vst.msk [vmem:[#allocation3 + $0x1a0] sm:$0xff] %vm717_vm2, %v5413_v58  ;;  %v5416_v4 = vadd.f32 %v9315_v53, %v5352_v63  ;;  %v6653_v53 = vld [vmem:[#allocation3] sm:$0xff] }
 0x389   :  { %v6026_v5 = vld [vmem:[#allocation3 + $0x198] sm:$0xff]  ;;  %v5253_v6 = vpop.f32.mrf.mxu1 }
 0x38a   :  { %v5931_v52 = vpop.f32.mrf.mxu0  ;;  %6151 = vst.msk [vmem:[#allocation3 + $0x180] sm:$0xff] %vm717_vm2, %v6087_v27  ;;  %v6090_v12 = vadd.f32 %v9377_v37, %v6026_v5  ;;  %5480 = vst.msk [vmem:[#allocation3 + $0x1b8] sm:$0xff] %vm717_vm2, %v5416_v4  ;;  %v5414_v11 = vadd.f32 %v5350_v43, %v5253_v6  ;;  %v5357_v37 = vld [vmem:[#allocation3 + $0x1e0] sm:$0xff]  ;;  %v6656_v6 = vld [vmem:[#allocation3 + $0x18] sm:$0xff] }
 0x38b   :  { %v6024_v59 = vld [vmem:[#allocation3 + $0x188] sm:$0xff]  ;;  %v9318_v48 = vpop.f32.mrf.mxu1 }
 0x38c   :  { %v9384_v13 = vpop.f32.mrf.mxu0  ;;  %6154 = vst.msk [vmem:[#allocation3 + $0x198] sm:$0xff] %vm717_vm2, %v6090_v12  ;;  %v6088_v14 = vadd.f32 %v6024_v59, %v5915_v44  ;;  %5478 = vst.msk [vmem:[#allocation3 + $0x1a8] sm:$0xff] %vm717_vm2, %v5414_v11  ;;  %v5419_v16 = vadd.f32 %v9318_v48, %v5355_v34  ;;  %v5360_v44 = vld [vmem:[#allocation3 + $0x1f8] sm:$0xff]  ;;  %v6654_v59 = vld [vmem:[#allocation3 + $0x8] sm:$0xff] }
 0x38d   :  { %v6029_v8 = vld [vmem:[#allocation3 + $0x1b0] sm:$0xff]  ;;  %v5266_v19 = vpop.f32.mrf.mxu1 }
 0x38e   :  { %v5944_v10 = vpop.f32.mrf.mxu0  ;;  %6152 = vst.msk [vmem:[#allocation3 + $0x188] sm:$0xff] %vm717_vm2, %v6088_v14  ;;  %v6093_v24 = vadd.f32 %v9380_v26, %v6029_v8  ;;  %5483 = vst.msk [vmem:[#allocation3 + $0x1d0] sm:$0xff] %vm717_vm2, %v5419_v16  ;;  %v5417_v39 = vadd.f32 %v5353_v46, %v5266_v19  ;;  %v6659_v8 = vld [vmem:[#allocation3 + $0x30] sm:$0xff] }
 0x38f   :  { %v6027_v17 = vld [vmem:[#allocation3 + $0x1a0] sm:$0xff]  ;;  %v9319_v36 = vpop.f32.mrf.mxu1 }
 0x390   :  { %v9385_v18 = vpop.f32.mrf.mxu0  ;;  %6157 = vst.msk [vmem:[#allocation3 + $0x1b0] sm:$0xff] %vm717_vm2, %v6093_v24  ;;  %v6091_v61 = vadd.f32 %v6027_v17, %v5928_v0  ;;  %5481 = vst.msk [vmem:[#allocation3 + $0x1c0] sm:$0xff] %vm717_vm2, %v5417_v39  ;;  %v5420_v21 = vadd.f32 %v9319_v36, %v5356_v45  ;;  %v6657_v24 = vld [vmem:[#allocation3 + $0x20] sm:$0xff]  ;;  %v6660_v36 = vld [vmem:[#allocation3 + $0x38] sm:$0xff] }
 0x391   :  { %v6030_v22 = vld [vmem:[#allocation3 + $0x1b8] sm:$0xff]  ;;  %v5269_v2 = vpop.f32.mrf.mxu1 }
 0x392   :  { %6155 = vst.msk [vmem:[#allocation3 + $0x1a0] sm:$0xff] %vm717_vm2, %v6091_v61  ;;  %v6094_v3 = vadd.f32 %v9381_v7, %v6030_v22  ;;  %5484 = vst.msk [vmem:[#allocation3 + $0x1d8] sm:$0xff] %vm717_vm2, %v5420_v21  ;;  %v5418_v54 = vadd.f32 %v5354_v23, %v5269_v2  ;;  %v5947_v29 = vpop.f32.mrf.mxu0  ;;  %v11508_v61 = vld [vmem:[%s11899_s4] ss:$0 sm:$0xff]  ;;  %v6658_v2 = vld [vmem:[#allocation3 + $0x28] sm:$0xff] }
 0x393   :  { %v6028_v28 = vld [vmem:[#allocation3 + $0x1a8] sm:$0xff]  ;;  %v9322_v25 = vpop.f32.mrf.mxu1 }
 0x394   :  { %6158 = vst.msk [vmem:[#allocation3 + $0x1b8] sm:$0xff] %vm717_vm2, %v6094_v3  ;;  %v6092_v15 = vadd.f32 %v6028_v28, %v5931_v52  ;;  %5482 = vst.msk [vmem:[#allocation3 + $0x1c8] sm:$0xff] %vm717_vm2, %v5418_v54  ;;  %v5423_v35 = vadd.f32 %v9322_v25, %v5359_v33  ;;  %v9388_v38 = vpop.f32.mrf.mxu0  ;;  %v6663_v25 = vld [vmem:[#allocation3 + $0x50] sm:$0xff] }
 0x395   :  { %v6033_v31 = vld [vmem:[#allocation3 + $0x1d0] sm:$0xff]  ;;  %v5282_v56 = vpop.f32.mrf.mxu1 }
 0x396   :  { %6156 = vst.msk [vmem:[#allocation3 + $0x1a8] sm:$0xff] %vm717_vm2, %v6092_v15  ;;  %v6097_v55 = vadd.f32 %v9384_v13, %v6033_v31  ;;  %5487 = vst.msk [vmem:[#allocation3 + $0x1f0] sm:$0xff] %vm717_vm2, %v5423_v35  ;;  %v5421_v32 = vadd.f32 %v5357_v37, %v5282_v56  ;;  %v5960_v26 = vpop.f32.mrf.mxu0  ;;  %v6661_v37 = vld [vmem:[#allocation3 + $0x40] sm:$0xff] }
 0x397   :  { %v6031_v40 = vld [vmem:[#allocation3 + $0x1c0] sm:$0xff]  ;;  %v9323_v42 = vpop.f32.mrf.mxu1 }
 0x398   :  { %6161 = vst.msk [vmem:[#allocation3 + $0x1d0] sm:$0xff] %vm717_vm2, %v6097_v55  ;;  %v6095_v20 = vadd.f32 %v6031_v40, %v5944_v10  ;;  %5485 = vst.msk [vmem:[#allocation3 + $0x1e0] sm:$0xff] %vm717_vm2, %v5421_v32  ;;  %v5424_v57 = vadd.f32 %v9323_v42, %v5360_v44  ;;  %v9389_v63 = vpop.f32.mrf.mxu0  ;;  %v6664_v44 = vld [vmem:[#allocation3 + $0x58] sm:$0xff] }
 0x399   :  { %v6034_v9 = vld [vmem:[#allocation3 + $0x1d8] sm:$0xff]  ;;  %v5285_v49 = vpop.f32.mrf.mxu1 }
 0x39a   :  { %6159 = vst.msk [vmem:[#allocation3 + $0x1c0] sm:$0xff] %vm717_vm2, %v6095_v20  ;;  %v6098_v1 = vadd.f32 %v9385_v18, %v6034_v9  ;;  %5488 = vst.msk [vmem:[#allocation3 + $0x1f8] sm:$0xff] %vm717_vm2, %v5424_v57  ;;  %v5422_v30 = vadd.f32 %v5358_v60, %v5285_v49  ;;  %v5963_v48 = vpop.f32.mrf.mxu0 }
 0x39b   :  { %v6032_v50 = vld [vmem:[#allocation3 + $0x1c8] sm:$0xff]  ;;  %v9394_v51 = vpop.f32.mrf.mxu1 }
 0x39c   :  { %6162 = vst.msk [vmem:[#allocation3 + $0x1d8] sm:$0xff] %vm717_vm2, %v6098_v1  ;;  %v6096_v0 = vadd.f32 %v6032_v50, %v5947_v29  ;;  %5486 = vst.msk [vmem:[#allocation3 + $0x1e8] sm:$0xff] %vm717_vm2, %v5422_v30  ;;  %v6719_v47 = vadd.f32 %v9394_v51, %v6655_v41  ;;  %v6662_v1 = vld [vmem:[#allocation3 + $0x48] sm:$0xff] }
 0x39d   :  { %v6037_v58 = vld [vmem:[#allocation3 + $0x1f0] sm:$0xff]  ;;  %v6398_v62 = vpop.f32.mrf.mxu1 }
 0x39e   :  { %6160 = vst.msk [vmem:[#allocation3 + $0x1c8] sm:$0xff] %vm717_vm2, %v6096_v0  ;;  %6783 = vst.msk [vmem:[#allocation3 + $0x10] sm:$0xff] %vm717_vm2, %v6719_v47  ;;  %v6101_v7 = vadd.f32 %v9388_v38, %v6037_v58  ;;  %v6717_v27 = vadd.f32 %v6653_v53, %v6398_v62  ;;  %v6667_v58 = vld [vmem:[#allocation3 + $0x70] sm:$0xff] }
 0x39f   :  { %v6035_v4 = vld [vmem:[#allocation3 + $0x1e0] sm:$0xff]  ;;  %v9395_v5 = vpop.f32.mrf.mxu1 }
 0x3a0   :  { %6165 = vst.msk [vmem:[#allocation3 + $0x1f0] sm:$0xff] %vm717_vm2, %v6101_v7  ;;  %6781 = vst.msk [vmem:[#allocation3] sm:$0xff] %vm717_vm2, %v6717_v27  ;;  %v6099_v43 = vadd.f32 %v6035_v4, %v5960_v26  ;;  %v6720_v52 = vadd.f32 %v9395_v5, %v6656_v6  ;;  %v6665_v4 = vld [vmem:[#allocation3 + $0x60] sm:$0xff] }
 0x3a1   :  { %v6038_v12 = vld [vmem:[#allocation3 + $0x1f8] sm:$0xff]  ;;  %v6401_v11 = vpop.f32.mrf.mxu1 }
 0x3a2   :  { %6163 = vst.msk [vmem:[#allocation3 + $0x1e0] sm:$0xff] %vm717_vm2, %v6099_v43  ;;  %6784 = vst.msk [vmem:[#allocation3 + $0x18] sm:$0xff] %vm717_vm2, %v6720_v52  ;;  %v6102_v34 = vadd.f32 %v9389_v63, %v6038_v12  ;;  %v6718_v13 = vadd.f32 %v6654_v59, %v6401_v11  ;;  %v6668_v11 = vld [vmem:[#allocation3 + $0x78] sm:$0xff] }
 0x3a3   :  { %v6036_v14 = vld [vmem:[#allocation3 + $0x1e8] sm:$0xff]  ;;  %v9398_v16 = vpop.f32.mrf.mxu1 }
 0x3a4   :  { %6166 = vst.msk [vmem:[#allocation3 + $0x1f8] sm:$0xff] %vm717_vm2, %v6102_v34  ;;  %6782 = vst.msk [vmem:[#allocation3 + $0x8] sm:$0xff] %vm717_vm2, %v6718_v13  ;;  %v6100_v19 = vadd.f32 %v6036_v14, %v5963_v48  ;;  %v6723_v46 = vadd.f32 %v9398_v16, %v6659_v8  ;;  %v6666_v8 = vld [vmem:[#allocation3 + $0x68] sm:$0xff] }
 0x3a5   :  { %v6414_v10 = vpop.f32.mrf.mxu1  ;;  %v6847_v21 = vld [vmem:[#allocation3 + $0x10] sm:$0xff] }
 0x3a6   :  { %6164 = vst.msk [vmem:[#allocation3 + $0x1e8] sm:$0xff] %vm717_vm2, %v6100_v19  ;;  %6787 = vst.msk [vmem:[#allocation3 + $0x30] sm:$0xff] %vm717_vm2, %v6723_v46  ;;  %v6721_v39 = vadd.f32 %v6657_v24, %v6414_v10  ;;  %v6918_v15 = vadd.f32 %v11508_v61, %v6847_v21 }
 0x3a7   :  { %v9399_v17 = vpop.f32.mrf.mxu1  ;;  %v6845_v45 = vld [vmem:[#allocation3] sm:$0xff] }
 0x3a8   :  { %6785 = vst.msk [vmem:[#allocation3 + $0x20] sm:$0xff] %vm717_vm2, %v6721_v39  ;;  %v6724_v18 = vadd.f32 %v9399_v17, %v6660_v36  ;;  %v6916_v54 = vadd.f32 %v11508_v61, %v6845_v45  ;;  %v6982_v20 = vmax.f32 %v6918_v15, 0.0  ;;  %v6671_v36 = vld [vmem:[#allocation3 + $0x90] sm:$0xff] }
 0x3a9   :  { %v6417_v22 = vpop.f32.mrf.mxu1  ;;  %v6848_v23 = vld [vmem:[#allocation3 + $0x18] sm:$0xff] }
 0x3aa   :  { %6788 = vst.msk [vmem:[#allocation3 + $0x38] sm:$0xff] %vm717_vm2, %v6724_v18  ;;  %v6722_v3 = vadd.f32 %v6658_v2, %v6417_v22  ;;  %v6919_v28 = vadd.f32 %v11508_v61, %v6848_v23  ;;  %v6980_v32 = vmax.f32 %v6916_v54, 0.0  ;;  %v6669_v23 = vld [vmem:[#allocation3 + $0x80] sm:$0xff] }
 0x3ab   :  { %v9402_v29 = vpop.f32.mrf.mxu1  ;;  %v6846_v33 = vld [vmem:[#allocation3 + $0x8] sm:$0xff] }
 0x3ac   :  { %6786 = vst.msk [vmem:[#allocation3 + $0x28] sm:$0xff] %vm717_vm2, %v6722_v3  ;;  %v6727_v35 = vadd.f32 %v9402_v29, %v6663_v25  ;;  %v6917_v31 = vadd.f32 %v11508_v61, %v6846_v33  ;;  %v6983_v38 = vmax.f32 %v6919_v28, 0.0  ;;  %v6672_v33 = vld [vmem:[#allocation3 + $0x98] sm:$0xff] }
 0x3ad   :  { %v6430_v56 = vpop.f32.mrf.mxu1  ;;  %v6851_v60 = vld [vmem:[#allocation3 + $0x30] sm:$0xff] }
 0x3ae   :  { %6791 = vst.msk [vmem:[#allocation3 + $0x50] sm:$0xff] %vm717_vm2, %v6727_v35  ;;  %v6725_v55 = vadd.f32 %v6661_v37, %v6430_v56  ;;  %v6981_v40 = vmax.f32 %v6917_v31, 0.0  ;;  %v7045_v30 = vpack.c.bf16 %v6983_v38, %v6982_v20  ;;  %v6922_v53 = vadd.f32 %v11508_v61, %v6851_v60 }
 0x3af   :  { %v9403_v42 = vpop.f32.mrf.mxu1  ;;  %v6849_v57 = vld [vmem:[#allocation3 + $0x20] sm:$0xff] }
 0x3b0   :  { %6789 = vst.msk [vmem:[#allocation3 + $0x40] sm:$0xff] %vm717_vm2, %v6725_v55  ;;  %v6728_v9 = vadd.f32 %v9403_v42, %v6664_v44  ;;  %v7044_v49 = vpack.c.bf16 %v6981_v40, %v6980_v32  ;;  %v6920_v41 = vadd.f32 %v11508_v61, %v6849_v57  ;;  %v6986_v59 = vmax.f32 %v6922_v53, 0.0  ;;  %v6670_v55 = vld [vmem:[#allocation3 + $0x88] sm:$0xff] }
 0x3b1   :  { %v6433_v26 = vpop.f32.mrf.mxu1  ;;  %v6852_v50 = vld [vmem:[#allocation3 + $0x38] sm:$0xff] }
 0x3b2   :  { %6792 = vst.msk [vmem:[#allocation3 + $0x58] sm:$0xff] %vm717_vm2, %v6728_v9  ;;  %v6726_v51 = vadd.f32 %v6662_v1, %v6433_v26  ;;  %9524 = vmatprep.mubr.msk.bf16.mxu1 %vm717_vm2, %v7044_v49  ;;  %v6923_v0 = vadd.f32 %v11508_v61, %v6852_v50  ;;  %v6984_v43 = vmax.f32 %v6920_v41, 0.0  ;;  %v6675_v9 = vld [vmem:[#allocation3 + $0xb0] sm:$0xff]  ;;  %v6673_v50 = vld [vmem:[#allocation3 + $0xa0] sm:$0xff] }
 0x3b3   :  { %v9406_v47 = vpop.f32.mrf.mxu1  ;;  %9525 = vmatmul.mubr.msk.bf16.vlgmr.msra.gmra.mxu1 %vm717_vm2, %v7045_v30  ;;  %v6850_v62 = vld [vmem:[#allocation3 + $0x28] sm:$0xff] }
 0x3b4   :  { %6790 = vst.msk [vmem:[#allocation3 + $0x48] sm:$0xff] %vm717_vm2, %v6726_v51  ;;  %v6731_v63 = vadd.f32 %v9406_v47, %v6667_v58  ;;  %v6921_v7 = vadd.f32 %v11508_v61, %v6850_v62  ;;  %v6987_v5 = vmax.f32 %v6923_v0, 0.0  ;;  %v6676_v62 = vld [vmem:[#allocation3 + $0xb8] sm:$0xff] }
 0x3b5   :  { %v6446_v27 = vpop.f32.mrf.mxu1  ;;  %v6855_v14 = vld [vmem:[#allocation3 + $0x50] sm:$0xff] }
 0x3b6   :  { %6795 = vst.msk [vmem:[#allocation3 + $0x70] sm:$0xff] %vm717_vm2, %v6731_v63  ;;  %v6729_v6 = vadd.f32 %v6665_v4, %v6446_v27  ;;  %v6985_v52 = vmax.f32 %v6921_v7, 0.0  ;;  %v7047_v19 = vpack.c.bf16 %v6987_v5, %v6986_v59  ;;  %v6926_v18 = vadd.f32 %v11508_v61, %v6855_v14 }
 0x3b7   :  { %v9407_v12 = vpop.f32.mrf.mxu1  ;;  %v6853_v48 = vld [vmem:[#allocation3 + $0x40] sm:$0xff] }
 0x3b8   :  { %6793 = vst.msk [vmem:[#allocation3 + $0x60] sm:$0xff] %vm717_vm2, %v6729_v6  ;;  %v6732_v34 = vadd.f32 %v9407_v12, %v6668_v11  ;;  %v7046_v13 = vpack.c.bf16 %v6985_v52, %v6984_v43  ;;  %v6924_v24 = vadd.f32 %v11508_v61, %v6853_v48  ;;  %v6990_v15 = vmax.f32 %v6926_v18, 0.0  ;;  %v6674_v6 = vld [vmem:[#allocation3 + $0xa8] sm:$0xff] }
 0x3b9   :  { %v6449_v16 = vpop.f32.mrf.mxu1  ;;  %v6856_v46 = vld [vmem:[#allocation3 + $0x58] sm:$0xff] }
 0x3ba   :  { %6796 = vst.msk [vmem:[#allocation3 + $0x78] sm:$0xff] %vm717_vm2, %v6732_v34  ;;  %v6730_v10 = vadd.f32 %v6666_v8, %v6449_v16  ;;  %9528 = vmatprep.mubr.msk.bf16.mxu1 %vm717_vm2, %v7046_v13  ;;  %v6927_v39 = vadd.f32 %v11508_v61, %v6856_v46  ;;  %v6988_v28 = vmax.f32 %v6924_v24, 0.0  ;;  %v6679_v34 = vld [vmem:[#allocation3 + $0xd0] sm:$0xff]  ;;  %v6677_v46 = vld [vmem:[#allocation3 + $0xc0] sm:$0xff] }
 0x3bb   :  { %v9410_v17 = vpop.f32.mrf.mxu1  ;;  %9529 = vmatmul.mubr.msk.bf16.gmra.mxu1 %vm717_vm2, %v7047_v19  ;;  %v6854_v45 = vld [vmem:[#allocation3 + $0x48] sm:$0xff] }
 0x3bc   :  { %6794 = vst.msk [vmem:[#allocation3 + $0x68] sm:$0xff] %vm717_vm2, %v6730_v10  ;;  %v6735_v21 = vadd.f32 %v9410_v17, %v6671_v36  ;;  %v6925_v22 = vadd.f32 %v11508_v61, %v6854_v45  ;;  %v6991_v3 = vmax.f32 %v6927_v39, 0.0  ;;  %v6680_v45 = vld [vmem:[#allocation3 + $0xd8] sm:$0xff] }
 0x3bd   :  { %v6462_v2 = vpop.f32.mrf.mxu1  ;;  %v6859_v37 = vld [vmem:[#allocation3 + $0x70] sm:$0xff] }
 0x3be   :  { %6799 = vst.msk [vmem:[#allocation3 + $0x90] sm:$0xff] %vm717_vm2, %v6735_v21  ;;  %v6733_v54 = vadd.f32 %v6669_v23, %v6462_v2  ;;  %v6989_v29 = vmax.f32 %v6925_v22, 0.0  ;;  %v7049_v32 = vpack.c.bf16 %v6991_v3, %v6990_v15  ;;  %v6930_v60 = vadd.f32 %v11508_v61, %v6859_v37 }
 0x3bf   :  { %v9411_v25 = vpop.f32.mrf.mxu1  ;;  %v6857_v35 = vld [vmem:[#allocation3 + $0x60] sm:$0xff] }
 0x3c0   :  { %6797 = vst.msk [vmem:[#allocation3 + $0x80] sm:$0xff] %vm717_vm2, %v6733_v54  ;;  %v6736_v31 = vadd.f32 %v9411_v25, %v6672_v33  ;;  %v7048_v56 = vpack.c.bf16 %v6989_v29, %v6988_v28  ;;  %v6928_v44 = vadd.f32 %v11508_v61, %v6857_v35  ;;  %v6994_v53 = vmax.f32 %v6930_v60, 0.0  ;;  %v6678_v54 = vld [vmem:[#allocation3 + $0xc8] sm:$0xff] }
 0x3c1   :  { %v6465_v38 = vpop.f32.mrf.mxu1  ;;  %v6860_v40 = vld [vmem:[#allocation3 + $0x78] sm:$0xff] }
 0x3c2   :  { %6800 = vst.msk [vmem:[#allocation3 + $0x98] sm:$0xff] %vm717_vm2, %v6736_v31  ;;  %v6734_v42 = vadd.f32 %v6670_v55, %v6465_v38  ;;  %9532 = vmatprep.mubr.msk.bf16.mxu1 %vm717_vm2, %v7048_v56  ;;  %v6931_v20 = vadd.f32 %v11508_v61, %v6860_v40  ;;  %v6992_v0 = vmax.f32 %v6928_v44, 0.0  ;;  %v6683_v31 = vld [vmem:[#allocation3 + $0xf0] sm:$0xff]  ;;  %v6681_v40 = vld [vmem:[#allocation3 + $0xe0] sm:$0xff] }
 0x3c3   :  { %v9414_v57 = vpop.f32.mrf.mxu1  ;;  %9533 = vmatmul.mubr.msk.bf16.gmra.mxu1 %vm717_vm2, %v7049_v32  ;;  %v6858_v49 = vld [vmem:[#allocation3 + $0x68] sm:$0xff] }
 0x3c4   :  { %6798 = vst.msk [vmem:[#allocation3 + $0x88] sm:$0xff] %vm717_vm2, %v6734_v42  ;;  %v6739_v26 = vadd.f32 %v9414_v57, %v6675_v9  ;;  %v6929_v1 = vadd.f32 %v11508_v61, %v6858_v49  ;;  %v6995_v51 = vmax.f32 %v6931_v20, 0.0  ;;  %v6684_v49 = vld [vmem:[#allocation3 + $0xf8] sm:$0xff] }
 0x3c5   :  { %v6478_v30 = vpop.f32.mrf.mxu1  ;;  %v6863_v4 = vld [vmem:[#allocation3 + $0x90] sm:$0xff] }
 0x3c6   :  { %6803 = vst.msk [vmem:[#allocation3 + $0xb0] sm:$0xff] %vm717_vm2, %v6739_v26  ;;  %v6737_v41 = vadd.f32 %v6673_v50, %v6478_v30  ;;  %v6993_v47 = vmax.f32 %v6929_v1, 0.0  ;;  %v7051_v43 = vpack.c.bf16 %v6995_v51, %v6994_v53  ;;  %v6934_v14 = vadd.f32 %v11508_v61, %v6863_v4 }
 0x3c7   :  { %v9415_v58 = vpop.f32.mrf.mxu1  ;;  %v6861_v63 = vld [vmem:[#allocation3 + $0x80] sm:$0xff] }
 0x3c8   :  { %6801 = vst.msk [vmem:[#allocation3 + $0xa0] sm:$0xff] %vm717_vm2, %v6737_v41  ;;  %v6740_v7 = vadd.f32 %v9415_v58, %v6676_v62  ;;  %v7050_v27 = vpack.c.bf16 %v6993_v47, %v6992_v0  ;;  %v6932_v11 = vadd.f32 %v11508_v61, %v6861_v63  ;;  %v6998_v18 = vmax.f32 %v6934_v14, 0.0  ;;  %v6682_v41 = vld [vmem:[#allocation3 + $0xe8] sm:$0xff] }
 0x3c9   :  { %v6481_v5 = vpop.f32.mrf.mxu1  ;;  %v6864_v52 = vld [vmem:[#allocation3 + $0x98] sm:$0xff] }
 0x3ca   :  { %6804 = vst.msk [vmem:[#allocation3 + $0xb8] sm:$0xff] %vm717_vm2, %v6740_v7  ;;  %v6738_v12 = vadd.f32 %v6674_v6, %v6481_v5  ;;  %9536 = vmatprep.mubr.msk.bf16.mxu1 %vm717_vm2, %v7050_v27  ;;  %v6935_v59 = vadd.f32 %v11508_v61, %v6864_v52  ;;  %v6996_v39 = vmax.f32 %v6932_v11, 0.0  ;;  %v6687_v7 = vld [vmem:[#allocation3 + $0x110] sm:$0xff]  ;;  %v6685_v52 = vld [vmem:[#allocation3 + $0x100] sm:$0xff] }
 0x3cb   :  { %v9418_v48 = vpop.f32.mrf.mxu1  ;;  %9537 = vmatmul.mubr.msk.bf16.gmra.mxu1 %vm717_vm2, %v7051_v43  ;;  %v6862_v13 = vld [vmem:[#allocation3 + $0x88] sm:$0xff] }
 0x3cc   :  { %6802 = vst.msk [vmem:[#allocation3 + $0xa8] sm:$0xff] %vm717_vm2, %v6738_v12  ;;  %v6743_v16 = vadd.f32 %v9418_v48, %v6679_v34  ;;  %v6933_v8 = vadd.f32 %v11508_v61, %v6862_v13  ;;  %v6999_v10 = vmax.f32 %v6935_v59, 0.0  ;;  %v6688_v13 = vld [vmem:[#allocation3 + $0x118] sm:$0xff] }
 0x3cd   :  { %v6494_v19 = vpop.f32.mrf.mxu1  ;;  %v6867_v23 = vld [vmem:[#allocation3 + $0xb0] sm:$0xff] }
 0x3ce   :  { %6807 = vst.msk [vmem:[#allocation3 + $0xd0] sm:$0xff] %vm717_vm2, %v6743_v16  ;;  %v6741_v24 = vadd.f32 %v6677_v46, %v6494_v19  ;;  %v6997_v17 = vmax.f32 %v6933_v8, 0.0  ;;  %v7053_v28 = vpack.c.bf16 %v6999_v10, %v6998_v18  ;;  %v6938_v37 = vadd.f32 %v11508_v61, %v6867_v23 }
 0x3cf   :  { %v9419_v36 = vpop.f32.mrf.mxu1  ;;  %v6865_v21 = vld [vmem:[#allocation3 + $0xa0] sm:$0xff] }
 0x3d0   :  { %6805 = vst.msk [vmem:[#allocation3 + $0xc0] sm:$0xff] %vm717_vm2, %v6741_v24  ;;  %v6744_v22 = vadd.f32 %v9419_v36, %v6680_v45  ;;  %v7052_v2 = vpack.c.bf16 %v6997_v17, %v6996_v39  ;;  %v6936_v33 = vadd.f32 %v11508_v61, %v6865_v21  ;;  %v7002_v60 = vmax.f32 %v6938_v37, 0.0  ;;  %v6686_v24 = vld [vmem:[#allocation3 + $0x108] sm:$0xff] }
 0x3d1   :  { %v6497_v3 = vpop.f32.mrf.mxu1  ;;  %v6868_v29 = vld [vmem:[#allocation3 + $0xb8] sm:$0xff] }
 0x3d2   :  { %6808 = vst.msk [vmem:[#allocation3 + $0xd8] sm:$0xff] %vm717_vm2, %v6744_v22  ;;  %v6742_v25 = vadd.f32 %v6678_v54, %v6497_v3  ;;  %9540 = vmatprep.mubr.msk.bf16.mxu1 %vm717_vm2, %v7052_v2  ;;  %v6939_v15 = vadd.f32 %v11508_v61, %v6868_v29  ;;  %v7000_v20 = vmax.f32 %v6936_v33, 0.0  ;;  %v6691_v22 = vld [vmem:[#allocation3 + $0x130] sm:$0xff]  ;;  %v6689_v29 = vld [vmem:[#allocation3 + $0x120] sm:$0xff] }
 0x3d3   :  { %v9422_v35 = vpop.f32.mrf.mxu1  ;;  %9541 = vmatmul.mubr.msk.bf16.gmra.mxu1 %vm717_vm2, %v7053_v28  ;;  %v6866_v56 = vld [vmem:[#allocation3 + $0xa8] sm:$0xff] }
 0x3d4   :  { %6806 = vst.msk [vmem:[#allocation3 + $0xc8] sm:$0xff] %vm717_vm2, %v6742_v25  ;;  %v6747_v38 = vadd.f32 %v9422_v35, %v6683_v31  ;;  %v6937_v55 = vadd.f32 %v11508_v61, %v6866_v56  ;;  %v7003_v42 = vmax.f32 %v6939_v15, 0.0  ;;  %v6692_v56 = vld [vmem:[#allocation3 + $0x138] sm:$0xff] }
 0x3d5   :  { %v6510_v32 = vpop.f32.mrf.mxu1  ;;  %v6871_v50 = vld [vmem:[#allocation3 + $0xd0] sm:$0xff] }
 0x3d6   :  { %6811 = vst.msk [vmem:[#allocation3 + $0xf0] sm:$0xff] %vm717_vm2, %v6747_v38  ;;  %v6745_v44 = vadd.f32 %v6681_v40, %v6510_v32  ;;  %v7001_v57 = vmax.f32 %v6937_v55, 0.0  ;;  %v7055_v0 = vpack.c.bf16 %v7003_v42, %v7002_v60  ;;  %v6942_v4 = vadd.f32 %v11508_v61, %v6871_v50 }
 0x3d7   :  { %v9423_v9 = vpop.f32.mrf.mxu1  ;;  %v6869_v26 = vld [vmem:[#allocation3 + $0xc0] sm:$0xff] }
 0x3d8   :  { %6809 = vst.msk [vmem:[#allocation3 + $0xe0] sm:$0xff] %vm717_vm2, %v6745_v44  ;;  %v6748_v1 = vadd.f32 %v9423_v9, %v6684_v49  ;;  %v7054_v30 = vpack.c.bf16 %v7001_v57, %v7000_v20  ;;  %v6940_v62 = vadd.f32 %v11508_v61, %v6869_v26  ;;  %v7006_v14 = vmax.f32 %v6942_v4, 0.0  ;;  %v6690_v44 = vld [vmem:[#allocation3 + $0x128] sm:$0xff] }
 0x3d9   :  { %v6513_v51 = vpop.f32.mrf.mxu1  ;;  %v6872_v47 = vld [vmem:[#allocation3 + $0xd8] sm:$0xff] }
 0x3da   :  { %6812 = vst.msk [vmem:[#allocation3 + $0xf8] sm:$0xff] %vm717_vm2, %v6748_v1  ;;  %v6746_v58 = vadd.f32 %v6682_v41, %v6513_v51  ;;  %9544 = vmatprep.mubr.msk.bf16.mxu1 %vm717_vm2, %v7054_v30  ;;  %v6943_v53 = vadd.f32 %v11508_v61, %v6872_v47  ;;  %v7004_v59 = vmax.f32 %v6940_v62, 0.0  ;;  %v6695_v1 = vld [vmem:[#allocation3 + $0x150] sm:$0xff]  ;;  %v6693_v47 = vld [vmem:[#allocation3 + $0x140] sm:$0xff] }
 0x3db   :  { %v9426_v63 = vpop.f32.mrf.mxu1  ;;  %9545 = vmatmul.mubr.msk.bf16.gmra.mxu1 %vm717_vm2, %v7055_v0  ;;  %v6870_v27 = vld [vmem:[#allocation3 + $0xc8] sm:$0xff] }
 0x3dc   :  { %6810 = vst.msk [vmem:[#allocation3 + $0xe8] sm:$0xff] %vm717_vm2, %v6746_v58  ;;  %v6751_v5 = vadd.f32 %v9426_v63, %v6687_v7  ;;  %v6941_v6 = vadd.f32 %v11508_v61, %v6870_v27  ;;  %v7007_v12 = vmax.f32 %v6943_v53, 0.0  ;;  %v6696_v27 = vld [vmem:[#allocation3 + $0x158] sm:$0xff] }
 0x3dd   :  { %v6526_v43 = vpop.f32.mrf.mxu1  ;;  %v6875_v46 = vld [vmem:[#allocation3 + $0xf0] sm:$0xff] }
 0x3de   :  { %6815 = vst.msk [vmem:[#allocation3 + $0x110] sm:$0xff] %vm717_vm2, %v6751_v5  ;;  %v6749_v11 = vadd.f32 %v6685_v52, %v6526_v43  ;;  %v7005_v48 = vmax.f32 %v6941_v6, 0.0  ;;  %v7057_v39 = vpack.c.bf16 %v7007_v12, %v7006_v14  ;;  %v6946_v23 = vadd.f32 %v11508_v61, %v6875_v46 }
 0x3df   :  { %v9427_v34 = vpop.f32.mrf.mxu1  ;;  %v6873_v16 = vld [vmem:[#allocation3 + $0xe0] sm:$0xff] }
 0x3e0   :  { %6813 = vst.msk [vmem:[#allocation3 + $0x100] sm:$0xff] %vm717_vm2, %v6749_v11  ;;  %v6752_v8 = vadd.f32 %v9427_v34, %v6688_v13  ;;  %v7056_v19 = vpack.c.bf16 %v7005_v48, %v7004_v59  ;;  %v6944_v45 = vadd.f32 %v11508_v61, %v6873_v16  ;;  %v7010_v37 = vmax.f32 %v6946_v23, 0.0  ;;  %v6694_v11 = vld [vmem:[#allocation3 + $0x148] sm:$0xff]  ;;  %v6700_v23 = vld [vmem:[#allocation3 + $0x178] sm:$0xff] }
 0x3e1   :  { %v6529_v10 = vpop.f32.mrf.mxu1  ;;  %v6876_v17 = vld [vmem:[#allocation3 + $0xf8] sm:$0xff] }
 0x3e2   :  { %6816 = vst.msk [vmem:[#allocation3 + $0x118] sm:$0xff] %vm717_vm2, %v6752_v8  ;;  %v6750_v36 = vadd.f32 %v6686_v24, %v6529_v10  ;;  %9548 = vmatprep.mubr.msk.bf16.mxu1 %vm717_vm2, %v7056_v19  ;;  %v6947_v18 = vadd.f32 %v11508_v61, %v6876_v17  ;;  %v7008_v15 = vmax.f32 %v6944_v45, 0.0  ;;  %v6699_v8 = vld [vmem:[#allocation3 + $0x170] sm:$0xff]  ;;  %v6697_v17 = vld [vmem:[#allocation3 + $0x160] sm:$0xff]  ;;  %v11606_v45 = vpop.f32.mrf.mxu0 }
 0x3e3   :  { %v9430_v21 = vpop.f32.mrf.mxu1  ;;  %9549 = vmatmul.mubr.msk.bf16.gmra.mxu1 %vm717_vm2, %v7057_v39  ;;  %v6874_v2 = vld [vmem:[#allocation3 + $0xe8] sm:$0xff] }
 0x3e4   :  { %6814 = vst.msk [vmem:[#allocation3 + $0x108] sm:$0xff] %vm717_vm2, %v6750_v36  ;;  %v6755_v3 = vadd.f32 %v9430_v21, %v6691_v22  ;;  %v6945_v54 = vadd.f32 %v11508_v61, %v6874_v2  ;;  %v7011_v25 = vmax.f32 %v6947_v18, 0.0 }
 0x3e5   :  { %v6542_v28 = vpop.f32.mrf.mxu1  ;;  %v6879_v40 = vld [vmem:[#allocation3 + $0x110] sm:$0xff] }
 0x3e6   :  { %6819 = vst.msk [vmem:[#allocation3 + $0x130] sm:$0xff] %vm717_vm2, %v6755_v3  ;;  %v6753_v33 = vadd.f32 %v6689_v29, %v6542_v28  ;;  %v7009_v35 = vmax.f32 %v6945_v54, 0.0  ;;  %v7059_v20 = vpack.c.bf16 %v7011_v25, %v7010_v37  ;;  %v6950_v50 = vadd.f32 %v11508_v61, %v6879_v40  ;;  %v6703_v40 = vld [vmem:[#allocation3 + $0x190] sm:$0xff] }
 0x3e7   :  { %v9431_v31 = vpop.f32.mrf.mxu1  ;;  %v6877_v38 = vld [vmem:[#allocation3 + $0x100] sm:$0xff] }
 0x3e8   :  { %6817 = vst.msk [vmem:[#allocation3 + $0x120] sm:$0xff] %vm717_vm2, %v6753_v33  ;;  %v6756_v55 = vadd.f32 %v9431_v31, %v6692_v56  ;;  %v7058_v32 = vpack.c.bf16 %v7009_v35, %v7008_v15  ;;  %v6948_v49 = vadd.f32 %v11508_v61, %v6877_v38  ;;  %v7014_v4 = vmax.f32 %v6950_v50, 0.0  ;;  %v6698_v15 = vld [vmem:[#allocation3 + $0x168] sm:$0xff]  ;;  %v11610_v56 = vpop.f32.mrf.mxu0 }
 0x3e9   :  { %v6545_v42 = vpop.f32.mrf.mxu1  ;;  %v6880_v57 = vld [vmem:[#allocation3 + $0x118] sm:$0xff] }
 0x3ea   :  { %6820 = vst.msk [vmem:[#allocation3 + $0x138] sm:$0xff] %vm717_vm2, %v6756_v55  ;;  %v6754_v9 = vadd.f32 %v6690_v44, %v6545_v42  ;;  %9552 = vmatprep.mubr.msk.bf16.mxu1 %vm717_vm2, %v7058_v32  ;;  %v6951_v60 = vadd.f32 %v11508_v61, %v6880_v57  ;;  %v7012_v53 = vmax.f32 %v6948_v49, 0.0  ;;  %v6701_v49 = vld [vmem:[#allocation3 + $0x180] sm:$0xff] }
 0x3eb   :  { %v9434_v26 = vpop.f32.mrf.mxu1  ;;  %9553 = vmatmul.mubr.msk.bf16.gmra.mxu1 %vm717_vm2, %v7059_v20  ;;  %v6878_v30 = vld [vmem:[#allocation3 + $0x108] sm:$0xff] }
 0x3ec   :  { %6818 = vst.msk [vmem:[#allocation3 + $0x128] sm:$0xff] %vm717_vm2, %v6754_v9  ;;  %v6759_v51 = vadd.f32 %v9434_v26, %v6695_v1  ;;  %v6949_v41 = vadd.f32 %v11508_v61, %v6878_v30  ;;  %v7015_v58 = vmax.f32 %v6951_v60, 0.0  ;;  %v11620_v26 = vpop.f32.mrf.mxu0 }
 0x3ed   :  { %v6558_v0 = vpop.f32.mrf.mxu1  ;;  %v6883_v52 = vld [vmem:[#allocation3 + $0x130] sm:$0xff] }
 0x3ee   :  { %6823 = vst.msk [vmem:[#allocation3 + $0x150] sm:$0xff] %vm717_vm2, %v6759_v51  ;;  %v6757_v62 = vadd.f32 %v6693_v47, %v6558_v0  ;;  %v7013_v63 = vmax.f32 %v6949_v41, 0.0  ;;  %v7061_v59 = vpack.c.bf16 %v7015_v58, %v7014_v4  ;;  %v6954_v46 = vadd.f32 %v11508_v61, %v6883_v52  ;;  %v6704_v41 = vld [vmem:[#allocation3 + $0x198] sm:$0xff] }
 0x3ef   :  { %v9435_v7 = vpop.f32.mrf.mxu1  ;;  %v6881_v5 = vld [vmem:[#allocation3 + $0x120] sm:$0xff] }
 0x3f0   :  { %6821 = vst.msk [vmem:[#allocation3 + $0x140] sm:$0xff] %vm717_vm2, %v6757_v62  ;;  %v6760_v6 = vadd.f32 %v9435_v7, %v6696_v27  ;;  %v7060_v43 = vpack.c.bf16 %v7013_v63, %v7012_v53  ;;  %v6952_v13 = vadd.f32 %v11508_v61, %v6881_v5  ;;  %v7018_v3 = vmax.f32 %v6954_v46, 0.0  ;;  %v6702_v7 = vld [vmem:[#allocation3 + $0x188] sm:$0xff]  ;;  %v11624_v5 = vpop.f32.mrf.mxu0 }
 0x3f1   :  { %v6561_v12 = vpop.f32.mrf.mxu1  ;;  %v6884_v48 = vld [vmem:[#allocation3 + $0x138] sm:$0xff] }
 0x3f2   :  { %6824 = vst.msk [vmem:[#allocation3 + $0x158] sm:$0xff] %vm717_vm2, %v6760_v6  ;;  %v6758_v34 = vadd.f32 %v6694_v11, %v6561_v12  ;;  %9556 = vmatprep.mubr.msk.bf16.mxu1 %vm717_vm2, %v7060_v43  ;;  %v6955_v14 = vadd.f32 %v11508_v61, %v6884_v48  ;;  %v7016_v21 = vmax.f32 %v6952_v13, 0.0  ;;  %v6707_v11 = vld [vmem:[#allocation3 + $0x1b0] sm:$0xff] }
 0x3f3   :  { %v9438_v16 = vpop.f32.mrf.mxu1  ;;  %9557 = vmatmul.mubr.msk.bf16.gmra.mxu1 %vm717_vm2, %v7061_v59  ;;  %v6882_v19 = vld [vmem:[#allocation3 + $0x128] sm:$0xff] }
 0x3f4   :  { %6822 = vst.msk [vmem:[#allocation3 + $0x148] sm:$0xff] %vm717_vm2, %v6758_v34  ;;  %v6763_v10 = vadd.f32 %v9438_v16, %v6699_v8  ;;  %v6953_v24 = vadd.f32 %v11508_v61, %v6882_v19  ;;  %v7019_v36 = vmax.f32 %v6955_v14, 0.0  ;;  %v6705_v16 = vld [vmem:[#allocation3 + $0x1a0] sm:$0xff]  ;;  %v11634_v19 = vpop.f32.mrf.mxu0 }
 0x3f5   :  { %v6574_v39 = vpop.f32.mrf.mxu1  ;;  %v6887_v25 = vld [vmem:[#allocation3 + $0x150] sm:$0xff] }
 0x3f6   :  { %6827 = vst.msk [vmem:[#allocation3 + $0x170] sm:$0xff] %vm717_vm2, %v6763_v10  ;;  %v6761_v18 = vadd.f32 %v6697_v17, %v6574_v39  ;;  %v7017_v22 = vmax.f32 %v6953_v24, 0.0  ;;  %v7063_v35 = vpack.c.bf16 %v7019_v36, %v7018_v3  ;;  %v6958_v44 = vadd.f32 %v11508_v61, %v6887_v25  ;;  %v6708_v17 = vld [vmem:[#allocation3 + $0x1b8] sm:$0xff]  ;;  %v6706_v3 = vld [vmem:[#allocation3 + $0x1a8] sm:$0xff] }
 0x3f7   :  { %v9439_v2 = vpop.f32.mrf.mxu1  ;;  %v6885_v54 = vld [vmem:[#allocation3 + $0x140] sm:$0xff] }
 0x3f8   :  { %6825 = vst.msk [vmem:[#allocation3 + $0x160] sm:$0xff] %vm717_vm2, %v6761_v18  ;;  %v6764_v28 = vadd.f32 %v9439_v2, %v6700_v23  ;;  %v7062_v29 = vpack.c.bf16 %v7017_v22, %v7016_v21  ;;  %v6956_v38 = vadd.f32 %v11508_v61, %v6885_v54  ;;  %v7022_v0 = vmax.f32 %v6958_v44, 0.0 }
 0x3f9   :  { %v6577_v33 = vpop.f32.mrf.mxu1  ;;  %v6888_v31 = vld [vmem:[#allocation3 + $0x158] sm:$0xff] }
 0x3fa   :  { %6828 = vst.msk [vmem:[#allocation3 + $0x178] sm:$0xff] %vm717_vm2, %v6764_v28  ;;  %v6762_v37 = vadd.f32 %v6698_v15, %v6577_v33  ;;  %9560 = vmatprep.mubr.msk.bf16.mxu1 %vm717_vm2, %v7062_v29  ;;  %v6959_v55 = vadd.f32 %v11508_v61, %v6888_v31  ;;  %v7020_v30 = vmax.f32 %v6956_v38, 0.0  ;;  %v11638_v29 = vpop.f32.mrf.mxu0  ;;  %v6711_v31 = vld [vmem:[#allocation3 + $0x1d0] sm:$0xff] }
 0x3fb   :  { %v9442_v32 = vpop.f32.mrf.mxu1  ;;  %9561 = vmatmul.mubr.msk.bf16.gmra.mxu1 %vm717_vm2, %v7063_v35  ;;  %v6886_v42 = vld [vmem:[#allocation3 + $0x148] sm:$0xff] }
 0x3fc   :  { %6826 = vst.msk [vmem:[#allocation3 + $0x168] sm:$0xff] %vm717_vm2, %v6762_v37  ;;  %v6767_v20 = vadd.f32 %v9442_v32, %v6703_v40  ;;  %v6957_v57 = vadd.f32 %v11508_v61, %v6886_v42  ;;  %v7023_v60 = vmax.f32 %v6959_v55, 0.0  ;;  %v6709_v42 = vld [vmem:[#allocation3 + $0x1c0] sm:$0xff] }
 0x3fd   :  { %v6590_v9 = vpop.f32.mrf.mxu1  ;;  %v6891_v53 = vld [vmem:[#allocation3 + $0x170] sm:$0xff] }
 0x3fe   :  { %6831 = vst.msk [vmem:[#allocation3 + $0x190] sm:$0xff] %vm717_vm2, %v6767_v20  ;;  %v6765_v1 = vadd.f32 %v6701_v49, %v6590_v9  ;;  %v7021_v50 = vmax.f32 %v6957_v57, 0.0  ;;  %v7065_v27 = vpack.c.bf16 %v7023_v60, %v7022_v0  ;;  %v6962_v48 = vadd.f32 %v11508_v61, %v6891_v53  ;;  %v11648_v20 = vpop.f32.mrf.mxu0 }
 0x3ff   :  { %v9443_v51 = vpop.f32.mrf.mxu1  ;;  %v6889_v47 = vld [vmem:[#allocation3 + $0x160] sm:$0xff] }
 0x400   :  { %6829 = vst.msk [vmem:[#allocation3 + $0x180] sm:$0xff] %vm717_vm2, %v6765_v1  ;;  %v6768_v58 = vadd.f32 %v9443_v51, %v6704_v41  ;;  %v7064_v62 = vpack.c.bf16 %v7021_v50, %v7020_v30  ;;  %v6960_v43 = vadd.f32 %v11508_v61, %v6889_v47  ;;  %v7026_v36 = vmax.f32 %v6962_v48, 0.0  ;;  %v6712_v1 = vld [vmem:[#allocation3 + $0x1d8] sm:$0xff] }
 0x401   :  { %v6593_v63 = vpop.f32.mrf.mxu1  ;;  %v6892_v4 = vld [vmem:[#allocation3 + $0x178] sm:$0xff] }
 0x402   :  { %6832 = vst.msk [vmem:[#allocation3 + $0x198] sm:$0xff] %vm717_vm2, %v6768_v58  ;;  %v6766_v6 = vadd.f32 %v6702_v7, %v6593_v63  ;;  %9564 = vmatprep.mubr.msk.bf16.mxu1 %vm717_vm2, %v7064_v62  ;;  %v6963_v52 = vadd.f32 %v11508_v61, %v6892_v4  ;;  %v7024_v10 = vmax.f32 %v6960_v43, 0.0  ;;  %v6710_v58 = vld [vmem:[#allocation3 + $0x1c8] sm:$0xff]  ;;  %v11652_v63 = vpop.f32.mrf.mxu0  ;;  %v6715_v43 = vld [vmem:[#allocation3 + $0x1f0] sm:$0xff] }
 0x403   :  { %v9446_v12 = vpop.f32.mrf.mxu1  ;;  %9565 = vmatmul.mubr.msk.bf16.gmra.mxu1 %vm717_vm2, %v7065_v27  ;;  %v6890_v59 = vld [vmem:[#allocation3 + $0x168] sm:$0xff] }
 0x404   :  { %6830 = vst.msk [vmem:[#allocation3 + $0x188] sm:$0xff] %vm717_vm2, %v6766_v6  ;;  %v6771_v34 = vadd.f32 %v9446_v12, %v6707_v11  ;;  %v6961_v13 = vadd.f32 %v11508_v61, %v6890_v59  ;;  %v7027_v8 = vmax.f32 %v6963_v52, 0.0 }
 0x405   :  { %v6606_v14 = vpop.f32.mrf.mxu1  ;;  %v6895_v2 = vld [vmem:[#allocation3 + $0x190] sm:$0xff] }
 0x406   :  { %6835 = vst.msk [vmem:[#allocation3 + $0x1b0] sm:$0xff] %vm717_vm2, %v6771_v34  ;;  %v6769_v46 = vadd.f32 %v6705_v16, %v6606_v14  ;;  %v7025_v24 = vmax.f32 %v6961_v13, 0.0  ;;  %v7067_v54 = vpack.c.bf16 %v7027_v8, %v7026_v36  ;;  %v6966_v38 = vadd.f32 %v11508_v61, %v6895_v2  ;;  %v6713_v34 = vld [vmem:[#allocation3 + $0x1e0] sm:$0xff]  ;;  %v11662_v14 = vpop.f32.mrf.mxu0  ;;  %v6714_v2 = vld [vmem:[#allocation3 + $0x1e8] sm:$0xff] }
 0x407   :  { %v9447_v39 = vpop.f32.mrf.mxu1  ;;  %v6893_v18 = vld [vmem:[#allocation3 + $0x180] sm:$0xff] }
 0x408   :  { %6833 = vst.msk [vmem:[#allocation3 + $0x1a0] sm:$0xff] %vm717_vm2, %v6769_v46  ;;  %v6772_v21 = vadd.f32 %v9447_v39, %v6708_v17  ;;  %v7066_v22 = vpack.c.bf16 %v7025_v24, %v7024_v10  ;;  %v6964_v33 = vadd.f32 %v11508_v61, %v6893_v18  ;;  %v7030_v30 = vmax.f32 %v6966_v38, 0.0  ;;  %v6716_v24 = vld [vmem:[#allocation3 + $0x1f8] sm:$0xff] }
 0x409   :  { %v6609_v23 = vpop.f32.mrf.mxu1  ;;  %v6896_v28 = vld [vmem:[#allocation3 + $0x198] sm:$0xff] }
 0x40a   :  { %6836 = vst.msk [vmem:[#allocation3 + $0x1b8] sm:$0xff] %vm717_vm2, %v6772_v21  ;;  %v6770_v25 = vadd.f32 %v6706_v3, %v6609_v23  ;;  %9568 = vmatprep.mubr.msk.bf16.mxu1 %vm717_vm2, %v7066_v22  ;;  %v6967_v15 = vadd.f32 %v11508_v61, %v6896_v28  ;;  %v7028_v9 = vmax.f32 %v6964_v33, 0.0 }
 0x40b   :  { %v9450_v35 = vpop.f32.mrf.mxu1  ;;  %9569 = vmatmul.mubr.msk.bf16.gmra.mxu1 %vm717_vm2, %v7067_v54  ;;  %v6894_v37 = vld [vmem:[#allocation3 + $0x188] sm:$0xff]  ;;  %v11666_v54 = vpop.f32.mrf.mxu0 }
 0x40c   :  { %6834 = vst.msk [vmem:[#allocation3 + $0x1a8] sm:$0xff] %vm717_vm2, %v6770_v25  ;;  %v6775_v55 = vadd.f32 %v9450_v35, %v6711_v31  ;;  %v6965_v32 = vadd.f32 %v11508_v61, %v6894_v37  ;;  %v7031_v44 = vmax.f32 %v6967_v15, 0.0 }
 0x40d   :  { %v6622_v40 = vpop.f32.mrf.mxu1  ;;  %v6899_v0 = vld [vmem:[#allocation3 + $0x1b0] sm:$0xff]  ;;  %v11676_v38 = vpop.f32.mrf.mxu0 }
 0x40e   :  { %6839 = vst.msk [vmem:[#allocation3 + $0x1d0] sm:$0xff] %vm717_vm2, %v6775_v55  ;;  %v6773_v57 = vadd.f32 %v6709_v42, %v6622_v40  ;;  %v7029_v49 = vmax.f32 %v6965_v32, 0.0  ;;  %v7069_v62 = vpack.c.bf16 %v7031_v44, %v7030_v30  ;;  %v6970_v12 = vadd.f32 %v11508_v61, %v6899_v0 }
 0x40f   :  { %v9451_v60 = vpop.f32.mrf.mxu1  ;;  %v6897_v50 = vld [vmem:[#allocation3 + $0x1a0] sm:$0xff] }
 0x410   :  { %6837 = vst.msk [vmem:[#allocation3 + $0x1c0] sm:$0xff] %vm717_vm2, %v6773_v57  ;;  %v6776_v51 = vadd.f32 %v9451_v60, %v6712_v1  ;;  %v7068_v41 = vpack.c.bf16 %v7029_v49, %v7028_v9  ;;  %v6968_v27 = vadd.f32 %v11508_v61, %v6897_v50  ;;  %v7034_v39 = vmax.f32 %v6970_v12, 0.0  ;;  %v11678_v60 = vpop.f32.mrf.mxu0 }
 0x411   :  { %v6625_v47 = vpop.f32.mrf.mxu1  ;;  %v6900_v53 = vld [vmem:[#allocation3 + $0x1b8] sm:$0xff] }
 0x412   :  { %6840 = vst.msk [vmem:[#allocation3 + $0x1d8] sm:$0xff] %vm717_vm2, %v6776_v51  ;;  %v6774_v7 = vadd.f32 %v6710_v58, %v6625_v47  ;;  %9572 = vmatprep.mubr.msk.bf16.mxu1 %vm717_vm2, %v7068_v41  ;;  %v6971_v4 = vadd.f32 %v11508_v61, %v6900_v53  ;;  %v7032_v8 = vmax.f32 %v6968_v27, 0.0  ;;  %v11686_v47 = vpop.f32.mrf.mxu0 }
 0x413   :  { %v9454_v6 = vpop.f32.mrf.mxu1  ;;  %9573 = vmatmul.mubr.msk.bf16.gmra.mxu1 %vm717_vm2, %v7069_v62  ;;  %v6898_v52 = vld [vmem:[#allocation3 + $0x1a8] sm:$0xff] }
 0x414   :  { %6838 = vst.msk [vmem:[#allocation3 + $0x1c8] sm:$0xff] %vm717_vm2, %v6774_v7  ;;  %v6779_v11 = vadd.f32 %v9454_v6, %v6715_v43  ;;  %v6969_v59 = vadd.f32 %v11508_v61, %v6898_v52  ;;  %v7035_v13 = vmax.f32 %v6971_v4, 0.0  ;;  %v11688_v4 = vpop.f32.mrf.mxu0 }
 0x415   :  { %v6638_v48 = vpop.f32.mrf.mxu1  ;;  %v6903_v21 = vld [vmem:[#allocation3 + $0x1d0] sm:$0xff] }
 0x416   :  { %6843 = vst.msk [vmem:[#allocation3 + $0x1f0] sm:$0xff] %vm717_vm2, %v6779_v11  ;;  %v6777_v16 = vadd.f32 %v6713_v34, %v6638_v48  ;;  %v7033_v46 = vmax.f32 %v6969_v59, 0.0  ;;  %v7071_v23 = vpack.c.bf16 %v7035_v13, %v7034_v39  ;;  %v6974_v35 = vadd.f32 %v11508_v61, %v6903_v21  ;;  %v11692_v6 = vpop.f32.mrf.mxu0  ;;  %v11731_v21 = vld [vmem:[%s11902_s7] ss:$0 sm:$0xff]  ;;  %s9692_s7 = smov [#allocation4]  }
 0x417   :  { %v9455_v10 = vpop.f32.mrf.mxu1  ;;  %v6901_v17 = vld [vmem:[#allocation3 + $0x1c0] sm:$0xff]  ;;  %s7962_s12 = sshll.u32 %s9692_s7, 4  ;;  %s7963_s12 = int_to_ptr.vmem [resolvable:$true] %s7962_s12 }
 0x418   :  { %6841 = vst.msk [vmem:[#allocation3 + $0x1e0] sm:$0xff] %vm717_vm2, %v6777_v16  ;;  %v6780_v36 = vadd.f32 %v9455_v10, %v6716_v24  ;;  %v7070_v18 = vpack.c.bf16 %v7033_v46, %v7032_v8  ;;  %v6972_v25 = vadd.f32 %v11508_v61, %v6901_v17  ;;  %v7038_v40 = vmax.f32 %v6974_v35, 0.0  ;;  %v11694_v43 = vpop.f32.mrf.mxu0  ;;  %s9669_s1 = scalar_lea.vmem %s7963_s12, 8192  ;;  %p9674_p1 = scmp.lt.s32.totalorder %s7963_s12, %s7963_s12 }
 0x419   :  { %v6641_v22 = vpop.f32.mrf.mxu1  ;;  %v6904_v3 = vld [vmem:[#allocation3 + $0x1d8] sm:$0xff]  ;;  %p9670_p0 = scmp.ne.s32.totalorder %s7963_s12, %s9669_s1  ;;  %p9675_p2 = scmp.lt.s32.totalorder %s9669_s1, %s9669_s1 }
 0x41a   :  { %6844 = vst.msk [vmem:[#allocation3 + $0x1f8] sm:$0xff] %vm717_vm2, %v6780_v36  ;;  %v6778_v28 = vadd.f32 %v6714_v2, %v6641_v22  ;;  %9576 = vmatprep.mubr.msk.bf16.mxu1 %vm717_vm2, %v7070_v18  ;;  %v6975_v33 = vadd.f32 %v11508_v61, %v6904_v3  ;;  %v7036_v55 = vmax.f32 %v6972_v25, 0.0  ;;  %v11696_v52 = vpop.f32.mrf.mxu0 }
 0x41b   :  { %9577 = vmatmul.mubr.msk.bf16.gmra.mxu1 %vm717_vm2, %v7071_v23  ;;  %v6902_v15 = vld [vmem:[#allocation3 + $0x1c8] sm:$0xff]  ;;  %p9676_p3 = por %p9675_p2, %p9674_p1 }
 0x41c   :  { %6842 = vst.msk [vmem:[#allocation3 + $0x1e8] sm:$0xff] %vm717_vm2, %v6778_v28  ;;  %v6973_v31 = vadd.f32 %v11508_v61, %v6902_v15  ;;  %v7039_v37 = vmax.f32 %v6975_v33, 0.0 }
 0x41d   :  { %v6907_v57 = vld [vmem:[#allocation3 + $0x1f0] sm:$0xff]  ;;  %p9677_p4 = pnand %p9676_p3, %p9670_p0 }
 0x41e   :  { %v7037_v32 = vmax.f32 %v6973_v31, 0.0  ;;  %v7073_v9 = vpack.c.bf16 %v7039_v37, %v7038_v40  ;;  %v6978_v51 = vadd.f32 %v11508_v61, %v6907_v57 }
 0x41f   :  { %v6905_v42 = vld [vmem:[#allocation3 + $0x1e0] sm:$0xff] }
 0x420   :  { %v7072_v44 = vpack.c.bf16 %v7037_v32, %v7036_v55  ;;  %v6976_v1 = vadd.f32 %v11508_v61, %v6905_v42  ;;  %v7042_v53 = vmax.f32 %v6978_v51, 0.0 }
 0x421   :  { %v6908_v49 = vld [vmem:[#allocation3 + $0x1f8] sm:$0xff] }
 0x422   :  { %9580 = vmatprep.mubr.msk.bf16.mxu1 %vm717_vm2, %v7072_v44  ;;  %v6979_v30 = vadd.f32 %v11508_v61, %v6908_v49  ;;  %v7040_v58 = vmax.f32 %v6976_v1, 0.0 }
 0x423   :  { %9581 = vmatmul.mubr.msk.bf16.gmra.mxu1 %vm717_vm2, %v7073_v9  ;;  %v6906_v50 = vld [vmem:[#allocation3 + $0x1e8] sm:$0xff] }
 0x424   :  { %v6977_v41 = vadd.f32 %v11508_v61, %v6906_v50  ;;  %v7043_v0 = vmax.f32 %v6979_v30, 0.0  ;;  %v11698_v61 = vpop.f32.mrf.mxu0 }
 0x426   :  { %v7041_v62 = vmax.f32 %v6977_v41, 0.0  ;;  %v7075_v27 = vpack.c.bf16 %v7043_v0, %v7042_v53  ;;  %v11700_v12 = vpop.f32.mrf.mxu0 }
 0x428   :  { %v7074_v7 = vpack.c.bf16 %v7041_v62, %v7040_v58  ;;  %v11702_v11 = vpop.f32.mrf.mxu0 }
 0x42a   :  { %9584 = vmatprep.mubr.msk.bf16.mxu1 %vm717_vm2, %v7074_v7  ;;  %v11704_v59 = vpop.f32.mrf.mxu0 }
 0x42b   :  { %9585 = vmatmul.mubr.msk.bf16.gmra.mxu1 %vm717_vm2, %v7075_v27 }
 0x42c   :  { %v11706_v48 = vpop.f32.mrf.mxu0 }
 0x42e   :  { %v11708_v34 = vpop.f32.mrf.mxu0 }
 0x430   :  { %v11710_v13 = vpop.f32.mrf.mxu0 }
 0x432   :  { %v11712_v16 = vpop.f32.mrf.mxu0 }
 0x434   :  { %v11714_v8 = vpop.f32.mrf.mxu0 }
 0x436   :  { %v11716_v46 = vpop.f32.mrf.mxu0 }
 0x438   :  { %v11718_v10 = vpop.f32.mrf.mxu0 }
 0x43a   :  { %v11720_v24 = vpop.f32.mrf.mxu0 }
 0x43c   :  { %v11722_v39 = vpop.f32.mrf.mxu0 }
 0x43e   :  { %v11724_v17 = vpop.f32.mrf.mxu0 }
 0x440   :  { %v11726_v36 = vpop.f32.mrf.mxu0 }
 0x442   :  { %v11734_v23 = vpop.f32.mrf.mxu0 }
 0x444   :  { %v11740_v37 = vpop.f32.mrf.mxu0 }
 0x446   :  { %v11746_v9 = vpop.f32.mrf.mxu0 }
 0x448   :  { %v11752_v0 = vpop.f32.mrf.mxu0 }
 0x473   :  { %v9526_v18 = vpop.f32.mrf.mxu1 }
 0x474   :  { %v7512_v22 = vadd.f32 %v9526_v18, %v11606_v45 }
 0x475   :  { %v7503_v2 = vpop.f32.mrf.mxu1 }
 0x476   :  { %v7767_v3 = vadd.f32 %v11731_v21, %v7512_v22  ;;  %v7504_v28 = vadd.f32 %v7503_v2, %v11610_v56  ;;  %v11758_v22 = vpop.f32.mrf.mxu0 }
 0x477   :  { %v9527_v25 = vpop.f32.mrf.mxu1 }
 0x478   :  { %v7831_v33 = vmax.f32 %v7767_v3, 0.0  ;;  %v7765_v15 = vadd.f32 %v11731_v21, %v7504_v28  ;;  %v7515_v35 = vadd.f32 %v9527_v25, %v11620_v26 }
 0x479   :  { %v7506_v31 = vpop.f32.mrf.mxu1 }
 0x47a   :  { %7895 = vst [vmem:[#allocation4 + $0x10] sm:$0xff] %v7831_v33  ;;  %v7829_v55 = vmax.f32 %v7765_v15, 0.0  ;;  %v7768_v45 = vadd.f32 %v11731_v21, %v7515_v35  ;;  %v7507_v32 = vadd.f32 %v7506_v31, %v11624_v5  ;;  %v11764_v35 = vpop.f32.mrf.mxu0 }
 0x47b   :  { %v9530_v40 = vpop.f32.mrf.mxu1 }
 0x47c   :  { %7893 = vst [vmem:[#allocation4] sm:$0xff] %v7829_v55  ;;  %v7832_v42 = vmax.f32 %v7768_v45, 0.0  ;;  %v7766_v56 = vadd.f32 %v11731_v21, %v7507_v32  ;;  %v7528_v44 = vadd.f32 %v9530_v40, %v11634_v19 }
 0x47d   :  { %v7519_v57 = vpop.f32.mrf.mxu1 }
 0x47e   :  { %7896 = vst [vmem:[#allocation4 + $0x18] sm:$0xff] %v7832_v42  ;;  %v7830_v26 = vmax.f32 %v7766_v56, 0.0  ;;  %v7771_v49 = vadd.f32 %v11731_v21, %v7528_v44  ;;  %v7520_v1 = vadd.f32 %v7519_v57, %v11638_v29  ;;  %v11770_v56 = vpop.f32.mrf.mxu0 }
 0x47f   :  { %v9531_v30 = vpop.f32.mrf.mxu1 }
 0x480   :  { %7894 = vst [vmem:[#allocation4 + $0x8] sm:$0xff] %v7830_v26  ;;  %v7835_v50 = vmax.f32 %v7771_v49, 0.0  ;;  %v7769_v5 = vadd.f32 %v11731_v21, %v7520_v1  ;;  %v7531_v51 = vadd.f32 %v9531_v30, %v11648_v20 }
 0x481   :  { %v7522_v41 = vpop.f32.mrf.mxu1 }
 0x482   :  { %7899 = vst [vmem:[#allocation4 + $0x30] sm:$0xff] %v7835_v50  ;;  %v7833_v19 = vmax.f32 %v7769_v5, 0.0  ;;  %v7772_v58 = vadd.f32 %v11731_v21, %v7531_v51  ;;  %v7523_v62 = vadd.f32 %v7522_v41, %v11652_v63  ;;  %v11776_v50 = vpop.f32.mrf.mxu0 }
 0x483   :  { %v9534_v53 = vpop.f32.mrf.mxu1 }
 0x484   :  { %7897 = vst [vmem:[#allocation4 + $0x20] sm:$0xff] %v7833_v19  ;;  %v7836_v7 = vmax.f32 %v7772_v58, 0.0  ;;  %v7770_v29 = vadd.f32 %v11731_v21, %v7523_v62  ;;  %v7544_v27 = vadd.f32 %v9534_v53, %v11662_v14  ;;  %v11782_v53 = vpop.f32.mrf.mxu0 }
 0x485   :  { %v7535_v18 = vpop.f32.mrf.mxu1 }
 0x486   :  { %7900 = vst [vmem:[#allocation4 + $0x38] sm:$0xff] %v7836_v7  ;;  %v7834_v20 = vmax.f32 %v7770_v29, 0.0  ;;  %v7775_v2 = vadd.f32 %v11731_v21, %v7544_v27  ;;  %v7536_v3 = vadd.f32 %v7535_v18, %v11666_v54 }
 0x487   :  { %v9535_v28 = vpop.f32.mrf.mxu1 }
 0x488   :  { %7898 = vst [vmem:[#allocation4 + $0x28] sm:$0xff] %v7834_v20  ;;  %v7839_v25 = vmax.f32 %v7775_v2, 0.0  ;;  %v7773_v63 = vadd.f32 %v11731_v21, %v7536_v3  ;;  %v7547_v33 = vadd.f32 %v9535_v28, %v11676_v38  ;;  %v11788_v3 = vpop.f32.mrf.mxu0 }
 0x489   :  { %v7538_v15 = vpop.f32.mrf.mxu1 }
 0x48a   :  { %7903 = vst [vmem:[#allocation4 + $0x50] sm:$0xff] %v7839_v25  ;;  %v7837_v14 = vmax.f32 %v7773_v63, 0.0  ;;  %v7776_v31 = vadd.f32 %v11731_v21, %v7547_v33  ;;  %v7539_v55 = vadd.f32 %v7538_v15, %v11678_v60 }
 0x48b   :  { %v9538_v45 = vpop.f32.mrf.mxu1 }
 0x48c   :  { %7901 = vst [vmem:[#allocation4 + $0x40] sm:$0xff] %v7837_v14  ;;  %v7840_v32 = vmax.f32 %v7776_v31, 0.0  ;;  %v7774_v54 = vadd.f32 %v11731_v21, %v7539_v55  ;;  %v7560_v40 = vadd.f32 %v9538_v45, %v11686_v47  ;;  %v11794_v31 = vpop.f32.mrf.mxu0 }
 0x48d   :  { %v7551_v42 = vpop.f32.mrf.mxu1 }
 0x48e   :  { %7904 = vst [vmem:[#allocation4 + $0x58] sm:$0xff] %v7840_v32  ;;  %v7838_v38 = vmax.f32 %v7774_v54, 0.0  ;;  %v7779_v44 = vadd.f32 %v11731_v21, %v7560_v40  ;;  %v7552_v57 = vadd.f32 %v7551_v42, %v11688_v4 }
 0x48f   :  { %v9539_v26 = vpop.f32.mrf.mxu1 }
 0x490   :  { %7902 = vst [vmem:[#allocation4 + $0x48] sm:$0xff] %v7838_v38  ;;  %v7843_v49 = vmax.f32 %v7779_v44, 0.0  ;;  %v7777_v60 = vadd.f32 %v11731_v21, %v7552_v57  ;;  %v7563_v1 = vadd.f32 %v9539_v26, %v11692_v6  ;;  %v11800_v38 = vpop.f32.mrf.mxu0 }
 0x491   :  { %v7554_v30 = vpop.f32.mrf.mxu1 }
 0x492   :  { %7907 = vst [vmem:[#allocation4 + $0x70] sm:$0xff] %v7843_v49  ;;  %v7841_v47 = vmax.f32 %v7777_v60, 0.0  ;;  %v7780_v5 = vadd.f32 %v11731_v21, %v7563_v1  ;;  %v7555_v51 = vadd.f32 %v7554_v30, %v11694_v43  ;;  %v11806_v30 = vpop.f32.mrf.mxu0 }
 0x493   :  { %v9542_v41 = vpop.f32.mrf.mxu1 }
 0x494   :  { %7905 = vst [vmem:[#allocation4 + $0x60] sm:$0xff] %v7841_v47  ;;  %v7844_v19 = vmax.f32 %v7780_v5, 0.0  ;;  %v7778_v4 = vadd.f32 %v11731_v21, %v7555_v51  ;;  %v7576_v58 = vadd.f32 %v9542_v41, %v11696_v52 }
 0x495   :  { %v7567_v62 = vpop.f32.mrf.mxu1 }
 0x496   :  { %7908 = vst [vmem:[#allocation4 + $0x78] sm:$0xff] %v7844_v19  ;;  %v7842_v6 = vmax.f32 %v7778_v4, 0.0  ;;  %v7783_v7 = vadd.f32 %v11731_v21, %v7576_v58  ;;  %v7568_v29 = vadd.f32 %v7567_v62, %v11698_v61  ;;  %v11812_v58 = vpop.f32.mrf.mxu0 }
 0x497   :  { %v9543_v27 = vpop.f32.mrf.mxu1 }
 0x498   :  { %7906 = vst [vmem:[#allocation4 + $0x68] sm:$0xff] %v7842_v6  ;;  %v7847_v18 = vmax.f32 %v7783_v7, 0.0  ;;  %v7781_v43 = vadd.f32 %v11731_v21, %v7568_v29  ;;  %v7579_v20 = vadd.f32 %v9543_v27, %v11700_v12 }
 0x499   :  { %v7570_v2 = vpop.f32.mrf.mxu1 }
 0x49a   :  { %7911 = vst [vmem:[#allocation4 + $0x90] sm:$0xff] %v7847_v18  ;;  %v7845_v52 = vmax.f32 %v7781_v43, 0.0  ;;  %v7784_v28 = vadd.f32 %v11731_v21, %v7579_v20  ;;  %v7571_v25 = vadd.f32 %v7570_v2, %v11702_v11  ;;  %v11818_v43 = vpop.f32.mrf.mxu0 }
 0x49b   :  { %v9546_v63 = vpop.f32.mrf.mxu1 }
 0x49c   :  { %7909 = vst [vmem:[#allocation4 + $0x80] sm:$0xff] %v7845_v52  ;;  %v7848_v33 = vmax.f32 %v7784_v28, 0.0  ;;  %v7782_v61 = vadd.f32 %v11731_v21, %v7571_v25  ;;  %v7592_v15 = vadd.f32 %v9546_v63, %v11704_v59 }
 0x49d   :  { %v7583_v14 = vpop.f32.mrf.mxu1 }
 0x49e   :  { %7912 = vst [vmem:[#allocation4 + $0x98] sm:$0xff] %v7848_v33  ;;  %v7846_v12 = vmax.f32 %v7782_v61, 0.0  ;;  %v7787_v55 = vadd.f32 %v11731_v21, %v7592_v15  ;;  %v7584_v45 = vadd.f32 %v7583_v14, %v11706_v48  ;;  %v11824_v33 = vpop.f32.mrf.mxu0 }
 0x49f   :  { %v9547_v32 = vpop.f32.mrf.mxu1 }
 0x4a0   :  { %7910 = vst [vmem:[#allocation4 + $0x88] sm:$0xff] %v7846_v12  ;;  %v7851_v54 = vmax.f32 %v7787_v55, 0.0  ;;  %v7785_v11 = vadd.f32 %v11731_v21, %v7584_v45  ;;  %v7595_v40 = vadd.f32 %v9547_v32, %v11708_v34  ;;  %v11830_v32 = vpop.f32.mrf.mxu0 }
 0x4a1   :  { %v7586_v42 = vpop.f32.mrf.mxu1 }
 0x4a2   :  { %7915 = vst [vmem:[#allocation4 + $0xb0] sm:$0xff] %v7851_v54  ;;  %v7849_v59 = vmax.f32 %v7785_v11, 0.0  ;;  %v7788_v44 = vadd.f32 %v11731_v21, %v7595_v40  ;;  %v7587_v57 = vadd.f32 %v7586_v42, %v11710_v13 }
 0x4a3   :  { %v9550_v26 = vpop.f32.mrf.mxu1 }
 0x4a4   :  { %7913 = vst [vmem:[#allocation4 + $0xa0] sm:$0xff] %v7849_v59  ;;  %v7852_v49 = vmax.f32 %v7788_v44, 0.0  ;;  %v7786_v48 = vadd.f32 %v11731_v21, %v7587_v57  ;;  %v7608_v60 = vadd.f32 %v9550_v26, %v11712_v16  ;;  %v11836_v57 = vpop.f32.mrf.mxu0 }
 0x4a5   :  { %v7599_v1 = vpop.f32.mrf.mxu1 }
 0x4a6   :  { %7916 = vst [vmem:[#allocation4 + $0xb8] sm:$0xff] %v7852_v49  ;;  %v7850_v34 = vmax.f32 %v7786_v48, 0.0  ;;  %v7791_v47 = vadd.f32 %v11731_v21, %v7608_v60  ;;  %v7600_v5 = vadd.f32 %v7599_v1, %v11714_v8 }
 0x4a7   :  { %v9551_v51 = vpop.f32.mrf.mxu1 }
 0x4a8   :  { %7914 = vst [vmem:[#allocation4 + $0xa8] sm:$0xff] %v7850_v34  ;;  %v7855_v41 = vmax.f32 %v7791_v47, 0.0  ;;  %v7789_v13 = vadd.f32 %v11731_v21, %v7600_v5  ;;  %v7611_v19 = vadd.f32 %v9551_v51, %v11716_v46  ;;  %v11842_v47 = vpop.f32.mrf.mxu0 }
 0x4a9   :  { %v7602_v4 = vpop.f32.mrf.mxu1 }
 0x4aa   :  { %7919 = vst [vmem:[#allocation4 + $0xd0] sm:$0xff] %v7855_v41  ;;  %v7853_v16 = vmax.f32 %v7789_v13, 0.0  ;;  %v7792_v62 = vadd.f32 %v11731_v21, %v7611_v19  ;;  %v7603_v6 = vadd.f32 %v7602_v4, %v11718_v10 }
 0x4ab   :  { %v9554_v7 = vpop.f32.mrf.mxu1 }
 0x4ac   :  { %7917 = vst [vmem:[#allocation4 + $0xc0] sm:$0xff] %v7853_v16  ;;  %v7856_v29 = vmax.f32 %v7792_v62, 0.0  ;;  %v7790_v8 = vadd.f32 %v11731_v21, %v7603_v6  ;;  %v7624_v27 = vadd.f32 %v9554_v7, %v11720_v24  ;;  %v11848_v16 = vpop.f32.mrf.mxu0 }
 0x4ad   :  { %v7615_v18 = vpop.f32.mrf.mxu1 }
 0x4ae   :  { %7920 = vst [vmem:[#allocation4 + $0xd8] sm:$0xff] %v7856_v29  ;;  %v7854_v46 = vmax.f32 %v7790_v8, 0.0  ;;  %v7795_v20 = vadd.f32 %v11731_v21, %v7624_v27  ;;  %v7616_v2 = vadd.f32 %v7615_v18, %v11722_v39  ;;  %v11854_v18 = vpop.f32.mrf.mxu0 }
 0x4af   :  { %v9555_v52 = vpop.f32.mrf.mxu1 }
 0x4b0   :  { %7918 = vst [vmem:[#allocation4 + $0xc8] sm:$0xff] %v7854_v46  ;;  %v7859_v28 = vmax.f32 %v7795_v20, 0.0  ;;  %v7793_v10 = vadd.f32 %v11731_v21, %v7616_v2  ;;  %v7627_v25 = vadd.f32 %v9555_v52, %v11724_v17 }
 0x4b1   :  { %v7618_v63 = vpop.f32.mrf.mxu1 }
 0x4b2   :  { %7923 = vst [vmem:[#allocation4 + $0xf0] sm:$0xff] %v7859_v28  ;;  %v7857_v24 = vmax.f32 %v7793_v10, 0.0  ;;  %v7796_v61 = vadd.f32 %v11731_v21, %v7627_v25  ;;  %v7619_v15 = vadd.f32 %v7618_v63, %v11726_v36  ;;  %v7323_v25 = vpop.f32.mrf.mxu0 }
 0x4b3   :  { %v9558_v14 = vpop.f32.mrf.mxu1 }
 0x4b4   :  { %7921 = vst [vmem:[#allocation4 + $0xe0] sm:$0xff] %v7857_v24  ;;  %v7860_v12 = vmax.f32 %v7796_v61, 0.0  ;;  %v7794_v39 = vadd.f32 %v11731_v21, %v7619_v15  ;;  %v7640_v55 = vadd.f32 %v9558_v14, %v11734_v23 }
 0x4b5   :  { %v7631_v45 = vpop.f32.mrf.mxu1 }
 0x4b6   :  { %7924 = vst [vmem:[#allocation4 + $0xf8] sm:$0xff] %v7860_v12  ;;  %v7858_v17 = vmax.f32 %v7794_v39, 0.0  ;;  %v7799_v54 = vadd.f32 %v11731_v21, %v7640_v55  ;;  %v7632_v11 = vadd.f32 %v7631_v45, %v11740_v37  ;;  %v9513_v39 = vpop.f32.mrf.mxu0 }
 0x4b7   :  { %v9559_v40 = vpop.f32.mrf.mxu1 }
 0x4b8   :  { %7922 = vst [vmem:[#allocation4 + $0xe8] sm:$0xff] %v7858_v17  ;;  %v7863_v42 = vmax.f32 %v7799_v54, 0.0  ;;  %v7797_v36 = vadd.f32 %v11731_v21, %v7632_v11  ;;  %v7643_v59 = vadd.f32 %v9559_v40, %v11746_v9 }
 0x4b9   :  { %v7634_v44 = vpop.f32.mrf.mxu1 }
 0x4ba   :  { %7927 = vst [vmem:[#allocation4 + $0x110] sm:$0xff] %v7863_v42  ;;  %v7861_v23 = vmax.f32 %v7797_v36, 0.0  ;;  %v7800_v26 = vadd.f32 %v11731_v21, %v7643_v59  ;;  %v7635_v49 = vadd.f32 %v7634_v44, %v11752_v0  ;;  %v7326_v42 = vpop.f32.mrf.mxu0 }
 0x4bb   :  { %v9562_v48 = vpop.f32.mrf.mxu1 }
 0x4bc   :  { %7925 = vst [vmem:[#allocation4 + $0x100] sm:$0xff] %v7861_v23  ;;  %v7864_v60 = vmax.f32 %v7800_v26, 0.0  ;;  %v7798_v37 = vadd.f32 %v11731_v21, %v7635_v49  ;;  %v7656_v1 = vadd.f32 %v9562_v48, %v11758_v22  ;;  %v9516_v48 = vpop.f32.mrf.mxu0 }
 0x4bd   :  { %v7647_v34 = vpop.f32.mrf.mxu1 }
 0x4be   :  { %7928 = vst [vmem:[#allocation4 + $0x118] sm:$0xff] %v7864_v60  ;;  %v7862_v9 = vmax.f32 %v7798_v37, 0.0  ;;  %v7803_v5 = vadd.f32 %v11731_v21, %v7656_v1  ;;  %v7648_v51 = vadd.f32 %v7647_v34, %v11764_v35 }
 0x4bf   :  { %v9563_v41 = vpop.f32.mrf.mxu1 }
 0x4c0   :  { %7926 = vst [vmem:[#allocation4 + $0x108] sm:$0xff] %v7862_v9  ;;  %v7867_v13 = vmax.f32 %v7803_v5, 0.0  ;;  %v7801_v0 = vadd.f32 %v11731_v21, %v7648_v51  ;;  %v7659_v19 = vadd.f32 %v9563_v41, %v11770_v56  ;;  %v7339_v51 = vpop.f32.mrf.mxu0 }
 0x4c1   :  { %v7650_v4 = vpop.f32.mrf.mxu1 }
 0x4c2   :  { %7931 = vst [vmem:[#allocation4 + $0x130] sm:$0xff] %v7867_v13  ;;  %v7865_v22 = vmax.f32 %v7801_v0, 0.0  ;;  %v7804_v62 = vadd.f32 %v11731_v21, %v7659_v19  ;;  %v7651_v6 = vadd.f32 %v7650_v4, %v11776_v50 }
 0x4c3   :  { %v9566_v7 = vpop.f32.mrf.mxu1 }
 0x4c4   :  { %7929 = vst [vmem:[#allocation4 + $0x120] sm:$0xff] %v7865_v22  ;;  %v7868_v29 = vmax.f32 %v7804_v62, 0.0  ;;  %v7802_v35 = vadd.f32 %v11731_v21, %v7651_v6  ;;  %v7672_v8 = vadd.f32 %v9566_v7, %v11782_v53  ;;  %v9517_v62 = vpop.f32.mrf.mxu0 }
 0x4c5   :  { %v7663_v27 = vpop.f32.mrf.mxu1 }
 0x4c6   :  { %7932 = vst [vmem:[#allocation4 + $0x138] sm:$0xff] %v7868_v29  ;;  %v7866_v56 = vmax.f32 %v7802_v35, 0.0  ;;  %v7807_v46 = vadd.f32 %v11731_v21, %v7672_v8  ;;  %v7664_v20 = vadd.f32 %v7663_v27, %v11788_v3 }
 0x4c7   :  { %v9567_v2 = vpop.f32.mrf.mxu1 }
 0x4c8   :  { %7930 = vst [vmem:[#allocation4 + $0x128] sm:$0xff] %v7866_v56  ;;  %v7871_v52 = vmax.f32 %v7807_v46, 0.0  ;;  %v7805_v50 = vadd.f32 %v11731_v21, %v7664_v20  ;;  %v7675_v28 = vadd.f32 %v9567_v2, %v11794_v31  ;;  %v7342_v56 = vpop.f32.mrf.mxu0 }
 0x4c9   :  { %v7666_v10 = vpop.f32.mrf.mxu1 }
 0x4ca   :  { %7935 = vst [vmem:[#allocation4 + $0x150] sm:$0xff] %v7871_v52  ;;  %v7869_v53 = vmax.f32 %v7805_v50, 0.0  ;;  %v7808_v63 = vadd.f32 %v11731_v21, %v7675_v28  ;;  %v7667_v24 = vadd.f32 %v7666_v10, %v11800_v38  ;;  %v9520_v10 = vpop.f32.mrf.mxu0 }
 0x4cb   :  { %v9570_v61 = vpop.f32.mrf.mxu1 }
 0x4cc   :  { %7933 = vst [vmem:[#allocation4 + $0x140] sm:$0xff] %v7869_v53  ;;  %v7872_v15 = vmax.f32 %v7808_v63, 0.0  ;;  %v7806_v3 = vadd.f32 %v11731_v21, %v7667_v24  ;;  %v7688_v14 = vadd.f32 %v9570_v61, %v11806_v30 }
 0x4cd   :  { %v7679_v12 = vpop.f32.mrf.mxu1 }
 0x4ce   :  { %7936 = vst [vmem:[#allocation4 + $0x158] sm:$0xff] %v7872_v15  ;;  %v7870_v55 = vmax.f32 %v7806_v3, 0.0  ;;  %v7811_v31 = vadd.f32 %v11731_v21, %v7688_v14  ;;  %v7680_v45 = vadd.f32 %v7679_v12, %v11812_v58  ;;  %v7355_v12 = vpop.f32.mrf.mxu0 }
 0x4cf   :  { %v9571_v17 = vpop.f32.mrf.mxu1 }
 0x4d0   :  { %7934 = vst [vmem:[#allocation4 + $0x148] sm:$0xff] %v7870_v55  ;;  %v7875_v54 = vmax.f32 %v7811_v31, 0.0  ;;  %v7809_v38 = vadd.f32 %v11731_v21, %v7680_v45  ;;  %v7691_v11 = vadd.f32 %v9571_v17, %v11818_v43 }
 0x4d1   :  { %v7682_v40 = vpop.f32.mrf.mxu1 }
 0x4d2   :  { %7939 = vst [vmem:[#allocation4 + $0x170] sm:$0xff] %v7875_v54  ;;  %v7873_v36 = vmax.f32 %v7809_v38, 0.0  ;;  %v7812_v30 = vadd.f32 %v11731_v21, %v7691_v11  ;;  %v7683_v59 = vadd.f32 %v7682_v40, %v11824_v33  ;;  %v9521_v40 = vpop.f32.mrf.mxu0 }
 0x4d3   :  { %v9574_v44 = vpop.f32.mrf.mxu1 }
 0x4d4   :  { %7937 = vst [vmem:[#allocation4 + $0x160] sm:$0xff] %v7873_v36  ;;  %v7876_v23 = vmax.f32 %v7812_v30, 0.0  ;;  %v7810_v58 = vadd.f32 %v11731_v21, %v7683_v59  ;;  %v7704_v26 = vadd.f32 %v9574_v44, %v11830_v32 }
 0x4d5   :  { %v7695_v49 = vpop.f32.mrf.mxu1 }
 0x4d6   :  { %7940 = vst [vmem:[#allocation4 + $0x178] sm:$0xff] %v7876_v23  ;;  %v7874_v60 = vmax.f32 %v7810_v58, 0.0  ;;  %v7815_v43 = vadd.f32 %v11731_v21, %v7704_v26  ;;  %v7696_v37 = vadd.f32 %v7695_v49, %v11836_v57  ;;  %v7358_v49 = vpop.f32.mrf.mxu0 }
 0x4d7   :  { %v9575_v1 = vpop.f32.mrf.mxu1 }
 0x4d8   :  { %7938 = vst [vmem:[#allocation4 + $0x168] sm:$0xff] %v7874_v60  ;;  %v7879_v34 = vmax.f32 %v7815_v43, 0.0  ;;  %v7813_v33 = vadd.f32 %v11731_v21, %v7696_v37  ;;  %v7707_v9 = vadd.f32 %v9575_v1, %v11842_v47 }
 0x4d9   :  { %v7698_v5 = vpop.f32.mrf.mxu1 }
 0x4da   :  { %7943 = vst [vmem:[#allocation4 + $0x190] sm:$0xff] %v7879_v34  ;;  %v7877_v41 = vmax.f32 %v7813_v33, 0.0  ;;  %v7816_v32 = vadd.f32 %v11731_v21, %v7707_v9  ;;  %v7699_v13 = vadd.f32 %v7698_v5, %v11848_v16 }
 0x4db   :  { %v9578_v0 = vpop.f32.mrf.mxu1 }
 0x4dc   :  { %7941 = vst [vmem:[#allocation4 + $0x180] sm:$0xff] %v7877_v41  ;;  %v7880_v19 = vmax.f32 %v7816_v32, 0.0  ;;  %v7814_v57 = vadd.f32 %v11731_v21, %v7699_v13  ;;  %v7720_v4 = vadd.f32 %v9578_v0, %v11854_v18 }
 0x4dd   :  { %v7711_v22 = vpop.f32.mrf.mxu1 }
 0x4de   :  { %7944 = vst [vmem:[#allocation4 + $0x198] sm:$0xff] %v7880_v19  ;;  %v7878_v6 = vmax.f32 %v7814_v57, 0.0  ;;  %v7819_v47 = vadd.f32 %v11731_v21, %v7720_v4  ;;  %v7712_v7 = vadd.f32 %v7711_v22, %v7323_v25 }
 0x4df   :  { %v9579_v29 = vpop.f32.mrf.mxu1 }
 0x4e0   :  { %7942 = vst [vmem:[#allocation4 + $0x188] sm:$0xff] %v7878_v6  ;;  %v7883_v35 = vmax.f32 %v7819_v47, 0.0  ;;  %v7817_v8 = vadd.f32 %v11731_v21, %v7712_v7  ;;  %v7723_v16 = vadd.f32 %v9579_v29, %v9513_v39 }
 0x4e1   :  { %v7714_v27 = vpop.f32.mrf.mxu1 }
 0x4e2   :  { %7947 = vst [vmem:[#allocation4 + $0x1b0] sm:$0xff] %v7883_v35  ;;  %v7881_v46 = vmax.f32 %v7817_v8, 0.0  ;;  %v7820_v20 = vadd.f32 %v11731_v21, %v7723_v16  ;;  %v7715_v18 = vadd.f32 %v7714_v27, %v7326_v42 }
 0x4e3   :  { %v9582_v2 = vpop.f32.mrf.mxu1 }
 0x4e4   :  { %7945 = vst [vmem:[#allocation4 + $0x1a0] sm:$0xff] %v7881_v46  ;;  %v7884_v52 = vmax.f32 %v7820_v20, 0.0  ;;  %v7818_v50 = vadd.f32 %v11731_v21, %v7715_v18  ;;  %v7736_v28 = vadd.f32 %v9582_v2, %v9516_v48 }
 0x4e5   :  { %v7727_v25 = vpop.f32.mrf.mxu1 }
 0x4e6   :  { %7948 = vst [vmem:[#allocation4 + $0x1b8] sm:$0xff] %v7884_v52  ;;  %v7882_v53 = vmax.f32 %v7818_v50, 0.0  ;;  %v7823_v63 = vadd.f32 %v11731_v21, %v7736_v28  ;;  %v7728_v24 = vadd.f32 %v7727_v25, %v7339_v51 }
 0x4e7   :  { %v9583_v61 = vpop.f32.mrf.mxu1 }
 0x4e8   :  { %7946 = vst [vmem:[#allocation4 + $0x1a8] sm:$0xff] %v7882_v53  ;;  %v7887_v15 = vmax.f32 %v7823_v63, 0.0  ;;  %v7821_v3 = vadd.f32 %v11731_v21, %v7728_v24  ;;  %v7739_v14 = vadd.f32 %v9583_v61, %v9517_v62 }
 0x4e9   :  { %v7730_v39 = vpop.f32.mrf.mxu1 }
 0x4ea   :  { %7951 = vst [vmem:[#allocation4 + $0x1d0] sm:$0xff] %v7887_v15  ;;  %v7885_v55 = vmax.f32 %v7821_v3, 0.0  ;;  %v7824_v31 = vadd.f32 %v11731_v21, %v7739_v14  ;;  %v7731_v45 = vadd.f32 %v7730_v39, %v7342_v56 }
 0x4eb   :  { %v9586_v17 = vpop.f32.mrf.mxu1 }
 0x4ec   :  { %7949 = vst [vmem:[#allocation4 + $0x1c0] sm:$0xff] %v7885_v55  ;;  %v7888_v54 = vmax.f32 %v7824_v31, 0.0  ;;  %v7822_v38 = vadd.f32 %v11731_v21, %v7731_v45  ;;  %v7752_v11 = vadd.f32 %v9586_v17, %v9520_v10 }
 0x4ed   :  { %v7743_v42 = vpop.f32.mrf.mxu1 }
 0x4ee   :  { %7952 = vst [vmem:[#allocation4 + $0x1d8] sm:$0xff] %v7888_v54  ;;  %v7886_v36 = vmax.f32 %v7822_v38, 0.0  ;;  %v7827_v30 = vadd.f32 %v11731_v21, %v7752_v11  ;;  %v7744_v59 = vadd.f32 %v7743_v42, %v7355_v12 }
 0x4ef   :  { %v9587_v44 = vpop.f32.mrf.mxu1 }
 0x4f0   :  { %7950 = vst [vmem:[#allocation4 + $0x1c8] sm:$0xff] %v7886_v36  ;;  %v7891_v23 = vmax.f32 %v7827_v30, 0.0  ;;  %v7825_v58 = vadd.f32 %v11731_v21, %v7744_v59  ;;  %v7755_v26 = vadd.f32 %v9587_v44, %v9521_v40 }
 0x4f1   :  { %v7746_v48 = vpop.f32.mrf.mxu1 }
 0x4f2   :  { %7955 = vst [vmem:[#allocation4 + $0x1f0] sm:$0xff] %v7891_v23  ;;  %v7889_v60 = vmax.f32 %v7825_v58, 0.0  ;;  %v7828_v43 = vadd.f32 %v11731_v21, %v7755_v26  ;;  %v7747_v37 = vadd.f32 %v7746_v48, %v7358_v49 }
 0x4f4   :  { %7953 = vst [vmem:[#allocation4 + $0x1e0] sm:$0xff] %v7889_v60  ;;  %v7892_v1 = vmax.f32 %v7828_v43, 0.0  ;;  %v7826_v34 = vadd.f32 %v11731_v21, %v7747_v37 }
 0x4f6   :  { %7956 = vst [vmem:[#allocation4 + $0x1f8] sm:$0xff] %v7892_v1  ;;  %v7890_v33 = vmax.f32 %v7826_v34, 0.0 }
 0x4f8   :  { %7954 = vst [vmem:[#allocation4 + $0x1e8] sm:$0xff] %v7890_v33 }
 0x4f9   :  { %9680 = shalt.err (!%p9677_p4)
}
 0x4fa   :  { %s9693_s13 = smov 128   ;;  %s9694_s14 = smov 8  }
 0x4fb   :  { %7968 = dma.vmem_to_hbm [thread:$0]  %s7963_s12, 8192, %s11903_s8, [#allocation5], %s9693_s13, %s9693_s13, %s9694_s14  }
 0x4fc   :  { %9689 = dma.done.wait [#allocation5], 8192  }
 0x4fd   :  { %9690 = vsyncadd [#allocation5], 4294959104 }
 0x4fe   :  { %7972 = vsyncpa [#allocation5], 1 }

</bundles_post_ra>
